<compile_context>
chip_gen: v7x
topology: tpu7x:2x2x1
jax: 0.10.0
libtpu: 0.0.40
codegen_flags: <defaults>
</compile_context>

<pallas_src>
import jax
import jax.numpy as jnp
from jax.experimental import pallas as pl
from jax.experimental.pallas import tpu as pltpu

IN_FEATURES = 2048
OUT_FEATURES = 5
OUT_PAD = 128          # lane-dense output width (multiple of 128); do not shrink/widen
DEFAULT_TM = 1024      # batch tile cap: 2 x 8 MiB x-buffers + 1 MiB weight + 1 MiB out


def _round_up(x, m):
    return ((x + m - 1) // m) * m


def _cdiv(a, b):
    return (a + b - 1) // b


def linear_kernel(x_ref, w_ref, b_ref, o_ref):
    """One tile: y = x @ W_padded + b_padded (f32 accumulate on the MXU)."""
    o_ref[...] = (
        jnp.dot(
            x_ref[...],
            w_ref[...],
            preferred_element_type=jnp.float32,
            precision=jax.lax.Precision.HIGHEST,
        )
        + b_ref[...]
    ).astype(o_ref.dtype)


def prepare_classifier_params(weight, bias, dtype=jnp.float32):
    """Pad PyTorch-layout params to lane-dense shapes ONCE (not per forward call).

    weight: (5, 2048) -> (2048, 128) transposed + zero-padded
    bias:   (5,)      -> (1, 128)    zero-padded
    """
    w_pad = (
        jnp.zeros((IN_FEATURES, OUT_PAD), dtype)
        .at[:, :OUT_FEATURES]
        .set(weight.T.astype(dtype))
    )
    b_pad = (
        jnp.zeros((1, OUT_PAD), dtype)
        .at[:, :OUT_FEATURES]
        .set(bias.astype(dtype))
    )
    return w_pad, b_pad


def classifier_forward(x, w_pad, b_pad, *, tm=DEFAULT_TM):
    """y = x @ weight.T + bias, with weight/bias pre-padded by prepare_classifier_params.

    x:     (N, 2048) float32
    w_pad: (2048, 128) float32
    b_pad: (1, 128)    float32
    returns (N, 5) float32
    """
    n, k = x.shape
    assert k == IN_FEATURES
    assert w_pad.shape == (IN_FEATURES, OUT_PAD)
    assert b_pad.shape == (1, OUT_PAD)

    # Batch tile: <= tm rows (VMEM budget), multiple of 8 (sublane rule), and
    # <= ceil(n/2) so there are >= 2 grid blocks whenever possible (v7x megacore).
    tm_eff = max(8, min(tm, _round_up(_cdiv(n, 2), 8)))
    grid = (_cdiv(n, tm_eff),)  # ragged last block handled by Pallas masking; no jnp.pad of x

    cost = pl.CostEstimate(
        flops=2 * n * IN_FEATURES * OUT_PAD,
        transcendentals=0,
        bytes_accessed=(
            n * IN_FEATURES * 4          # x reads (dominant)
            + IN_FEATURES * OUT_PAD * 4  # weight (resident, read once)
            + n * OUT_PAD * 4            # output writes
        ),
    )

    out = pl.pallas_call(
        linear_kernel,
        out_shape=jax.ShapeDtypeStruct((n, OUT_PAD), x.dtype),
        grid_spec=pltpu.PrefetchScalarGridSpec(
            num_scalar_prefetch=0,
            grid=grid,
            in_specs=[
                # x tile: tm_eff contiguous rows, all 2048 features (dense DMA).
                pl.BlockSpec((tm_eff, IN_FEATURES), lambda i: (i, 0)),
                # weight: whole padded matrix, same block every step -> resident,
                # single-buffered (no point double-buffering a constant operand).
                pl.BlockSpec(
                    (IN_FEATURES, OUT_PAD),
                    lambda i: (0, 0),
                    pipeline_mode=pl.Buffered(1),
                ),
                # bias: whole padded row, resident, single-buffered.
                pl.BlockSpec(
                    (1, OUT_PAD),
                    lambda i: (0, 0),
                    pipeline_mode=pl.Buffered(1),
                ),
            ],
            out_specs=pl.BlockSpec((tm_eff, OUT_PAD), lambda i: (i, 0)),
        ),
        compiler_params=pltpu.CompilerParams(
            dimension_semantics=("parallel",),          # independent batch tiles
            vmem_limit_bytes=32 * 1024 * 1024,          # covers TM=1024 on all gens
        ),
        cost_estimate=cost,
    )(x, w_pad, b_pad)

    # Strip the zero-padded output lanes.
    return out[:, :OUT_FEATURES]


if __name__ == "__main__":
    key = jax.random.PRNGKey(0)
    kx, kw, kb = jax.random.split(key, 3)

    batch = 2
    # Deterministic synthetic parameters (PyTorch-style uniform init bound).
    bound = 1.0 / (IN_FEATURES ** 0.5)
    weight = jax.random.uniform(
        kw, (OUT_FEATURES, IN_FEATURES), jnp.float32, -bound, bound
    )
    bias = jax.random.uniform(kb, (OUT_FEATURES,), jnp.float32, -bound, bound)

    x = jax.random.normal(kx, (batch, IN_FEATURES), jnp.float32)

    # Hoisted out of the per-call path: pad the params once.
    w_pad, b_pad = prepare_classifier_params(weight, bias)

    fwd = jax.jit(classifier_forward)
    y = jax.block_until_ready(fwd(x, w_pad, b_pad))

    # Cross-check against plain JAX reference.
    y_ref = x @ weight.T + bias
    assert y.shape == (batch, OUT_FEATURES)
    assert jnp.allclose(y, y_ref, atol=1e-4, rtol=1e-4)

    print("KERNEL_OK")
</pallas_src>

<mosaic_0001>
module attributes {stable_mosaic.version = 11 : i64} {
  func.func @linear_kernel(%arg0: i32, %arg1: memref<8x2048xf32, #tpu.memory_space<vmem>>, %arg2: memref<2048x128xf32, #tpu.memory_space<vmem>>, %arg3: memref<1x128xf32, #tpu.memory_space<vmem>>, %arg4: memref<8x128xf32, #tpu.memory_space<vmem>>) attributes {dimension_semantics = [#tpu.dimension_semantics<parallel>], iteration_bounds = array<i64: 1>, scalar_prefetch = 0 : i64, scratch_operands = 0 : i64, tpu.core_type = #tpu.core_type<tc>, window_params = [{transform_indices = @transform_0, window_bounds = array<i64: 8, 2048>}, {pipeline_mode = #tpu.pipeline_mode<synchronous>, transform_indices = @transform_1, window_bounds = array<i64: 2048, 128>}, {pipeline_mode = #tpu.pipeline_mode<synchronous>, transform_indices = @transform_2, window_bounds = array<i64: 1, 128>}, {transform_indices = @transform_3, window_bounds = array<i64: 8, 128>}]} {
    %c0 = arith.constant 0 : index
    %c0_0 = arith.constant 0 : index
    %0 = vector.load %arg1[%c0, %c0_0] : memref<8x2048xf32, #tpu.memory_space<vmem>>, vector<8x2048xf32>
    %c0_1 = arith.constant 0 : index
    %c0_2 = arith.constant 0 : index
    %1 = vector.load %arg2[%c0_1, %c0_2] : memref<2048x128xf32, #tpu.memory_space<vmem>>, vector<2048x128xf32>
    %cst = arith.constant dense<0.000000e+00> : vector<8x128xf32>
    %2 = tpu.matmul %0, %1, %cst {dimension_numbers = #tpu.dot_dimension_numbers<[1], [0], [0], [1], [0, 0, 1, 1], [], []>, precision = #tpu.contract_precision<fp32>} : vector<8x2048xf32>, vector<2048x128xf32>, vector<8x128xf32> -> vector<8x128xf32>
    %c0_3 = arith.constant 0 : index
    %c0_4 = arith.constant 0 : index
    %3 = vector.load %arg3[%c0_3, %c0_4] : memref<1x128xf32, #tpu.memory_space<vmem>>, vector<1x128xf32>
    %4 = vector.broadcast %3 : vector<1x128xf32> to vector<8x128xf32>
    %5 = arith.addf %2, %4 : vector<8x128xf32>
    %c0_5 = arith.constant 0 : index
    %c0_6 = arith.constant 0 : index
    %6 = vector.load %arg4[%c0_5, %c0_6] : memref<8x128xf32, #tpu.memory_space<vmem>>, vector<8x128xf32>
    tpu.vector_store %arg4[%c0_5, %c0_6], %5 {strides = array<i32>} : memref<8x128xf32, #tpu.memory_space<vmem>>, vector<8x128xf32>,
    return
  }
  func.func @transform_0(%arg0: i32) -> (i32, i32) {
    %c0_i32 = arith.constant 0 : i32
    %c0_i32_0 = arith.constant 0 : i32
    return %arg0, %c0_i32 : i32, i32
  }
  func.func @transform_1(%arg0: i32) -> (i32, i32) {
    %c0_i32 = arith.constant 0 : i32
    %c0_i32_0 = arith.constant 0 : i32
    %c0_i32_1 = arith.constant 0 : i32
    return %c0_i32, %c0_i32_0 : i32, i32
  }
  func.func @transform_2(%arg0: i32) -> (i32, i32) {
    %c0_i32 = arith.constant 0 : i32
    %c0_i32_0 = arith.constant 0 : i32
    %c0_i32_1 = arith.constant 0 : i32
    return %c0_i32, %c0_i32_0 : i32, i32
  }
  func.func @transform_3(%arg0: i32) -> (i32, i32) {
    %c0_i32 = arith.constant 0 : i32
    %c0_i32_0 = arith.constant 0 : i32
    return %arg0, %c0_i32 : i32, i32
  }
}

</mosaic_0001>

<bundles_post_ra>
// kernel: classifier_forward.1
= control target key start
LH: loop header
LB: loop body
LE: loop exit
PB: predicated region body
PF: predicated region fallthrough
CT: control target
= control target key end

     0   :  { %8 = vsyncpa [#allocation3], 0  ;;  %s16357_s0 = inlined_call_operand.hbm [shape: f32[2,2048], index: 0, kind: input, shape index: {}]   ;;  %s16358_s1 = inlined_call_operand.hbm [shape: f32[2048,128], index: 1, kind: input, shape index: {}]   ;;  %s16359_s2 = inlined_call_operand.vmem [shape: f32[1,128], index: 2, kind: input, shape index: {}]   ;;  %s16360_s3 = inlined_call_operand.hbm [shape: f32[2,128], index: 3, kind: output, shape index: {}]  }
   0x1   :  { %9 = vsyncpa [#allocation6], 0 }
   0x2   :  { %10 = vsyncpa [#allocation4], 0 }
   0x3   :  { %15 = vsyncadd [#allocation3], 1536  ;;  %s10711_s12 = smov [#allocation2]   ;;  %s10639_s16 = scalar_lea.hbm %s16357_s0, 512 }
   0x4   :  { %s16_s13 = sshll.u32 %s10711_s12, 4  ;;  %p10640_p0 = scmp.ne.s32.totalorder %s16357_s0, %s10639_s16  ;;  %s17_s13 = int_to_ptr.vmem [resolvable:$true] %s16_s13 }
   0x5   :  { %p10643_p1 = scmp.lt.u32.totalorder %s10639_s16, %s16357_s0 }
   0x7   :  { %p10645_p2 = pnand %p10643_p1, %p10640_p0 }
   0x9   :  { %10648 = shalt.err (!%p10645_p2)
}
   0xa   :  { %s10649_s21 = scalar_lea.vmem %s17_s13, 512  ;;  %s10653_s22 = scalar_lea.vmem %s17_s13, 2048 }
   0xb   :  { %p10650_p3 = scmp.ne.s32.totalorder %s17_s13, %s10649_s21  ;;  %p10654_p4 = scmp.lt.s32.totalorder %s17_s13, %s17_s13 }
   0xc   :  { %p10655_p5 = scmp.lt.s32.totalorder %s10653_s22, %s10649_s21 }
   0xe   :  { %p10656_p6 = por %p10655_p5, %p10654_p4 }
  0x10   :  { %p10657_p7 = pnand %p10656_p6, %p10650_p3 }
  0x12   :  { %10660 = shalt.err (!%p10657_p7)
}
  0x13   :  { %s10712_s23 = smov 512   ;;  %s10713_s24 = smov 32  }
  0x14   :  { %22 = dma.hbm_to_vmem [thread:$0]  %s16357_s0, 512, %s17_s13, [#allocation3], %s10712_s23, %s10712_s23, %s10713_s24  }
  0x15   :  { %s10714_s27 = smov [#allocation5]   ;;  %s10661_s4 = scalar_lea.hbm %s16358_s1, 32768 }
  0x16   :  { %s28_s28 = sshll.u32 %s10714_s27, 4  ;;  %p10662_p8 = scmp.ne.s32.totalorder %s16358_s1, %s10661_s4  ;;  %s29_s28 = int_to_ptr.vmem [resolvable:$true] %s28_s28 }
  0x17   :  { %p10665_p9 = scmp.lt.u32.totalorder %s10661_s4, %s16358_s1 }
  0x19   :  { %p10667_p10 = pnand %p10665_p9, %p10662_p8 }
  0x1b   :  { %10670 = shalt.err (!%p10667_p10)
}
  0x1c   :  { %s10671_s9 = scalar_lea.vmem %s29_s28, 32768  ;;  %p10676_p12 = scmp.lt.s32.totalorder %s29_s28, %s29_s28 }
  0x1d   :  { %p10672_p11 = scmp.ne.s32.totalorder %s29_s28, %s10671_s9  ;;  %p10677_p13 = scmp.lt.s32.totalorder %s10671_s9, %s10671_s9 }
  0x1f   :  { %p10678_p0 = por %p10677_p13, %p10676_p12 }
  0x21   :  { %p10679_p1 = pnand %p10678_p0, %p10672_p11 }
  0x23   :  { %10682 = shalt.err (!%p10679_p1)
}
  0x24   :  { %s10715_s0 = smov 128   ;;  %s10716_s10 = smov 8  }
  0x25   :  { %34 = dma.hbm_to_vmem [thread:$0]  %s16358_s1, 32768, %s29_s28, [#allocation6], %s10715_s0, %s10715_s0, %s10716_s10  }
  0x26   :  { %10705 = dma.done.wait [#allocation3], 2048  }
  0x27   :  { %10706 = vsyncadd [#allocation3], 4294965248 }
  0x28   :  { %10707 = dma.done.wait [#allocation6], 32768  }
  0x29   :  { %10708 = vsyncadd [#allocation6], 4294934528  ;;  %v10717_v0 = vmov 1983009808   ;;  %v345_v2 = vlaneseq  ;;  %v75_v3 = vld [vmem:[#allocation5 + $0x80] sm:$0xff]  ;;  %v76_v4 = vld [vmem:[#allocation5 + $0x88] sm:$0xff] }
  0x2a   :  { %v343_v1 = vunpack.c.l.s4 %v10717_v0  ;;  %v59_v5 = vld [vmem:[#allocation5] sm:$0xff]  ;;  %v547_v8 = vand.u32 4294901760, %v75_v3  ;;  %v550_v9 = vand.u32 4294901760, %v76_v4  ;;  %v60_v10 = vld [vmem:[#allocation5 + $0x8] sm:$0xff]  ;;  %v77_v12 = vld [vmem:[#allocation5 + $0x90] sm:$0xff] }
  0x2b   :  { %v346_v7 = vshrl.u32 %v345_v2, 7  ;;  %v499_v11 = vand.u32 4294901760, %v59_v5  ;;  %v78_v13 = vld [vmem:[#allocation5 + $0x98] sm:$0xff]  ;;  %v502_v14 = vand.u32 4294901760, %v60_v10  ;;  %v553_v15 = vand.u32 4294901760, %v77_v12  ;;  %v61_v17 = vld [vmem:[#allocation5 + $0x10] sm:$0xff] }
  0x2c   :  { %v344_v6 = vunpack.c.0.s8 %v343_v1  ;;  %v556_v16 = vand.u32 4294901760, %v78_v13  ;;  %v62_v18 = vld [vmem:[#allocation5 + $0x18] sm:$0xff]  ;;  %v10765_v19 = vpack.c.bf16 %v550_v9, %v547_v8  ;;  %v505_v21 = vand.u32 4294901760, %v61_v17  ;;  %v79_v23 = vld [vmem:[#allocation5 + $0xa0] sm:$0xff]  ;;  %v80_v24 = vld [vmem:[#allocation5 + $0xa8] sm:$0xff] }
  0x2d   :  { %v10767_v20 = vsub.f32 %v59_v5, %v499_v11  ;;  %v508_v22 = vand.u32 4294901760, %v62_v18  ;;  %v10769_v25 = vpack.c.bf16 %v502_v14, %v499_v11  ;;  %v10771_v26 = vsub.f32 %v60_v10, %v502_v14  ;;  %v63_v28 = vld [vmem:[#allocation5 + $0x20] sm:$0xff]  ;;  %v64_v29 = vld [vmem:[#allocation5 + $0x28] sm:$0xff]  ;;  %v81_v43 = vld [vmem:[#allocation5 + $0xb0] sm:$0xff] }
  0x2e   :  { %v10773_v27 = vpack.c.bf16 %v556_v16, %v553_v15  ;;  %v10775_v30 = vsub.s32 %v344_v6, %v346_v7  ;;  %9095 = vmatprep.subr.bf16.mxu0 %v10765_v19  ;;  %v10778_v31 = vsub.f32 %v77_v12, %v553_v15  ;;  %v10780_v32 = vsub.f32 %v78_v13, %v556_v16  ;;  %v82_v48 = vld [vmem:[#allocation5 + $0xb8] sm:$0xff]  ;;  %v65_v61 = vld [vmem:[#allocation5 + $0x30] sm:$0xff]  ;;  %v83_v11 = vld [vmem:[#allocation5 + $0xc0] sm:$0xff] }
  0x2f   :  { %v10782_v33 = vpack.c.bf16 %v508_v22, %v505_v21  ;;  %v10784_v34 = vsub.f32 %v61_v17, %v505_v21  ;;  %9097 = vmatpush3.bf16.msra.mxu0 %v10769_v25  ;;  %v559_v35 = vand.u32 4294901760, %v79_v23  ;;  %v562_v36 = vand.u32 4294901760, %v80_v24  ;;  %v66_v62 = vld [vmem:[#allocation5 + $0x38] sm:$0xff]  ;;  %v84_v12 = vld [vmem:[#allocation5 + $0xc8] sm:$0xff]  ;;  %v67_v17 = vld [vmem:[#allocation5 + $0x40] sm:$0xff] }
  0x30   :  { %16924 = vst [vmem:[#allocation11_spill] sm:$0xff] %v10775_v30  ;;  %v10787_v37 = vsub.f32 %v75_v3, %v547_v8  ;;  %v10789_v38 = vsub.f32 %v76_v4, %v550_v9  ;;  %9099 = vmatprep.subr.bf16.mxu0 %v10773_v27  ;;  %v511_v39 = vand.u32 4294901760, %v63_v28  ;;  %v514_v40 = vand.u32 4294901760, %v64_v29 }
  0x31   :  { %v16376_v41 = vand.u32 4294901760, %v10767_v20  ;;  %v16374_v42 = vand.u32 4294901760, %v10771_v26  ;;  %v10794_v44 = vsub.f32 %v62_v18, %v508_v22  ;;  %v10796_v45 = vpack.c.bf16 %v562_v36, %v559_v35 }
  0x32   :  { %v10798_v46 = vsub.f32 %v79_v23, %v559_v35  ;;  %v16379_v47 = vand.u32 4294901760, %v10787_v37  ;;  %v10801_v49 = vsub.f32 %v80_v24, %v562_v36  ;;  %v16377_v50 = vand.u32 4294901760, %v10789_v38  ;;  %v68_v36 = vld [vmem:[#allocation5 + $0x48] sm:$0xff] }
  0x33   :  { %v10804_v51 = vpack.c.bf16 %v514_v40, %v511_v39  ;;  %v10806_v52 = vsub.f32 %v63_v28, %v511_v39  ;;  %9101 = vmatpush3.bf16.msra.mxu0 %v10782_v33  ;;  %v614_v54 = vsub.f32 %v10767_v20, %v16376_v41  ;;  %v621_v55 = vsub.f32 %v10771_v26, %v16374_v42 }
  0x34   :  { %v726_v53 = vsub.f32 %v10787_v37, %v16379_v47  ;;  %v565_v56 = vand.u32 4294901760, %v81_v43  ;;  %9103 = vmatprep.subr.bf16.mxu0 %v10796_v45  ;;  %v733_v57 = vsub.f32 %v10789_v38, %v16377_v50  ;;  %v568_v58 = vand.u32 4294901760, %v82_v48 }
  0x35   :  { %v16372_v59 = vand.u32 4294901760, %v10778_v31  ;;  %v16371_v60 = vand.u32 4294901760, %v10780_v32  ;;  %v10824_v0 = vsub.f32 %v64_v29, %v514_v40  ;;  %v615_v1 = vand.u32 4294901760, %v614_v54 }
  0x36   :  { %v727_v63 = vand.u32 4294901760, %v726_v53  ;;  %v622_v2 = vand.u32 4294901760, %v621_v55  ;;  %v734_v3 = vand.u32 4294901760, %v733_v57  ;;  %v10826_v4 = vpack.c.bf16 %v568_v58, %v565_v56 }
  0x37   :  { %v10828_v5 = vsub.f32 %v81_v43, %v565_v56  ;;  %v740_v6 = vsub.f32 %v10778_v31, %v16372_v59  ;;  %9105 = vmatpush3.bf16.msra.mxu0 %v10804_v51  ;;  %v747_v8 = vsub.f32 %v10780_v32, %v16371_v60  ;;  %v517_v9 = vand.u32 4294901760, %v65_v61  ;;  %v89_v60 = vld [vmem:[#allocation5 + $0xf0] sm:$0xff]  ;;  %v90_v59 = vld [vmem:[#allocation5 + $0xf8] sm:$0xff] }
  0x38   :  { %v9128_v7 = vpack.c.bf16 %v622_v2, %v615_v1  ;;  %v520_v10 = vand.u32 4294901760, %v66_v62  ;;  %v9126_v13 = vpack.c.bf16 %v734_v3, %v727_v63  ;;  %9107 = vmatprep.subr.bf16.mxu0 %v10826_v4  ;;  %v16369_v15 = vand.u32 4294901760, %v10784_v34  ;;  %v85_v1 = vld [vmem:[#allocation5 + $0xd0] sm:$0xff]  ;;  %v86_v2 = vld [vmem:[#allocation5 + $0xd8] sm:$0xff] }
  0x39   :  { %v741_v14 = vand.u32 4294901760, %v740_v6  ;;  %v16367_v16 = vand.u32 4294901760, %v10794_v44  ;;  %v10840_v18 = vsub.f32 %v82_v48, %v568_v58  ;;  %v748_v21 = vand.u32 4294901760, %v747_v8  ;;  %v69_v8 = vld [vmem:[#allocation5 + $0x50] sm:$0xff] }
  0x3a   :  { %v10842_v22 = vpack.c.bf16 %v520_v10, %v517_v9  ;;  %v10844_v23 = vsub.f32 %v65_v61, %v517_v9  ;;  %9127 = vmatprep.subr.bf16.mxu1 %v9126_v13  ;;  %v628_v24 = vsub.f32 %v10784_v34, %v16369_v15  ;;  %v571_v29 = vand.u32 4294901760, %v83_v11 }
  0x3b   :  { %v635_v28 = vsub.f32 %v10794_v44, %v16367_v16  ;;  %v574_v35 = vand.u32 4294901760, %v84_v12  ;;  %9129 = vmatpush3.bf16.msra.mxu1 %v9128_v7  ;;  %v9130_v39 = vpack.c.bf16 %v748_v21, %v741_v14  ;;  %v16366_v40 = vand.u32 4294901760, %v10798_v46 }
  0x3c   :  { %9109 = vmatpush3.bf16.msra.mxu0 %v10842_v22  ;;  %v16364_v43 = vand.u32 4294901760, %v10801_v49  ;;  %v523_v48 = vand.u32 4294901760, %v67_v17  ;;  %v10855_v53 = vsub.f32 %v66_v62, %v520_v10  ;;  %v629_v54 = vand.u32 4294901760, %v628_v24 }
  0x3d   :  { %v636_v55 = vand.u32 4294901760, %v635_v28  ;;  %v10857_v56 = vpack.c.bf16 %v574_v35, %v571_v29  ;;  %9131 = vmatprep.subr.bf16.mxu1 %v9130_v39  ;;  %v10859_v57 = vsub.f32 %v83_v11, %v571_v29  ;;  %v754_v58 = vsub.f32 %v10798_v46, %v16366_v40  ;;  %v70_v28 = vld [vmem:[#allocation5 + $0x58] sm:$0xff] }
  0x3e   :  { %v761_v61 = vsub.f32 %v10801_v49, %v16364_v43  ;;  %v526_v63 = vand.u32 4294901760, %v68_v36  ;;  %v10868_v3 = vsub.f32 %v84_v12, %v574_v35  ;;  %v16362_v6 = vand.u32 4294901760, %v10806_v52 }
  0x3f   :  { %v9132_v62 = vpack.c.bf16 %v636_v55, %v629_v54  ;;  %9111 = vmatprep.subr.bf16.mxu0 %v10857_v56  ;;  %v16361_v7 = vand.u32 4294901760, %v10824_v0  ;;  %v755_v9 = vand.u32 4294901760, %v754_v58  ;;  %v10874_v13 = vsub.f32 %v67_v17, %v523_v48 }
  0x40   :  { %v762_v10 = vand.u32 4294901760, %v761_v61  ;;  %v10872_v11 = vpack.c.bf16 %v526_v63, %v523_v48  ;;  %v642_v14 = vsub.f32 %v10806_v52, %v16362_v6  ;;  %v577_v21 = vand.u32 4294901760, %v85_v1  ;;  %v88_v6 = vld [vmem:[#allocation5 + $0xe8] sm:$0xff] }
  0x41   :  { %9133 = vmatpush3.bf16.msra.mxu1 %v9132_v62  ;;  %v649_v12 = vsub.f32 %v10824_v0, %v16361_v7  ;;  %v580_v24 = vand.u32 4294901760, %v86_v2  ;;  %v16363_v35 = vand.u32 4294901760, %v10828_v5  ;;  %v16365_v17 = vand.u32 4294901760, %v10840_v18  ;;  %v87_v7 = vld [vmem:[#allocation5 + $0xe0] sm:$0xff] }
  0x42   :  { %v9134_v29 = vpack.c.bf16 %v762_v10, %v755_v9  ;;  %9113 = vmatpush3.bf16.msra.mxu0 %v10872_v11  ;;  %v529_v39 = vand.u32 4294901760, %v69_v8  ;;  %v10885_v48 = vsub.f32 %v68_v36, %v526_v63  ;;  %v643_v54 = vand.u32 4294901760, %v642_v14 }
  0x43   :  { %v650_v55 = vand.u32 4294901760, %v649_v12  ;;  %v10887_v58 = vpack.c.bf16 %v580_v24, %v577_v21  ;;  %v10889_v61 = vsub.f32 %v85_v1, %v577_v21  ;;  %v768_v62 = vsub.f32 %v10828_v5, %v16363_v35  ;;  %v71_v12 = vld [vmem:[#allocation5 + $0x60] sm:$0xff] }
  0x44   :  { %9135 = vmatprep.subr.bf16.mxu1 %v9134_v29  ;;  %v775_v9 = vsub.f32 %v10840_v18, %v16365_v17  ;;  %v532_v10 = vand.u32 4294901760, %v70_v28  ;;  %v10898_v63 = vsub.f32 %v86_v2, %v580_v24  ;;  %v16368_v14 = vand.u32 4294901760, %v10844_v23  ;;  %v72_v17 = vld [vmem:[#allocation5 + $0x68] sm:$0xff] }
  0x45   :  { %16925 = vst [vmem:[#allocation12_spill] sm:$0xff] %v10887_v58  ;;  %v9136_v36 = vpack.c.bf16 %v650_v55, %v643_v54  ;;  %9115 = vmatprep.subr.bf16.mxu0 %v10887_v58  ;;  %v16370_v1 = vand.u32 4294901760, %v10855_v53  ;;  %v769_v21 = vand.u32 4294901760, %v768_v62  ;;  %v10904_v43 = vsub.f32 %v69_v8, %v529_v39 }
  0x46   :  { %v776_v29 = vand.u32 4294901760, %v775_v9  ;;  %v10902_v35 = vpack.c.bf16 %v532_v10, %v529_v39  ;;  %v656_v54 = vsub.f32 %v10844_v23, %v16368_v14  ;;  %v583_v24 = vand.u32 4294901760, %v87_v7 }
  0x47   :  { %9137 = vmatpush3.bf16.msra.mxu1 %v9136_v36  ;;  %v663_v2 = vsub.f32 %v10855_v53, %v16370_v1  ;;  %v586_v55 = vand.u32 4294901760, %v88_v6  ;;  %v16373_v62 = vand.u32 4294901760, %v10859_v57  ;;  %v16375_v8 = vand.u32 4294901760, %v10868_v3 }
  0x48   :  { %16926 = vst [vmem:[#allocation13_spill] sm:$0xff] %v10902_v35  ;;  %v9138_v40 = vpack.c.bf16 %v776_v29, %v769_v21  ;;  %9117 = vmatpush3.bf16.msra.mxu0 %v10902_v35  ;;  %v535_v39 = vand.u32 4294901760, %v71_v12  ;;  %v10915_v9 = vsub.f32 %v70_v28, %v532_v10  ;;  %v657_v36 = vand.u32 4294901760, %v656_v54  ;;  %v73_v54 = vld [vmem:[#allocation5 + $0x70] sm:$0xff] }
  0x49   :  { %v664_v16 = vand.u32 4294901760, %v663_v2  ;;  %v10917_v14 = vpack.c.bf16 %v586_v55, %v583_v24  ;;  %v10919_v15 = vsub.f32 %v87_v7, %v583_v24  ;;  %v782_v21 = vsub.f32 %v10859_v57, %v16373_v62 }
  0x4a   :  { %9139 = vmatprep.subr.bf16.mxu1 %v9138_v40  ;;  %v789_v29 = vsub.f32 %v10868_v3, %v16375_v8  ;;  %v538_v1 = vand.u32 4294901760, %v72_v17  ;;  %v10928_v10 = vsub.f32 %v88_v6, %v586_v55  ;;  %v16378_v40 = vand.u32 4294901760, %v10874_v13  ;;  %v74_v8 = vld [vmem:[#allocation5 + $0x78] sm:$0xff] }
  0x4b   :  { %16927 = vst [vmem:[#allocation14_spill] sm:$0xff] %v10917_v14  ;;  %v9140_v28 = vpack.c.bf16 %v664_v16, %v657_v36  ;;  %9119 = vmatprep.subr.bf16.mxu0 %v10917_v14  ;;  %v16380_v7 = vand.u32 4294901760, %v10885_v48  ;;  %v783_v2 = vand.u32 4294901760, %v782_v21  ;;  %v10934_v42 = vsub.f32 %v71_v12, %v535_v39 }
  0x4c   :  { %v790_v24 = vand.u32 4294901760, %v789_v29  ;;  %v10932_v62 = vpack.c.bf16 %v538_v1, %v535_v39  ;;  %v670_v16 = vsub.f32 %v10874_v13, %v16378_v40  ;;  %v589_v55 = vand.u32 4294901760, %v89_v60 }
  0x4d   :  { %9141 = vmatpush3.bf16.msra.mxu1 %v9140_v28  ;;  %v677_v6 = vsub.f32 %v10885_v48, %v16380_v7  ;;  %v592_v36 = vand.u32 4294901760, %v90_v59  ;;  %v16383_v21 = vand.u32 4294901760, %v10889_v61  ;;  %v16384_v12 = vand.u32 4294901760, %v10898_v63 }
  0x4e   :  { %16928 = vst [vmem:[#allocation15_spill] sm:$0xff] %v10932_v62  ;;  %v9142_v41 = vpack.c.bf16 %v790_v24, %v783_v2  ;;  %9121 = vmatpush3.bf16.msra.mxu0 %v10932_v62  ;;  %v541_v39 = vand.u32 4294901760, %v73_v54  ;;  %v10945_v29 = vsub.f32 %v72_v17, %v538_v1  ;;  %v671_v28 = vand.u32 4294901760, %v670_v16  ;;  %v10957_v62 = vld [vmem:[#allocation2] sm:$0xff] }
  0x4f   :  { %v678_v50 = vand.u32 4294901760, %v677_v6  ;;  %v10947_v40 = vpack.c.bf16 %v592_v36, %v589_v55  ;;  %v10949_v47 = vsub.f32 %v89_v60, %v589_v55  ;;  %v796_v2 = vsub.f32 %v10889_v61, %v16383_v21  ;;  %16931 = vst [vmem:[#allocation18_spill] sm:$0xff] %v10957_v62  ;;  %v10959_v17 = vld [vmem:[#allocation2 + $0x20] sm:$0xff] }
  0x50   :  { %9143 = vmatprep.subr.bf16.mxu1 %v9142_v41  ;;  %v803_v24 = vsub.f32 %v10898_v63, %v16384_v12  ;;  %v544_v7 = vand.u32 4294901760, %v74_v8  ;;  %16932 = vst [vmem:[#allocation19_spill] sm:$0xff] %v10959_v17  ;;  %v10962_v16 = vsub.f32 %v90_v59, %v592_v36  ;;  %v16389_v41 = vand.u32 4294901760, %v10904_v43  ;;  %v10966_v6 = vld [vmem:[#allocation2 + $0x40] sm:$0xff] }
  0x51   :  { %16929 = vst [vmem:[#allocation16_spill] sm:$0xff] %v10947_v40  ;;  %16930 = vst [vmem:[#allocation17_spill] sm:$0xff] %v10949_v47  ;;  %v9144_v1 = vpack.c.bf16 %v678_v50, %v671_v28  ;;  %9123 = vmatprep.subr.bf16.mxu0 %v10947_v40  ;;  %v16390_v60 = vand.u32 4294901760, %v10915_v9  ;;  %v10968_v55 = vld [vmem:[#allocation2 + $0x60] sm:$0xff]  ;;  %v797_v21 = vand.u32 4294901760, %v796_v2  ;;  %v10972_v35 = vsub.f32 %v73_v54, %v541_v39 }
  0x52   :  { %16933 = vst [vmem:[#allocation20_spill] sm:$0xff] %v10962_v16  ;;  %16934 = vst [vmem:[#allocation21_spill] sm:$0xff] %v10966_v6  ;;  %v804_v12 = vand.u32 4294901760, %v803_v24  ;;  %v10970_v14 = vpack.c.bf16 %v544_v7, %v541_v39  ;;  %v684_v50 = vsub.f32 %v10904_v43, %v16389_v41  ;;  %v338_v36 = vcombine.low %v10957_v62, %v10959_v17 }
  0x53   :  { %16935 = vst [vmem:[#allocation22_spill] sm:$0xff] %v10968_v55  ;;  %9145 = vmatpush3.bf16.msra.mxu1 %v9144_v1  ;;  %v691_v59 = vsub.f32 %v10915_v9, %v16390_v60  ;;  %v340_v54 = vcombine.low %v10966_v6, %v10968_v55  ;;  %v16395_v24 = vand.u32 4294901760, %v10919_v15  ;;  %v16397_v40 = vand.u32 4294901760, %v10928_v10 }
  0x54   :  { %16936 = vst [vmem:[#allocation23_spill] sm:$0xff] %v10970_v14  ;;  %v9146_v2 = vpack.c.bf16 %v804_v12, %v797_v21  ;;  %9125 = vmatpush3.bf16.msra.mxu0 %v10970_v14  ;;  %v685_v1 = vand.u32 4294901760, %v684_v50  ;;  %v348_v60 = vrot.slane %v338_v36, %v10775_v30  ;;  %v9158_v12 = vpack.c.bf16 %v10789_v38, %v10787_v37 }
  0x55   :  { %v692_v41 = vand.u32 4294901760, %v691_v59  ;;  %v362_v28 = vrot.slane %v340_v54, %v10775_v30  ;;  %v810_v21 = vsub.f32 %v10919_v15, %v16395_v24  ;;  %v16398_v39 = vand.u32 4294901760, %v10934_v42 }
  0x56   :  { %9147 = vmatprep.subr.bf16.mxu1 %v9146_v2  ;;  %v10999_v55 = vsub.f32 %v74_v8, %v544_v7  ;;  %v817_v59 = vsub.f32 %v10928_v10, %v16397_v40  ;;  %v16399_v36 = vand.u32 4294901760, %v10945_v29  ;;  %9159 = vmatprep.subr.bf16.mxu0 %v9158_v12  ;;  %v823_v7 = vand.u32 4294901760, %v10949_v47 }
  0x57   :  { %v9148_v50 = vpack.c.bf16 %v692_v41, %v685_v1  ;;  %v371_v2 = vcombine.high %v348_v60, %v362_v28  ;;  %v811_v54 = vand.u32 4294901760, %v810_v21  ;;  %v370_v6 = vcombine.low %v348_v60, %v362_v28 }
  0x58   :  { %v698_v24 = vsub.f32 %v10934_v42, %v16398_v39  ;;  %v818_v17 = vand.u32 4294901760, %v817_v59  ;;  %v705_v8 = vsub.f32 %v10945_v29, %v16399_v36  ;;  %v830_v41 = vand.u32 4294901760, %v10962_v16 }
  0x59   :  { %9149 = vmatpush3.bf16.msra.mxu1 %v9148_v50  ;;  %v11013_v1 = vand.u32 4294901760, %v371_v2  ;;  %v11015_v40 = vand.u32 4294901760, %v370_v6  ;;  %v824_v12 = vsub.f32 %v10949_v47, %v823_v7  ;;  %v711_v36 = vand.u32 4294901760, %v10972_v35 }
  0x5a   :  { %v699_v21 = vand.u32 4294901760, %v698_v24  ;;  %v9150_v60 = vpack.c.bf16 %v818_v17, %v811_v54  ;;  %v706_v28 = vand.u32 4294901760, %v705_v8  ;;  %v831_v50 = vsub.f32 %v10962_v16, %v830_v41 }
  0x5b   :  { %16937 = vst [vmem:[#allocation24_spill] sm:$0xff] %v11013_v1  ;;  %v595_v59 = vsub.f32 %v371_v2, %v11013_v1  ;;  %v11021_v39 = vsub.f32 %v370_v6, %v11015_v40  ;;  %v718_v62 = vand.u32 4294901760, %v10999_v55  ;;  %835 = vmatprep.mubr.f32.mxu1 %v11013_v1  ;;  %v825_v24 = vand.u32 4294901760, %v824_v12 }
  0x5c   :  { %9151 = vmatprep.subr.bf16.mxu1 %v9150_v60  ;;  %v9152_v30 = vpack.c.bf16 %v706_v28, %v699_v21  ;;  %v832_v17 = vand.u32 4294901760, %v831_v50  ;;  %v712_v14 = vsub.f32 %v10972_v35, %v711_v36  ;;  %v9160_v28 = vpack.c.bf16 %v10771_v26, %v10767_v20 }
  0x5d   :  { %v596_v54 = vand.u32 4294901760, %v595_v59  ;;  %v16411_v8 = vand.u32 4294901760, %v11021_v39  ;;  %v719_v2 = vsub.f32 %v10999_v55, %v718_v62  ;;  %v9162_v50 = vpack.c.bf16 %v10780_v32, %v10778_v31 }
  0x5e   :  { %9153 = vmatpush3.bf16.msra.mxu1 %v9152_v30  ;;  %v9154_v6 = vpack.c.bf16 %v832_v17, %v825_v24  ;;  %v713_v58 = vand.u32 4294901760, %v712_v14  ;;  %v9164_v30 = vpack.c.bf16 %v10794_v44, %v10784_v34  ;;  %v9166_v24 = vpack.c.bf16 %v10801_v49, %v10798_v46 }
  0x5f   :  { %v597_v16 = vsub.f32 %v595_v59, %v596_v54  ;;  %v603_v47 = vsub.f32 %v11021_v39, %v16411_v8  ;;  %v720_v1 = vand.u32 4294901760, %v719_v2  ;;  %v16938_v14 = vand.u32 4294901760, %v10787_v37 }
  0x60   :  { %9155 = vmatprep.subr.bf16.mxu1 %v9154_v6  ;;  %v16940_v17 = vand.u32 4294901760, %v10767_v20  ;;  %v16942_v2 = vand.u32 4294901760, %v10778_v31  ;;  %v16943_v6 = vand.u32 4294901760, %v10780_v32  ;;  %v16944_v37 = vand.u32 4294901760, %v10784_v34 }
  0x61   :  { %v598_v21 = vand.u32 4294901760, %v597_v16  ;;  %v604_v60 = vand.u32 4294901760, %v603_v47  ;;  %v9156_v12 = vpack.c.bf16 %v720_v1, %v713_v58  ;;  %v16939_v16 = vand.u32 4294901760, %v10789_v38 }
  0x62   :  { %v16941_v58 = vand.u32 4294901760, %v10771_v26  ;;  %v11056_v8 = vpack.c.bf16 %v16943_v6, %v16942_v2  ;;  %v16945_v38 = vand.u32 4294901760, %v10794_v44  ;;  %v16946_v20 = vand.u32 4294901760, %v10798_v46 }
  0x63   :  { %599 = vmatprep.mubr.f32.mxu0 %v598_v21  ;;  %9157 = vmatpush3.bf16.msra.mxu1 %v9156_v12  ;;  %v11044_v47 = vpack.c.bf16 %v16939_v16, %v16938_v14  ;;  %v16947_v26 = vand.u32 4294901760, %v10801_v49  ;;  %v16948_v31 = vand.u32 4294901760, %v10806_v52  ;;  %v16949_v32 = vand.u32 4294901760, %v10824_v0 }
  0x64   :  { %v11050_v1 = vpack.c.bf16 %v16941_v58, %v16940_v17  ;;  %605 = vmatmul.mubr.f32.vlgmr.msra.gmra.mrb[0].mxu0 %v604_v60  ;;  %9191 = vmatprep.subr.bf16.mxu1 %v10765_v19  ;;  %v11063_v21 = vpack.c.bf16 %v16945_v38, %v16944_v37  ;;  %v16950_v34 = vand.u32 4294901760, %v10828_v5  ;;  %v16951_v44 = vand.u32 4294901760, %v10840_v18 }
  0x65   :  { %v11069_v12 = vpack.c.bf16 %v16947_v26, %v16946_v20  ;;  %v11075_v14 = vpack.c.bf16 %v16949_v32, %v16948_v31  ;;  %9161 = vmatpush3.bf16.msra.mxu0 %v9160_v28  ;;  %972 = vmatprep.mubr.f32.mxu0 %v595_v59  ;;  %v16952_v46 = vand.u32 4294901760, %v10844_v23  ;;  %v16953_v49 = vand.u32 4294901760, %v10855_v53 }
  0x66   :  { %v11081_v60 = vpack.c.bf16 %v16951_v44, %v16950_v34  ;;  %v16954_v17 = vand.u32 4294901760, %v10859_v57  ;;  %v16955_v58 = vand.u32 4294901760, %v10868_v3  ;;  %9163 = vmatprep.subr.bf16.mxu0 %v9162_v50  ;;  %837 = vmatmul.mubr.f32.vlgmr.msra.gmra.mrb[0].mxu1 %v11015_v40  ;;  %v16956_v59 = vand.u32 4294901760, %v10874_v13 }
  0x67   :  { %v11087_v16 = vpack.c.bf16 %v16953_v49, %v16952_v46  ;;  %v16957_v28 = vand.u32 4294901760, %v10885_v48  ;;  %v16958_v37 = vand.u32 4294901760, %v10889_v61  ;;  %v16959_v38 = vand.u32 4294901760, %v10898_v63  ;;  %9193 = vmatpush3.bf16.msra.mxu1 %v10769_v25  ;;  %1079 = vmatprep.mubr.f32.mxu1 %v596_v54 }
  0x68   :  { %v11093_v2 = vpack.c.bf16 %v16955_v58, %v16954_v17  ;;  %v16960_v26 = vand.u32 4294901760, %v10904_v43  ;;  %v16961_v31 = vand.u32 4294901760, %v10915_v9  ;;  %v16962_v50 = vand.u32 4294901760, %v10919_v15  ;;  %9195 = vmatprep.subr.bf16.mxu1 %v10773_v27 }
  0x69   :  { %v11100_v6 = vpack.c.bf16 %v16957_v28, %v16956_v59  ;;  %v11106_v20 = vpack.c.bf16 %v16959_v38, %v16958_v37  ;;  %v16963_v34 = vand.u32 4294901760, %v10928_v10  ;;  %v16964_v46 = vand.u32 4294901760, %v10934_v42  ;;  %9165 = vmatpush3.bf16.msra.mxu0 %v9164_v30  ;;  %v109_v37 = vld [vmem:[#allocation5 + $0x190] sm:$0xff]  ;;  %v16970_v38 = vld [vmem:[#allocation14_spill] sm:$0xff] }
  0x6a   :  { %v11112_v32 = vpack.c.bf16 %v16961_v31, %v16960_v26  ;;  %v16965_v49 = vand.u32 4294901760, %v10945_v29  ;;  %v11127_v58 = vpack.c.bf16 %v830_v41, %v823_v7  ;;  %v11130_v59 = vpack.c.bf16 %v718_v62, %v711_v36  ;;  %9167 = vmatprep.subr.bf16.mxu0 %v9166_v24  ;;  %v16969_v24 = vld [vmem:[#allocation13_spill] sm:$0xff] }
  0x6b   :  { %v11119_v44 = vpack.c.bf16 %v16963_v34, %v16962_v50  ;;  %v9168_v54 = vpack.c.bf16 %v10824_v0, %v10806_v52  ;;  %v9170_v28 = vpack.c.bf16 %v10840_v18, %v10828_v5  ;;  %9197 = vmatpush3.bf16.msra.mxu1 %v10782_v33  ;;  %v9172_v7 = vpack.c.bf16 %v10855_v53, %v10844_v23  ;;  %v107_v5 = vld [vmem:[#allocation5 + $0x180] sm:$0xff]  ;;  %v108_v18 = vld [vmem:[#allocation5 + $0x188] sm:$0xff]  ;;  %v110_v26 = vld [vmem:[#allocation5 + $0x198] sm:$0xff] }
  0x6c   :  { %v11125_v17 = vpack.c.bf16 %v16965_v49, %v16964_v46  ;;  %9199 = vmatprep.subr.bf16.mxu1 %v10796_v45  ;;  %v9174_v62 = vpack.c.bf16 %v10868_v3, %v10859_v57  ;;  %v9176_v52 = vpack.c.bf16 %v10885_v48, %v10874_v13  ;;  %v9178_v0 = vpack.c.bf16 %v10898_v63, %v10889_v61  ;;  %v91_v57 = vld [vmem:[#allocation5 + $0x100] sm:$0xff]  ;;  %v92_v3 = vld [vmem:[#allocation5 + $0x108] sm:$0xff]  ;;  %v16966_v61 = vld [vmem:[#allocation12_spill] sm:$0xff] }
  0x6d   :  { %9169 = vmatpush3.bf16.msra.mxu0 %v9168_v54  ;;  %v9180_v23 = vpack.c.bf16 %v10915_v9, %v10904_v43  ;;  %v9182_v53 = vpack.c.bf16 %v10928_v10, %v10919_v15  ;;  %v1409_v13 = vand.u32 4294901760, %v107_v5  ;;  %v1412_v48 = vand.u32 4294901760, %v108_v18  ;;  %v16967_v43 = vld [vmem:[#allocation17_spill] sm:$0xff]  ;;  %v16968_v9 = vld [vmem:[#allocation20_spill] sm:$0xff]  ;;  %v16971_v34 = vld [vmem:[#allocation15_spill] sm:$0xff] }
  0x6e   :  { %9171 = vmatprep.subr.bf16.mxu0 %v9170_v28  ;;  %v9184_v63 = vpack.c.bf16 %v10945_v29, %v10934_v42  ;;  %v1361_v36 = vand.u32 4294901760, %v91_v57  ;;  %v1364_v41 = vand.u32 4294901760, %v92_v3  ;;  %v9186_v30 = vpack.c.bf16 %v16968_v9, %v16967_v43  ;;  %v11173_v49 = vld [vmem:[#allocation5 + $0x110] sm:$0xff] }
  0x6f   :  { %9201 = vmatpush3.bf16.msra.mxu1 %v10804_v51  ;;  %v11161_v15 = vsub.f32 %v107_v5, %v1409_v13  ;;  %v11163_v10 = vsub.f32 %v108_v18, %v1412_v48  ;;  %v9188_v42 = vpack.c.bf16 %v10999_v55, %v10972_v35  ;;  %v1415_v50 = vand.u32 4294901760, %v109_v37  ;;  %16972 = vst [vmem:[#allocation12_spill] sm:$0xff] %v11173_v49  ;;  %v11180_v35 = vld [vmem:[#allocation5 + $0x1a0] sm:$0xff]  ;;  %v11182_v55 = vld [vmem:[#allocation5 + $0x1a8] sm:$0xff]  ;;  %v11204_v9 = vld [vmem:[#allocation5 + $0x1b0] sm:$0xff] }
  0x70   :  { %9203 = vmatprep.subr.bf16.mxu1 %v10826_v4  ;;  %v11168_v29 = vsub.f32 %v91_v57, %v1361_v36  ;;  %v11170_v31 = vsub.f32 %v92_v3, %v1364_v41  ;;  %v1418_v46 = vand.u32 4294901760, %v110_v26  ;;  %16975 = vst [vmem:[#allocation20_spill] sm:$0xff] %v11180_v35  ;;  %16976 = vst [vmem:[#allocation13_spill] sm:$0xff] %v11182_v55  ;;  %v16979_v57 = vld [vmem:[#allocation23_spill] sm:$0xff] }
  0x71   :  { %9173 = vmatpush3.bf16.msra.mxu0 %v9172_v7  ;;  %v16412_v54 = vand.u32 4294901760, %v11161_v15  ;;  %v16413_v28 = vand.u32 4294901760, %v11163_v10  ;;  %v16973_v7 = vld [vmem:[#allocation16_spill] sm:$0xff]  ;;  %v11189_v18 = vsub.f32 %v109_v37, %v1415_v50  ;;  %v11210_v37 = vpack.c.bf16 %v1412_v48, %v1409_v13 }
  0x72   :  { %9175 = vmatprep.subr.bf16.mxu0 %v9174_v62  ;;  %v11178_v62 = vld [vmem:[#allocation5 + $0x118] sm:$0xff]  ;;  %v16415_v5 = vand.u32 4294901760, %v11170_v31  ;;  %v11195_v3 = vsub.f32 %v110_v26, %v1418_v46  ;;  %16980 = vst [vmem:[#allocation16_spill] sm:$0xff] %v11204_v9  ;;  %v16416_v26 = vand.u32 4294901760, %v11180_v35  ;;  %v16985_v48 = vand.u32 4294901760, %v11021_v39 }
  0x73   :  { %9205 = vmatpush3.bf16.msra.mxu1 %v10842_v22  ;;  %16974 = vst [vmem:[#allocation17_spill] sm:$0xff] %v11178_v62  ;;  %v1588_v43 = vsub.f32 %v11161_v15, %v16412_v54  ;;  %16982 = vst [vmem:[#allocation25_spill] sm:$0xff] %v11210_v37  ;;  %v11237_v54 = vld [vmem:[#allocation5 + $0x130] sm:$0xff] }
  0x74   :  { %9207 = vmatprep.subr.bf16.mxu1 %v10857_v56  ;;  %v1483_v13 = vsub.f32 %v11170_v31, %v16415_v5  ;;  %16987 = vst [vmem:[#allocation26_spill] sm:$0xff] %v11237_v54  ;;  %v11274_v5 = vld [vmem:[#allocation5 + $0x1c0] sm:$0xff] }
  0x75   :  { %9177 = vmatpush3.bf16.msra.mxu0 %v9176_v52  ;;  %v11184_v52 = vld [vmem:[#allocation5 + $0x120] sm:$0xff]  ;;  %16993 = vst [vmem:[#allocation29_spill] sm:$0xff] %v11274_v5 }
  0x76   :  { %9179 = vmatprep.subr.bf16.mxu0 %v9178_v0  ;;  %16977 = vst [vmem:[#allocation14_spill] sm:$0xff] %v11184_v52  ;;  %v16414_v0 = vand.u32 4294901760, %v11168_v29 }
  0x77   :  { %9209 = vmatpush3.bf16.msra.mxu1 %v10872_v11 }
  0x78   :  { %9211 = vmatprep.subr.bf16.mxu1 %v16966_v61 }
  0x79   :  { %9181 = vmatpush3.bf16.msra.mxu0 %v9180_v23 }
  0x7a   :  { %9183 = vmatprep.subr.bf16.mxu0 %v9182_v53  ;;  %v11192_v53 = vld [vmem:[#allocation5 + $0x128] sm:$0xff] }
  0x7b   :  { %9213 = vmatpush3.bf16.msra.mxu1 %v16969_v24  ;;  %16978 = vst [vmem:[#allocation15_spill] sm:$0xff] %v11192_v53 }
  0x7c   :  { %9215 = vmatprep.subr.bf16.mxu1 %v16970_v38 }
  0x7d   :  { %9185 = vmatpush3.bf16.msra.mxu0 %v9184_v63  ;;  %v16983_v63 = vld [vmem:[#allocation24_spill] sm:$0xff] }
  0x7e   :  { %9187 = vmatprep.subr.bf16.mxu0 %v9186_v30  ;;  %v11206_v30 = vld [vmem:[#allocation5 + $0x1b8] sm:$0xff] }
  0x7f   :  { %9217 = vmatpush3.bf16.msra.mxu1 %v16971_v34  ;;  %16981 = vst [vmem:[#allocation23_spill] sm:$0xff] %v11206_v30 }
  0x80   :  { %9219 = vmatprep.subr.bf16.mxu1 %v16973_v7 }
  0x81   :  { %9189 = vmatpush3.bf16.msra.mxu0 %v9188_v42  ;;  %v16417_v42 = vand.u32 4294901760, %v11182_v55 }
  0x82   :  { %9223 = vmatprep.subr.bf16.mxu0 %v11044_v47  ;;  %v1595_v47 = vsub.f32 %v11163_v10, %v16413_v28  ;;  %v11217_v28 = vpack.c.bf16 %v1364_v41, %v1361_v36  ;;  %v11247_v41 = vld [vmem:[#allocation5 + $0x138] sm:$0xff] }
  0x83   :  { %9221 = vmatpush3.bf16.msra.mxu1 %v16979_v57  ;;  %16989 = vst [vmem:[#allocation27_spill] sm:$0xff] %v11247_v41 }
  0x84   :  { %975 = vmatmul.mubr.f32.vlgmr.msra.gmra.mrb[2].mxu0 %v11021_v39  ;;  %9255 = vmatprep.subr.bf16.mxu1 %v10765_v19  ;;  %16984 = vst [vmem:[#allocation24_spill] sm:$0xff] %v11217_v28  ;;  %v1476_v19 = vsub.f32 %v11168_v29, %v16414_v0  ;;  %v11250_v0 = vpack.c.bf16 %v1418_v46, %v1415_v50 }
  0x85   :  { %9225 = vmatpush3.bf16.msra.mxu0 %v11050_v1  ;;  %1249 = vmatprep.mubr.f32.mxu0 %v16983_v63  ;;  %v16986_v1 = vand.u32 4294901760, %v11173_v49 }
  0x86   :  { %9227 = vmatprep.subr.bf16.mxu0 %v11056_v8  ;;  %1083 = vmatmul.mubr.f32.vlgmr.msra.gmra.mrb[2].mxu1 %v16985_v48  ;;  %v16988_v8 = vand.u32 4294901760, %v11178_v62  ;;  %v1589_v48 = vand.u32 4294901760, %v1588_v43  ;;  %16990 = vst [vmem:[#allocation28_spill] sm:$0xff] %v11250_v0  ;;  %v1477_v46 = vand.u32 4294901760, %v1476_v19  ;;  %v16997_v19 = vand.u32 4294901760, %v11189_v18 }
  0x87   :  { %v11232_v36 = vsub.f32 %v11173_v49, %v16986_v1  ;;  %9257 = vmatpush3.bf16.msra.mxu1 %v10769_v25  ;;  %1353 = vmatprep.mubr.f32.mxu1 %v16983_v63  ;;  %v1596_v1 = vand.u32 4294901760, %v1595_v47  ;;  %v11255_v25 = vsub.f32 %v11180_v35, %v16416_v26  ;;  %v16991_v63 = vand.u32 4294901760, %v11184_v52  ;;  %v17007_v35 = vld [vmem:[#allocation18_spill] sm:$0xff]  ;;  %v17008_v26 = vld [vmem:[#allocation19_spill] sm:$0xff] }
  0x88   :  { %v11243_v39 = vsub.f32 %v11178_v62, %v16988_v8  ;;  %9259 = vmatprep.subr.bf16.mxu1 %v10773_v27  ;;  %v11260_v8 = vsub.f32 %v11182_v55, %v16417_v42  ;;  %v16992_v27 = vand.u32 4294901760, %v11192_v53  ;;  %v1484_v47 = vand.u32 4294901760, %v1483_v13  ;;  %v11276_v42 = vld [vmem:[#allocation5 + $0x1c8] sm:$0xff] }
  0x89   :  { %v11265_v43 = vsub.f32 %v11184_v52, %v16991_v63  ;;  %9229 = vmatpush3.bf16.msra.mxu0 %v11063_v21  ;;  %16994 = vst [vmem:[#allocation30_spill] sm:$0xff] %v11276_v42  ;;  %v16995_v63 = vand.u32 4294901760, %v11204_v9  ;;  %v16996_v21 = vand.u32 4294901760, %v11206_v30  ;;  %v11292_v13 = vsub.f32 %v11189_v18, %v16997_v19  ;;  %v11307_v52 = vld [vmem:[#allocation5 + $0x148] sm:$0xff]  ;;  %v11309_v19 = vld [vmem:[#allocation5 + $0x1d0] sm:$0xff] }
  0x8a   :  { %v11271_v50 = vsub.f32 %v11192_v53, %v16992_v27  ;;  %9231 = vmatprep.subr.bf16.mxu0 %v11069_v12  ;;  %v11295_v53 = vld [vmem:[#allocation5 + $0x140] sm:$0xff]  ;;  %v11298_v12 = vpack.c.bf16 %v1596_v1, %v1589_v48  ;;  %17002 = vst [vmem:[#allocation34_spill] sm:$0xff] %v11307_v52  ;;  %17003 = vst [vmem:[#allocation35_spill] sm:$0xff] %v11309_v19  ;;  %v17009_v0 = vcombine.high %v17007_v35, %v17008_v26  ;;  %v17013_v1 = vld [vmem:[#allocation21_spill] sm:$0xff] }
  0x8b   :  { %v11282_v23 = vsub.f32 %v11204_v9, %v16995_v63  ;;  %v11287_v27 = vsub.f32 %v11206_v30, %v16996_v21  ;;  %16998 = vst [vmem:[#allocation31_spill] sm:$0xff] %v11292_v13  ;;  %16999 = vst [vmem:[#allocation32_spill] sm:$0xff] %v11295_v53  ;;  %9261 = vmatpush3.bf16.msra.mxu1 %v10782_v33  ;;  %v17000_v63 = vand.u32 4294901760, %v11195_v3  ;;  %v17005_v30 = vand.u32 4294901760, %v11237_v54 }
  0x8c   :  { %9263 = vmatprep.subr.bf16.mxu1 %v10796_v45  ;;  %v17006_v45 = vld [vmem:[#allocation11_spill] sm:$0xff]  ;;  %v17011_v35 = vand.u32 4294901760, %v11232_v36 }
  0x8d   :  { %v11303_v9 = vsub.f32 %v11195_v3, %v17000_v63  ;;  %9233 = vmatpush3.bf16.msra.mxu0 %v11075_v14  ;;  %v11317_v63 = vpack.c.bf16 %v1484_v47, %v1477_v46  ;;  %v11322_v21 = vsub.f32 %v11237_v54, %v17005_v30  ;;  %v355_v33 = vrot.slane %v17009_v0, %v17006_v45  ;;  %v17014_v47 = vld [vmem:[#allocation22_spill] sm:$0xff] }
  0x8e   :  { %9235 = vmatprep.subr.bf16.mxu0 %v11081_v60  ;;  %v17010_v14 = vand.u32 4294901760, %v11247_v41  ;;  %v11343_v0 = vsub.f32 %v11232_v36, %v17011_v35  ;;  %v17012_v60 = vand.u32 4294901760, %v11243_v39  ;;  %v17015_v30 = vcombine.high %v17013_v1, %v17014_v47 }
  0x8f   :  { %17001 = vst [vmem:[#allocation33_spill] sm:$0xff] %v11303_v9  ;;  %17004 = vst [vmem:[#allocation36_spill] sm:$0xff] %v11317_v63  ;;  %9265 = vmatpush3.bf16.msra.mxu1 %v10804_v51  ;;  %v17016_v51 = vand.u32 4294901760, %v11274_v5  ;;  %v17017_v35 = vand.u32 4294901760, %v11276_v42  ;;  %v17019_v1 = vand.u32 4294901760, %v11260_v8  ;;  %v11411_v9 = vld [vmem:[#allocation5 + $0x1f0] sm:$0xff] }
  0x90   :  { %v11334_v46 = vsub.f32 %v11247_v41, %v17010_v14  ;;  %v11348_v26 = vsub.f32 %v11243_v39, %v17012_v60  ;;  %v11350_v14 = vld [vmem:[#allocation5 + $0x1d8] sm:$0xff]  ;;  %v369_v48 = vrot.slane %v17015_v30, %v17006_v45  ;;  %9267 = vmatprep.subr.bf16.mxu1 %v10826_v4  ;;  %v17018_v60 = vand.u32 4294901760, %v11255_v25  ;;  %v11377_v4 = vld [vmem:[#allocation5 + $0x150] sm:$0xff]  ;;  %17028 = vst [vmem:[#allocation38_spill] sm:$0xff] %v11411_v9 }
  0x91   :  { %v11360_v55 = vsub.f32 %v11274_v5, %v17016_v51  ;;  %v11365_v41 = vsub.f32 %v11276_v42, %v17017_v35  ;;  %v11375_v47 = vsub.f32 %v11260_v8, %v17019_v1  ;;  %v11379_v30 = vld [vmem:[#allocation5 + $0x158] sm:$0xff]  ;;  %v11381_v51 = vld [vmem:[#allocation5 + $0x1e0] sm:$0xff]  ;;  %9237 = vmatpush3.bf16.msra.mxu0 %v11087_v16  ;;  %v17020_v35 = vand.u32 4294901760, %v11295_v53  ;;  %v11390_v42 = vld [vmem:[#allocation5 + $0x1e8] sm:$0xff] }
  0x92   :  { %v11370_v54 = vsub.f32 %v11255_v25, %v17018_v60  ;;  %v11392_v5 = vld [vmem:[#allocation5 + $0x160] sm:$0xff]  ;;  %v11394_v1 = vld [vmem:[#allocation5 + $0x168] sm:$0xff]  ;;  %v373_v63 = vcombine.high %v355_v33, %v369_v48  ;;  %v11396_v62 = vcombine.low %v355_v33, %v369_v48  ;;  %9239 = vmatprep.subr.bf16.mxu0 %v11093_v2  ;;  %v17024_v16 = vand.u32 4294901760, %v11307_v52  ;;  %v11413_v33 = vld [vmem:[#allocation5 + $0x1f8] sm:$0xff] }
  0x93   :  { %v11387_v45 = vsub.f32 %v11295_v53, %v17020_v35  ;;  %17021 = vst [vmem:[#allocation18_spill] sm:$0xff] %v11392_v5  ;;  %17022 = vst [vmem:[#allocation19_spill] sm:$0xff] %v11394_v1  ;;  %v17026_v53 = vand.u32 4294901760, %v11309_v19  ;;  %v11415_v48 = vld [vmem:[#allocation5 + $0x170] sm:$0xff]  ;;  %9269 = vmatpush3.bf16.msra.mxu1 %v10842_v22  ;;  %v11421_v60 = vld [vmem:[#allocation5 + $0x178] sm:$0xff] }
  0x94   :  { %17023 = vst [vmem:[#allocation21_spill] sm:$0xff] %v11396_v62  ;;  %v11402_v49 = vsub.f32 %v11307_v52, %v17024_v16  ;;  %17029 = vst [vmem:[#allocation39_spill] sm:$0xff] %v11415_v48  ;;  %v11423_v52 = vand.u32 4294901760, %v373_v63  ;;  %9271 = vmatprep.subr.bf16.mxu1 %v10857_v56  ;;  %v16440_v62 = vand.u32 4294901760, %v11392_v5  ;;  %v17033_v56 = vand.u32 4294901760, %v11350_v14 }
  0x95   :  { %v11409_v28 = vsub.f32 %v11309_v19, %v17026_v53  ;;  %17030 = vst [vmem:[#allocation40_spill] sm:$0xff] %v11421_v60  ;;  %v16439_v53 = vand.u32 4294901760, %v11381_v51  ;;  %9241 = vmatpush3.bf16.msra.mxu0 %v11100_v6  ;;  %v17034_v16 = vand.u32 4294901760, %v11377_v4  ;;  %v17036_v6 = vand.u32 4294901760, %v11390_v42 }
  0x96   :  { %17025 = vst [vmem:[#allocation22_spill] sm:$0xff] %v11402_v49  ;;  %17031 = vst [vmem:[#allocation41_spill] sm:$0xff] %v11423_v52  ;;  %v11435_v13 = vsub.f32 %v373_v63, %v11423_v52  ;;  %9243 = vmatprep.subr.bf16.mxu0 %v11106_v20  ;;  %v11441_v19 = vsub.f32 %v11350_v14, %v17033_v56  ;;  %v17035_v20 = vand.u32 4294901760, %v11379_v30 }
  0x97   :  { %17027 = vst [vmem:[#allocation37_spill] sm:$0xff] %v11409_v28  ;;  %9273 = vmatpush3.bf16.msra.mxu1 %v10872_v11  ;;  %v11450_v63 = vsub.f32 %v11377_v4, %v17034_v16  ;;  %v11463_v11 = vsub.f32 %v11381_v51, %v16439_v53  ;;  %v11468_v16 = vsub.f32 %v11390_v42, %v17036_v6  ;;  %v17038_v53 = vand.u32 4294901760, %v11411_v9 }
  0x98   :  { %17032 = vst [vmem:[#allocation42_spill] sm:$0xff] %v11435_v13  ;;  %v11455_v35 = vsub.f32 %v11379_v30, %v17035_v20  ;;  %9275 = vmatprep.subr.bf16.mxu1 %v16966_v61  ;;  %v11474_v20 = vsub.f32 %v11392_v5, %v16440_v62  ;;  %v17037_v61 = vand.u32 4294901760, %v11394_v1  ;;  %v17039_v6 = vand.u32 4294901760, %v11413_v33 }
  0x99   :  { %9245 = vmatpush3.bf16.msra.mxu0 %v11112_v32  ;;  %v11485_v22 = vsub.f32 %v11411_v9, %v17038_v53  ;;  %v17040_v62 = vand.u32 4294901760, %v11415_v48  ;;  %v17044_v9 = vand.u32 4294901760, %v11435_v13  ;;  %v17051_v32 = vand.u32 4294901760, %v11189_v18 }
  0x9a   :  { %v11480_v56 = vsub.f32 %v11394_v1, %v17037_v61  ;;  %v11490_v2 = vsub.f32 %v11413_v33, %v17039_v6  ;;  %9247 = vmatprep.subr.bf16.mxu0 %v11119_v44  ;;  %v17042_v1 = vand.u32 4294901760, %v11421_v60  ;;  %v17054_v61 = vand.u32 4294901760, %v11232_v36 }
  0x9b   :  { %v11495_v5 = vsub.f32 %v11415_v48, %v17040_v62  ;;  %v1459_v6 = vsub.f32 %v11435_v13, %v17044_v9  ;;  %9277 = vmatpush3.bf16.msra.mxu1 %v16969_v24  ;;  %v17049_v24 = vand.u32 4294901760, %v11170_v31  ;;  %v17055_v44 = vand.u32 4294901760, %v11243_v39 }
  0x9c   :  { %v11503_v53 = vsub.f32 %v11421_v60, %v17042_v1  ;;  %9279 = vmatprep.subr.bf16.mxu1 %v16970_v38  ;;  %v17045_v1 = vand.u32 4294901760, %v11161_v15  ;;  %v17046_v60 = vand.u32 4294901760, %v11163_v10  ;;  %v17058_v62 = vand.u32 4294901760, %v11260_v8 }
  0x9d   :  { %17041 = vst [vmem:[#allocation43_spill] sm:$0xff] %v11495_v5  ;;  %9249 = vmatpush3.bf16.msra.mxu0 %v11125_v17  ;;  %v1460_v38 = vand.u32 4294901760, %v1459_v6  ;;  %v17048_v17 = vand.u32 4294901760, %v11168_v29 }
  0x9e   :  { %17043 = vst [vmem:[#allocation44_spill] sm:$0xff] %v11503_v53  ;;  %9251 = vmatprep.subr.bf16.mxu0 %v11127_v58  ;;  %v11529_v9 = vpack.c.bf16 %v17046_v60, %v17045_v1  ;;  %v17052_v58 = vand.u32 4294901760, %v11195_v3  ;;  %v11548_v60 = vpack.c.bf16 %v17055_v44, %v17054_v61  ;;  %v17057_v1 = vand.u32 4294901760, %v11255_v25 }
  0x9f   :  { %v11535_v48 = vpack.c.bf16 %v17049_v24, %v17048_v17  ;;  %9281 = vmatpush3.bf16.msra.mxu1 %v16971_v34  ;;  %v17060_v34 = vand.u32 4294901760, %v11265_v43  ;;  %v17061_v17 = vand.u32 4294901760, %v11271_v50  ;;  %v17066_v44 = vand.u32 4294901760, %v11322_v21 }
  0xa0   :  { %17047 = vst [vmem:[#allocation45_spill] sm:$0xff] %v11529_v9  ;;  %v11542_v6 = vpack.c.bf16 %v17052_v58, %v17051_v32  ;;  %17056 = vst [vmem:[#allocation48_spill] sm:$0xff] %v11548_v60  ;;  %v11554_v24 = vpack.c.bf16 %v17058_v62, %v17057_v1  ;;  %9283 = vmatprep.subr.bf16.mxu1 %v16973_v7  ;;  %v17063_v32 = vand.u32 4294901760, %v11282_v23  ;;  %v17064_v58 = vand.u32 4294901760, %v11287_v27 }
  0xa1   :  { %17050 = vst [vmem:[#allocation46_spill] sm:$0xff] %v11535_v48  ;;  %v11560_v48 = vpack.c.bf16 %v17061_v17, %v17060_v34  ;;  %v17067_v60 = vand.u32 4294901760, %v11334_v46  ;;  %v17069_v1 = vand.u32 4294901760, %v11360_v55  ;;  %v17072_v7 = vand.u32 4294901760, %v11387_v45  ;;  %9253 = vmatpush3.bf16.msra.mxu0 %v11130_v59 }
  0xa2   :  { %17053 = vst [vmem:[#allocation47_spill] sm:$0xff] %v11542_v6  ;;  %17059 = vst [vmem:[#allocation49_spill] sm:$0xff] %v11554_v24  ;;  %v11567_v61 = vpack.c.bf16 %v17064_v58, %v17063_v32  ;;  %v17070_v24 = vand.u32 4294901760, %v11365_v41  ;;  %v17073_v17 = vand.u32 4294901760, %v11402_v49  ;;  %v17075_v32 = vand.u32 4294901760, %v11409_v28  ;;  %9287 = vmatprep.subr.bf16.mxu0 %v11210_v37  ;;  %v17104_v6 = vld [vmem:[#allocation17_spill] sm:$0xff] }
  0xa3   :  { %17062 = vst [vmem:[#allocation50_spill] sm:$0xff] %v11560_v48  ;;  %v11573_v62 = vpack.c.bf16 %v17067_v60, %v17066_v44  ;;  %v17076_v58 = vand.u32 4294901760, %v11441_v19  ;;  %v17078_v44 = vand.u32 4294901760, %v11450_v63  ;;  %v17084_v59 = vand.u32 4294901760, %v11474_v20  ;;  %9285 = vmatpush3.bf16.msra.mxu1 %v16979_v57 }
  0xa4   :  { %17065 = vst [vmem:[#allocation51_spill] sm:$0xff] %v11567_v61  ;;  %v11579_v34 = vpack.c.bf16 %v17070_v24, %v17069_v1  ;;  %v11585_v48 = vpack.c.bf16 %v17073_v17, %v17072_v7  ;;  %v17081_v1 = vand.u32 4294901760, %v11463_v11  ;;  %v17085_v17 = vand.u32 4294901760, %v11480_v56  ;;  %1251 = vmatmul.mubr.f32.vlgmr.msra.gmra.mrb[4].mxu0 %v11015_v40  ;;  %9319 = vmatprep.subr.bf16.mxu1 %v11298_v12 }
  0xa5   :  { %17068 = vst [vmem:[#allocation52_spill] sm:$0xff] %v11573_v62  ;;  %v11592_v60 = vpack.c.bf16 %v17076_v58, %v17075_v32  ;;  %v17079_v62 = vand.u32 4294901760, %v11455_v35  ;;  %v1491_v32 = vand.u32 4294901760, %v11343_v0  ;;  %v1498_v58 = vand.u32 4294901760, %v11348_v26  ;;  %1461 = vmatprep.mubr.f32.mxu0 %v1460_v38 }
  0xa6   :  { %17071 = vst [vmem:[#allocation53_spill] sm:$0xff] %v11579_v34  ;;  %17074 = vst [vmem:[#allocation54_spill] sm:$0xff] %v11585_v48  ;;  %v17082_v34 = vand.u32 4294901760, %v11468_v16  ;;  %v11610_v48 = vpack.c.bf16 %v17085_v17, %v17084_v59  ;;  %v1617_v59 = vand.u32 4294901760, %v11370_v54  ;;  %v1624_v0 = vand.u32 4294901760, %v11375_v47  ;;  %1355 = vmatmul.mubr.f32.vlgmr.msra.gmra.mrb[4].mxu1 %v11015_v40 }
  0xa7   :  { %17077 = vst [vmem:[#allocation55_spill] sm:$0xff] %v11592_v60  ;;  %v11598_v24 = vpack.c.bf16 %v17079_v62, %v17078_v44  ;;  %v17087_v62 = vand.u32 4294901760, %v11485_v22  ;;  %v17088_v44 = vand.u32 4294901760, %v11490_v2  ;;  %v17093_v26 = vand.u32 4294901760, %v11265_v43  ;;  %v17101_v60 = vld [vmem:[#allocation24_spill] sm:$0xff]  ;;  %1697 = vmatprep.mubr.f32.mxu1 %v11423_v52 }
  0xa8   :  { %v11604_v7 = vpack.c.bf16 %v17082_v34, %v17081_v1  ;;  %17086 = vst [vmem:[#allocation58_spill] sm:$0xff] %v11610_v48  ;;  %v17090_v34 = vand.u32 4294901760, %v11495_v5  ;;  %v17091_v1 = vand.u32 4294901760, %v11503_v53  ;;  %v17094_v48 = vand.u32 4294901760, %v11271_v50  ;;  %9289 = vmatpush3.bf16.msra.mxu0 %v17101_v60 }
  0xa9   :  { %17080 = vst [vmem:[#allocation56_spill] sm:$0xff] %v11598_v24  ;;  %v11619_v24 = vpack.c.bf16 %v17088_v44, %v17087_v62  ;;  %v1504_v17 = vsub.f32 %v11265_v43, %v17093_v26  ;;  %v17095_v44 = vld [vmem:[#allocation31_spill] sm:$0xff]  ;;  %v17099_v54 = vand.u32 4294901760, %v11282_v23  ;;  %v17105_v9 = vand.u32 4294901760, %v17104_v6  ;;  %v17115_v6 = vld [vmem:[#allocation36_spill] sm:$0xff] }
  0xaa   :  { %17083 = vst [vmem:[#allocation57_spill] sm:$0xff] %v11604_v7  ;;  %v11625_v7 = vpack.c.bf16 %v17091_v1, %v17090_v34  ;;  %v1511_v62 = vsub.f32 %v11271_v50, %v17094_v48  ;;  %v17096_v34 = vand.u32 4294901760, %v17095_v44  ;;  %v17097_v1 = vld [vmem:[#allocation33_spill] sm:$0xff]  ;;  %v17102_v48 = vld [vmem:[#allocation12_spill] sm:$0xff]  ;;  %9321 = vmatpush3.bf16.msra.mxu1 %v17115_v6  ;;  %v9324_v38 = vpack.c.bf16 %v1498_v58, %v1491_v32  ;;  %v17120_v58 = vld [vmem:[#allocation15_spill] sm:$0xff] }
  0xab   :  { %17089 = vst [vmem:[#allocation59_spill] sm:$0xff] %v11619_v24  ;;  %v17098_v57 = vand.u32 4294901760, %v17097_v1  ;;  %v1630_v47 = vsub.f32 %v11282_v23, %v17099_v54  ;;  %v17100_v24 = vand.u32 4294901760, %v11287_v27  ;;  %v17103_v61 = vand.u32 4294901760, %v17102_v48  ;;  %v17107_v44 = vld [vmem:[#allocation28_spill] sm:$0xff] }
  0xac   :  { %17092 = vst [vmem:[#allocation60_spill] sm:$0xff] %v11625_v7  ;;  %9291 = vmatprep.subr.bf16.mxu0 %v17107_v44  ;;  %v17114_v48 = vand.u32 4294901760, %v11334_v46  ;;  %v1505_v44 = vand.u32 4294901760, %v1504_v17  ;;  %v1512_v40 = vand.u32 4294901760, %v1511_v62  ;;  %v17125_v62 = vld [vmem:[#allocation23_spill] sm:$0xff] }
  0xad   :  { %v9322_v7 = vpack.c.bf16 %v17098_v57, %v17096_v34  ;;  %v1637_v26 = vsub.f32 %v11287_v27, %v17100_v24  ;;  %v11653_v12 = vpack.c.bf16 %v17105_v9, %v17103_v61  ;;  %v17108_v34 = vld [vmem:[#allocation20_spill] sm:$0xff]  ;;  %v17110_v57 = vld [vmem:[#allocation13_spill] sm:$0xff]  ;;  %v17113_v24 = vand.u32 4294901760, %v11322_v21 }
  0xae   :  { %v17109_v1 = vand.u32 4294901760, %v17108_v34  ;;  %v17111_v54 = vand.u32 4294901760, %v17110_v57  ;;  %v1525_v9 = vsub.f32 %v11334_v46, %v17114_v48  ;;  %v9326_v61 = vpack.c.bf16 %v1624_v0, %v1617_v59  ;;  %v17118_v48 = vld [vmem:[#allocation14_spill] sm:$0xff] }
  0xaf   :  { %17106 = vst [vmem:[#allocation31_spill] sm:$0xff] %v11653_v12  ;;  %v1518_v60 = vsub.f32 %v11322_v21, %v17113_v24  ;;  %9323 = vmatprep.subr.bf16.mxu1 %v9322_v7  ;;  %v1631_v34 = vand.u32 4294901760, %v1630_v47  ;;  %v17116_v57 = vand.u32 4294901760, %v11360_v55  ;;  %v17117_v24 = vand.u32 4294901760, %v11365_v41  ;;  %9293 = vmatpush3.bf16.msra.mxu0 %v11653_v12  ;;  %v17123_v7 = vld [vmem:[#allocation16_spill] sm:$0xff] }
  0xb0   :  { %v11661_v13 = vpack.c.bf16 %v17111_v54, %v17109_v1  ;;  %v1638_v1 = vand.u32 4294901760, %v1637_v26  ;;  %v17119_v32 = vand.u32 4294901760, %v17118_v48  ;;  %v17121_v59 = vand.u32 4294901760, %v17120_v58  ;;  %9325 = vmatpush3.bf16.msra.mxu1 %v9324_v38  ;;  %v17132_v38 = vld [vmem:[#allocation26_spill] sm:$0xff] }
  0xb1   :  { %v1644_v54 = vsub.f32 %v11360_v55, %v17116_v57  ;;  %v1651_v37 = vsub.f32 %v11365_v41, %v17117_v24  ;;  %v17124_v17 = vand.u32 4294901760, %v17123_v7  ;;  %v17126_v47 = vand.u32 4294901760, %v17125_v62  ;;  %9327 = vmatprep.subr.bf16.mxu1 %v9326_v61 }
  0xb2   :  { %17112 = vst [vmem:[#allocation33_spill] sm:$0xff] %v11661_v13  ;;  %v11682_v0 = vpack.c.bf16 %v17121_v59, %v17119_v32  ;;  %9295 = vmatprep.subr.bf16.mxu0 %v11661_v13  ;;  %v1519_v6 = vand.u32 4294901760, %v1518_v60  ;;  %v1526_v57 = vand.u32 4294901760, %v1525_v9  ;;  %v17128_v24 = vand.u32 4294901760, %v11387_v45 }
  0xb3   :  { %v11689_v26 = vpack.c.bf16 %v17126_v47, %v17124_v17  ;;  %v9328_v48 = vpack.c.bf16 %v1512_v40, %v1505_v44  ;;  %v17129_v58 = vand.u32 4294901760, %v11402_v49  ;;  %v17130_v59 = vand.u32 4294901760, %v11409_v28  ;;  %v17134_v40 = vld [vmem:[#allocation27_spill] sm:$0xff] }
  0xb4   :  { %17122 = vst [vmem:[#allocation12_spill] sm:$0xff] %v11682_v0  ;;  %v1532_v52 = vsub.f32 %v11387_v45, %v17128_v24  ;;  %v17131_v62 = vand.u32 4294901760, %v11441_v19  ;;  %v9330_v60 = vpack.c.bf16 %v1638_v1, %v1631_v34  ;;  %v1645_v9 = vand.u32 4294901760, %v1644_v54  ;;  %9297 = vmatpush3.bf16.msra.mxu0 %v11682_v0 }
  0xb5   :  { %17127 = vst [vmem:[#allocation17_spill] sm:$0xff] %v11689_v26  ;;  %v1539_v32 = vsub.f32 %v11402_v49, %v17129_v58  ;;  %v1658_v7 = vsub.f32 %v11409_v28, %v17130_v59  ;;  %v1652_v47 = vand.u32 4294901760, %v1651_v37  ;;  %v17133_v44 = vand.u32 4294901760, %v17132_v38  ;;  %v17137_v58 = vld [vmem:[#allocation29_spill] sm:$0xff]  ;;  %v17139_v49 = vld [vmem:[#allocation30_spill] sm:$0xff]  ;;  %9299 = vmatprep.subr.bf16.mxu0 %v11689_v26  ;;  %9329 = vmatpush3.bf16.msra.mxu1 %v9328_v48 }
  0xb6   :  { %v1665_v17 = vsub.f32 %v11441_v19, %v17131_v62  ;;  %v17135_v24 = vand.u32 4294901760, %v17134_v40  ;;  %v17138_v12 = vand.u32 4294901760, %v17137_v58  ;;  %v17140_v59 = vand.u32 4294901760, %v17139_v49  ;;  %9331 = vmatprep.subr.bf16.mxu1 %v9330_v60  ;;  %v17151_v60 = vld [vmem:[#allocation35_spill] sm:$0xff] }
  0xb7   :  { %v9332_v61 = vpack.c.bf16 %v1526_v57, %v1519_v6  ;;  %v1533_v34 = vand.u32 4294901760, %v1532_v52  ;;  %v17141_v37 = vand.u32 4294901760, %v11450_v63  ;;  %v17142_v54 = vand.u32 4294901760, %v11455_v35 }
  0xb8   :  { %v11708_v13 = vpack.c.bf16 %v17135_v24, %v17133_v44  ;;  %v11714_v28 = vpack.c.bf16 %v17140_v59, %v17138_v12  ;;  %v1540_v38 = vand.u32 4294901760, %v1539_v32  ;;  %v1659_v44 = vand.u32 4294901760, %v1658_v7  ;;  %v17143_v24 = vld [vmem:[#allocation21_spill] sm:$0xff]  ;;  %v17147_v59 = vld [vmem:[#allocation32_spill] sm:$0xff]  ;;  %v17149_v32 = vld [vmem:[#allocation34_spill] sm:$0xff] }
  0xb9   :  { %v1546_v1 = vsub.f32 %v11450_v63, %v17141_v37  ;;  %v1553_v62 = vsub.f32 %v11455_v35, %v17142_v54  ;;  %v1666_v40 = vand.u32 4294901760, %v1665_v17  ;;  %v11724_v49 = vand.u32 4294901760, %v17143_v24  ;;  %9333 = vmatpush3.bf16.msra.mxu1 %v9332_v61 }
  0xba   :  { %17136 = vst [vmem:[#allocation20_spill] sm:$0xff] %v11708_v13  ;;  %v9334_v12 = vpack.c.bf16 %v1652_v47, %v1645_v9  ;;  %v17145_v6 = vand.u32 4294901760, %v11463_v11  ;;  %v17146_v57 = vand.u32 4294901760, %v11468_v16  ;;  %9301 = vmatpush3.bf16.msra.mxu0 %v11708_v13  ;;  %v17148_v48 = vand.u32 4294901760, %v17147_v59 }
  0xbb   :  { %17144 = vst [vmem:[#allocation13_spill] sm:$0xff] %v11724_v49  ;;  %v17150_v7 = vand.u32 4294901760, %v17149_v32  ;;  %9303 = vmatprep.subr.bf16.mxu0 %v11714_v28  ;;  %v17152_v9 = vand.u32 4294901760, %v17151_v60  ;;  %v17153_v47 = vand.u32 4294901760, %v11350_v14  ;;  %v1547_v54 = vand.u32 4294901760, %v1546_v1 }
  0xbc   :  { %v1672_v52 = vsub.f32 %v11463_v11, %v17145_v6  ;;  %v1679_v58 = vsub.f32 %v11468_v16, %v17146_v57  ;;  %v1554_v6 = vand.u32 4294901760, %v1553_v62  ;;  %v17154_v57 = vand.u32 4294901760, %v11474_v20  ;;  %9335 = vmatprep.subr.bf16.mxu1 %v9334_v12 }
  0xbd   :  { %v11737_v17 = vpack.c.bf16 %v17150_v7, %v17148_v48  ;;  %v11744_v37 = vpack.c.bf16 %v17153_v47, %v17152_v9  ;;  %v9336_v59 = vpack.c.bf16 %v1540_v38, %v1533_v34  ;;  %v9338_v26 = vpack.c.bf16 %v1666_v40, %v1659_v44 }
  0xbe   :  { %v1560_v13 = vsub.f32 %v11474_v20, %v17154_v57  ;;  %v11751_v48 = vsub.f32 %v17143_v24, %v11724_v49  ;;  %v17156_v32 = vand.u32 4294901760, %v11480_v56  ;;  %v1673_v14 = vand.u32 4294901760, %v1672_v52 }
  0xbf   :  { %v1680_v60 = vand.u32 4294901760, %v1679_v58  ;;  %v17157_v1 = vand.u32 4294901760, %v11485_v22  ;;  %v17158_v9 = vand.u32 4294901760, %v11490_v2  ;;  %9305 = vmatpush3.bf16.msra.mxu0 %v11737_v17  ;;  %v17159_v34 = vand.u32 4294901760, %v11377_v4  ;;  %9337 = vmatpush3.bf16.msra.mxu1 %v9336_v59 }
  0xc0   :  { %17155 = vst [vmem:[#allocation36_spill] sm:$0xff] %v11751_v48  ;;  %v1567_v7 = vsub.f32 %v11480_v56, %v17156_v32  ;;  %v17160_v38 = vand.u32 4294901760, %v11379_v30  ;;  %9307 = vmatprep.subr.bf16.mxu0 %v11744_v37  ;;  %v17161_v40 = vand.u32 4294901760, %v11381_v51  ;;  %v17162_v24 = vand.u32 4294901760, %v11390_v42  ;;  %9339 = vmatprep.subr.bf16.mxu1 %v9338_v26 }
  0xc1   :  { %v1686_v62 = vsub.f32 %v11485_v22, %v17157_v1  ;;  %v1693_v61 = vsub.f32 %v11490_v2, %v17158_v9  ;;  %v9340_v52 = vpack.c.bf16 %v1554_v6, %v1547_v54  ;;  %v1561_v58 = vand.u32 4294901760, %v1560_v13  ;;  %v17165_v54 = vld [vmem:[#allocation18_spill] sm:$0xff]  ;;  %v17167_v6 = vld [vmem:[#allocation19_spill] sm:$0xff] }
  0xc2   :  { %v11767_v44 = vpack.c.bf16 %v17160_v38, %v17159_v34  ;;  %v11774_v12 = vpack.c.bf16 %v17162_v24, %v17161_v40  ;;  %v16464_v47 = vand.u32 4294901760, %v11751_v48  ;;  %v1568_v57 = vand.u32 4294901760, %v1567_v7  ;;  %v17169_v7 = vld [vmem:[#allocation38_spill] sm:$0xff] }
  0xc3   :  { %v17163_v4 = vand.u32 4294901760, %v11495_v5  ;;  %v17164_v32 = vand.u32 4294901760, %v11503_v53  ;;  %v9342_v51 = vpack.c.bf16 %v1680_v60, %v1673_v14  ;;  %v1687_v9 = vand.u32 4294901760, %v1686_v62  ;;  %9341 = vmatpush3.bf16.msra.mxu1 %v9340_v52  ;;  %v11809_v52 = vld [vmem:[#allocation5 + $0x280] sm:$0xff] }
  0xc4   :  { %v1694_v42 = vand.u32 4294901760, %v1693_v61  ;;  %9309 = vmatpush3.bf16.msra.mxu0 %v11767_v44  ;;  %v17166_v13 = vand.u32 4294901760, %v17165_v54  ;;  %v17168_v59 = vand.u32 4294901760, %v17167_v6  ;;  %v17170_v38 = vand.u32 4294901760, %v17169_v7  ;;  %v17174_v54 = vld [vmem:[#allocation40_spill] sm:$0xff]  ;;  %17177 = vst [vmem:[#allocation15_spill] sm:$0xff] %v11809_v52 }
  0xc5   :  { %v1574_v30 = vsub.f32 %v11495_v5, %v17163_v4  ;;  %v1581_v1 = vsub.f32 %v11503_v53, %v17164_v32  ;;  %9311 = vmatprep.subr.bf16.mxu0 %v11774_v12  ;;  %v17171_v40 = vand.u32 4294901760, %v11413_v33  ;;  %v1465_v26 = vsub.f32 %v11751_v48, %v16464_v47  ;;  %9343 = vmatprep.subr.bf16.mxu1 %v9342_v51  ;;  %v17172_v4 = vld [vmem:[#allocation39_spill] sm:$0xff]  ;;  %v11822_v51 = vld [vmem:[#allocation5 + $0x200] sm:$0xff]  ;;  %v17245_v5 = vld [vmem:[#allocation17_spill] sm:$0xff] }
  0xc6   :  { %v11788_v34 = vpack.c.bf16 %v17168_v59, %v17166_v13  ;;  %v9344_v14 = vpack.c.bf16 %v1568_v57, %v1561_v58  ;;  %v9346_v61 = vpack.c.bf16 %v1694_v42, %v1687_v9  ;;  %v17173_v32 = vand.u32 4294901760, %v17172_v4  ;;  %v11811_v59 = vld [vmem:[#allocation5 + $0x288] sm:$0xff]  ;;  %17179 = vst [vmem:[#allocation23_spill] sm:$0xff] %v11822_v51  ;;  %v17187_v4 = vld [vmem:[#allocation37_spill] sm:$0xff]  ;;  %v17195_v42 = vld [vmem:[#allocation42_spill] sm:$0xff] }
  0xc7   :  { %v11795_v24 = vpack.c.bf16 %v17171_v40, %v17170_v38  ;;  %v1575_v60 = vand.u32 4294901760, %v1574_v30  ;;  %v1582_v62 = vand.u32 4294901760, %v1581_v1  ;;  %v17175_v13 = vand.u32 4294901760, %v17174_v54  ;;  %17178 = vst [vmem:[#allocation16_spill] sm:$0xff] %v11811_v59  ;;  %v11853_v47 = vld [vmem:[#allocation5 + $0x2a8] sm:$0xff]  ;;  %v11866_v30 = vld [vmem:[#allocation5 + $0x220] sm:$0xff] }
  0xc8   :  { %9313 = vmatpush3.bf16.msra.mxu0 %v11788_v34  ;;  %v9350_v33 = vpack.c.bf16 %v11163_v10, %v11161_v15  ;;  %v9352_v58 = vpack.c.bf16 %v11170_v31, %v11168_v29  ;;  %v9354_v57 = vpack.c.bf16 %v11195_v3, %v11189_v18  ;;  %v11824_v15 = vld [vmem:[#allocation5 + $0x208] sm:$0xff]  ;;  %v1466_v10 = vand.u32 4294901760, %v1465_v26  ;;  %9345 = vmatpush3.bf16.msra.mxu1 %v9344_v14  ;;  %v11830_v31 = vld [vmem:[#allocation5 + $0x290] sm:$0xff]  ;;  %v11832_v18 = vld [vmem:[#allocation5 + $0x298] sm:$0xff] }
  0xc9   :  { %v11805_v6 = vpack.c.bf16 %v17175_v13, %v17173_v32  ;;  %9315 = vmatprep.subr.bf16.mxu0 %v11795_v24  ;;  %17180 = vst [vmem:[#allocation26_spill] sm:$0xff] %v11824_v15  ;;  %v9348_v9 = vpack.c.bf16 %v1582_v62, %v1575_v60  ;;  %17181 = vst [vmem:[#allocation27_spill] sm:$0xff] %v11830_v31  ;;  %9347 = vmatprep.subr.bf16.mxu1 %v9346_v61  ;;  %v16465_v38 = vand.u32 4294901760, %v11809_v52  ;;  %v11840_v26 = vld [vmem:[#allocation5 + $0x210] sm:$0xff]  ;;  %v11842_v14 = vld [vmem:[#allocation5 + $0x218] sm:$0xff] }
  0xca   :  { %17182 = vst [vmem:[#allocation29_spill] sm:$0xff] %v11832_v18  ;;  %v16466_v40 = vand.u32 4294901760, %v11811_v59  ;;  %17183 = vst [vmem:[#allocation30_spill] sm:$0xff] %v11840_v26  ;;  %v11844_v60 = vld [vmem:[#allocation5 + $0x2a0] sm:$0xff]  ;;  %v16467_v54 = vand.u32 4294901760, %v11822_v51  ;;  %v16468_v13 = vand.u32 4294901760, %v11824_v15 }
  0xcb   :  { %17176 = vst [vmem:[#allocation14_spill] sm:$0xff] %v11805_v6  ;;  %17184 = vst [vmem:[#allocation21_spill] sm:$0xff] %v11842_v14  ;;  %v17186_v62 = vld [vmem:[#allocation22_spill] sm:$0xff]  ;;  %v16473_v29 = vand.u32 4294901760, %v11830_v31  ;;  %v11868_v7 = vld [vmem:[#allocation5 + $0x228] sm:$0xff] }
  0xcc   :  { %17185 = vst [vmem:[#allocation32_spill] sm:$0xff] %v11844_v60  ;;  %9317 = vmatpush3.bf16.msra.mxu0 %v11805_v6  ;;  %17188 = vst [vmem:[#allocation34_spill] sm:$0xff] %v11853_v47  ;;  %9349 = vmatpush3.bf16.msra.mxu1 %v9348_v9  ;;  %v17191_v3 = vld [vmem:[#allocation25_spill] sm:$0xff]  ;;  %v11876_v9 = vsub.f32 %v11809_v52, %v16465_v38  ;;  %v11881_v32 = vsub.f32 %v11811_v59, %v16466_v40  ;;  %v11884_v1 = vld [vmem:[#allocation5 + $0x2b0] sm:$0xff] }
  0xcd   :  { %9351 = vmatprep.subr.bf16.mxu0 %v9350_v33  ;;  %17189 = vst [vmem:[#allocation35_spill] sm:$0xff] %v11866_v30  ;;  %17190 = vst [vmem:[#allocation18_spill] sm:$0xff] %v11868_v7  ;;  %9383 = vmatprep.subr.bf16.mxu1 %v17191_v3  ;;  %v11892_v38 = vsub.f32 %v11822_v51, %v16467_v54  ;;  %v11897_v40 = vsub.f32 %v11824_v15, %v16468_v13  ;;  %v11899_v61 = vld [vmem:[#allocation5 + $0x2b8] sm:$0xff]  ;;  %v11914_v15 = vld [vmem:[#allocation5 + $0x230] sm:$0xff]  ;;  %v17209_v33 = vand.u32 4294901760, %v11842_v14 }
  0xce   :  { %17192 = vst [vmem:[#allocation19_spill] sm:$0xff] %v11876_v9  ;;  %17193 = vst [vmem:[#allocation38_spill] sm:$0xff] %v11881_v32  ;;  %v11916_v51 = vld [vmem:[#allocation5 + $0x238] sm:$0xff]  ;;  %v11950_v3 = vld [vmem:[#allocation5 + $0x240] sm:$0xff]  ;;  %v17219_v52 = vpack.c.bf16 %v11243_v39, %v11232_v36  ;;  %v17222_v36 = vand.u32 4294901760, %v11868_v7 }
  0xcf   :  { %1467 = vmatmul.mubr.f32.vlgmr.msra.gmra.mrb[6].mxu0 %v1466_v10  ;;  %17194 = vst [vmem:[#allocation39_spill] sm:$0xff] %v11884_v1  ;;  %17196 = vst [vmem:[#allocation40_spill] sm:$0xff] %v11892_v38  ;;  %1699 = vmatmul.mubr.f32.vlgmr.msra.gmra.mrb[6].mxu1 %v11724_v49  ;;  %v17200_v10 = vand.u32 4294901760, %v11832_v18  ;;  %v17205_v49 = vld [vmem:[#allocation24_spill] sm:$0xff]  ;;  %v11931_v13 = vsub.f32 %v11842_v14, %v17209_v33  ;;  %v17220_v33 = vpack.c.bf16 %v11260_v8, %v11255_v25  ;;  %v11996_v8 = vld [vmem:[#allocation5 + $0x2d8] sm:$0xff] }
  0xd0   :  { %9353 = vmatpush3.bf16.msra.mxu0 %v9352_v58  ;;  %1834 = vmatprep.mubr.f32.mxu0 %v17195_v42  ;;  %17197 = vst [vmem:[#allocation22_spill] sm:$0xff] %v11897_v40  ;;  %17198 = vst [vmem:[#allocation37_spill] sm:$0xff] %v11899_v61  ;;  %v11905_v58 = vsub.f32 %v11830_v31, %v16473_v29  ;;  %v17206_v29 = vand.u32 4294901760, %v17195_v42  ;;  %v17207_v31 = vand.u32 4294901760, %v11840_v26  ;;  %v17214_v42 = vld [vmem:[#allocation28_spill] sm:$0xff]  ;;  %v17221_v14 = vand.u32 4294901760, %v11866_v30 }
  0xd1   :  { %9355 = vmatprep.subr.bf16.mxu0 %v9354_v57  ;;  %v11910_v54 = vsub.f32 %v11832_v18, %v17200_v10  ;;  %17202 = vst [vmem:[#allocation62_spill] sm:$0xff] %v11914_v15  ;;  %17203 = vst [vmem:[#allocation63_spill] sm:$0xff] %v11916_v51  ;;  %v11918_v57 = vld [vmem:[#allocation5 + $0x2c0] sm:$0xff]  ;;  %9385 = vmatpush3.bf16.msra.mxu1 %v17205_v49  ;;  %v17211_v18 = vand.u32 4294901760, %v11844_v60  ;;  %v11939_v49 = vld [vmem:[#allocation5 + $0x2c8] sm:$0xff]  ;;  %v11972_v39 = vsub.f32 %v11868_v7, %v17222_v36 }
  0xd2   :  { %17199 = vst [vmem:[#allocation42_spill] sm:$0xff] %v11905_v58  ;;  %17204 = vst [vmem:[#allocation64_spill] sm:$0xff] %v11918_v57  ;;  %1941 = vmatprep.mubr.f32.mxu1 %v17206_v29  ;;  %v11926_v10 = vsub.f32 %v11840_v26, %v17207_v31  ;;  %9387 = vmatprep.subr.bf16.mxu1 %v17214_v42  ;;  %v17215_v29 = vand.u32 4294901760, %v11853_v47  ;;  %v17224_v26 = vand.u32 4294901760, %v11884_v1  ;;  %v11985_v42 = vld [vmem:[#allocation5 + $0x2d0] sm:$0xff]  ;;  %v17225_v36 = vld [vmem:[#allocation33_spill] sm:$0xff] }
  0xd3   :  { %17201 = vst [vmem:[#allocation61_spill] sm:$0xff] %v11910_v54  ;;  %17210 = vst [vmem:[#allocation66_spill] sm:$0xff] %v11931_v13  ;;  %v11936_v59 = vsub.f32 %v11844_v60, %v17211_v18  ;;  %v11952_v18 = vld [vmem:[#allocation5 + $0x248] sm:$0xff]  ;;  %v17231_v7 = vand.u32 4294901760, %v11916_v51  ;;  %v12021_v48 = vld [vmem:[#allocation5 + $0x2e0] sm:$0xff] }
  0xd4   :  { %17208 = vst [vmem:[#allocation65_spill] sm:$0xff] %v11926_v10  ;;  %17213 = vst [vmem:[#allocation68_spill] sm:$0xff] %v11939_v49  ;;  %v11945_v31 = vsub.f32 %v11853_v47, %v17215_v29  ;;  %9357 = vmatpush3.bf16.msra.mxu0 %v17219_v52  ;;  %v11967_v47 = vsub.f32 %v11866_v30, %v17221_v14  ;;  %v17223_v29 = vld [vmem:[#allocation31_spill] sm:$0xff]  ;;  %v11980_v25 = vsub.f32 %v11884_v1, %v17224_v26  ;;  %v11998_v14 = vld [vmem:[#allocation5 + $0x250] sm:$0xff] }
  0xd5   :  { %17212 = vst [vmem:[#allocation67_spill] sm:$0xff] %v11936_v59  ;;  %17217 = vst [vmem:[#allocation70_spill] sm:$0xff] %v11950_v3  ;;  %9359 = vmatprep.subr.bf16.mxu0 %v17220_v33  ;;  %9389 = vmatpush3.bf16.msra.mxu1 %v17223_v29  ;;  %v17226_v52 = vand.u32 4294901760, %v11899_v61  ;;  %v12000_v33 = vld [vmem:[#allocation5 + $0x258] sm:$0xff]  ;;  %v17228_v30 = vpack.c.bf16 %v11271_v50, %v11265_v43  ;;  %v12013_v26 = vsub.f32 %v11916_v51, %v17231_v7  ;;  %v12023_v43 = vld [vmem:[#allocation5 + $0x2e8] sm:$0xff] }
  0xd6   :  { %17216 = vst [vmem:[#allocation69_spill] sm:$0xff] %v11945_v31  ;;  %17218 = vst [vmem:[#allocation71_spill] sm:$0xff] %v11952_v18  ;;  %9391 = vmatprep.subr.bf16.mxu1 %v17225_v36  ;;  %v17229_v36 = vand.u32 4294901760, %v11914_v15  ;;  %v17233_v1 = vand.u32 4294901760, %v11918_v57  ;;  %v12025_v50 = vld [vmem:[#allocation5 + $0x260] sm:$0xff]  ;;  %v17237_v7 = vand.u32 4294901760, %v11939_v49 }
  0xd7   :  { %v11991_v60 = vsub.f32 %v11899_v61, %v17226_v52  ;;  %17227 = vst [vmem:[#allocation72_spill] sm:$0xff] %v12000_v33  ;;  %17232 = vst [vmem:[#allocation74_spill] sm:$0xff] %v12013_v26  ;;  %v12038_v51 = vld [vmem:[#allocation5 + $0x268] sm:$0xff]  ;;  %v12042_v6 = vld [vmem:[#allocation5 + $0x2f8] sm:$0xff] }
  0xd8   :  { %9361 = vmatpush3.bf16.msra.mxu0 %v17228_v30  ;;  %v12008_v52 = vsub.f32 %v11914_v15, %v17229_v36  ;;  %v12018_v61 = vsub.f32 %v11918_v57, %v17233_v1  ;;  %17235 = vst [vmem:[#allocation76_spill] sm:$0xff] %v12021_v48  ;;  %v17236_v30 = vpack.c.bf16 %v11287_v27, %v11282_v23  ;;  %17238 = vst [vmem:[#allocation77_spill] sm:$0xff] %v12038_v51  ;;  %v12040_v15 = vld [vmem:[#allocation5 + $0x2f0] sm:$0xff] }
  0xd9   :  { %v12033_v36 = vsub.f32 %v11939_v49, %v17237_v7  ;;  %17239 = vst [vmem:[#allocation78_spill] sm:$0xff] %v12040_v15  ;;  %17240 = vst [vmem:[#allocation79_spill] sm:$0xff] %v12042_v6  ;;  %9393 = vmatpush3.bf16.msra.mxu1 %v11682_v0  ;;  %v17241_v23 = vand.u32 4294901760, %v11950_v3  ;;  %v12057_v29 = vld [vmem:[#allocation5 + $0x270] sm:$0xff]  ;;  %v12059_v49 = vld [vmem:[#allocation5 + $0x278] sm:$0xff]  ;;  %v16502_v57 = vand.u32 4294901760, %v12025_v50  ;;  %v17247_v0 = vpack.c.bf16 %v11365_v41, %v11360_v55 }
  0xda   :  { %17230 = vst [vmem:[#allocation73_spill] sm:$0xff] %v12008_v52  ;;  %17234 = vst [vmem:[#allocation75_spill] sm:$0xff] %v12018_v61  ;;  %9363 = vmatprep.subr.bf16.mxu0 %v17236_v30  ;;  %v17242_v30 = vand.u32 4294901760, %v11952_v18  ;;  %9395 = vmatprep.subr.bf16.mxu1 %v17245_v5  ;;  %v17249_v1 = vld [vmem:[#allocation20_spill] sm:$0xff]  ;;  %v17253_v41 = vand.u32 4294901760, %v12023_v43 }
  0xdb   :  { %v12048_v27 = vsub.f32 %v11950_v3, %v17241_v23  ;;  %17243 = vst [vmem:[#allocation80_spill] sm:$0xff] %v12057_v29  ;;  %17244 = vst [vmem:[#allocation81_spill] sm:$0xff] %v12059_v49  ;;  %v16499_v23 = vand.u32 4294901760, %v12000_v33  ;;  %v17248_v3 = vand.u32 4294901760, %v11985_v42 }
  0xdc   :  { %v12053_v7 = vsub.f32 %v11952_v18, %v17242_v30  ;;  %v17246_v30 = vpack.c.bf16 %v11334_v46, %v11322_v21  ;;  %v17250_v18 = vand.u32 4294901760, %v11996_v8  ;;  %v17254_v46 = vpack.c.bf16 %v17186_v62, %v11387_v45 }
  0xdd   :  { %v12079_v53 = vsub.f32 %v11985_v42, %v17248_v3  ;;  %9397 = vmatpush3.bf16.msra.mxu1 %v17249_v1  ;;  %v17251_v3 = vand.u32 4294901760, %v11998_v14  ;;  %v17258_v62 = vpack.c.bf16 %v11441_v19, %v17187_v4  ;;  %v17281_v19 = vand.u32 4294901760, %v11972_v39 }
  0xde   :  { %9365 = vmatpush3.bf16.msra.mxu0 %v17246_v30  ;;  %v12088_v5 = vsub.f32 %v11996_v8, %v17250_v18  ;;  %9399 = vmatprep.subr.bf16.mxu1 %v11714_v28  ;;  %v12102_v30 = vsub.f32 %v12000_v33, %v16499_v23  ;;  %v17252_v18 = vand.u32 4294901760, %v12021_v48  ;;  %v17255_v23 = vand.u32 4294901760, %v12038_v51 }
  0xdf   :  { %9367 = vmatprep.subr.bf16.mxu0 %v17247_v0  ;;  %v12097_v21 = vsub.f32 %v11998_v14, %v17251_v3  ;;  %v12112_v0 = vsub.f32 %v12023_v43, %v17253_v41  ;;  %v12120_v3 = vsub.f32 %v12025_v50, %v16502_v57  ;;  %v17257_v41 = vand.u32 4294901760, %v12042_v6 }
  0xe0   :  { %v12107_v55 = vsub.f32 %v12021_v48, %v17252_v18  ;;  %v12125_v33 = vsub.f32 %v12038_v51, %v17255_v23  ;;  %v17256_v18 = vand.u32 4294901760, %v12040_v15  ;;  %v17259_v23 = vand.u32 4294901760, %v12057_v29 }
  0xe1   :  { %v12135_v45 = vsub.f32 %v12042_v6, %v17257_v41  ;;  %9401 = vmatpush3.bf16.msra.mxu1 %v11737_v17  ;;  %v17265_v57 = vand.u32 4294901760, %v11876_v9  ;;  %v17278_v41 = vand.u32 4294901760, %v11945_v31  ;;  %v17357_v6 = vld [vmem:[#allocation59_spill] sm:$0xff] }
  0xe2   :  { %9369 = vmatpush3.bf16.msra.mxu0 %v17254_v46  ;;  %v12130_v48 = vsub.f32 %v12040_v15, %v17256_v18  ;;  %v12145_v51 = vsub.f32 %v12057_v29, %v17259_v23  ;;  %v17261_v18 = vand.u32 4294901760, %v12059_v49  ;;  %9403 = vmatprep.subr.bf16.mxu1 %v11744_v37  ;;  %v17264_v23 = vpack.c.bf16 %v11468_v16, %v11463_v11  ;;  %v17330_v29 = vld [vmem:[#allocation49_spill] sm:$0xff] }
  0xe3   :  { %9371 = vmatprep.subr.bf16.mxu0 %v17258_v62  ;;  %v17269_v62 = vand.u32 4294901760, %v11897_v40  ;;  %v17271_v11 = vand.u32 4294901760, %v11905_v58  ;;  %v17272_v16 = vand.u32 4294901760, %v11910_v54  ;;  %v17275_v46 = vand.u32 4294901760, %v11931_v13 }
  0xe4   :  { %17260 = vst [vmem:[#allocation20_spill] sm:$0xff] %v12145_v51  ;;  %v12150_v15 = vsub.f32 %v12059_v49, %v17261_v18  ;;  %v17263_v49 = vpack.c.bf16 %v11455_v35, %v11450_v63  ;;  %v17266_v35 = vand.u32 4294901760, %v11881_v32  ;;  %v17274_v18 = vand.u32 4294901760, %v11926_v10 }
  0xe5   :  { %9405 = vmatpush3.bf16.msra.mxu1 %v11767_v44 }
  0xe6   :  { %17262 = vst [vmem:[#allocation82_spill] sm:$0xff] %v12150_v15  ;;  %9373 = vmatpush3.bf16.msra.mxu0 %v17263_v49  ;;  %v12178_v63 = vpack.c.bf16 %v17266_v35, %v17265_v57  ;;  %v17268_v49 = vand.u32 4294901760, %v11892_v38  ;;  %v12197_v57 = vpack.c.bf16 %v17275_v46, %v17274_v18  ;;  %v17277_v35 = vand.u32 4294901760, %v11936_v59  ;;  %9407 = vmatprep.subr.bf16.mxu1 %v11774_v12 }
  0xe7   :  { %9375 = vmatprep.subr.bf16.mxu0 %v17264_v23  ;;  %v12191_v23 = vpack.c.bf16 %v17272_v16, %v17271_v11  ;;  %v17283_v11 = vand.u32 4294901760, %v11980_v25  ;;  %v17284_v16 = vand.u32 4294901760, %v11991_v60  ;;  %v17286_v18 = vand.u32 4294901760, %v12008_v52 }
  0xe8   :  { %17267 = vst [vmem:[#allocation83_spill] sm:$0xff] %v12178_v63  ;;  %v12184_v4 = vpack.c.bf16 %v17269_v62, %v17268_v49  ;;  %17276 = vst [vmem:[#allocation86_spill] sm:$0xff] %v12197_v57  ;;  %v12203_v62 = vpack.c.bf16 %v17278_v41, %v17277_v35  ;;  %v17280_v49 = vand.u32 4294901760, %v11967_v47  ;;  %v17287_v57 = vand.u32 4294901760, %v12013_v26 }
  0xe9   :  { %17273 = vst [vmem:[#allocation85_spill] sm:$0xff] %v12191_v23  ;;  %v12216_v46 = vpack.c.bf16 %v17284_v16, %v17283_v11  ;;  %v17289_v35 = vand.u32 4294901760, %v12018_v61  ;;  %v17295_v11 = vpack.c.bf16 %v11480_v56, %v11474_v20  ;;  %v17296_v16 = vand.u32 4294901760, %v12079_v53  ;;  %9409 = vmatpush3.bf16.msra.mxu1 %v11788_v34 }
  0xea   :  { %17270 = vst [vmem:[#allocation84_spill] sm:$0xff] %v12184_v4  ;;  %17279 = vst [vmem:[#allocation87_spill] sm:$0xff] %v12203_v62  ;;  %v12209_v4 = vpack.c.bf16 %v17281_v19, %v17280_v49  ;;  %v12222_v41 = vpack.c.bf16 %v17287_v57, %v17286_v18  ;;  %v17290_v62 = vand.u32 4294901760, %v12033_v36  ;;  %v17292_v49 = vand.u32 4294901760, %v12048_v27  ;;  %9411 = vmatprep.subr.bf16.mxu1 %v11795_v24 }
  0xeb   :  { %17285 = vst [vmem:[#allocation89_spill] sm:$0xff] %v12216_v46  ;;  %9377 = vmatpush3.bf16.msra.mxu0 %v17295_v11  ;;  %v17297_v57 = vand.u32 4294901760, %v12088_v5  ;;  %v17305_v56 = vand.u32 4294901760, %v12120_v3  ;;  %v17306_v20 = vand.u32 4294901760, %v12125_v33 }
  0xec   :  { %17282 = vst [vmem:[#allocation88_spill] sm:$0xff] %v12209_v4  ;;  %17288 = vst [vmem:[#allocation90_spill] sm:$0xff] %v12222_v41  ;;  %v12228_v19 = vpack.c.bf16 %v17290_v62, %v17289_v35  ;;  %v17293_v4 = vand.u32 4294901760, %v12053_v7  ;;  %v17299_v41 = vand.u32 4294901760, %v12097_v21  ;;  %v17300_v62 = vand.u32 4294901760, %v12102_v30 }
  0xed   :  { %v12243_v18 = vpack.c.bf16 %v17297_v57, %v17296_v16  ;;  %v12261_v11 = vpack.c.bf16 %v17306_v20, %v17305_v56  ;;  %v17308_v16 = vpack.c.bf16 %v11490_v2, %v11485_v22  ;;  %v17309_v57 = vand.u32 4294901760, %v12130_v48  ;;  %v17315_v56 = vld [vmem:[#allocation44_spill] sm:$0xff]  ;;  %v17316_v20 = vld [vmem:[#allocation43_spill] sm:$0xff] }
  0xee   :  { %17291 = vst [vmem:[#allocation91_spill] sm:$0xff] %v12228_v19  ;;  %v12234_v23 = vpack.c.bf16 %v17293_v4, %v17292_v49  ;;  %v12249_v35 = vpack.c.bf16 %v17300_v62, %v17299_v41  ;;  %v17302_v19 = vand.u32 4294901760, %v12107_v55  ;;  %v17303_v4 = vand.u32 4294901760, %v12112_v0  ;;  %v12283_v22 = vld [vmem:[#allocation2 + $0x8] sm:$0xff] }
  0xef   :  { %17298 = vst [vmem:[#allocation93_spill] sm:$0xff] %v12243_v18  ;;  %17307 = vst [vmem:[#allocation96_spill] sm:$0xff] %v12261_v11  ;;  %9379 = vmatprep.subr.bf16.mxu0 %v17308_v16  ;;  %v17310_v41 = vand.u32 4294901760, %v12135_v45  ;;  %v17317_v2 = vpack.c.bf16 %v17315_v56, %v17316_v20  ;;  %v17318_v16 = vld [vmem:[#allocation45_spill] sm:$0xff]  ;;  %v17322_v11 = vld [vmem:[#allocation46_spill] sm:$0xff] }
  0xf0   :  { %17294 = vst [vmem:[#allocation92_spill] sm:$0xff] %v12234_v23  ;;  %17301 = vst [vmem:[#allocation94_spill] sm:$0xff] %v12249_v35  ;;  %v12255_v49 = vpack.c.bf16 %v17303_v4, %v17302_v19  ;;  %v17312_v35 = vand.u32 4294901760, %v12145_v51  ;;  %v17313_v19 = vand.u32 4294901760, %v12150_v15  ;;  %v17323_v56 = vld [vmem:[#allocation41_spill] sm:$0xff]  ;;  %v17326_v18 = vld [vmem:[#allocation24_spill] sm:$0xff] }
  0xf1   :  { %v12270_v62 = vpack.c.bf16 %v17310_v41, %v17309_v57  ;;  %9381 = vmatpush3.bf16.msra.mxu0 %v17317_v2  ;;  %v12286_v57 = vld [vmem:[#allocation2 + $0x28] sm:$0xff] }
  0xf2   :  { %17304 = vst [vmem:[#allocation95_spill] sm:$0xff] %v12255_v49  ;;  %v12276_v4 = vpack.c.bf16 %v17313_v19, %v17312_v35  ;;  %9415 = vmatprep.subr.bf16.mxu0 %v17318_v16  ;;  %v12288_v41 = vld [vmem:[#allocation2 + $0x48] sm:$0xff]  ;;  %v17319_v35 = vld [vmem:[#allocation14_spill] sm:$0xff]  ;;  %v17320_v19 = vld [vmem:[#allocation36_spill] sm:$0xff]  ;;  %v374_v20 = vcombine.low %v12283_v22, %v12286_v57 }
  0xf3   :  { %17311 = vst [vmem:[#allocation97_spill] sm:$0xff] %v12270_v62  ;;  %v12290_v62 = vld [vmem:[#allocation2 + $0x68] sm:$0xff]  ;;  %9413 = vmatpush3.bf16.msra.mxu1 %v17319_v35  ;;  %v17325_v49 = vand.u32 4294901760, %v17320_v19 }
  0xf4   :  { %17314 = vst [vmem:[#allocation98_spill] sm:$0xff] %v12276_v4  ;;  %1837 = vmatmul.mubr.f32.vlgmr.msra.gmra.mrb[8].mxu0 %v17320_v19  ;;  %v17321_v4 = vld [vmem:[#allocation25_spill] sm:$0xff]  ;;  %v376_v2 = vcombine.low %v12288_v41, %v12290_v62  ;;  %v17324_v16 = vld [vmem:[#allocation47_spill] sm:$0xff] }
  0xf5   :  { %9447 = vmatprep.subr.bf16.mxu1 %v17321_v4  ;;  %9417 = vmatpush3.bf16.msra.mxu0 %v17322_v11  ;;  %v17327_v4 = vld [vmem:[#allocation28_spill] sm:$0xff]  ;;  %v17329_v23 = vld [vmem:[#allocation11_spill] sm:$0xff]  ;;  %v17332_v19 = vld [vmem:[#allocation33_spill] sm:$0xff] }
  0xf6   :  { %2111 = vmatprep.mubr.f32.mxu0 %v17323_v56  ;;  %9419 = vmatprep.subr.bf16.mxu0 %v17324_v16  ;;  %v17328_v11 = vld [vmem:[#allocation48_spill] sm:$0xff]  ;;  %v12309_v46 = vrot.slane %v374_v20, %v17329_v23  ;;  %v12312_v63 = vrot.slane %v376_v2, %v17329_v23  ;;  %v17331_v16 = vld [vmem:[#allocation31_spill] sm:$0xff]  ;;  %v17336_v20 = vld [vmem:[#allocation17_spill] sm:$0xff] }
  0xf7   :  { %1945 = vmatmul.mubr.f32.vlgmr.msra.gmra.mrb[8].mxu1 %v17325_v49  ;;  %v17333_v49 = vld [vmem:[#allocation50_spill] sm:$0xff] }
  0xf8   :  { %9449 = vmatpush3.bf16.msra.mxu1 %v17326_v18  ;;  %2215 = vmatprep.mubr.f32.mxu1 %v17323_v56  ;;  %v407_v18 = vcombine.high %v12309_v46, %v12312_v63  ;;  %v17334_v56 = vld [vmem:[#allocation51_spill] sm:$0xff] }
  0xf9   :  { %9451 = vmatprep.subr.bf16.mxu1 %v17327_v4  ;;  %9421 = vmatpush3.bf16.msra.mxu0 %v17328_v11  ;;  %v17335_v4 = vld [vmem:[#allocation12_spill] sm:$0xff] }
  0xfa   :  { %9423 = vmatprep.subr.bf16.mxu0 %v17330_v29  ;;  %v17337_v11 = vld [vmem:[#allocation52_spill] sm:$0xff]  ;;  %v12324_v2 = vand.u32 4294901760, %v407_v18  ;;  %v17339_v29 = vld [vmem:[#allocation53_spill] sm:$0xff] }
  0xfc   :  { %9453 = vmatpush3.bf16.msra.mxu1 %v17331_v16  ;;  %17338 = vst [vmem:[#allocation44_spill] sm:$0xff] %v12324_v2  ;;  %v17340_v16 = vld [vmem:[#allocation54_spill] sm:$0xff] }
  0xfd   :  { %9455 = vmatprep.subr.bf16.mxu1 %v17332_v19  ;;  %9425 = vmatpush3.bf16.msra.mxu0 %v17333_v49  ;;  %v12331_v19 = vsub.f32 %v407_v18, %v12324_v2  ;;  %v17342_v49 = vld [vmem:[#allocation55_spill] sm:$0xff]  ;;  %v17346_v18 = vld [vmem:[#allocation57_spill] sm:$0xff] }
  0xfe   :  { %9427 = vmatprep.subr.bf16.mxu0 %v17334_v56  ;;  %v17343_v56 = vand.u32 4294901760, %v11876_v9 }
  0xff   :  { %17341 = vst [vmem:[#allocation43_spill] sm:$0xff] %v12331_v19 }
 0x100   :  { %9457 = vmatpush3.bf16.msra.mxu1 %v17335_v4  ;;  %v2450_v4 = vsub.f32 %v11876_v9, %v17343_v56  ;;  %v17354_v9 = vld [vmem:[#allocation16_spill] sm:$0xff] }
 0x101   :  { %9459 = vmatprep.subr.bf16.mxu1 %v17336_v20  ;;  %9429 = vmatpush3.bf16.msra.mxu0 %v17337_v11  ;;  %v17344_v20 = vand.u32 4294901760, %v11881_v32 }
 0x102   :  { %9431 = vmatprep.subr.bf16.mxu0 %v17339_v29  ;;  %v17347_v29 = vand.u32 4294901760, %v11892_v38 }
 0x104   :  { %9461 = vmatpush3.bf16.msra.mxu1 %v17249_v1  ;;  %v2457_v1 = vsub.f32 %v11881_v32, %v17344_v20  ;;  %v17350_v20 = vand.u32 4294901760, %v11910_v54  ;;  %v17351_v32 = vld [vmem:[#allocation58_spill] sm:$0xff] }
 0x105   :  { %9463 = vmatprep.subr.bf16.mxu1 %v11714_v28  ;;  %9433 = vmatpush3.bf16.msra.mxu0 %v17340_v16  ;;  %v17345_v28 = vld [vmem:[#allocation56_spill] sm:$0xff] }
 0x106   :  { %9435 = vmatprep.subr.bf16.mxu0 %v17342_v49  ;;  %v17349_v49 = vand.u32 4294901760, %v11905_v58  ;;  %v2458_v11 = vand.u32 4294901760, %v2457_v1 }
 0x108   :  { %9465 = vmatpush3.bf16.msra.mxu1 %v11737_v17  ;;  %v2338_v17 = vsub.f32 %v11892_v38, %v17347_v29  ;;  %v2464_v56 = vsub.f32 %v11905_v58, %v17349_v49  ;;  %v17352_v29 = vld [vmem:[#allocation15_spill] sm:$0xff]  ;;  %v17356_v49 = vand.u32 4294901760, %v12331_v19 }
 0x109   :  { %9467 = vmatprep.subr.bf16.mxu1 %v11744_v37  ;;  %9437 = vmatpush3.bf16.msra.mxu0 %v17345_v28  ;;  %v17348_v37 = vand.u32 4294901760, %v11897_v40  ;;  %v2471_v28 = vsub.f32 %v11910_v54, %v17350_v20  ;;  %v17353_v38 = vand.u32 4294901760, %v17352_v29  ;;  %v17360_v29 = vand.u32 4294901760, %v11936_v59 }
 0x10a   :  { %9439 = vmatprep.subr.bf16.mxu0 %v17346_v18  ;;  %v2451_v18 = vand.u32 4294901760, %v2450_v4  ;;  %v2321_v58 = vsub.f32 %v12331_v19, %v17356_v49  ;;  %v2339_v20 = vand.u32 4294901760, %v2338_v17  ;;  %v2465_v54 = vand.u32 4294901760, %v2464_v56  ;;  %v17363_v56 = vld [vmem:[#allocation23_spill] sm:$0xff] }
 0x10b   :  { %v2345_v16 = vsub.f32 %v11897_v40, %v17348_v37  ;;  %v17355_v37 = vand.u32 4294901760, %v17354_v9  ;;  %v17359_v9 = vand.u32 4294901760, %v11931_v13  ;;  %v17361_v17 = vand.u32 4294901760, %v11945_v31 }
 0x10c   :  { %9469 = vmatpush3.bf16.msra.mxu1 %v11767_v44  ;;  %v9510_v1 = vpack.c.bf16 %v2458_v11, %v2451_v18  ;;  %v17369_v18 = vld [vmem:[#allocation29_spill] sm:$0xff] }
 0x10d   :  { %9471 = vmatprep.subr.bf16.mxu1 %v11774_v12  ;;  %9441 = vmatpush3.bf16.msra.mxu0 %v17351_v32  ;;  %v12364_v40 = vpack.c.bf16 %v17355_v37, %v17353_v38  ;;  %v2346_v44 = vand.u32 4294901760, %v2345_v16  ;;  %v2472_v12 = vand.u32 4294901760, %v2471_v28  ;;  %v17358_v32 = vand.u32 4294901760, %v11926_v10  ;;  %v17365_v37 = vld [vmem:[#allocation26_spill] sm:$0xff] }
 0x10e   :  { %9443 = vmatprep.subr.bf16.mxu0 %v17357_v6  ;;  %v2359_v38 = vsub.f32 %v11931_v13, %v17359_v9  ;;  %v2478_v6 = vsub.f32 %v11936_v59, %v17360_v29  ;;  %v2485_v16 = vsub.f32 %v11945_v31, %v17361_v17  ;;  %v17364_v28 = vand.u32 4294901760, %v17363_v56  ;;  %v17371_v59 = vld [vmem:[#allocation30_spill] sm:$0xff]  ;;  %v17373_v17 = vld [vmem:[#allocation21_spill] sm:$0xff] }
 0x10f   :  { %v2352_v4 = vsub.f32 %v11926_v10, %v17358_v32  ;;  %v17366_v49 = vand.u32 4294901760, %v17365_v37  ;;  %v2322_v9 = vand.u32 4294901760, %v2321_v58  ;;  %v17370_v19 = vand.u32 4294901760, %v17369_v18 }
 0x110   :  { %9473 = vmatpush3.bf16.msra.mxu1 %v11788_v34  ;;  %v17362_v34 = vld [vmem:[#allocation60_spill] sm:$0xff]  ;;  %v17372_v13 = vand.u32 4294901760, %v17371_v59  ;;  %v17374_v31 = vand.u32 4294901760, %v17373_v17  ;;  %v9512_v56 = vpack.c.bf16 %v2346_v44, %v2339_v20  ;;  %v9514_v10 = vpack.c.bf16 %v2472_v12, %v2465_v54  ;;  %v17385_v17 = vld [vmem:[#allocation34_spill] sm:$0xff] }
 0x111   :  { %9475 = vmatprep.subr.bf16.mxu1 %v11795_v24  ;;  %9445 = vmatpush3.bf16.msra.mxu0 %v17362_v34  ;;  %v12389_v32 = vpack.c.bf16 %v17366_v49, %v17364_v28  ;;  %v17367_v24 = vld [vmem:[#allocation27_spill] sm:$0xff]  ;;  %v2353_v28 = vand.u32 4294901760, %v2352_v4  ;;  %v2360_v58 = vand.u32 4294901760, %v2359_v38  ;;  %v17375_v37 = vand.u32 4294901760, %v11967_v47 }
 0x112   :  { %9479 = vmatprep.subr.bf16.mxu0 %v12364_v40  ;;  %v17368_v11 = vand.u32 4294901760, %v17367_v24  ;;  %v12402_v34 = vpack.c.bf16 %v17374_v31, %v17372_v13  ;;  %v17376_v24 = vand.u32 4294901760, %v11972_v39  ;;  %v2479_v59 = vand.u32 4294901760, %v2478_v6 }
 0x113   :  { %v2366_v49 = vsub.f32 %v11967_v47, %v17375_v37  ;;  %v2486_v13 = vand.u32 4294901760, %v2485_v16  ;;  %v17378_v31 = vand.u32 4294901760, %v11980_v25  ;;  %v17380_v44 = vand.u32 4294901760, %v12008_v52  ;;  %v17383_v16 = vld [vmem:[#allocation32_spill] sm:$0xff] }
 0x114   :  { %v12396_v29 = vpack.c.bf16 %v17370_v19, %v17368_v11  ;;  %9477 = vmatpush3.bf16.msra.mxu1 %v17319_v35  ;;  %v2373_v19 = vsub.f32 %v11972_v39, %v17376_v24  ;;  %v17377_v11 = vld [vmem:[#allocation13_spill] sm:$0xff]  ;;  %v17379_v35 = vand.u32 4294901760, %v11991_v60  ;;  %v17381_v4 = vand.u32 4294901760, %v12013_v26 }
 0x115   :  { %2113 = vmatmul.mubr.f32.vlgmr.msra.gmra.mrb[10].mxu0 %v17377_v11  ;;  %9511 = vmatprep.subr.bf16.mxu1 %v9510_v1  ;;  %v2492_v54 = vsub.f32 %v11980_v25, %v17378_v31  ;;  %v2380_v12 = vsub.f32 %v12008_v52, %v17380_v44  ;;  %v17382_v1 = vand.u32 4294901760, %v12018_v61  ;;  %v17384_v18 = vand.u32 4294901760, %v17383_v16  ;;  %v17388_v44 = vld [vmem:[#allocation35_spill] sm:$0xff] }
 0x116   :  { %v2499_v20 = vsub.f32 %v11991_v60, %v17379_v35  ;;  %9481 = vmatpush3.bf16.msra.mxu0 %v12389_v32  ;;  %v2387_v38 = vsub.f32 %v12013_v26, %v17381_v4  ;;  %2323 = vmatprep.mubr.f32.mxu0 %v2322_v9  ;;  %v17386_v37 = vand.u32 4294901760, %v17385_v17  ;;  %v17387_v31 = vand.u32 4294901760, %v12033_v36  ;;  %v17390_v26 = vld [vmem:[#allocation18_spill] sm:$0xff] }
 0x117   :  { %v2506_v6 = vsub.f32 %v12018_v61, %v17382_v1  ;;  %9483 = vmatprep.subr.bf16.mxu0 %v12396_v29  ;;  %2217 = vmatmul.mubr.f32.vlgmr.msra.gmra.mrb[10].mxu1 %v17377_v11  ;;  %v17389_v4 = vand.u32 4294901760, %v17388_v44  ;;  %v17391_v52 = vand.u32 4294901760, %v17390_v26  ;;  %v9516_v9 = vpack.c.bf16 %v2360_v58, %v2353_v28  ;;  %v17394_v26 = vld [vmem:[#allocation37_spill] sm:$0xff] }
 0x118   :  { %v12434_v24 = vpack.c.bf16 %v17386_v37, %v17384_v18  ;;  %v2513_v35 = vsub.f32 %v12033_v36, %v17387_v31  ;;  %9513 = vmatpush3.bf16.msra.mxu1 %v9512_v56  ;;  %v2367_v61 = vand.u32 4294901760, %v2366_v49  ;;  %v2374_v11 = vand.u32 4294901760, %v2373_v19  ;;  %2559 = vmatprep.mubr.f32.mxu1 %v12324_v2  ;;  %v17392_v31 = vld [vmem:[#allocation39_spill] sm:$0xff] }
 0x119   :  { %v12443_v1 = vpack.c.bf16 %v17391_v52, %v17389_v4  ;;  %9515 = vmatprep.subr.bf16.mxu1 %v9514_v10  ;;  %v9518_v16 = vpack.c.bf16 %v2486_v13, %v2479_v59  ;;  %v2493_v18 = vand.u32 4294901760, %v2492_v54  ;;  %v2500_v17 = vand.u32 4294901760, %v2499_v20 }
 0x11a   :  { %v375_v37 = vcombine.high %v12283_v22, %v12286_v57  ;;  %9485 = vmatpush3.bf16.msra.mxu0 %v12402_v34  ;;  %v17393_v44 = vand.u32 4294901760, %v17392_v31  ;;  %v17395_v52 = vand.u32 4294901760, %v17394_v26  ;;  %v2381_v56 = vand.u32 4294901760, %v2380_v12 }
 0x11b   :  { %v2388_v28 = vand.u32 4294901760, %v2387_v38  ;;  %v2507_v58 = vand.u32 4294901760, %v2506_v6  ;;  %9487 = vmatprep.subr.bf16.mxu0 %v12434_v24  ;;  %v2514_v10 = vand.u32 4294901760, %v2513_v35  ;;  %v406_v49 = vcombine.low %v12309_v46, %v12312_v63  ;;  %v17402_v35 = vld [vmem:[#allocation63_spill] sm:$0xff] }
 0x11c   :  { %v12453_v4 = vpack.c.bf16 %v17395_v52, %v17393_v44  ;;  %v377_v22 = vcombine.high %v12288_v41, %v12290_v62  ;;  %v391_v57 = vrot.slane %v375_v37, %v17329_v23  ;;  %9517 = vmatpush3.bf16.msra.mxu1 %v9516_v9  ;;  %v9520_v19 = vpack.c.bf16 %v2374_v11, %v2367_v61  ;;  %v17400_v41 = vld [vmem:[#allocation62_spill] sm:$0xff] }
 0x11d   :  { %v17396_v59 = vand.u32 4294901760, %v12048_v27  ;;  %v17397_v54 = vand.u32 4294901760, %v12053_v7  ;;  %9519 = vmatprep.subr.bf16.mxu1 %v9518_v16  ;;  %v9522_v12 = vpack.c.bf16 %v2500_v17, %v2493_v18  ;;  %v17398_v38 = vand.u32 4294901760, %v12079_v53  ;;  %v17404_v16 = vld [vmem:[#allocation64_spill] sm:$0xff] }
 0x11e   :  { %v17399_v46 = vand.u32 4294901760, %v12088_v5  ;;  %v405_v61 = vrot.slane %v377_v22, %v17329_v23  ;;  %9489 = vmatpush3.bf16.msra.mxu0 %v12443_v1  ;;  %v17401_v6 = vand.u32 4294901760, %v17400_v41  ;;  %v17403_v9 = vand.u32 4294901760, %v17402_v35  ;;  %v17406_v17 = vld [vmem:[#allocation68_spill] sm:$0xff] }
 0x11f   :  { %v2394_v13 = vsub.f32 %v12048_v27, %v17396_v59  ;;  %v2401_v20 = vsub.f32 %v12053_v7, %v17397_v54  ;;  %v2520_v63 = vsub.f32 %v12079_v53, %v17398_v38  ;;  %v17405_v18 = vand.u32 4294901760, %v17404_v16  ;;  %9491 = vmatprep.subr.bf16.mxu0 %v12453_v4 }
 0x120   :  { %v2527_v62 = vsub.f32 %v12088_v5, %v17399_v46  ;;  %v12479_v11 = vpack.c.bf16 %v17403_v9, %v17401_v6  ;;  %v17407_v37 = vand.u32 4294901760, %v17406_v17  ;;  %v9524_v44 = vpack.c.bf16 %v2388_v28, %v2381_v56  ;;  %9521 = vmatpush3.bf16.msra.mxu1 %v9520_v19 }
 0x121   :  { %v9526_v26 = vpack.c.bf16 %v2514_v10, %v2507_v58  ;;  %v12488_v52 = vand.u32 4294901760, %v406_v49  ;;  %v12490_v22 = vcombine.high %v391_v57, %v405_v61  ;;  %v12492_v59 = vcombine.low %v391_v57, %v405_v61  ;;  %9523 = vmatprep.subr.bf16.mxu1 %v9522_v12  ;;  %v17416_v61 = vld [vmem:[#allocation71_spill] sm:$0xff] }
 0x122   :  { %v12485_v31 = vpack.c.bf16 %v17407_v37, %v17405_v18  ;;  %v2395_v54 = vand.u32 4294901760, %v2394_v13  ;;  %v2402_v38 = vand.u32 4294901760, %v2401_v20  ;;  %v17410_v46 = vand.u32 4294901760, %v12097_v21  ;;  %9493 = vmatpush3.bf16.msra.mxu0 %v12479_v11  ;;  %v17414_v13 = vld [vmem:[#allocation70_spill] sm:$0xff] }
 0x123   :  { %17408 = vst [vmem:[#allocation45_spill] sm:$0xff] %v12490_v22  ;;  %17409 = vst [vmem:[#allocation14_spill] sm:$0xff] %v12492_v59  ;;  %v17411_v6 = vand.u32 4294901760, %v12102_v30  ;;  %v2521_v28 = vand.u32 4294901760, %v2520_v63  ;;  %v2528_v58 = vand.u32 4294901760, %v2527_v62  ;;  %v17412_v10 = vand.u32 4294901760, %v12107_v55 }
 0x124   :  { %v2408_v41 = vsub.f32 %v12097_v21, %v17410_v46  ;;  %v17413_v57 = vand.u32 4294901760, %v12112_v0  ;;  %v17415_v20 = vand.u32 4294901760, %v17414_v13  ;;  %v17417_v9 = vand.u32 4294901760, %v17416_v61  ;;  %9495 = vmatprep.subr.bf16.mxu0 %v12485_v31  ;;  %9525 = vmatpush3.bf16.msra.mxu1 %v9524_v44 }
 0x125   :  { %v2415_v56 = vsub.f32 %v12102_v30, %v17411_v6  ;;  %v2534_v35 = vsub.f32 %v12107_v55, %v17412_v10  ;;  %v17418_v12 = vand.u32 4294901760, %v11985_v42  ;;  %v17419_v63 = vand.u32 4294901760, %v11996_v8  ;;  %9527 = vmatprep.subr.bf16.mxu1 %v9526_v26  ;;  %v12550_v26 = vld [vmem:[#allocation5 + $0x388] sm:$0xff] }
 0x126   :  { %v2541_v19 = vsub.f32 %v12112_v0, %v17413_v57  ;;  %v12511_v16 = vpack.c.bf16 %v17417_v9, %v17415_v20  ;;  %v17420_v18 = vand.u32 4294901760, %v12120_v3  ;;  %v12524_v37 = vsub.f32 %v406_v49, %v12488_v52  ;;  %17434 = vst [vmem:[#allocation47_spill] sm:$0xff] %v12550_v26 }
 0x127   :  { %v12517_v62 = vpack.c.bf16 %v17419_v63, %v17418_v12  ;;  %v17422_v46 = vand.u32 4294901760, %v12125_v33  ;;  %v17423_v10 = vand.u32 4294901760, %v12130_v48  ;;  %v17424_v8 = vand.u32 4294901760, %v12135_v45 }
 0x128   :  { %v2422_v17 = vsub.f32 %v12120_v3, %v17420_v18  ;;  %17421 = vst [vmem:[#allocation36_spill] sm:$0xff] %v12524_v37  ;;  %v9528_v13 = vpack.c.bf16 %v2402_v38, %v2395_v54  ;;  %v2409_v20 = vand.u32 4294901760, %v2408_v41  ;;  %v2416_v61 = vand.u32 4294901760, %v2415_v56  ;;  %9497 = vmatpush3.bf16.msra.mxu0 %v12511_v16  ;;  %v17426_v18 = vld [vmem:[#allocation72_spill] sm:$0xff]  ;;  %v12548_v38 = vld [vmem:[#allocation5 + $0x380] sm:$0xff] }
 0x129   :  { %v2429_v6 = vsub.f32 %v12125_v33, %v17422_v46  ;;  %v2548_v42 = vsub.f32 %v12130_v48, %v17423_v10  ;;  %v2555_v57 = vsub.f32 %v12135_v45, %v17424_v8  ;;  %v9530_v9 = vpack.c.bf16 %v2528_v58, %v2521_v28  ;;  %v17429_v10 = vld [vmem:[#allocation76_spill] sm:$0xff]  ;;  %17433 = vst [vmem:[#allocation41_spill] sm:$0xff] %v12548_v38  ;;  %v12554_v58 = vld [vmem:[#allocation5 + $0x300] sm:$0xff] }
 0x12a   :  { %v2535_v49 = vand.u32 4294901760, %v2534_v35  ;;  %v2542_v12 = vand.u32 4294901760, %v2541_v19  ;;  %v17425_v63 = vand.u32 4294901760, %v11998_v14  ;;  %v17427_v46 = vand.u32 4294901760, %v17426_v18  ;;  %9499 = vmatprep.subr.bf16.mxu0 %v12517_v62  ;;  %17435 = vst [vmem:[#allocation24_spill] sm:$0xff] %v12554_v58  ;;  %v12556_v35 = vld [vmem:[#allocation5 + $0x308] sm:$0xff]  ;;  %9529 = vmatpush3.bf16.msra.mxu1 %v9528_v13 }
 0x12b   :  { %v17430_v59 = vand.u32 4294901760, %v17429_v10  ;;  %v17431_v8 = vand.u32 4294901760, %v12023_v43  ;;  %v2423_v54 = vand.u32 4294901760, %v2422_v17  ;;  %v2430_v14 = vand.u32 4294901760, %v2429_v6  ;;  %17436 = vst [vmem:[#allocation28_spill] sm:$0xff] %v12556_v35  ;;  %9531 = vmatprep.subr.bf16.mxu1 %v9530_v9  ;;  %v12595_v13 = vld [vmem:[#allocation5 + $0x318] sm:$0xff] }
 0x12c   :  { %v12540_v23 = vpack.c.bf16 %v17427_v46, %v17425_v63  ;;  %v2549_v56 = vand.u32 4294901760, %v2548_v42  ;;  %v2556_v28 = vand.u32 4294901760, %v2555_v57  ;;  %v17437_v43 = vand.u32 4294901760, %v12025_v50  ;;  %v17443_v57 = vld [vmem:[#allocation78_spill] sm:$0xff]  ;;  %17456 = vst [vmem:[#allocation50_spill] sm:$0xff] %v12595_v13 }
 0x12d   :  { %v12546_v44 = vpack.c.bf16 %v17431_v8, %v17430_v59  ;;  %v17438_v59 = vld [vmem:[#allocation77_spill] sm:$0xff]  ;;  %v9532_v63 = vpack.c.bf16 %v2416_v61, %v2409_v20  ;;  %v17441_v18 = vand.u32 4294901760, %v12145_v51  ;;  %v17442_v6 = vand.u32 4294901760, %v12150_v15  ;;  %v17445_v8 = vld [vmem:[#allocation79_spill] sm:$0xff]  ;;  %v12578_v20 = vld [vmem:[#allocation5 + $0x390] sm:$0xff] }
 0x12e   :  { %17428 = vst [vmem:[#allocation25_spill] sm:$0xff] %v12540_v23  ;;  %v17439_v19 = vand.u32 4294901760, %v17438_v59  ;;  %v17444_v10 = vand.u32 4294901760, %v17443_v57  ;;  %v17446_v41 = vand.u32 4294901760, %v17445_v8  ;;  %v9534_v50 = vpack.c.bf16 %v2542_v12, %v2535_v49  ;;  %17447 = vst [vmem:[#allocation49_spill] sm:$0xff] %v12578_v20  ;;  %v12580_v61 = vld [vmem:[#allocation5 + $0x398] sm:$0xff]  ;;  %9501 = vmatpush3.bf16.msra.mxu0 %v12540_v23 }
 0x12f   :  { %17432 = vst [vmem:[#allocation46_spill] sm:$0xff] %v12546_v44  ;;  %v2436_v46 = vsub.f32 %v12145_v51, %v17441_v18  ;;  %v2443_v42 = vsub.f32 %v12150_v15, %v17442_v6  ;;  %17448 = vst [vmem:[#allocation31_spill] sm:$0xff] %v12580_v61  ;;  %v17449_v59 = vld [vmem:[#allocation80_spill] sm:$0xff]  ;;  %v17451_v18 = vld [vmem:[#allocation81_spill] sm:$0xff]  ;;  %9503 = vmatprep.subr.bf16.mxu0 %v12546_v44  ;;  %v9538_v15 = vpack.c.bf16 %v2556_v28, %v2549_v56 }
 0x130   :  { %v12562_v17 = vpack.c.bf16 %v17439_v19, %v17437_v43  ;;  %v12574_v22 = vpack.c.bf16 %v17446_v41, %v17444_v10  ;;  %v17450_v19 = vand.u32 4294901760, %v17449_v59  ;;  %v17452_v6 = vand.u32 4294901760, %v17451_v18  ;;  %v17453_v41 = vld [vmem:[#allocation19_spill] sm:$0xff]  ;;  %v17454_v10 = vld [vmem:[#allocation38_spill] sm:$0xff]  ;;  %v12593_v8 = vld [vmem:[#allocation5 + $0x310] sm:$0xff]  ;;  %9533 = vmatpush3.bf16.msra.mxu1 %v9532_v63 }
 0x131   :  { %v9542_v9 = vpack.c.bf16 %v17454_v10, %v17453_v41  ;;  %17455 = vst [vmem:[#allocation33_spill] sm:$0xff] %v12593_v8  ;;  %v17457_v43 = vand.u32 4294901760, %v12524_v37  ;;  %v9536_v18 = vpack.c.bf16 %v2430_v14, %v2423_v54  ;;  %v12603_v41 = vld [vmem:[#allocation5 + $0x3a0] sm:$0xff]  ;;  %v2437_v10 = vand.u32 4294901760, %v2436_v46  ;;  %v12607_v23 = vld [vmem:[#allocation5 + $0x3a8] sm:$0xff]  ;;  %9535 = vmatprep.subr.bf16.mxu1 %v9534_v50  ;;  %v17468_v50 = vld [vmem:[#allocation61_spill] sm:$0xff] }
 0x132   :  { %17440 = vst [vmem:[#allocation48_spill] sm:$0xff] %v12562_v17  ;;  %v12587_v57 = vpack.c.bf16 %v17452_v6, %v17450_v19  ;;  %v17458_v19 = vld [vmem:[#allocation40_spill] sm:$0xff]  ;;  %v17459_v6 = vld [vmem:[#allocation22_spill] sm:$0xff]  ;;  %17460 = vst [vmem:[#allocation51_spill] sm:$0xff] %v12603_v41  ;;  %v2444_v12 = vand.u32 4294901760, %v2443_v42  ;;  %v17463_v54 = vand.u32 4294901760, %v12548_v38  ;;  %9505 = vmatpush3.bf16.msra.mxu0 %v12562_v17 }
 0x133   :  { %v2327_v59 = vsub.f32 %v12524_v37, %v17457_v43  ;;  %17461 = vst [vmem:[#allocation12_spill] sm:$0xff] %v12607_v23  ;;  %v12609_v44 = vld [vmem:[#allocation5 + $0x320] sm:$0xff]  ;;  %v17464_v56 = vand.u32 4294901760, %v12550_v26  ;;  %v12623_v42 = vld [vmem:[#allocation5 + $0x328] sm:$0xff]  ;;  %v17469_v51 = vand.u32 4294901760, %v12554_v58  ;;  %v17470_v49 = vand.u32 4294901760, %v12556_v35  ;;  %9507 = vmatprep.subr.bf16.mxu0 %v12574_v22 }
 0x134   :  { %17462 = vst [vmem:[#allocation17_spill] sm:$0xff] %v12609_v44  ;;  %v12614_v14 = vsub.f32 %v12548_v38, %v17463_v54  ;;  %17466 = vst [vmem:[#allocation53_spill] sm:$0xff] %v12623_v42  ;;  %v17467_v43 = vld [vmem:[#allocation42_spill] sm:$0xff]  ;;  %v12644_v17 = vld [vmem:[#allocation5 + $0x3b0] sm:$0xff]  ;;  %9537 = vmatpush3.bf16.msra.mxu1 %v9536_v18  ;;  %v17476_v63 = vand.u32 4294901760, %v12580_v61  ;;  %v17480_v37 = vand.u32 4294901760, %v12603_v41 }
 0x135   :  { %v12619_v28 = vsub.f32 %v12550_v26, %v17464_v56  ;;  %v9546_v2 = vpack.c.bf16 %v17468_v50, %v17467_v43  ;;  %v12631_v54 = vsub.f32 %v12554_v58, %v17469_v51  ;;  %v12636_v56 = vsub.f32 %v12556_v35, %v17470_v49  ;;  %v17472_v26 = vld [vmem:[#allocation65_spill] sm:$0xff]  ;;  %v17473_v38 = vld [vmem:[#allocation66_spill] sm:$0xff]  ;;  %17474 = vst [vmem:[#allocation55_spill] sm:$0xff] %v12644_v17 }
 0x136   :  { %v2328_v46 = vand.u32 4294901760, %v2327_v59  ;;  %v9540_v51 = vpack.c.bf16 %v2444_v12, %v2437_v10  ;;  %v17475_v58 = vand.u32 4294901760, %v12578_v20  ;;  %v12654_v59 = vsub.f32 %v12580_v61, %v17476_v63  ;;  %v12657_v35 = vld [vmem:[#allocation5 + $0x3b8] sm:$0xff]  ;;  %9539 = vmatprep.subr.bf16.mxu1 %v9538_v15  ;;  %9509 = vmatpush3.bf16.msra.mxu0 %v12587_v57  ;;  %v12680_v61 = vld [vmem:[#allocation5 + $0x330] sm:$0xff] }
 0x137   :  { %17465 = vst [vmem:[#allocation52_spill] sm:$0xff] %v12619_v28  ;;  %17471 = vst [vmem:[#allocation54_spill] sm:$0xff] %v12636_v56  ;;  %v17478_v50 = vand.u32 4294901760, %v12593_v8  ;;  %v17479_v12 = vand.u32 4294901760, %v12595_v13  ;;  %v12675_v15 = vsub.f32 %v12603_v41, %v17480_v37  ;;  %9543 = vmatprep.subr.bf16.mxu0 %v9542_v9  ;;  %v17483_v63 = vand.u32 4294901760, %v12607_v23 }
 0x138   :  { %v12649_v49 = vsub.f32 %v12578_v20, %v17475_v58  ;;  %17477 = vst [vmem:[#allocation56_spill] sm:$0xff] %v12657_v35  ;;  %17481 = vst [vmem:[#allocation57_spill] sm:$0xff] %v12680_v61  ;;  %9541 = vmatpush3.bf16.msra.mxu1 %v9540_v51  ;;  %v17488_v9 = vand.u32 4294901760, %v12623_v42  ;;  %v17491_v43 = vand.u32 4294901760, %v12631_v54  ;;  %v17500_v51 = vand.u32 4294901760, %v12644_v17 }
 0x139   :  { %v12662_v18 = vsub.f32 %v12593_v8, %v17478_v50  ;;  %v12667_v58 = vsub.f32 %v12595_v13, %v17479_v12  ;;  %v12682_v12 = vld [vmem:[#allocation5 + $0x338] sm:$0xff]  ;;  %v12687_v10 = vsub.f32 %v12607_v23, %v17483_v63  ;;  %v17484_v13 = vand.u32 4294901760, %v12609_v44  ;;  %2329 = vmatmul.mubr.f32.vlgmr.msra.gmra.mrb[12].mxu0 %v2328_v46  ;;  %9575 = vmatprep.subr.bf16.mxu1 %v12364_v40  ;;  %v12723_v63 = vld [vmem:[#allocation5 + $0x340] sm:$0xff] }
 0x13a   :  { %17482 = vst [vmem:[#allocation58_spill] sm:$0xff] %v12682_v12  ;;  %v17485_v50 = vand.u32 4294901760, %v12614_v14  ;;  %v17486_v8 = vand.u32 4294901760, %v12619_v28  ;;  %v12704_v20 = vsub.f32 %v12623_v42, %v17488_v9  ;;  %v17492_v28 = vand.u32 4294901760, %v12636_v56  ;;  %17494 = vst [vmem:[#allocation23_spill] sm:$0xff] %v12723_v63  ;;  %v17498_v46 = vld [vmem:[#allocation69_spill] sm:$0xff] }
 0x13b   :  { %v12692_v37 = vsub.f32 %v12609_v44, %v17484_v13  ;;  %v12708_v13 = vld [vmem:[#allocation5 + $0x3c0] sm:$0xff]  ;;  %v12710_v44 = vld [vmem:[#allocation5 + $0x3c8] sm:$0xff]  ;;  %v17496_v42 = vpack.c.bf16 %v17459_v6, %v17458_v19  ;;  %v17502_v23 = vand.u32 4294901760, %v12649_v49  ;;  %v17503_v9 = vand.u32 4294901760, %v12654_v59  ;;  %2561 = vmatmul.mubr.f32.vlgmr.msra.gmra.mrb[12].mxu1 %v12488_v52 }
 0x13c   :  { %v12699_v41 = vpack.c.bf16 %v17486_v8, %v17485_v50  ;;  %17489 = vst [vmem:[#allocation16_spill] sm:$0xff] %v12708_v13  ;;  %17490 = vst [vmem:[#allocation59_spill] sm:$0xff] %v12710_v44  ;;  %v12716_v8 = vpack.c.bf16 %v17492_v28, %v17491_v43  ;;  %v17497_v28 = vld [vmem:[#allocation67_spill] sm:$0xff]  ;;  %v12736_v50 = vsub.f32 %v12644_v17, %v17500_v51  ;;  %v17505_v19 = vand.u32 4294901760, %v12657_v35 }
 0x13d   :  { %9545 = vmatpush3.bf16.msra.mxu0 %v17496_v42  ;;  %v9550_v43 = vpack.c.bf16 %v17498_v46, %v17497_v28  ;;  %v12742_v56 = vpack.c.bf16 %v17503_v9, %v17502_v23  ;;  %v17507_v51 = vand.u32 4294901760, %v12662_v18  ;;  %v17508_v46 = vand.u32 4294901760, %v12667_v58  ;;  %9577 = vmatpush3.bf16.msra.mxu1 %v12389_v32  ;;  %v12765_v28 = vld [vmem:[#allocation5 + $0x3d0] sm:$0xff] }
 0x13e   :  { %17487 = vst [vmem:[#allocation15_spill] sm:$0xff] %v12699_v41  ;;  %17493 = vst [vmem:[#allocation60_spill] sm:$0xff] %v12716_v8  ;;  %v12725_v41 = vld [vmem:[#allocation5 + $0x348] sm:$0xff]  ;;  %9547 = vmatprep.subr.bf16.mxu0 %v9546_v2  ;;  %v12748_v6 = vsub.f32 %v12657_v35, %v17505_v19  ;;  %9579 = vmatprep.subr.bf16.mxu1 %v12396_v29  ;;  %v16560_v19 = vand.u32 4294901760, %v12704_v20  ;;  %v17516_v42 = vpack.c.bf16 %v17473_v38, %v17472_v26 }
 0x13f   :  { %17495 = vst [vmem:[#allocation26_spill] sm:$0xff] %v12725_v41  ;;  %v17499_v8 = vld [vmem:[#allocation43_spill] sm:$0xff]  ;;  %17501 = vst [vmem:[#allocation27_spill] sm:$0xff] %v12736_v50  ;;  %v12756_v17 = vpack.c.bf16 %v17508_v46, %v17507_v51  ;;  %v17512_v51 = vand.u32 4294901760, %v12680_v61  ;;  %v9552_v2 = vpack.c.bf16 %v11972_v39, %v11967_v47  ;;  %v17520_v9 = vand.u32 4294901760, %v12687_v10 }
 0x140   :  { %2696 = vmatprep.mubr.f32.mxu0 %v17499_v8  ;;  %17504 = vst [vmem:[#allocation29_spill] sm:$0xff] %v12742_v56  ;;  %17506 = vst [vmem:[#allocation30_spill] sm:$0xff] %v12748_v6  ;;  %v17510_v23 = vand.u32 4294901760, %v17499_v8  ;;  %v17514_v8 = vand.u32 4294901760, %v12682_v12  ;;  %v12789_v56 = vld [vmem:[#allocation5 + $0x350] sm:$0xff]  ;;  %v17522_v38 = vand.u32 4294901760, %v12708_v13 }
 0x141   :  { %17509 = vst [vmem:[#allocation21_spill] sm:$0xff] %v12756_v17  ;;  %17511 = vst [vmem:[#allocation13_spill] sm:$0xff] %v12765_v28  ;;  %v12771_v46 = vsub.f32 %v12680_v61, %v17512_v51  ;;  %9549 = vmatpush3.bf16.msra.mxu0 %v17516_v42  ;;  %v9554_v51 = vpack.c.bf16 %v11991_v60, %v11980_v25  ;;  %v12787_v17 = vld [vmem:[#allocation5 + $0x3d8] sm:$0xff]  ;;  %v17524_v47 = vand.u32 4294901760, %v12710_v44  ;;  %v17526_v42 = vand.u32 4294901760, %v12692_v37 }
 0x142   :  { %2803 = vmatprep.mubr.f32.mxu1 %v17510_v23  ;;  %v12776_v23 = vsub.f32 %v12682_v12, %v17514_v8  ;;  %17517 = vst [vmem:[#allocation35_spill] sm:$0xff] %v12787_v17  ;;  %17518 = vst [vmem:[#allocation18_spill] sm:$0xff] %v12789_v56  ;;  %v17519_v8 = vand.u32 4294901760, %v12675_v15  ;;  %9551 = vmatprep.subr.bf16.mxu0 %v9550_v43  ;;  %v12800_v26 = vsub.f32 %v12708_v13, %v17522_v38  ;;  %v12808_v25 = vld [vmem:[#allocation5 + $0x358] sm:$0xff] }
 0x143   :  { %17513 = vst [vmem:[#allocation32_spill] sm:$0xff] %v12771_v46  ;;  %v12805_v60 = vsub.f32 %v12710_v44, %v17524_v47  ;;  %17525 = vst [vmem:[#allocation62_spill] sm:$0xff] %v12808_v25  ;;  %9581 = vmatpush3.bf16.msra.mxu1 %v12402_v34  ;;  %v17528_v43 = vand.u32 4294901760, %v12723_v63  ;;  %v17529_v38 = vand.u32 4294901760, %v12725_v41  ;;  %v12836_v44 = vld [vmem:[#allocation5 + $0x3e8] sm:$0xff]  ;;  %v17532_v13 = vand.u32 4294901760, %v12736_v50 }
 0x144   :  { %17515 = vst [vmem:[#allocation34_spill] sm:$0xff] %v12776_v23  ;;  %v12795_v12 = vpack.c.bf16 %v17520_v9, %v17519_v8  ;;  %17523 = vst [vmem:[#allocation37_spill] sm:$0xff] %v12800_v26  ;;  %v12814_v9 = vpack.c.bf16 %v16560_v19, %v17526_v42  ;;  %9583 = vmatprep.subr.bf16.mxu1 %v12434_v24  ;;  %v17533_v42 = vand.u32 4294901760, %v12748_v6  ;;  %v17535_v19 = vld [vmem:[#allocation75_spill] sm:$0xff] }
 0x145   :  { %v12820_v8 = vsub.f32 %v12723_v63, %v17528_v43  ;;  %v12825_v47 = vsub.f32 %v12725_v41, %v17529_v38  ;;  %v12834_v63 = vld [vmem:[#allocation5 + $0x3e0] sm:$0xff]  ;;  %9553 = vmatpush3.bf16.msra.mxu0 %v9552_v2  ;;  %v17530_v38 = vld [vmem:[#allocation73_spill] sm:$0xff]  ;;  %v9558_v43 = vpack.c.bf16 %v12033_v36, %v17535_v19  ;;  %v17536_v2 = vand.u32 4294901760, %v12765_v28 }
 0x146   :  { %17521 = vst [vmem:[#allocation39_spill] sm:$0xff] %v12795_v12  ;;  %17527 = vst [vmem:[#allocation63_spill] sm:$0xff] %v12814_v9  ;;  %v17531_v41 = vld [vmem:[#allocation74_spill] sm:$0xff]  ;;  %v12845_v61 = vpack.c.bf16 %v17533_v42, %v17532_v13  ;;  %9555 = vmatprep.subr.bf16.mxu0 %v9554_v51  ;;  %v9560_v9 = vpack.c.bf16 %v12053_v7, %v12048_v27  ;;  %v17539_v12 = vand.u32 4294901760, %v12771_v46  ;;  %v17540_v13 = vand.u32 4294901760, %v12776_v23  ;;  %v12871_v42 = vld [vmem:[#allocation5 + $0x3f0] sm:$0xff] }
 0x147   :  { %v9556_v39 = vpack.c.bf16 %v17531_v41, %v17530_v38  ;;  %v12854_v35 = vsub.f32 %v12765_v28, %v17536_v2  ;;  %v12856_v41 = vld [vmem:[#allocation5 + $0x360] sm:$0xff]  ;;  %v12858_v38 = vld [vmem:[#allocation5 + $0x368] sm:$0xff]  ;;  %9585 = vmatpush3.bf16.msra.mxu1 %v12443_v1  ;;  %17542 = vst [vmem:[#allocation72_spill] sm:$0xff] %v12871_v42  ;;  %v17543_v2 = vand.u32 4294901760, %v12787_v17  ;;  %v12886_v7 = vld [vmem:[#allocation5 + $0x3f8] sm:$0xff]  ;;  %v17547_v19 = vand.u32 4294901760, %v12808_v25 }
 0x148   :  { %17534 = vst [vmem:[#allocation64_spill] sm:$0xff] %v12845_v61  ;;  %17537 = vst [vmem:[#allocation68_spill] sm:$0xff] %v12856_v41  ;;  %v12864_v51 = vpack.c.bf16 %v17540_v13, %v17539_v12  ;;  %9587 = vmatprep.subr.bf16.mxu1 %v12453_v4  ;;  %v17544_v12 = vand.u32 4294901760, %v12789_v56  ;;  %v12895_v28 = vld [vmem:[#allocation5 + $0x370] sm:$0xff]  ;;  %v17551_v27 = vand.u32 4294901760, %v12800_v26  ;;  %v17552_v36 = vand.u32 4294901760, %v12805_v60 }
 0x149   :  { %17538 = vst [vmem:[#allocation70_spill] sm:$0xff] %v12858_v38  ;;  %v12877_v61 = vsub.f32 %v12787_v17, %v17543_v2  ;;  %17546 = vst [vmem:[#allocation77_spill] sm:$0xff] %v12886_v7  ;;  %9557 = vmatpush3.bf16.msra.mxu0 %v9556_v39  ;;  %v9562_v39 = vpack.c.bf16 %v12088_v5, %v12079_v53  ;;  %v17554_v2 = vand.u32 4294901760, %v12820_v8  ;;  %v17555_v17 = vand.u32 4294901760, %v12825_v47 }
 0x14a   :  { %17541 = vst [vmem:[#allocation71_spill] sm:$0xff] %v12864_v51  ;;  %v12882_v13 = vsub.f32 %v12789_v56, %v17544_v12  ;;  %v12891_v51 = vsub.f32 %v12808_v25, %v17547_v19  ;;  %17549 = vst [vmem:[#allocation79_spill] sm:$0xff] %v12895_v28  ;;  %v12897_v12 = vld [vmem:[#allocation5 + $0x378] sm:$0xff]  ;;  %v12903_v56 = vpack.c.bf16 %v17552_v36, %v17551_v27  ;;  %9559 = vmatprep.subr.bf16.mxu0 %v9558_v43 }
 0x14b   :  { %17550 = vst [vmem:[#allocation80_spill] sm:$0xff] %v12897_v12  ;;  %v12912_v25 = vpack.c.bf16 %v17555_v17, %v17554_v2  ;;  %v9564_v23 = vpack.c.bf16 %v12102_v30, %v12097_v21  ;;  %9589 = vmatpush3.bf16.msra.mxu1 %v12479_v11  ;;  %v17557_v36 = vand.u32 4294901760, %v12834_v63  ;;  %v17559_v5 = vand.u32 4294901760, %v12836_v44 }
 0x14c   :  { %17545 = vst [vmem:[#allocation76_spill] sm:$0xff] %v12882_v13  ;;  %17548 = vst [vmem:[#allocation78_spill] sm:$0xff] %v12891_v51  ;;  %9591 = vmatprep.subr.bf16.mxu1 %v12485_v31  ;;  %v16573_v21 = vand.u32 4294901760, %v12877_v61  ;;  %v9566_v30 = vpack.c.bf16 %v12112_v0, %v12107_v55  ;;  %v17569_v17 = vand.u32 4294901760, %v12886_v7  ;;  %v17570_v55 = vand.u32 4294901760, %v12891_v51 }
 0x14d   :  { %17553 = vst [vmem:[#allocation81_spill] sm:$0xff] %v12903_v56  ;;  %17556 = vst [vmem:[#allocation19_spill] sm:$0xff] %v12912_v25  ;;  %v12920_v43 = vsub.f32 %v12834_v63, %v17557_v36  ;;  %v12925_v53 = vsub.f32 %v12836_v44, %v17559_v5  ;;  %9561 = vmatpush3.bf16.msra.mxu0 %v9560_v9  ;;  %v17561_v36 = vand.u32 4294901760, %v12856_v41  ;;  %v17563_v5 = vand.u32 4294901760, %v12858_v38 }
 0x14e   :  { %v16575_v25 = vand.u32 4294901760, %v12882_v13  ;;  %9563 = vmatprep.subr.bf16.mxu0 %v9562_v39  ;;  %v17565_v9 = vand.u32 4294901760, %v12871_v42  ;;  %v12962_v39 = vsub.f32 %v12886_v7, %v17569_v17  ;;  %v17574_v17 = vand.u32 4294901760, %v12897_v12 }
 0x14f   :  { %17558 = vst [vmem:[#allocation38_spill] sm:$0xff] %v12920_v43  ;;  %17560 = vst [vmem:[#allocation40_spill] sm:$0xff] %v12925_v53  ;;  %v12936_v19 = vsub.f32 %v12856_v41, %v17561_v36  ;;  %v12941_v27 = vsub.f32 %v12858_v38, %v17563_v5  ;;  %v17567_v36 = vand.u32 4294901760, %v12854_v35  ;;  %v7446_v5 = vpop.f32.mrb[0].mxu0  ;;  %9593 = vmatpush3.bf16.msra.mxu1 %v12511_v16  ;;  %v7481_v38 = vpop.f32.mrb[0].mxu1 }
 0x150   :  { %v12950_v2 = vsub.f32 %v12871_v42, %v17565_v9  ;;  %v12968_v0 = vpack.c.bf16 %v17570_v55, %v16575_v25  ;;  %v7413_v9 = vld [vmem:[%s16359_s2] ss:$0 sm:$0xff]  ;;  %9595 = vmatprep.subr.bf16.mxu1 %v12517_v62  ;;  %v12982_v7 = vsub.f32 %v12897_v12, %v17574_v17  ;;  %v16582_v55 = vand.u32 4294901760, %v12920_v43 }
 0x151   :  { %17562 = vst [vmem:[#allocation22_spill] sm:$0xff] %v12936_v19  ;;  %17564 = vst [vmem:[#allocation42_spill] sm:$0xff] %v12941_v27  ;;  %v12956_v56 = vpack.c.bf16 %v16573_v21, %v17567_v36  ;;  %v7447_v36 = vpop.f32.mrb[1].mxu0  ;;  %v17572_v21 = vand.u32 4294901760, %v12895_v28  ;;  %v16581_v25 = vand.u32 4294901760, %v12925_v53  ;;  %9565 = vmatpush3.bf16.msra.mxu0 %v9564_v23  ;;  %v16584_v41 = vand.u32 4294901760, %v12936_v19 }
 0x152   :  { %17566 = vst [vmem:[#allocation61_spill] sm:$0xff] %v12950_v2  ;;  %17571 = vst [vmem:[#allocation66_spill] sm:$0xff] %v12968_v0  ;;  %v9568_v0 = vpack.c.bf16 %v12125_v33, %v12120_v3  ;;  %v7448_v42 = vadd.f32 %v7447_v36, %v7446_v5  ;;  %9567 = vmatprep.subr.bf16.mxu0 %v9566_v30  ;;  %v9570_v17 = vpack.c.bf16 %v12135_v45, %v12130_v48  ;;  %v17577_v5 = vld [vmem:[#allocation25_spill] sm:$0xff]  ;;  %v17579_v48 = vld [vmem:[#allocation46_spill] sm:$0xff] }
 0x153   :  { %17568 = vst [vmem:[#allocation65_spill] sm:$0xff] %v12956_v56  ;;  %v12977_v56 = vsub.f32 %v12895_v28, %v17572_v21  ;;  %17575 = vst [vmem:[#allocation69_spill] sm:$0xff] %v12982_v7  ;;  %v16583_v21 = vand.u32 4294901760, %v12941_v27  ;;  %v7482_v28 = vpop.f32.mrb[1].mxu1  ;;  %v12997_v23 = vpack.c.bf16 %v16581_v25, %v16582_v55  ;;  %9597 = vmatpush3.bf16.msra.mxu1 %v17577_v5  ;;  %v16587_v36 = vand.u32 4294901760, %v12962_v39 }
 0x154   :  { %v607_v33 = vadd.f32 %v7448_v42, %v7413_v9  ;;  %v7483_v3 = vadd.f32 %v7482_v28, %v7481_v38  ;;  %9599 = vmatprep.subr.bf16.mxu1 %v17579_v48  ;;  %v16585_v12 = vand.u32 4294901760, %v12982_v7  ;;  %v17580_v42 = vld [vmem:[#allocation20_spill] sm:$0xff]  ;;  %v17581_v28 = vld [vmem:[#allocation82_spill] sm:$0xff]  ;;  %v17582_v9 = vand.u32 4294901760, %v12950_v2 }
 0x155   :  { %17573 = vst [vmem:[#allocation67_spill] sm:$0xff] %v12977_v56  ;;  %17576 = vst [vmem:[#allocation43_spill] sm:$0xff] %v12997_v23  ;;  %v13005_v30 = vpack.c.bf16 %v16583_v21, %v16584_v41  ;;  %v16586_v45 = vand.u32 4294901760, %v12977_v56  ;;  %9569 = vmatpush3.bf16.msra.mxu0 %v9568_v0  ;;  %v9572_v38 = vpack.c.bf16 %v17581_v28, %v17580_v42  ;;  %v17585_v41 = vld [vmem:[#allocation48_spill] sm:$0xff]  ;;  %v17586_v0 = vld [vmem:[#allocation83_spill] sm:$0xff] }
 0x156   :  { %v839_v25 = vadd.f32 %v7483_v3, %v607_v33  ;;  %v13016_v55 = vpack.c.bf16 %v16587_v36, %v17582_v9  ;;  %9571 = vmatprep.subr.bf16.mxu0 %v9570_v17  ;;  %v17587_v33 = vld [vmem:[#allocation36_spill] sm:$0xff]  ;;  %v17590_v42 = vld [vmem:[#allocation85_spill] sm:$0xff]  ;;  %v17593_v9 = vld [vmem:[#allocation87_spill] sm:$0xff] }
 0x157   :  { %17578 = vst [vmem:[#allocation73_spill] sm:$0xff] %v13005_v30  ;;  %v13022_v21 = vpack.c.bf16 %v16585_v12, %v16586_v45  ;;  %9601 = vmatpush3.bf16.msra.mxu1 %v17585_v41  ;;  %v17588_v17 = vld [vmem:[#allocation84_spill] sm:$0xff]  ;;  %v17591_v28 = vand.u32 4294901760, %v17587_v33  ;;  %v17610_v12 = vand.u32 4294901760, %v12649_v49 }
 0x158   :  { %17583 = vst [vmem:[#allocation74_spill] sm:$0xff] %v13016_v55  ;;  %9603 = vmatprep.subr.bf16.mxu1 %v12574_v22  ;;  %v17589_v3 = vld [vmem:[#allocation44_spill] sm:$0xff]  ;;  %v17615_v55 = vld [vmem:[#allocation47_spill] sm:$0xff] }
 0x159   :  { %17584 = vst [vmem:[#allocation75_spill] sm:$0xff] %v13022_v21  ;;  %9573 = vmatpush3.bf16.msra.mxu0 %v9572_v38  ;;  %v17592_v38 = vld [vmem:[#allocation86_spill] sm:$0xff]  ;;  %v17612_v36 = vld [vmem:[#allocation96_spill] sm:$0xff] }
 0x15a   :  { %9607 = vmatprep.subr.bf16.mxu0 %v17586_v0  ;;  %v17595_v0 = vld [vmem:[#allocation89_spill] sm:$0xff] }
 0x15b   :  { %9605 = vmatpush3.bf16.msra.mxu1 %v12587_v57 }
 0x15c   :  { %2699 = vmatmul.mubr.f32.vlgmr.msra.gmra.mrb[14].mxu0 %v17587_v33  ;;  %9639 = vmatprep.subr.bf16.mxu1 %v12364_v40  ;;  %v17594_v40 = vld [vmem:[#allocation88_spill] sm:$0xff]  ;;  %v17597_v33 = vld [vmem:[#allocation45_spill] sm:$0xff] }
 0x15d   :  { %9609 = vmatpush3.bf16.msra.mxu0 %v17588_v17  ;;  %2973 = vmatprep.mubr.f32.mxu0 %v17589_v3  ;;  %v17599_v17 = vld [vmem:[#allocation91_spill] sm:$0xff] }
 0x15e   :  { %9611 = vmatprep.subr.bf16.mxu0 %v17590_v42  ;;  %2807 = vmatmul.mubr.f32.vlgmr.msra.gmra.mrb[14].mxu1 %v17591_v28  ;;  %v17602_v42 = vand.u32 4294901760, %v12614_v14  ;;  %v17603_v28 = vld [vmem:[#allocation52_spill] sm:$0xff] }
 0x15f   :  { %9641 = vmatpush3.bf16.msra.mxu1 %v12389_v32  ;;  %3077 = vmatprep.mubr.f32.mxu1 %v17589_v3  ;;  %v17596_v32 = vld [vmem:[#allocation90_spill] sm:$0xff] }
 0x160   :  { %9643 = vmatprep.subr.bf16.mxu1 %v12396_v29  ;;  %v13048_v29 = vand.u32 4294901760, %v17597_v33 }
 0x161   :  { %9613 = vmatpush3.bf16.msra.mxu0 %v17592_v38 }
 0x162   :  { %9615 = vmatprep.subr.bf16.mxu0 %v17593_v9  ;;  %17598 = vst [vmem:[#allocation25_spill] sm:$0xff] %v13048_v29 }
 0x163   :  { %9645 = vmatpush3.bf16.msra.mxu1 %v12402_v34  ;;  %v17600_v34 = vld [vmem:[#allocation92_spill] sm:$0xff] }
 0x164   :  { %9647 = vmatprep.subr.bf16.mxu1 %v12434_v24  ;;  %v13056_v24 = vsub.f32 %v17597_v33, %v13048_v29  ;;  %v17606_v33 = vld [vmem:[#allocation95_spill] sm:$0xff] }
 0x165   :  { %9617 = vmatpush3.bf16.msra.mxu0 %v17594_v40  ;;  %v17605_v40 = vld [vmem:[#allocation94_spill] sm:$0xff] }
 0x166   :  { %9619 = vmatprep.subr.bf16.mxu0 %v17595_v0  ;;  %v7551_v0 = vpop.f32.mrb[2].mxu1 }
 0x167   :  { %9649 = vmatpush3.bf16.msra.mxu1 %v12443_v1  ;;  %v17601_v1 = vld [vmem:[#allocation93_spill] sm:$0xff] }
 0x168   :  { %9651 = vmatprep.subr.bf16.mxu1 %v12453_v4  ;;  %v7516_v4 = vpop.f32.mrb[2].mxu0 }
 0x169   :  { %9621 = vmatpush3.bf16.msra.mxu0 %v17596_v32  ;;  %v7517_v3 = vpop.f32.mrb[3].mxu0 }
 0x16a   :  { %9623 = vmatprep.subr.bf16.mxu0 %v17599_v17  ;;  %v7518_v9 = vadd.f32 %v7517_v3, %v7516_v4  ;;  %v17607_v17 = vand.u32 4294901760, %v12631_v54  ;;  %v3326_v4 = vsub.f32 %v12649_v49, %v17610_v12  ;;  %v17611_v3 = vand.u32 4294901760, %v12654_v59 }
 0x16b   :  { %9653 = vmatpush3.bf16.msra.mxu1 %v12479_v11  ;;  %v3312_v11 = vsub.f32 %v12614_v14, %v17602_v42  ;;  %v17616_v12 = vand.u32 4294901760, %v17615_v55  ;;  %v17620_v55 = vand.u32 4294901760, %v12667_v58 }
 0x16c   :  { %9655 = vmatprep.subr.bf16.mxu1 %v12485_v31  ;;  %v17604_v31 = vand.u32 4294901760, %v17603_v28 }
 0x16d   :  { %9625 = vmatpush3.bf16.msra.mxu0 %v17600_v34  ;;  %v17608_v34 = vld [vmem:[#allocation54_spill] sm:$0xff] }
 0x16e   :  { %9627 = vmatprep.subr.bf16.mxu0 %v17601_v1  ;;  %v3319_v38 = vsub.f32 %v17603_v28, %v17604_v31  ;;  %v17609_v1 = vand.u32 4294901760, %v17608_v34  ;;  %v3333_v31 = vsub.f32 %v12654_v59, %v17611_v3  ;;  %v17617_v3 = vand.u32 4294901760, %v13056_v24 }
 0x16f   :  { %9657 = vmatpush3.bf16.msra.mxu1 %v12511_v16  ;;  %v7552_v16 = vpop.f32.mrb[3].mxu1 }
 0x170   :  { %9659 = vmatprep.subr.bf16.mxu1 %v12517_v62  ;;  %v3200_v62 = vsub.f32 %v12631_v54, %v17607_v17  ;;  %v3207_v42 = vsub.f32 %v17608_v34, %v17609_v1  ;;  %v7553_v45 = vadd.f32 %v7552_v16, %v7551_v0  ;;  %v3320_v17 = vand.u32 4294901760, %v3319_v38  ;;  %v17613_v1 = vld [vmem:[#allocation41_spill] sm:$0xff] }
 0x171   :  { %9629 = vmatpush3.bf16.msra.mxu0 %v17605_v40  ;;  %v977_v40 = vadd.f32 %v7518_v9, %v839_v25  ;;  %v17614_v21 = vand.u32 4294901760, %v17613_v1  ;;  %v3183_v25 = vsub.f32 %v13056_v24, %v17617_v3  ;;  %v17618_v9 = vld [vmem:[#allocation97_spill] sm:$0xff]  ;;  %v3334_v38 = vand.u32 4294901760, %v3333_v31  ;;  %v17624_v31 = vld [vmem:[#allocation24_spill] sm:$0xff] }
 0x172   :  { %9631 = vmatprep.subr.bf16.mxu0 %v17606_v33  ;;  %v3313_v33 = vand.u32 4294901760, %v3312_v11  ;;  %v3327_v11 = vand.u32 4294901760, %v3326_v4  ;;  %v17621_v16 = vand.u32 4294901760, %v12675_v15  ;;  %v17626_v1 = vld [vmem:[#allocation28_spill] sm:$0xff] }
 0x173   :  { %9661 = vmatpush3.bf16.msra.mxu1 %v17577_v5  ;;  %v13085_v32 = vadd.f32 %v7553_v45, %v977_v40  ;;  %v13091_v30 = vpack.c.bf16 %v17616_v12, %v17614_v21  ;;  %v3201_v5 = vand.u32 4294901760, %v3200_v62  ;;  %v3221_v21 = vsub.f32 %v12667_v58, %v17620_v55 }
 0x174   :  { %9663 = vmatprep.subr.bf16.mxu1 %v17579_v48  ;;  %v3208_v48 = vand.u32 4294901760, %v3207_v42  ;;  %v9702_v0 = vpack.c.bf16 %v3320_v17, %v3313_v33  ;;  %v3340_v62 = vsub.f32 %v12675_v15, %v17621_v16  ;;  %v17622_v42 = vand.u32 4294901760, %v12687_v10  ;;  %v17630_v17 = vld [vmem:[#allocation31_spill] sm:$0xff] }
 0x175   :  { %9633 = vmatpush3.bf16.msra.mxu0 %v17612_v36  ;;  %v17619_v36 = vand.u32 4294901760, %v12662_v18  ;;  %v17625_v40 = vand.u32 4294901760, %v17624_v31  ;;  %v17627_v12 = vand.u32 4294901760, %v17626_v1  ;;  %v9706_v23 = vpack.c.bf16 %v3334_v38, %v3327_v11  ;;  %v17636_v38 = vld [vmem:[#allocation33_spill] sm:$0xff] }
 0x176   :  { %9635 = vmatprep.subr.bf16.mxu0 %v17618_v9  ;;  %v3347_v4 = vsub.f32 %v12687_v10, %v17622_v42  ;;  %v3184_v9 = vand.u32 4294901760, %v3183_v25  ;;  %v9704_v16 = vpack.c.bf16 %v3208_v48, %v3201_v5  ;;  %v17632_v31 = vand.u32 4294901760, %v12692_v37 }
 0x177   :  { %9665 = vmatpush3.bf16.msra.mxu1 %v17585_v41  ;;  %v3214_v45 = vsub.f32 %v12662_v18, %v17619_v36  ;;  %v17623_v41 = vld [vmem:[#allocation98_spill] sm:$0xff]  ;;  %v13116_v3 = vpack.c.bf16 %v17627_v12, %v17625_v40  ;;  %v17631_v36 = vand.u32 4294901760, %v17630_v17  ;;  %v17633_v25 = vand.u32 4294901760, %v12704_v20 }
 0x178   :  { %9667 = vmatprep.subr.bf16.mxu1 %v12574_v22  ;;  %v17628_v22 = vld [vmem:[#allocation49_spill] sm:$0xff]  ;;  %v3228_v40 = vsub.f32 %v12692_v37, %v17632_v31  ;;  %v3341_v12 = vand.u32 4294901760, %v3340_v62  ;;  %v17634_v5 = vand.u32 4294901760, %v12736_v50  ;;  %v17642_v62 = vld [vmem:[#allocation12_spill] sm:$0xff] }
 0x179   :  { %9637 = vmatpush3.bf16.msra.mxu0 %v17623_v41  ;;  %v17629_v33 = vand.u32 4294901760, %v17628_v22  ;;  %v3215_v42 = vand.u32 4294901760, %v3214_v45  ;;  %v3222_v41 = vand.u32 4294901760, %v3221_v21  ;;  %v3235_v1 = vsub.f32 %v12704_v20, %v17633_v25  ;;  %v17638_v21 = vld [vmem:[#allocation50_spill] sm:$0xff] }
 0x17a   :  { %9671 = vmatprep.subr.bf16.mxu0 %v13091_v30  ;;  %v3348_v22 = vand.u32 4294901760, %v3347_v4  ;;  %v3354_v48 = vsub.f32 %v12736_v50, %v17634_v5  ;;  %v17637_v45 = vand.u32 4294901760, %v17636_v38  ;;  %v17643_v4 = vand.u32 4294901760, %v17642_v62  ;;  %v17653_v50 = vld [vmem:[#allocation55_spill] sm:$0xff] }
 0x17b   :  { %v13123_v55 = vpack.c.bf16 %v17631_v36, %v17629_v33  ;;  %9669 = vmatpush3.bf16.msra.mxu1 %v12587_v57  ;;  %v17635_v57 = vand.u32 4294901760, %v12748_v6  ;;  %v17639_v33 = vand.u32 4294901760, %v17638_v21  ;;  %v17640_v36 = vld [vmem:[#allocation51_spill] sm:$0xff]  ;;  %v17644_v25 = vand.u32 4294901760, %v12771_v46 }
 0x17c   :  { %2975 = vmatmul.mubr.f32.vlgmr.msra.gmra.mrb[16].mxu0 %v12488_v52  ;;  %9703 = vmatprep.subr.bf16.mxu1 %v9702_v0  ;;  %v17641_v0 = vand.u32 4294901760, %v17640_v36  ;;  %v17647_v21 = vand.u32 4294901760, %v12800_v26  ;;  %v17648_v36 = vand.u32 4294901760, %v12805_v60  ;;  %v9708_v62 = vpack.c.bf16 %v3222_v41, %v3215_v42 }
 0x17d   :  { %v3361_v11 = vsub.f32 %v12748_v6, %v17635_v57  ;;  %9673 = vmatpush3.bf16.msra.mxu0 %v13116_v3  ;;  %v13144_v17 = vpack.c.bf16 %v17639_v33, %v17637_v45  ;;  %v3242_v5 = vsub.f32 %v12771_v46, %v17644_v25  ;;  %3185 = vmatprep.mubr.f32.mxu0 %v3184_v9  ;;  %v17645_v57 = vld [vmem:[#allocation34_spill] sm:$0xff]  ;;  %v3236_v9 = vand.u32 4294901760, %v3235_v1  ;;  %v17651_v6 = vld [vmem:[#allocation53_spill] sm:$0xff] }
 0x17e   :  { %v13150_v31 = vpack.c.bf16 %v17643_v4, %v17641_v0  ;;  %9675 = vmatprep.subr.bf16.mxu0 %v13123_v55  ;;  %3079 = vmatmul.mubr.f32.vlgmr.msra.gmra.mrb[16].mxu1 %v12488_v52  ;;  %v17646_v38 = vand.u32 4294901760, %v17645_v57  ;;  %v3368_v33 = vsub.f32 %v12800_v26, %v17647_v21  ;;  %v3375_v0 = vsub.f32 %v12805_v60, %v17648_v36 }
 0x17f   :  { %9705 = vmatpush3.bf16.msra.mxu1 %v9704_v16  ;;  %v3229_v4 = vand.u32 4294901760, %v3228_v40  ;;  %3421 = vmatprep.mubr.f32.mxu1 %v13048_v29  ;;  %v9710_v52 = vpack.c.bf16 %v3348_v22, %v3341_v12  ;;  %v3355_v25 = vand.u32 4294901760, %v3354_v48  ;;  %v3362_v46 = vand.u32 4294901760, %v3361_v11  ;;  %v17655_v16 = vld [vmem:[#allocation56_spill] sm:$0xff]  ;;  %v17683_v29 = vld [vmem:[#allocation13_spill] sm:$0xff] }
 0x180   :  { %v3249_v45 = vsub.f32 %v17645_v57, %v17646_v38  ;;  %9707 = vmatprep.subr.bf16.mxu1 %v9706_v23  ;;  %v17649_v38 = vld [vmem:[#allocation17_spill] sm:$0xff]  ;;  %v17652_v21 = vand.u32 4294901760, %v17651_v6  ;;  %v17654_v36 = vand.u32 4294901760, %v17653_v50  ;;  %v17656_v42 = vand.u32 4294901760, %v17655_v16 }
 0x181   :  { %9677 = vmatpush3.bf16.msra.mxu0 %v13144_v17  ;;  %v17650_v57 = vand.u32 4294901760, %v17649_v38  ;;  %v3243_v23 = vand.u32 4294901760, %v3242_v5  ;;  %v3369_v1 = vand.u32 4294901760, %v3368_v33  ;;  %v3376_v12 = vand.u32 4294901760, %v3375_v0  ;;  %v17661_v33 = vld [vmem:[#allocation57_spill] sm:$0xff] }
 0x182   :  { %v13178_v41 = vpack.c.bf16 %v17656_v42, %v17654_v36  ;;  %9679 = vmatprep.subr.bf16.mxu0 %v13150_v31  ;;  %v3250_v40 = vand.u32 4294901760, %v3249_v45  ;;  %v9712_v22 = vpack.c.bf16 %v3236_v9, %v3229_v4  ;;  %v17657_v48 = vand.u32 4294901760, %v12820_v8 }
 0x183   :  { %v13172_v26 = vpack.c.bf16 %v17652_v21, %v17650_v57  ;;  %9709 = vmatpush3.bf16.msra.mxu1 %v9708_v62  ;;  %v17658_v11 = vand.u32 4294901760, %v12825_v47  ;;  %v9714_v57 = vpack.c.bf16 %v3362_v46, %v3355_v25  ;;  %v17659_v38 = vand.u32 4294901760, %v12854_v35  ;;  %v17663_v62 = vld [vmem:[#allocation58_spill] sm:$0xff]  ;;  %v17668_v25 = vld [vmem:[#allocation59_spill] sm:$0xff] }
 0x184   :  { %v3256_v6 = vsub.f32 %v12820_v8, %v17657_v48  ;;  %9711 = vmatprep.subr.bf16.mxu1 %v9710_v52  ;;  %v17660_v5 = vand.u32 4294901760, %v12877_v61  ;;  %v17662_v0 = vand.u32 4294901760, %v17661_v33  ;;  %v17664_v4 = vand.u32 4294901760, %v17663_v62  ;;  %v17666_v52 = vld [vmem:[#allocation16_spill] sm:$0xff] }
 0x185   :  { %v3263_v50 = vsub.f32 %v12825_v47, %v17658_v11  ;;  %v3382_v21 = vsub.f32 %v12854_v35, %v17659_v38  ;;  %9681 = vmatpush3.bf16.msra.mxu0 %v13172_v26  ;;  %v17667_v46 = vand.u32 4294901760, %v17666_v52  ;;  %v17669_v36 = vand.u32 4294901760, %v17668_v25  ;;  %v17671_v11 = vld [vmem:[#allocation14_spill] sm:$0xff] }
 0x186   :  { %v3389_v45 = vsub.f32 %v12877_v61, %v17660_v5  ;;  %v13198_v9 = vpack.c.bf16 %v17664_v4, %v17662_v0  ;;  %9683 = vmatprep.subr.bf16.mxu0 %v13178_v41  ;;  %v9716_v42 = vpack.c.bf16 %v3250_v40, %v3243_v23  ;;  %v9718_v48 = vpack.c.bf16 %v3376_v12, %v3369_v1 }
 0x187   :  { %v13205_v16 = vpack.c.bf16 %v17669_v36, %v17667_v46  ;;  %v13208_v38 = vand.u32 4294901760, %v17671_v11  ;;  %9713 = vmatpush3.bf16.msra.mxu1 %v9712_v22  ;;  %v3257_v5 = vand.u32 4294901760, %v3256_v6  ;;  %v3264_v33 = vand.u32 4294901760, %v3263_v50  ;;  %v17676_v22 = vld [vmem:[#allocation23_spill] sm:$0xff]  ;;  %v17678_v50 = vld [vmem:[#allocation26_spill] sm:$0xff] }
 0x188   :  { %17665 = vst [vmem:[#allocation46_spill] sm:$0xff] %v13198_v9  ;;  %v17672_v62 = vand.u32 4294901760, %v12882_v13  ;;  %v17673_v4 = vand.u32 4294901760, %v12891_v51  ;;  %9715 = vmatprep.subr.bf16.mxu1 %v9714_v57  ;;  %v3383_v25 = vand.u32 4294901760, %v3382_v21  ;;  %v3390_v46 = vand.u32 4294901760, %v3389_v45 }
 0x189   :  { %17670 = vst [vmem:[#allocation20_spill] sm:$0xff] %v13205_v16  ;;  %v17674_v23 = vand.u32 4294901760, %v12920_v43  ;;  %v17675_v1 = vand.u32 4294901760, %v12925_v53  ;;  %9685 = vmatpush3.bf16.msra.mxu0 %v13198_v9  ;;  %v17677_v6 = vand.u32 4294901760, %v17676_v22  ;;  %v17679_v36 = vand.u32 4294901760, %v17678_v50  ;;  %v17689_v9 = vld [vmem:[#allocation62_spill] sm:$0xff] }
 0x18a   :  { %v3270_v0 = vsub.f32 %v12882_v13, %v17672_v62  ;;  %v3277_v52 = vsub.f32 %v12891_v51, %v17673_v4  ;;  %v17680_v57 = vand.u32 4294901760, %v12936_v19  ;;  %v17681_v45 = vand.u32 4294901760, %v12941_v27  ;;  %9687 = vmatprep.subr.bf16.mxu0 %v13205_v16 }
 0x18b   :  { %v3396_v40 = vsub.f32 %v12920_v43, %v17674_v23  ;;  %v3403_v12 = vsub.f32 %v12925_v53, %v17675_v1  ;;  %v13227_v62 = vpack.c.bf16 %v17679_v36, %v17677_v6  ;;  %v17682_v23 = vand.u32 4294901760, %v12950_v2  ;;  %v17685_v53 = vld [vmem:[#allocation35_spill] sm:$0xff]  ;;  %v17687_v36 = vld [vmem:[#allocation18_spill] sm:$0xff]  ;;  %9717 = vmatpush3.bf16.msra.mxu1 %v9716_v42 }
 0x18c   :  { %v3284_v21 = vsub.f32 %v12936_v19, %v17680_v57  ;;  %v3291_v4 = vsub.f32 %v12941_v27, %v17681_v45  ;;  %v17684_v22 = vand.u32 4294901760, %v17683_v29  ;;  %v17686_v50 = vand.u32 4294901760, %v17685_v53  ;;  %9719 = vmatprep.subr.bf16.mxu1 %v9718_v48  ;;  %v17698_v27 = vld [vmem:[#allocation70_spill] sm:$0xff] }
 0x18d   :  { %v3410_v1 = vsub.f32 %v12950_v2, %v17682_v23  ;;  %v17688_v43 = vand.u32 4294901760, %v17687_v36  ;;  %v17690_v57 = vand.u32 4294901760, %v17689_v9  ;;  %v13253_v45 = vsub.f32 %v17671_v11, %v13208_v38  ;;  %9689 = vmatpush3.bf16.msra.mxu0 %v13227_v62 }
 0x18e   :  { %v13243_v6 = vpack.c.bf16 %v17686_v50, %v17684_v22  ;;  %v17692_v23 = vand.u32 4294901760, %v12962_v39  ;;  %v17693_v29 = vand.u32 4294901760, %v12834_v63  ;;  %v17694_v53 = vand.u32 4294901760, %v12836_v44  ;;  %v17700_v63 = vld [vmem:[#allocation72_spill] sm:$0xff]  ;;  %v17702_v44 = vld [vmem:[#allocation77_spill] sm:$0xff] }
 0x18f   :  { %v13249_v19 = vpack.c.bf16 %v17690_v57, %v17688_v43  ;;  %v9720_v50 = vpack.c.bf16 %v3264_v33, %v3257_v5  ;;  %v3271_v36 = vand.u32 4294901760, %v3270_v0  ;;  %v3278_v9 = vand.u32 4294901760, %v3277_v52  ;;  %v17696_v43 = vld [vmem:[#allocation68_spill] sm:$0xff]  ;;  %v13277_v0 = vld [vmem:[#allocation5 + $0x480] sm:$0xff]  ;;  %v13279_v52 = vld [vmem:[#allocation5 + $0x488] sm:$0xff] }
 0x190   :  { %v3417_v2 = vsub.f32 %v12962_v39, %v17692_v23  ;;  %v13262_v22 = vpack.c.bf16 %v17694_v53, %v17693_v29  ;;  %v17697_v57 = vand.u32 4294901760, %v17696_v43  ;;  %v17699_v11 = vand.u32 4294901760, %v17698_v27  ;;  %9691 = vmatprep.subr.bf16.mxu0 %v13243_v6 }
 0x191   :  { %17691 = vst [vmem:[#allocation82_spill] sm:$0xff] %v13249_v19  ;;  %v9722_v51 = vpack.c.bf16 %v3390_v46, %v3383_v25  ;;  %v3397_v13 = vand.u32 4294901760, %v3396_v40  ;;  %v3404_v23 = vand.u32 4294901760, %v3403_v12  ;;  %v17701_v42 = vand.u32 4294901760, %v17700_v63  ;;  %9721 = vmatpush3.bf16.msra.mxu1 %v9720_v50  ;;  %v17709_v63 = vld [vmem:[#allocation80_spill] sm:$0xff]  ;;  %9693 = vmatpush3.bf16.msra.mxu0 %v13249_v19  ;;  %v13327_v19 = vld [vmem:[#allocation5 + $0x4a8] sm:$0xff] }
 0x192   :  { %17695 = vst [vmem:[#allocation48_spill] sm:$0xff] %v13262_v22  ;;  %v13268_v16 = vpack.c.bf16 %v17699_v11, %v17697_v57  ;;  %v17703_v29 = vand.u32 4294901760, %v17702_v44  ;;  %v3285_v5 = vand.u32 4294901760, %v3284_v21  ;;  %v3292_v33 = vand.u32 4294901760, %v3291_v4  ;;  %v13289_v21 = vld [vmem:[#allocation5 + $0x400] sm:$0xff]  ;;  %v13291_v4 = vld [vmem:[#allocation5 + $0x408] sm:$0xff]  ;;  %9695 = vmatprep.subr.bf16.mxu0 %v13262_v22 }
 0x193   :  { %v3411_v48 = vand.u32 4294901760, %v3410_v1  ;;  %v3418_v25 = vand.u32 4294901760, %v3417_v2  ;;  %v17704_v46 = vand.u32 4294901760, %v12977_v56  ;;  %v17705_v12 = vand.u32 4294901760, %v12982_v7  ;;  %17706 = vst [vmem:[#allocation83_spill] sm:$0xff] %v13291_v4  ;;  %v7586_v1 = vpop.f32.mrb[4].mxu0  ;;  %9723 = vmatprep.subr.bf16.mxu1 %v9722_v51 }
 0x194   :  { %v13275_v53 = vpack.c.bf16 %v17703_v29, %v17701_v42  ;;  %v17707_v57 = vld [vmem:[#allocation79_spill] sm:$0xff]  ;;  %v17710_v42 = vand.u32 4294901760, %v17709_v63  ;;  %v9724_v2 = vpack.c.bf16 %v3278_v9, %v3271_v36  ;;  %v9726_v27 = vpack.c.bf16 %v3404_v23, %v3397_v13  ;;  %v13307_v63 = vld [vmem:[#allocation5 + $0x490] sm:$0xff]  ;;  %v7621_v9 = vpop.f32.mrb[4].mxu1  ;;  %v13316_v23 = vld [vmem:[#allocation5 + $0x418] sm:$0xff]  ;;  %17717 = vst [vmem:[#allocation87_spill] sm:$0xff] %v13327_v19 }
 0x195   :  { %v3298_v40 = vsub.f32 %v12977_v56, %v17704_v46  ;;  %v3305_v43 = vsub.f32 %v12982_v7, %v17705_v12  ;;  %v17708_v11 = vand.u32 4294901760, %v17707_v57  ;;  %v7587_v12 = vpop.f32.mrb[5].mxu0  ;;  %17711 = vst [vmem:[#allocation36_spill] sm:$0xff] %v13307_v63  ;;  %v13314_v13 = vld [vmem:[#allocation5 + $0x410] sm:$0xff]  ;;  %17714 = vst [vmem:[#allocation85_spill] sm:$0xff] %v13316_v23  ;;  %v7622_v7 = vpop.f32.mrb[5].mxu1  ;;  %9697 = vmatpush3.bf16.msra.mxu0 %v13268_v16 }
 0x196   :  { %v7588_v36 = vadd.f32 %v7587_v12, %v7586_v1  ;;  %17713 = vst [vmem:[#allocation44_spill] sm:$0xff] %v13314_v13  ;;  %v17715_v29 = vand.u32 4294901760, %v13253_v45  ;;  %v9730_v1 = vpack.c.bf16 %v3418_v25, %v3411_v48  ;;  %v13322_v56 = vld [vmem:[#allocation5 + $0x4a0] sm:$0xff]  ;;  %9725 = vmatpush3.bf16.msra.mxu1 %v9724_v2  ;;  %v16613_v51 = vand.u32 4294901760, %v13307_v63  ;;  %9699 = vmatprep.subr.bf16.mxu0 %v13275_v53  ;;  %v13364_v46 = vld [vmem:[#allocation5 + $0x4b0] sm:$0xff] }
 0x197   :  { %v13297_v44 = vpack.c.bf16 %v17710_v42, %v17708_v11  ;;  %v13309_v11 = vld [vmem:[#allocation5 + $0x498] sm:$0xff]  ;;  %v9728_v42 = vpack.c.bf16 %v3292_v33, %v3285_v5  ;;  %v3299_v12 = vand.u32 4294901760, %v3298_v40  ;;  %v3306_v50 = vand.u32 4294901760, %v3305_v43  ;;  %17716 = vst [vmem:[#allocation86_spill] sm:$0xff] %v13322_v56  ;;  %v13329_v22 = vld [vmem:[#allocation5 + $0x420] sm:$0xff]  ;;  %9727 = vmatprep.subr.bf16.mxu1 %v9726_v27  ;;  %v13343_v43 = vld [vmem:[#allocation5 + $0x428] sm:$0xff] }
 0x198   :  { %17712 = vst [vmem:[#allocation84_spill] sm:$0xff] %v13309_v11  ;;  %v3189_v57 = vsub.f32 %v13253_v45, %v17715_v29  ;;  %v1253_v5 = vadd.f32 %v7588_v36, %v13085_v32  ;;  %v7623_v33 = vadd.f32 %v7622_v7, %v7621_v9  ;;  %17718 = vst [vmem:[#allocation88_spill] sm:$0xff] %v13329_v22  ;;  %v17719_v29 = vand.u32 4294901760, %v13277_v0 }
 0x199   :  { %v17720_v25 = vand.u32 4294901760, %v13279_v52  ;;  %17721 = vst [vmem:[#allocation89_spill] sm:$0xff] %v13343_v43  ;;  %v17722_v27 = vand.u32 4294901760, %v13289_v21  ;;  %v17723_v9 = vand.u32 4294901760, %v13291_v4  ;;  %17724 = vst [vmem:[#allocation90_spill] sm:$0xff] %v13364_v46  ;;  %9701 = vmatpush3.bf16.msra.mxu0 %v13297_v44  ;;  %v17729_v7 = vand.u32 4294901760, %v13322_v56 }
 0x19a   :  { %v13334_v48 = vsub.f32 %v13277_v0, %v17719_v29  ;;  %v13346_v2 = vadd.f32 %v7623_v33, %v1253_v5  ;;  %v3190_v40 = vand.u32 4294901760, %v3189_v57  ;;  %9729 = vmatpush3.bf16.msra.mxu1 %v9728_v42  ;;  %v17727_v33 = vand.u32 4294901760, %v13314_v13 }
 0x19b   :  { %v13339_v32 = vsub.f32 %v13279_v52, %v17720_v25  ;;  %v13351_v36 = vsub.f32 %v13289_v21, %v17722_v27  ;;  %v13356_v29 = vsub.f32 %v13291_v4, %v17723_v9  ;;  %v9732_v27 = vpack.c.bf16 %v3306_v50, %v3299_v12  ;;  %v13377_v4 = vld [vmem:[#allocation5 + $0x4b8] sm:$0xff]  ;;  %9731 = vmatprep.subr.bf16.mxu1 %v9730_v1 }
 0x19c   :  { %v13369_v9 = vsub.f32 %v13307_v63, %v16613_v51  ;;  %v17725_v25 = vand.u32 4294901760, %v13309_v11  ;;  %17726 = vst [vmem:[#allocation45_spill] sm:$0xff] %v13377_v4  ;;  %v13382_v42 = vsub.f32 %v13314_v13, %v17727_v33  ;;  %v17728_v50 = vand.u32 4294901760, %v13316_v23  ;;  %3191 = vmatmul.mubr.f32.vlgmr.msra.gmra.mrb[18].mxu0 %v3190_v40 }
 0x19d   :  { %v13395_v1 = vsub.f32 %v13322_v56, %v17729_v7  ;;  %v17733_v51 = vand.u32 4294901760, %v13327_v19  ;;  %v17734_v7 = vand.u32 4294901760, %v13329_v22  ;;  %v17735_v33 = vand.u32 4294901760, %v13334_v48  ;;  %3558 = vmatprep.mubr.f32.mxu0 %v13056_v24 }
 0x19e   :  { %v13374_v57 = vsub.f32 %v13309_v11, %v17725_v25  ;;  %v13387_v12 = vsub.f32 %v13316_v23, %v17728_v50  ;;  %v13400_v11 = vld [vmem:[#allocation5 + $0x430] sm:$0xff]  ;;  %v13402_v50 = vld [vmem:[#allocation5 + $0x438] sm:$0xff]  ;;  %v17732_v25 = vpack.c.bf16 %v17603_v28, %v12614_v14  ;;  %v17736_v56 = vand.u32 4294901760, %v13339_v32  ;;  %9733 = vmatpush3.bf16.msra.mxu1 %v9732_v27 }
 0x19f   :  { %17730 = vst [vmem:[#allocation91_spill] sm:$0xff] %v13400_v11  ;;  %17731 = vst [vmem:[#allocation92_spill] sm:$0xff] %v13402_v50  ;;  %v13410_v23 = vsub.f32 %v13327_v19, %v17733_v51  ;;  %v13415_v5 = vsub.f32 %v13329_v22, %v17734_v7  ;;  %v17738_v14 = vand.u32 4294901760, %v13343_v43  ;;  %v13431_v7 = vld [vmem:[#allocation5 + $0x4c0] sm:$0xff]  ;;  %v13433_v22 = vld [vmem:[#allocation5 + $0x4c8] sm:$0xff]  ;;  %v17741_v13 = vand.u32 4294901760, %v13351_v36  ;;  %9767 = vmatprep.subr.bf16.mxu1 %v13091_v30 }
 0x1a0   :  { %9735 = vmatprep.subr.bf16.mxu0 %v17732_v25  ;;  %v13422_v63 = vpack.c.bf16 %v17736_v56, %v17735_v33  ;;  %17739 = vst [vmem:[#allocation52_spill] sm:$0xff] %v13431_v7  ;;  %17740 = vst [vmem:[#allocation94_spill] sm:$0xff] %v13433_v22  ;;  %v17742_v19 = vand.u32 4294901760, %v13356_v29  ;;  %v13446_v51 = vld [vmem:[#allocation5 + $0x440] sm:$0xff]  ;;  %v17748_v33 = vand.u32 4294901760, %v13369_v9  ;;  %v17749_v27 = vand.u32 4294901760, %v13374_v57 }
 0x1a1   :  { %v13427_v28 = vsub.f32 %v13343_v43, %v17738_v14  ;;  %v16622_v14 = vand.u32 4294901760, %v13382_v42  ;;  %17744 = vst [vmem:[#allocation54_spill] sm:$0xff] %v13446_v51  ;;  %v17746_v43 = vpack.c.bf16 %v17608_v34, %v12631_v54  ;;  %v17751_v54 = vpack.c.bf16 %v12654_v59, %v12649_v49  ;;  %3423 = vmatmul.mubr.f32.vlgmr.msra.gmra.mrb[18].mxu1 %v13208_v38  ;;  %v17762_v59 = vld [vmem:[#allocation27_spill] sm:$0xff] }
 0x1a2   :  { %17737 = vst [vmem:[#allocation93_spill] sm:$0xff] %v13422_v63  ;;  %v13439_v56 = vpack.c.bf16 %v17742_v19, %v17741_v13  ;;  %v13448_v63 = vld [vmem:[#allocation5 + $0x448] sm:$0xff]  ;;  %v9742_v19 = vpack.c.bf16 %v12687_v10, %v12675_v15  ;;  %v17747_v13 = vand.u32 4294901760, %v13364_v46  ;;  %v13465_v25 = vpack.c.bf16 %v17749_v27, %v17748_v33  ;;  %9769 = vmatpush3.bf16.msra.mxu1 %v13116_v3 }
 0x1a3   :  { %17745 = vst [vmem:[#allocation96_spill] sm:$0xff] %v13448_v63  ;;  %9737 = vmatpush3.bf16.msra.mxu0 %v17746_v43  ;;  %v17752_v10 = vand.u32 4294901760, %v13377_v4  ;;  %v17753_v27 = vand.u32 4294901760, %v13387_v12  ;;  %v17755_v49 = vand.u32 4294901760, %v13056_v24  ;;  %v13491_v43 = vld [vmem:[#allocation5 + $0x4d0] sm:$0xff]  ;;  %9771 = vmatprep.subr.bf16.mxu1 %v13123_v55  ;;  %v17759_v24 = vand.u32 4294901760, %v13402_v50 }
 0x1a4   :  { %17743 = vst [vmem:[#allocation95_spill] sm:$0xff] %v13439_v56  ;;  %v13459_v40 = vsub.f32 %v13364_v46, %v17747_v13  ;;  %17750 = vst [vmem:[#allocation41_spill] sm:$0xff] %v13465_v25  ;;  %9739 = vmatprep.subr.bf16.mxu0 %v17751_v54  ;;  %v16624_v54 = vand.u32 4294901760, %v13427_v28  ;;  %v9744_v13 = vpack.c.bf16 %v12704_v20, %v12692_v37  ;;  %v13513_v25 = vld [vmem:[#allocation5 + $0x4d8] sm:$0xff]  ;;  %v13515_v56 = vld [vmem:[#allocation5 + $0x450] sm:$0xff]  ;;  %v17767_v34 = vand.u32 4294901760, %v13410_v23 }
 0x1a5   :  { %v13474_v15 = vsub.f32 %v13377_v4, %v17752_v10  ;;  %v13482_v33 = vpack.c.bf16 %v17753_v27, %v16622_v14  ;;  %3665 = vmatprep.mubr.f32.mxu1 %v17755_v49  ;;  %17756 = vst [vmem:[#allocation97_spill] sm:$0xff] %v13491_v43  ;;  %v17757_v27 = vand.u32 4294901760, %v13400_v11  ;;  %v13502_v49 = vsub.f32 %v13402_v50, %v17759_v24  ;;  %v17808_v46 = vld [vmem:[#allocation76_spill] sm:$0xff] }
 0x1a6   :  { %v17761_v10 = vpack.c.bf16 %v12667_v58, %v12662_v18  ;;  %17764 = vst [vmem:[#allocation28_spill] sm:$0xff] %v13513_v25  ;;  %17765 = vst [vmem:[#allocation49_spill] sm:$0xff] %v13515_v56  ;;  %v17766_v24 = vand.u32 4294901760, %v13395_v1  ;;  %v17769_v18 = vand.u32 4294901760, %v13431_v7  ;;  %v17771_v20 = vand.u32 4294901760, %v13433_v22  ;;  %9773 = vmatpush3.bf16.msra.mxu1 %v13144_v17 }
 0x1a7   :  { %17754 = vst [vmem:[#allocation47_spill] sm:$0xff] %v13482_v33  ;;  %v13497_v14 = vsub.f32 %v13400_v11, %v17757_v27  ;;  %17760 = vst [vmem:[#allocation24_spill] sm:$0xff] %v13502_v49  ;;  %v17763_v33 = vld [vmem:[#allocation30_spill] sm:$0xff]  ;;  %9775 = vmatprep.subr.bf16.mxu1 %v13150_v31 }
 0x1a8   :  { %9741 = vmatpush3.bf16.msra.mxu0 %v17761_v10  ;;  %v9746_v27 = vpack.c.bf16 %v17763_v33, %v17762_v59  ;;  %v13521_v50 = vpack.c.bf16 %v17767_v34, %v17766_v24  ;;  %v13526_v58 = vsub.f32 %v13431_v7, %v17769_v18  ;;  %v13531_v37 = vsub.f32 %v13433_v22, %v17771_v20  ;;  %v13534_v59 = vld [vmem:[#allocation5 + $0x458] sm:$0xff]  ;;  %v13562_v22 = vld [vmem:[#allocation5 + $0x4e8] sm:$0xff] }
 0x1a9   :  { %17758 = vst [vmem:[#allocation98_spill] sm:$0xff] %v13497_v14  ;;  %9743 = vmatprep.subr.bf16.mxu0 %v9742_v19  ;;  %17772 = vst [vmem:[#allocation50_spill] sm:$0xff] %v13534_v59  ;;  %v17773_v10 = vand.u32 4294901760, %v13415_v5  ;;  %v17775_v19 = vand.u32 4294901760, %v13446_v51  ;;  %v17776_v18 = vand.u32 4294901760, %v13448_v63  ;;  %v17781_v7 = vand.u32 4294901760, %v13459_v40 }
 0x1aa   :  { %17768 = vst [vmem:[#allocation31_spill] sm:$0xff] %v13521_v50  ;;  %17770 = vst [vmem:[#allocation33_spill] sm:$0xff] %v13526_v58  ;;  %v17789_v50 = vand.u32 4294901760, %v13497_v14  ;;  %9777 = vmatpush3.bf16.msra.mxu1 %v13172_v26 }
 0x1ab   :  { %v13540_v34 = vpack.c.bf16 %v16624_v54, %v17773_v10  ;;  %v13546_v24 = vsub.f32 %v13446_v51, %v17775_v19  ;;  %v13551_v20 = vsub.f32 %v13448_v63, %v17776_v18  ;;  %v13560_v51 = vld [vmem:[#allocation5 + $0x4e0] sm:$0xff]  ;;  %17778 = vst [vmem:[#allocation17_spill] sm:$0xff] %v13562_v22  ;;  %v17779_v18 = vld [vmem:[#allocation32_spill] sm:$0xff]  ;;  %v17782_v10 = vand.u32 4294901760, %v13474_v15  ;;  %v17784_v54 = vld [vmem:[#allocation37_spill] sm:$0xff]  ;;  %9779 = vmatprep.subr.bf16.mxu1 %v13178_v41 }
 0x1ac   :  { %17777 = vst [vmem:[#allocation12_spill] sm:$0xff] %v13560_v51  ;;  %9745 = vmatpush3.bf16.msra.mxu0 %v9744_v13  ;;  %v17780_v63 = vld [vmem:[#allocation34_spill] sm:$0xff]  ;;  %v9750_v19 = vpack.c.bf16 %v12805_v60, %v17784_v54  ;;  %v17785_v13 = vand.u32 4294901760, %v13491_v43  ;;  %v17798_v54 = vand.u32 4294901760, %v13534_v59  ;;  %v17803_v60 = vand.u32 4294901760, %v13531_v37 }
 0x1ad   :  { %17774 = vst [vmem:[#allocation51_spill] sm:$0xff] %v13540_v34  ;;  %v9748_v33 = vpack.c.bf16 %v17780_v63, %v17779_v18  ;;  %v13571_v11 = vpack.c.bf16 %v17782_v10, %v17781_v7  ;;  %9747 = vmatprep.subr.bf16.mxu0 %v9746_v27  ;;  %v9752_v34 = vpack.c.bf16 %v12825_v47, %v12820_v8  ;;  %v13582_v63 = vld [vmem:[#allocation5 + $0x460] sm:$0xff]  ;;  %v13584_v18 = vld [vmem:[#allocation5 + $0x468] sm:$0xff]  ;;  %v17790_v7 = vand.u32 4294901760, %v13502_v49  ;;  %v13597_v10 = vld [vmem:[#allocation5 + $0x4f0] sm:$0xff] }
 0x1ae   :  { %v13580_v4 = vsub.f32 %v13491_v43, %v17785_v13  ;;  %17787 = vst [vmem:[#allocation56_spill] sm:$0xff] %v13582_v63  ;;  %17788 = vst [vmem:[#allocation57_spill] sm:$0xff] %v13584_v18  ;;  %v17793_v13 = vand.u32 4294901760, %v13513_v25  ;;  %v13612_v47 = vld [vmem:[#allocation5 + $0x4f8] sm:$0xff]  ;;  %v13621_v43 = vld [vmem:[#allocation5 + $0x470] sm:$0xff]  ;;  %v17802_v8 = vand.u32 4294901760, %v13526_v58 }
 0x1af   :  { %17783 = vst [vmem:[#allocation53_spill] sm:$0xff] %v13571_v11  ;;  %v13590_v27 = vpack.c.bf16 %v17790_v7, %v17789_v50  ;;  %17792 = vst [vmem:[#allocation16_spill] sm:$0xff] %v13597_v10  ;;  %v17795_v50 = vand.u32 4294901760, %v13515_v56  ;;  %v17809_v49 = vld [vmem:[#allocation78_spill] sm:$0xff] }
 0x1b0   :  { %17786 = vst [vmem:[#allocation55_spill] sm:$0xff] %v13580_v4  ;;  %v13603_v11 = vsub.f32 %v13513_v25, %v17793_v13  ;;  %17797 = vst [vmem:[#allocation23_spill] sm:$0xff] %v13612_v47  ;;  %9749 = vmatpush3.bf16.msra.mxu0 %v9748_v33  ;;  %v9754_v33 = vpack.c.bf16 %v12877_v61, %v12854_v35  ;;  %v17805_v13 = vand.u32 4294901760, %v13546_v24  ;;  %v17806_v25 = vand.u32 4294901760, %v13551_v20  ;;  %v17810_v58 = vld [vmem:[#allocation46_spill] sm:$0xff] }
 0x1b1   :  { %17791 = vst [vmem:[#allocation58_spill] sm:$0xff] %v13590_v27  ;;  %v13608_v7 = vsub.f32 %v13515_v56, %v17795_v50  ;;  %v13617_v27 = vsub.f32 %v13534_v59, %v17798_v54  ;;  %17800 = vst [vmem:[#allocation13_spill] sm:$0xff] %v13621_v43  ;;  %v13623_v50 = vld [vmem:[#allocation5 + $0x478] sm:$0xff]  ;;  %v13629_v56 = vpack.c.bf16 %v17803_v60, %v17802_v8  ;;  %9751 = vmatprep.subr.bf16.mxu0 %v9750_v19  ;;  %v17815_v54 = vld [vmem:[#allocation20_spill] sm:$0xff] }
 0x1b2   :  { %17794 = vst [vmem:[#allocation59_spill] sm:$0xff] %v13603_v11  ;;  %17801 = vst [vmem:[#allocation35_spill] sm:$0xff] %v13623_v50  ;;  %v13638_v59 = vpack.c.bf16 %v17806_v25, %v17805_v13  ;;  %v9756_v14 = vpack.c.bf16 %v17809_v49, %v17808_v46  ;;  %9781 = vmatpush3.bf16.msra.mxu1 %v17810_v58  ;;  %v17811_v60 = vand.u32 4294901760, %v13560_v51  ;;  %v17813_v35 = vand.u32 4294901760, %v13562_v22  ;;  %v17820_v46 = vld [vmem:[#allocation38_spill] sm:$0xff]  ;;  %v17821_v49 = vld [vmem:[#allocation40_spill] sm:$0xff] }
 0x1b3   :  { %17796 = vst [vmem:[#allocation14_spill] sm:$0xff] %v13608_v7  ;;  %17799 = vst [vmem:[#allocation26_spill] sm:$0xff] %v13617_v27  ;;  %9783 = vmatprep.subr.bf16.mxu1 %v17815_v54  ;;  %v17827_v25 = vand.u32 4294901760, %v13612_v47 }
 0x1b4   :  { %17804 = vst [vmem:[#allocation18_spill] sm:$0xff] %v13629_v56  ;;  %17807 = vst [vmem:[#allocation62_spill] sm:$0xff] %v13638_v59  ;;  %v13646_v19 = vsub.f32 %v13560_v51, %v17811_v60  ;;  %v13651_v61 = vsub.f32 %v13562_v22, %v17813_v35  ;;  %9753 = vmatpush3.bf16.msra.mxu0 %v9752_v34  ;;  %v17816_v60 = vand.u32 4294901760, %v13582_v63  ;;  %v17818_v35 = vand.u32 4294901760, %v13584_v18 }
 0x1b5   :  { %v16648_v56 = vand.u32 4294901760, %v13608_v7  ;;  %9755 = vmatprep.subr.bf16.mxu0 %v9754_v33  ;;  %v9758_v22 = vpack.c.bf16 %v17821_v49, %v17820_v46  ;;  %v17822_v34 = vand.u32 4294901760, %v13597_v10  ;;  %v13688_v33 = vsub.f32 %v13612_v47, %v17827_v25 }
 0x1b6   :  { %17812 = vst [vmem:[#allocation68_spill] sm:$0xff] %v13646_v19  ;;  %17814 = vst [vmem:[#allocation70_spill] sm:$0xff] %v13651_v61  ;;  %v13662_v59 = vsub.f32 %v13582_v63, %v17816_v60  ;;  %v13667_v8 = vsub.f32 %v13584_v18, %v17818_v35  ;;  %v17824_v60 = vand.u32 4294901760, %v13580_v4  ;;  %v17825_v63 = vand.u32 4294901760, %v13603_v11  ;;  %v7656_v35 = vpop.f32.mrb[6].mxu0  ;;  %9785 = vmatpush3.bf16.msra.mxu1 %v13227_v62  ;;  %v17836_v11 = vld [vmem:[#allocation61_spill] sm:$0xff] }
 0x1b7   :  { %v13676_v13 = vsub.f32 %v13597_v10, %v17822_v34  ;;  %v17828_v46 = vand.u32 4294901760, %v13617_v27  ;;  %v7657_v34 = vpop.f32.mrb[7].mxu0  ;;  %9787 = vmatprep.subr.bf16.mxu1 %v13243_v6  ;;  %v16658_v25 = vand.u32 4294901760, %v13646_v19  ;;  %v16657_v47 = vand.u32 4294901760, %v13651_v61  ;;  %v7691_v27 = vpop.f32.mrb[6].mxu1 }
 0x1b8   :  { %17817 = vst [vmem:[#allocation72_spill] sm:$0xff] %v13662_v59  ;;  %17819 = vst [vmem:[#allocation77_spill] sm:$0xff] %v13667_v8  ;;  %v13682_v51 = vpack.c.bf16 %v17825_v63, %v17824_v60  ;;  %v17830_v63 = vand.u32 4294901760, %v13621_v43  ;;  %v7658_v18 = vadd.f32 %v7657_v34, %v7656_v35  ;;  %9757 = vmatpush3.bf16.msra.mxu0 %v9756_v14  ;;  %v16664_v7 = vand.u32 4294901760, %v13662_v59  ;;  %v17838_v34 = vld [vmem:[#allocation82_spill] sm:$0xff] }
 0x1b9   :  { %17823 = vst [vmem:[#allocation79_spill] sm:$0xff] %v13676_v13  ;;  %v13694_v49 = vpack.c.bf16 %v17828_v46, %v16648_v56  ;;  %v17834_v46 = vld [vmem:[#allocation22_spill] sm:$0xff]  ;;  %9759 = vmatprep.subr.bf16.mxu0 %v9758_v22  ;;  %v13720_v14 = vpack.c.bf16 %v16657_v47, %v16658_v25  ;;  %v17840_v22 = vld [vmem:[#allocation48_spill] sm:$0xff] }
 0x1ba   :  { %17826 = vst [vmem:[#allocation80_spill] sm:$0xff] %v13682_v51  ;;  %v13700_v60 = vsub.f32 %v13621_v43, %v17830_v63  ;;  %v17832_v51 = vand.u32 4294901760, %v13623_v50  ;;  %v17835_v56 = vld [vmem:[#allocation42_spill] sm:$0xff]  ;;  %v16659_v63 = vand.u32 4294901760, %v13667_v8  ;;  %v7692_v43 = vpop.f32.mrb[7].mxu1  ;;  %9789 = vmatpush3.bf16.msra.mxu1 %v17838_v34 }
 0x1bb   :  { %17829 = vst [vmem:[#allocation27_spill] sm:$0xff] %v13694_v49  ;;  %v9760_v49 = vpack.c.bf16 %v17835_v56, %v17834_v46  ;;  %17837 = vst [vmem:[#allocation34_spill] sm:$0xff] %v13720_v14  ;;  %v1469_v56 = vadd.f32 %v7658_v18, %v13346_v2  ;;  %v7693_v35 = vadd.f32 %v7692_v43, %v7691_v27  ;;  %v16662_v46 = vand.u32 4294901760, %v13688_v33  ;;  %v17841_v2 = vld [vmem:[#allocation67_spill] sm:$0xff]  ;;  %v17842_v43 = vld [vmem:[#allocation69_spill] sm:$0xff] }
 0x1bc   :  { %17831 = vst [vmem:[#allocation30_spill] sm:$0xff] %v13700_v60  ;;  %v13705_v10 = vsub.f32 %v13623_v50, %v17832_v51  ;;  %v9762_v51 = vpack.c.bf16 %v12962_v39, %v17836_v11  ;;  %v16663_v50 = vand.u32 4294901760, %v13676_v13  ;;  %v13729_v39 = vpack.c.bf16 %v16659_v63, %v16664_v7  ;;  %9791 = vmatprep.subr.bf16.mxu1 %v17840_v22 }
 0x1bd   :  { %v16661_v11 = vand.u32 4294901760, %v13700_v60  ;;  %9761 = vmatpush3.bf16.msra.mxu0 %v9760_v49  ;;  %v1701_v25 = vadd.f32 %v7693_v35, %v1469_v56  ;;  %v9764_v18 = vpack.c.bf16 %v17842_v43, %v17841_v2  ;;  %v13750_v49 = vld [vmem:[#allocation2 + $0x10] sm:$0xff]  ;;  %v17846_v56 = vld [vmem:[#allocation15_spill] sm:$0xff] }
 0x1be   :  { %17833 = vst [vmem:[#allocation32_spill] sm:$0xff] %v13705_v10  ;;  %17839 = vst [vmem:[#allocation37_spill] sm:$0xff] %v13729_v39  ;;  %v16660_v47 = vand.u32 4294901760, %v13705_v10  ;;  %v13740_v27 = vpack.c.bf16 %v16662_v46, %v16663_v50  ;;  %9763 = vmatprep.subr.bf16.mxu0 %v9762_v51  ;;  %9793 = vmatpush3.bf16.msra.mxu1 %v13268_v16  ;;  %v13753_v35 = vld [vmem:[#allocation2 + $0x30] sm:$0xff]  ;;  %v17853_v46 = vand.u32 4294901760, %v13253_v45 }
 0x1bf   :  { %9795 = vmatprep.subr.bf16.mxu1 %v13275_v53  ;;  %17845 = vst [vmem:[#allocation46_spill] sm:$0xff] %v13750_v49  ;;  %17847 = vst [vmem:[#allocation20_spill] sm:$0xff] %v13753_v35  ;;  %v13755_v2 = vld [vmem:[#allocation2 + $0x50] sm:$0xff] }
 0x1c0   :  { %17843 = vst [vmem:[#allocation76_spill] sm:$0xff] %v13740_v27  ;;  %v13746_v63 = vpack.c.bf16 %v16660_v47, %v16661_v11  ;;  %17848 = vst [vmem:[#allocation38_spill] sm:$0xff] %v13755_v2  ;;  %v13757_v51 = vld [vmem:[#allocation2 + $0x70] sm:$0xff]  ;;  %v17851_v47 = vld [vmem:[#allocation25_spill] sm:$0xff] }
 0x1c1   :  { %9765 = vmatpush3.bf16.msra.mxu0 %v9764_v18  ;;  %17849 = vst [vmem:[#allocation40_spill] sm:$0xff] %v13757_v51  ;;  %v17850_v43 = vld [vmem:[#allocation60_spill] sm:$0xff]  ;;  %v410_v18 = vcombine.low %v13750_v49, %v13753_v35  ;;  %v17852_v11 = vld [vmem:[#allocation29_spill] sm:$0xff] }
 0x1c2   :  { %17844 = vst [vmem:[#allocation78_spill] sm:$0xff] %v13746_v63  ;;  %9799 = vmatprep.subr.bf16.mxu0 %v17846_v56  ;;  %9797 = vmatpush3.bf16.msra.mxu1 %v13297_v44  ;;  %v412_v56 = vcombine.low %v13755_v2, %v13757_v51  ;;  %v17856_v63 = vld [vmem:[#allocation39_spill] sm:$0xff]  ;;  %v17872_v27 = vld [vmem:[#allocation73_spill] sm:$0xff] }
 0x1c3   :  { %9831 = vmatprep.subr.bf16.mxu1 %v13091_v30  ;;  %v17854_v30 = vld [vmem:[#allocation21_spill] sm:$0xff] }
 0x1c4   :  { %3561 = vmatmul.mubr.f32.vlgmr.msra.gmra.mrb[20].mxu0 %v13253_v45  ;;  %v17857_v45 = vld [vmem:[#allocation63_spill] sm:$0xff]  ;;  %v17910_v35 = vld [vmem:[#allocation89_spill] sm:$0xff] }
 0x1c5   :  { %9801 = vmatpush3.bf16.msra.mxu0 %v17850_v43  ;;  %3835 = vmatprep.mubr.f32.mxu0 %v17851_v47  ;;  %v17855_v43 = vld [vmem:[#allocation11_spill] sm:$0xff] }
 0x1c6   :  { %9803 = vmatprep.subr.bf16.mxu0 %v17852_v11  ;;  %3669 = vmatmul.mubr.f32.vlgmr.msra.gmra.mrb[20].mxu1 %v17853_v46  ;;  %v13776_v50 = vrot.slane %v410_v18, %v17855_v43  ;;  %v13779_v7 = vrot.slane %v412_v56, %v17855_v43  ;;  %v17863_v11 = vld [vmem:[#allocation65_spill] sm:$0xff]  ;;  %v17864_v18 = vand.u32 4294901760, %v13334_v48 }
 0x1c7   :  { %9833 = vmatpush3.bf16.msra.mxu1 %v13116_v3  ;;  %3939 = vmatprep.mubr.f32.mxu1 %v17851_v47  ;;  %v17859_v47 = vld [vmem:[#allocation71_spill] sm:$0xff] }
 0x1c8   :  { %9835 = vmatprep.subr.bf16.mxu1 %v13123_v55  ;;  %v443_v3 = vcombine.high %v13776_v50, %v13779_v7  ;;  %v17858_v55 = vld [vmem:[#allocation64_spill] sm:$0xff]  ;;  %v4174_v56 = vsub.f32 %v13334_v48, %v17864_v18  ;;  %v17870_v18 = vand.u32 4294901760, %v13369_v9 }
 0x1c9   :  { %9805 = vmatpush3.bf16.msra.mxu0 %v17854_v30 }
 0x1ca   :  { %9807 = vmatprep.subr.bf16.mxu0 %v17856_v63  ;;  %v13791_v46 = vand.u32 4294901760, %v443_v3  ;;  %v17861_v63 = vld [vmem:[#allocation81_spill] sm:$0xff] }
 0x1cb   :  { %9837 = vmatpush3.bf16.msra.mxu1 %v13144_v17  ;;  %v17862_v17 = vld [vmem:[#allocation19_spill] sm:$0xff] }
 0x1cc   :  { %9839 = vmatprep.subr.bf16.mxu1 %v13150_v31  ;;  %17860 = vst [vmem:[#allocation22_spill] sm:$0xff] %v13791_v46  ;;  %v13798_v31 = vsub.f32 %v443_v3, %v13791_v46  ;;  %v7761_v3 = vpop.f32.mrb[8].mxu1 }
 0x1cd   :  { %9809 = vmatpush3.bf16.msra.mxu0 %v17857_v45  ;;  %v17866_v45 = vld [vmem:[#allocation66_spill] sm:$0xff] }
 0x1ce   :  { %9811 = vmatprep.subr.bf16.mxu0 %v17858_v55 }
 0x1cf   :  { %9841 = vmatpush3.bf16.msra.mxu1 %v13172_v26  ;;  %v7726_v26 = vpop.f32.mrb[8].mxu0 }
 0x1d0   :  { %9843 = vmatprep.subr.bf16.mxu1 %v13178_v41  ;;  %v7727_v41 = vpop.f32.mrb[9].mxu0 }
 0x1d1   :  { %9813 = vmatpush3.bf16.msra.mxu0 %v17859_v47  ;;  %v7728_v30 = vadd.f32 %v7727_v41, %v7726_v26  ;;  %v17867_v47 = vld [vmem:[#allocation43_spill] sm:$0xff]  ;;  %v4188_v26 = vsub.f32 %v13369_v9, %v17870_v18  ;;  %v17871_v41 = vand.u32 4294901760, %v13374_v57  ;;  %v17874_v18 = vand.u32 4294901760, %v13279_v52 }
 0x1d2   :  { %9815 = vmatprep.subr.bf16.mxu0 %v17861_v63  ;;  %v17868_v63 = vand.u32 4294901760, %v13351_v36  ;;  %v17878_v52 = vand.u32 4294901760, %v13387_v12 }
 0x1d3   :  { %9845 = vmatpush3.bf16.msra.mxu1 %v17810_v58  ;;  %v17865_v58 = vand.u32 4294901760, %v13339_v32 }
 0x1d4   :  { %9847 = vmatprep.subr.bf16.mxu1 %v17815_v54 }
 0x1d5   :  { %9817 = vmatpush3.bf16.msra.mxu0 %v17862_v17  ;;  %v4181_v54 = vsub.f32 %v13339_v32, %v17865_v58  ;;  %v17869_v17 = vand.u32 4294901760, %v13356_v29  ;;  %v4195_v58 = vsub.f32 %v13374_v57, %v17871_v41  ;;  %v17875_v41 = vand.u32 4294901760, %v13798_v31 }
 0x1d6   :  { %9819 = vmatprep.subr.bf16.mxu0 %v17863_v11 }
 0x1d7   :  { %9849 = vmatpush3.bf16.msra.mxu1 %v13227_v62  ;;  %v7762_v62 = vpop.f32.mrb[9].mxu1  ;;  %v4069_v11 = vsub.f32 %v13356_v29, %v17869_v17  ;;  %v17873_v17 = vand.u32 4294901760, %v13277_v0 }
 0x1d8   :  { %9851 = vmatprep.subr.bf16.mxu1 %v13243_v6  ;;  %v4062_v6 = vsub.f32 %v13351_v36, %v17868_v63  ;;  %v7763_v55 = vadd.f32 %v7762_v62, %v7761_v3  ;;  %v4182_v63 = vand.u32 4294901760, %v4181_v54  ;;  %v4196_v54 = vand.u32 4294901760, %v4195_v58 }
 0x1d9   :  { %9821 = vmatpush3.bf16.msra.mxu0 %v17866_v45  ;;  %v1839_v45 = vadd.f32 %v7728_v30, %v1701_v25  ;;  %v13833_v14 = vpack.c.bf16 %v17874_v18, %v17873_v17  ;;  %v4045_v25 = vsub.f32 %v13798_v31, %v17875_v41  ;;  %v17876_v30 = vld [vmem:[#allocation74_spill] sm:$0xff]  ;;  %v4083_v3 = vsub.f32 %v13387_v12, %v17878_v52 }
 0x1da   :  { %9823 = vmatprep.subr.bf16.mxu0 %v17867_v47  ;;  %v4175_v47 = vand.u32 4294901760, %v4174_v56  ;;  %v4189_v56 = vand.u32 4294901760, %v4188_v26  ;;  %v17879_v62 = vand.u32 4294901760, %v13395_v1  ;;  %v17882_v58 = vand.u32 4294901760, %v13289_v21 }
 0x1db   :  { %9853 = vmatpush3.bf16.msra.mxu1 %v17838_v34  ;;  %v13827_v39 = vadd.f32 %v7763_v55, %v1839_v45  ;;  %v4063_v34 = vand.u32 4294901760, %v4062_v6  ;;  %v17883_v45 = vld [vmem:[#allocation83_spill] sm:$0xff]  ;;  %v4046_v41 = vand.u32 4294901760, %v4045_v25  ;;  %v17889_v21 = vand.u32 4294901760, %v13415_v5 }
 0x1dc   :  { %9855 = vmatprep.subr.bf16.mxu1 %v17840_v22  ;;  %v4070_v22 = vand.u32 4294901760, %v4069_v11  ;;  %v9894_v55 = vpack.c.bf16 %v4182_v63, %v4175_v47  ;;  %v4202_v6 = vsub.f32 %v13395_v1, %v17879_v62  ;;  %v17880_v11 = vand.u32 4294901760, %v13410_v23  ;;  %v17887_v63 = vld [vmem:[#allocation84_spill] sm:$0xff] }
 0x1dd   :  { %9825 = vmatpush3.bf16.msra.mxu0 %v17872_v27  ;;  %v17877_v27 = vand.u32 4294901760, %v13382_v42  ;;  %v17884_v17 = vand.u32 4294901760, %v17883_v45  ;;  %v9898_v62 = vpack.c.bf16 %v4196_v54, %v4189_v56  ;;  %v17890_v25 = vand.u32 4294901760, %v13427_v28  ;;  %v17893_v54 = vld [vmem:[#allocation44_spill] sm:$0xff] }
 0x1de   :  { %9827 = vmatprep.subr.bf16.mxu0 %v17876_v30  ;;  %v4209_v26 = vsub.f32 %v13410_v23, %v17880_v11  ;;  %v17888_v30 = vand.u32 4294901760, %v17887_v63  ;;  %v9896_v52 = vpack.c.bf16 %v4070_v22, %v4063_v34  ;;  %v17891_v34 = vand.u32 4294901760, %v13459_v40 }
 0x1df   :  { %9857 = vmatpush3.bf16.msra.mxu1 %v13268_v16  ;;  %v4076_v0 = vsub.f32 %v13382_v42, %v17877_v27  ;;  %v17881_v16 = vld [vmem:[#allocation75_spill] sm:$0xff]  ;;  %v13858_v18 = vpack.c.bf16 %v17884_v17, %v17882_v58  ;;  %v4090_v58 = vsub.f32 %v13415_v5, %v17889_v21  ;;  %v4097_v45 = vsub.f32 %v13427_v28, %v17890_v25  ;;  %v17901_v25 = vld [vmem:[#allocation98_spill] sm:$0xff] }
 0x1e0   :  { %9859 = vmatprep.subr.bf16.mxu1 %v13275_v53  ;;  %v17885_v53 = vld [vmem:[#allocation36_spill] sm:$0xff]  ;;  %v4203_v17 = vand.u32 4294901760, %v4202_v6  ;;  %v4216_v22 = vsub.f32 %v13459_v40, %v17891_v34  ;;  %v17899_v6 = vld [vmem:[#allocation87_spill] sm:$0xff]  ;;  %v17902_v34 = vand.u32 4294901760, %v17901_v25 }
 0x1e1   :  { %9829 = vmatpush3.bf16.msra.mxu0 %v17881_v16  ;;  %v17886_v47 = vand.u32 4294901760, %v17885_v53  ;;  %v4077_v11 = vand.u32 4294901760, %v4076_v0  ;;  %v4084_v16 = vand.u32 4294901760, %v4083_v3  ;;  %v4210_v53 = vand.u32 4294901760, %v4209_v26  ;;  %v17895_v3 = vld [vmem:[#allocation85_spill] sm:$0xff] }
 0x1e2   :  { %9863 = vmatprep.subr.bf16.mxu0 %v13833_v14  ;;  %v17894_v0 = vand.u32 4294901760, %v17893_v54  ;;  %v17900_v26 = vand.u32 4294901760, %v17899_v6  ;;  %v4104_v43 = vsub.f32 %v17901_v25, %v17902_v34  ;;  %v4091_v34 = vand.u32 4294901760, %v4090_v58 }
 0x1e3   :  { %v13865_v27 = vpack.c.bf16 %v17888_v30, %v17886_v47  ;;  %9861 = vmatpush3.bf16.msra.mxu1 %v13297_v44  ;;  %v17892_v44 = vand.u32 4294901760, %v13474_v15  ;;  %v17896_v47 = vand.u32 4294901760, %v17895_v3  ;;  %v17897_v30 = vld [vmem:[#allocation86_spill] sm:$0xff]  ;;  %v17905_v3 = vld [vmem:[#allocation33_spill] sm:$0xff]  ;;  %v4217_v2 = vand.u32 4294901760, %v4216_v22 }
 0x1e4   :  { %3837 = vmatmul.mubr.f32.vlgmr.msra.gmra.mrb[22].mxu0 %v13208_v38  ;;  %9895 = vmatprep.subr.bf16.mxu1 %v9894_v55  ;;  %v17898_v55 = vand.u32 4294901760, %v17897_v30  ;;  %v4105_v58 = vand.u32 4294901760, %v4104_v43 }
 0x1e5   :  { %v4223_v56 = vsub.f32 %v13474_v15, %v17892_v44  ;;  %9865 = vmatpush3.bf16.msra.mxu0 %v13858_v18  ;;  %v13886_v63 = vpack.c.bf16 %v17896_v47, %v17894_v0  ;;  %4047 = vmatprep.mubr.f32.mxu0 %v4046_v41  ;;  %v17903_v44 = vld [vmem:[#allocation24_spill] sm:$0xff]  ;;  %v17906_v47 = vand.u32 4294901760, %v17905_v3  ;;  %v4098_v41 = vand.u32 4294901760, %v4097_v45 }
 0x1e6   :  { %v13892_v21 = vpack.c.bf16 %v17900_v26, %v17898_v55  ;;  %9867 = vmatprep.subr.bf16.mxu0 %v13865_v27  ;;  %3941 = vmatmul.mubr.f32.vlgmr.msra.gmra.mrb[22].mxu1 %v13208_v38  ;;  %v17904_v54 = vand.u32 4294901760, %v17903_v44  ;;  %v17907_v55 = vand.u32 4294901760, %v13531_v37  ;;  %v9900_v26 = vpack.c.bf16 %v4084_v16, %v4077_v11 }
 0x1e7   :  { %v4230_v30 = vsub.f32 %v17905_v3, %v17906_v47  ;;  %9897 = vmatpush3.bf16.msra.mxu1 %v9896_v52  ;;  %4283 = vmatprep.mubr.f32.mxu1 %v13791_v46  ;;  %v9902_v38 = vpack.c.bf16 %v4210_v53, %v4203_v17  ;;  %v4224_v51 = vand.u32 4294901760, %v4223_v56  ;;  %v17911_v47 = vand.u32 4294901760, %v17910_v35  ;;  %v17914_v52 = vld [vmem:[#allocation45_spill] sm:$0xff] }
 0x1e8   :  { %v4111_v0 = vsub.f32 %v17903_v44, %v17904_v54  ;;  %v4237_v6 = vsub.f32 %v13531_v37, %v17907_v55  ;;  %9899 = vmatprep.subr.bf16.mxu1 %v9898_v62  ;;  %v17908_v54 = vld [vmem:[#allocation88_spill] sm:$0xff]  ;;  %v17912_v44 = vld [vmem:[#allocation90_spill] sm:$0xff]  ;;  %v17915_v11 = vand.u32 4294901760, %v17914_v52  ;;  %v442_v53 = vcombine.low %v13776_v50, %v13779_v7  ;;  %v17922_v50 = vld [vmem:[#allocation91_spill] sm:$0xff] }
 0x1e9   :  { %9869 = vmatpush3.bf16.msra.mxu0 %v13886_v63  ;;  %v17909_v49 = vand.u32 4294901760, %v17908_v54  ;;  %v17913_v55 = vand.u32 4294901760, %v17912_v44  ;;  %v4231_v45 = vand.u32 4294901760, %v4230_v30  ;;  %v9904_v22 = vpack.c.bf16 %v4098_v41, %v4091_v34  ;;  %v17920_v30 = vld [vmem:[#allocation59_spill] sm:$0xff]  ;;  %v17924_v34 = vld [vmem:[#allocation92_spill] sm:$0xff] }
 0x1ea   :  { %9871 = vmatprep.subr.bf16.mxu0 %v13892_v21  ;;  %v4112_v62 = vand.u32 4294901760, %v4111_v0  ;;  %v4238_v17 = vand.u32 4294901760, %v4237_v6  ;;  %v17918_v56 = vand.u32 4294901760, %v13551_v20  ;;  %v9906_v43 = vpack.c.bf16 %v4224_v51, %v4217_v2  ;;  %v17929_v51 = vld [vmem:[#allocation94_spill] sm:$0xff] }
 0x1eb   :  { %v13914_v3 = vpack.c.bf16 %v17911_v47, %v17909_v49  ;;  %v13920_v16 = vpack.c.bf16 %v17915_v11, %v17913_v55  ;;  %9901 = vmatpush3.bf16.msra.mxu1 %v9900_v26  ;;  %v17917_v49 = vand.u32 4294901760, %v13546_v24  ;;  %v17919_v54 = vand.u32 4294901760, %v13580_v4 }
 0x1ec   :  { %v4125_v44 = vsub.f32 %v13551_v20, %v17918_v56  ;;  %9903 = vmatprep.subr.bf16.mxu1 %v9902_v38  ;;  %v17921_v6 = vand.u32 4294901760, %v17920_v30  ;;  %v17923_v26 = vand.u32 4294901760, %v17922_v50  ;;  %v17925_v41 = vand.u32 4294901760, %v17924_v34  ;;  %v17927_v38 = vld [vmem:[#allocation52_spill] sm:$0xff]  ;;  %v17932_v50 = vld [vmem:[#allocation14_spill] sm:$0xff] }
 0x1ed   :  { %17916 = vst [vmem:[#allocation42_spill] sm:$0xff] %v13920_v16  ;;  %v4118_v35 = vsub.f32 %v13546_v24, %v17917_v49  ;;  %v4244_v0 = vsub.f32 %v13580_v4, %v17919_v54  ;;  %9873 = vmatpush3.bf16.msra.mxu0 %v13914_v3  ;;  %v17928_v2 = vand.u32 4294901760, %v17927_v38  ;;  %v17930_v55 = vand.u32 4294901760, %v17929_v51  ;;  %v17934_v34 = vld [vmem:[#allocation26_spill] sm:$0xff] }
 0x1ee   :  { %v4251_v7 = vsub.f32 %v17920_v30, %v17921_v6  ;;  %v13942_v47 = vpack.c.bf16 %v17925_v41, %v17923_v26  ;;  %9875 = vmatprep.subr.bf16.mxu0 %v13920_v16  ;;  %v9908_v11 = vpack.c.bf16 %v4112_v62, %v4105_v58  ;;  %v9910_v49 = vpack.c.bf16 %v4238_v17, %v4231_v45  ;;  %v17938_v17 = vld [vmem:[#allocation54_spill] sm:$0xff] }
 0x1ef   :  { %v13949_v52 = vpack.c.bf16 %v17930_v55, %v17928_v2  ;;  %v13951_v56 = vand.u32 4294901760, %v442_v53  ;;  %9905 = vmatpush3.bf16.msra.mxu1 %v9904_v22  ;;  %v4119_v54 = vand.u32 4294901760, %v4118_v35  ;;  %v4126_v6 = vand.u32 4294901760, %v4125_v44 }
 0x1f0   :  { %17926 = vst [vmem:[#allocation61_spill] sm:$0xff] %v13942_v47  ;;  %v17933_v46 = vand.u32 4294901760, %v17932_v50  ;;  %v17935_v41 = vand.u32 4294901760, %v17934_v34  ;;  %9907 = vmatprep.subr.bf16.mxu1 %v9906_v43  ;;  %v4245_v38 = vand.u32 4294901760, %v4244_v0  ;;  %v4252_v51 = vand.u32 4294901760, %v4251_v7 }
 0x1f1   :  { %17931 = vst [vmem:[#allocation82_spill] sm:$0xff] %v13949_v52  ;;  %v17936_v2 = vand.u32 4294901760, %v13646_v19  ;;  %v17937_v62 = vand.u32 4294901760, %v13651_v61  ;;  %9877 = vmatpush3.bf16.msra.mxu0 %v13942_v47  ;;  %v17939_v22 = vand.u32 4294901760, %v17938_v17  ;;  %v17942_v43 = vand.u32 4294901760, %v13662_v59  ;;  %v17951_v47 = vld [vmem:[#allocation50_spill] sm:$0xff] }
 0x1f2   :  { %v4132_v26 = vsub.f32 %v17932_v50, %v17933_v46  ;;  %v4139_v30 = vsub.f32 %v17934_v34, %v17935_v41  ;;  %v17940_v46 = vld [vmem:[#allocation96_spill] sm:$0xff]  ;;  %v17943_v7 = vand.u32 4294901760, %v13667_v8  ;;  %v17944_v41 = vand.u32 4294901760, %v13676_v13  ;;  %9879 = vmatprep.subr.bf16.mxu0 %v13949_v52  ;;  %v17957_v52 = vld [vmem:[#allocation17_spill] sm:$0xff] }
 0x1f3   :  { %v4258_v58 = vsub.f32 %v13646_v19, %v17936_v2  ;;  %v4265_v45 = vsub.f32 %v13651_v61, %v17937_v62  ;;  %v17941_v35 = vand.u32 4294901760, %v17940_v46  ;;  %v4146_v0 = vsub.f32 %v13662_v59, %v17942_v43  ;;  %v17945_v62 = vld [vmem:[#allocation97_spill] sm:$0xff]  ;;  %v17947_v61 = vld [vmem:[#allocation28_spill] sm:$0xff]  ;;  %9909 = vmatpush3.bf16.msra.mxu1 %v9908_v11 }
 0x1f4   :  { %v4153_v55 = vsub.f32 %v13667_v8, %v17943_v7  ;;  %v4272_v2 = vsub.f32 %v13676_v13, %v17944_v41  ;;  %v17946_v17 = vand.u32 4294901760, %v17945_v62  ;;  %v17948_v46 = vand.u32 4294901760, %v17947_v61  ;;  %v17955_v13 = vld [vmem:[#allocation12_spill] sm:$0xff]  ;;  %9911 = vmatprep.subr.bf16.mxu1 %v9910_v49 }
 0x1f5   :  { %v13970_v44 = vpack.c.bf16 %v17941_v35, %v17939_v22  ;;  %v17949_v35 = vld [vmem:[#allocation49_spill] sm:$0xff]  ;;  %v17952_v43 = vand.u32 4294901760, %v17951_v47  ;;  %v13995_v7 = vsub.f32 %v442_v53, %v13951_v56  ;;  %v17954_v8 = vand.u32 4294901760, %v13688_v33 }
 0x1f6   :  { %v13986_v22 = vpack.c.bf16 %v17948_v46, %v17946_v17  ;;  %v17950_v19 = vand.u32 4294901760, %v17949_v35  ;;  %v17956_v62 = vand.u32 4294901760, %v17955_v13  ;;  %v17958_v61 = vand.u32 4294901760, %v17957_v52  ;;  %v17964_v13 = vld [vmem:[#allocation16_spill] sm:$0xff]  ;;  %v17966_v52 = vld [vmem:[#allocation23_spill] sm:$0xff] }
 0x1f7   :  { %v4279_v41 = vsub.f32 %v13688_v33, %v17954_v8  ;;  %v9912_v46 = vpack.c.bf16 %v4126_v6, %v4119_v54  ;;  %v4133_v35 = vand.u32 4294901760, %v4132_v26  ;;  %v4140_v34 = vand.u32 4294901760, %v4139_v30  ;;  %9881 = vmatpush3.bf16.msra.mxu0 %v13970_v44  ;;  %v14019_v6 = vld [vmem:[#allocation5 + $0x580] sm:$0xff]  ;;  %v14021_v26 = vld [vmem:[#allocation5 + $0x588] sm:$0xff] }
 0x1f8   :  { %v13992_v59 = vpack.c.bf16 %v17952_v43, %v17950_v19  ;;  %v14004_v17 = vpack.c.bf16 %v17958_v61, %v17956_v62  ;;  %v17960_v19 = vld [vmem:[#allocation56_spill] sm:$0xff]  ;;  %v17962_v43 = vld [vmem:[#allocation57_spill] sm:$0xff]  ;;  %v9914_v4 = vpack.c.bf16 %v4252_v51, %v4245_v38  ;;  %v4259_v16 = vand.u32 4294901760, %v4258_v58  ;;  %9883 = vmatprep.subr.bf16.mxu0 %v13986_v22 }
 0x1f9   :  { %v17961_v47 = vand.u32 4294901760, %v17960_v19  ;;  %v17963_v53 = vand.u32 4294901760, %v17962_v43  ;;  %v4266_v8 = vand.u32 4294901760, %v4265_v45  ;;  %v17965_v11 = vand.u32 4294901760, %v17964_v13  ;;  %9913 = vmatpush3.bf16.msra.mxu1 %v9912_v46  ;;  %v17971_v43 = vld [vmem:[#allocation13_spill] sm:$0xff]  ;;  %v17973_v13 = vld [vmem:[#allocation35_spill] sm:$0xff] }
 0x1fa   :  { %17953 = vst [vmem:[#allocation48_spill] sm:$0xff] %v13992_v59  ;;  %17959 = vst [vmem:[#allocation67_spill] sm:$0xff] %v14004_v17  ;;  %v17967_v62 = vand.u32 4294901760, %v17966_v52  ;;  %v4147_v54 = vand.u32 4294901760, %v4146_v0  ;;  %v4154_v30 = vand.u32 4294901760, %v4153_v55  ;;  %v4273_v49 = vand.u32 4294901760, %v4272_v2  ;;  %9915 = vmatprep.subr.bf16.mxu1 %v9914_v4 }
 0x1fb   :  { %v14010_v50 = vpack.c.bf16 %v17963_v53, %v17961_v47  ;;  %v4280_v51 = vand.u32 4294901760, %v4279_v41  ;;  %v17968_v58 = vand.u32 4294901760, %v13700_v60  ;;  %v17969_v19 = vand.u32 4294901760, %v13705_v10  ;;  %v14031_v0 = vld [vmem:[#allocation5 + $0x500] sm:$0xff]  ;;  %v14033_v55 = vld [vmem:[#allocation5 + $0x508] sm:$0xff]  ;;  %v7796_v2 = vpop.f32.mrb[10].mxu0  ;;  %9885 = vmatpush3.bf16.msra.mxu0 %v13992_v59 }
 0x1fc   :  { %v14017_v61 = vpack.c.bf16 %v17967_v62, %v17965_v11  ;;  %17970 = vst [vmem:[#allocation69_spill] sm:$0xff] %v14033_v55  ;;  %v17972_v53 = vand.u32 4294901760, %v17971_v43  ;;  %v17974_v11 = vand.u32 4294901760, %v17973_v13  ;;  %v9916_v41 = vpack.c.bf16 %v4140_v34, %v4133_v35  ;;  %v14049_v13 = vld [vmem:[#allocation5 + $0x590] sm:$0xff]  ;;  %v7831_v35 = vpop.f32.mrb[10].mxu1  ;;  %9887 = vmatprep.subr.bf16.mxu0 %v14004_v17  ;;  %v14069_v59 = vld [vmem:[#allocation5 + $0x5a8] sm:$0xff] }
 0x1fd   :  { %v4160_v45 = vsub.f32 %v13700_v60, %v17968_v58  ;;  %v4167_v47 = vsub.f32 %v13705_v10, %v17969_v19  ;;  %v7797_v19 = vpop.f32.mrb[11].mxu0  ;;  %v9918_v38 = vpack.c.bf16 %v4266_v8, %v4259_v16  ;;  %17975 = vst [vmem:[#allocation15_spill] sm:$0xff] %v14049_v13  ;;  %v14056_v16 = vld [vmem:[#allocation5 + $0x510] sm:$0xff]  ;;  %v14058_v8 = vld [vmem:[#allocation5 + $0x518] sm:$0xff]  ;;  %v7832_v10 = vpop.f32.mrb[11].mxu1  ;;  %v17979_v62 = vand.u32 4294901760, %v13995_v7 }
 0x1fe   :  { %v14039_v52 = vpack.c.bf16 %v17974_v11, %v17972_v53  ;;  %v14051_v53 = vld [vmem:[#allocation5 + $0x598] sm:$0xff]  ;;  %v7798_v34 = vadd.f32 %v7797_v19, %v7796_v2  ;;  %v9920_v11 = vpack.c.bf16 %v4154_v30, %v4147_v54  ;;  %17977 = vst [vmem:[#allocation25_spill] sm:$0xff] %v14056_v16  ;;  %17978 = vst [vmem:[#allocation29_spill] sm:$0xff] %v14058_v8  ;;  %v14064_v60 = vld [vmem:[#allocation5 + $0x5a0] sm:$0xff]  ;;  %9917 = vmatpush3.bf16.msra.mxu1 %v9916_v41 }
 0x1ff   :  { %17976 = vst [vmem:[#allocation60_spill] sm:$0xff] %v14051_v53  ;;  %v4051_v43 = vsub.f32 %v13995_v7, %v17979_v62  ;;  %v9922_v2 = vpack.c.bf16 %v4280_v51, %v4273_v49  ;;  %v4161_v19 = vand.u32 4294901760, %v4160_v45  ;;  %v4168_v46 = vand.u32 4294901760, %v4167_v47  ;;  %17980 = vst [vmem:[#allocation21_spill] sm:$0xff] %v14064_v60  ;;  %v14071_v17 = vld [vmem:[#allocation5 + $0x520] sm:$0xff]  ;;  %9919 = vmatprep.subr.bf16.mxu1 %v9918_v38  ;;  %v14085_v47 = vld [vmem:[#allocation5 + $0x528] sm:$0xff] }
 0x200   :  { %v2115_v54 = vadd.f32 %v7798_v34, %v13827_v39  ;;  %v7833_v30 = vadd.f32 %v7832_v10, %v7831_v35  ;;  %v16696_v4 = vand.u32 4294901760, %v14049_v13  ;;  %17981 = vst [vmem:[#allocation39_spill] sm:$0xff] %v14069_v59  ;;  %17982 = vst [vmem:[#allocation63_spill] sm:$0xff] %v14071_v17  ;;  %v17983_v62 = vand.u32 4294901760, %v14019_v6  ;;  %9889 = vmatpush3.bf16.msra.mxu0 %v14010_v50  ;;  %v14106_v58 = vld [vmem:[#allocation5 + $0x5b0] sm:$0xff] }
 0x201   :  { %v17984_v51 = vand.u32 4294901760, %v14021_v26  ;;  %17985 = vst [vmem:[#allocation64_spill] sm:$0xff] %v14085_v47  ;;  %v17986_v38 = vand.u32 4294901760, %v14031_v0  ;;  %v17987_v35 = vand.u32 4294901760, %v14033_v55  ;;  %9891 = vmatprep.subr.bf16.mxu0 %v14017_v61  ;;  %v4052_v45 = vand.u32 4294901760, %v4051_v43  ;;  %17988 = vst [vmem:[#allocation71_spill] sm:$0xff] %v14106_v58 }
 0x202   :  { %v14076_v49 = vsub.f32 %v14019_v6, %v17983_v62  ;;  %v14088_v41 = vadd.f32 %v7833_v30, %v2115_v54  ;;  %9921 = vmatpush3.bf16.msra.mxu1 %v9920_v11  ;;  %v17991_v30 = vand.u32 4294901760, %v14056_v16  ;;  %v17993_v10 = vand.u32 4294901760, %v14064_v60 }
 0x203   :  { %v14081_v39 = vsub.f32 %v14021_v26, %v17984_v51  ;;  %v14093_v34 = vsub.f32 %v14031_v0, %v17986_v38  ;;  %v14098_v62 = vsub.f32 %v14033_v55, %v17987_v35  ;;  %v9924_v38 = vpack.c.bf16 %v4168_v46, %v4161_v19  ;;  %v14119_v55 = vld [vmem:[#allocation5 + $0x5b8] sm:$0xff]  ;;  %9923 = vmatprep.subr.bf16.mxu1 %v9922_v2 }
 0x204   :  { %v14111_v35 = vsub.f32 %v14049_v13, %v16696_v4  ;;  %v17989_v51 = vand.u32 4294901760, %v14051_v53  ;;  %17990 = vst [vmem:[#allocation81_spill] sm:$0xff] %v14119_v55  ;;  %v14124_v11 = vsub.f32 %v14056_v16, %v17991_v30  ;;  %v17992_v46 = vand.u32 4294901760, %v14058_v8  ;;  %9893 = vmatpush3.bf16.msra.mxu0 %v14039_v52 }
 0x205   :  { %v14137_v2 = vsub.f32 %v14064_v60, %v17993_v10  ;;  %v17997_v4 = vand.u32 4294901760, %v14069_v59  ;;  %v17998_v10 = vand.u32 4294901760, %v14071_v17  ;;  %v17999_v30 = vand.u32 4294901760, %v14076_v49 }
 0x206   :  { %v14116_v43 = vsub.f32 %v14051_v53, %v17989_v51  ;;  %v14129_v19 = vsub.f32 %v14058_v8, %v17992_v46  ;;  %v14142_v53 = vld [vmem:[#allocation5 + $0x530] sm:$0xff]  ;;  %v14144_v46 = vld [vmem:[#allocation5 + $0x538] sm:$0xff]  ;;  %v17996_v51 = vpack.c.bf16 %v13339_v32, %v13334_v48  ;;  %v18000_v60 = vand.u32 4294901760, %v14081_v39  ;;  %9925 = vmatpush3.bf16.msra.mxu1 %v9924_v38 }
 0x207   :  { %17994 = vst [vmem:[#allocation19_spill] sm:$0xff] %v14142_v53  ;;  %17995 = vst [vmem:[#allocation65_spill] sm:$0xff] %v14144_v46  ;;  %v14152_v8 = vsub.f32 %v14069_v59, %v17997_v4  ;;  %v14157_v54 = vsub.f32 %v14071_v17, %v17998_v10  ;;  %v18002_v48 = vand.u32 4294901760, %v14085_v47  ;;  %v14173_v10 = vld [vmem:[#allocation5 + $0x5c0] sm:$0xff]  ;;  %v14175_v17 = vld [vmem:[#allocation5 + $0x5c8] sm:$0xff]  ;;  %v18005_v16 = vand.u32 4294901760, %v14093_v34  ;;  %4053 = vmatmul.mubr.f32.vlgmr.msra.gmra.mrb[24].mxu0 %v4052_v45 }
 0x208   :  { %9927 = vmatprep.subr.bf16.mxu0 %v17996_v51  ;;  %v14164_v13 = vpack.c.bf16 %v18000_v60, %v17999_v30  ;;  %18003 = vst [vmem:[#allocation43_spill] sm:$0xff] %v14173_v10  ;;  %18004 = vst [vmem:[#allocation73_spill] sm:$0xff] %v14175_v17  ;;  %v18006_v59 = vand.u32 4294901760, %v14098_v62  ;;  %9959 = vmatprep.subr.bf16.mxu1 %v13833_v14  ;;  %v14188_v4 = vld [vmem:[#allocation5 + $0x540] sm:$0xff]  ;;  %v18012_v30 = vand.u32 4294901760, %v14111_v35  ;;  %v18013_v38 = vand.u32 4294901760, %v14116_v43 }
 0x209   :  { %v14169_v32 = vsub.f32 %v14085_v47, %v18002_v48  ;;  %v16705_v48 = vand.u32 4294901760, %v14124_v11  ;;  %18008 = vst [vmem:[#allocation75_spill] sm:$0xff] %v14188_v4  ;;  %v18010_v47 = vpack.c.bf16 %v13356_v29, %v13351_v36  ;;  %4420 = vmatprep.mubr.f32.mxu0 %v13798_v31  ;;  %v18015_v36 = vpack.c.bf16 %v13374_v57, %v13369_v9  ;;  %v14255_v57 = vld [vmem:[#allocation5 + $0x5d8] sm:$0xff] }
 0x20a   :  { %18001 = vst [vmem:[#allocation66_spill] sm:$0xff] %v14164_v13  ;;  %v14181_v60 = vpack.c.bf16 %v18006_v59, %v18005_v16  ;;  %v14190_v13 = vld [vmem:[#allocation5 + $0x548] sm:$0xff]  ;;  %v9934_v59 = vpack.c.bf16 %v13410_v23, %v13395_v1  ;;  %v18011_v16 = vand.u32 4294901760, %v14106_v58  ;;  %v14207_v51 = vpack.c.bf16 %v18013_v38, %v18012_v30  ;;  %4285 = vmatmul.mubr.f32.vlgmr.msra.gmra.mrb[24].mxu1 %v13951_v56 }
 0x20b   :  { %18009 = vst [vmem:[#allocation83_spill] sm:$0xff] %v14190_v13  ;;  %9929 = vmatpush3.bf16.msra.mxu0 %v18010_v47  ;;  %v18016_v23 = vand.u32 4294901760, %v14119_v55  ;;  %v18017_v38 = vand.u32 4294901760, %v14129_v19  ;;  %9961 = vmatpush3.bf16.msra.mxu1 %v13858_v18  ;;  %v18019_v9 = vand.u32 4294901760, %v13798_v31  ;;  %v14233_v47 = vld [vmem:[#allocation5 + $0x5d0] sm:$0xff]  ;;  %v18023_v31 = vand.u32 4294901760, %v14144_v46 }
 0x20c   :  { %18007 = vst [vmem:[#allocation74_spill] sm:$0xff] %v14181_v60  ;;  %v14201_v45 = vsub.f32 %v14106_v58, %v18011_v16  ;;  %18014 = vst [vmem:[#allocation36_spill] sm:$0xff] %v14207_v51  ;;  %9931 = vmatprep.subr.bf16.mxu0 %v18015_v36  ;;  %9963 = vmatprep.subr.bf16.mxu1 %v13865_v27  ;;  %v16706_v36 = vand.u32 4294901760, %v14169_v32  ;;  %v9936_v16 = vpack.c.bf16 %v13427_v28, %v13415_v5  ;;  %v14302_v60 = vld [vmem:[#allocation5 + $0x5e0] sm:$0xff] }
 0x20d   :  { %v14216_v29 = vsub.f32 %v14119_v55, %v18016_v23  ;;  %v14224_v30 = vpack.c.bf16 %v18017_v38, %v16705_v48  ;;  %4527 = vmatprep.mubr.f32.mxu1 %v18019_v9  ;;  %18020 = vst [vmem:[#allocation44_spill] sm:$0xff] %v14233_v47  ;;  %v18021_v38 = vand.u32 4294901760, %v14142_v53  ;;  %v14244_v9 = vsub.f32 %v14144_v46, %v18023_v31  ;;  %v14363_v46 = vld [vmem:[#allocation5 + $0x570] sm:$0xff]  ;;  %v18072_v58 = vld [vmem:[#allocation14_spill] sm:$0xff] }
 0x20e   :  { %v18025_v23 = vpack.c.bf16 %v13387_v12, %v13382_v42  ;;  %18026 = vst [vmem:[#allocation87_spill] sm:$0xff] %v14255_v57  ;;  %v18028_v31 = vand.u32 4294901760, %v14137_v2  ;;  %v18029_v1 = vand.u32 4294901760, %v14152_v8  ;;  %v18031_v42 = vand.u32 4294901760, %v14173_v10  ;;  %18039 = vst [vmem:[#allocation91_spill] sm:$0xff] %v14302_v60 }
 0x20f   :  { %18018 = vst [vmem:[#allocation84_spill] sm:$0xff] %v14224_v30  ;;  %v14239_v48 = vsub.f32 %v14142_v53, %v18021_v38  ;;  %18024 = vst [vmem:[#allocation86_spill] sm:$0xff] %v14244_v9  ;;  %v9938_v38 = vpack.c.bf16 %v13474_v15, %v13459_v40  ;;  %v14257_v30 = vld [vmem:[#allocation5 + $0x550] sm:$0xff]  ;;  %v18033_v5 = vand.u32 4294901760, %v14175_v17  ;;  %v14276_v15 = vld [vmem:[#allocation5 + $0x558] sm:$0xff]  ;;  %9965 = vmatpush3.bf16.msra.mxu1 %v13886_v63 }
 0x210   :  { %9933 = vmatpush3.bf16.msra.mxu0 %v18025_v23  ;;  %18027 = vst [vmem:[#allocation98_spill] sm:$0xff] %v14257_v30  ;;  %v14263_v51 = vpack.c.bf16 %v18029_v1, %v18028_v31  ;;  %v14268_v12 = vsub.f32 %v14173_v10, %v18031_v42  ;;  %18034 = vst [vmem:[#allocation90_spill] sm:$0xff] %v14276_v15  ;;  %v18035_v23 = vand.u32 4294901760, %v14157_v54  ;;  %v18038_v42 = vand.u32 4294901760, %v14190_v13  ;;  %v18068_v53 = vld [vmem:[#allocation59_spill] sm:$0xff] }
 0x211   :  { %18022 = vst [vmem:[#allocation85_spill] sm:$0xff] %v14239_v48  ;;  %9935 = vmatprep.subr.bf16.mxu0 %v9934_v59  ;;  %v14273_v28 = vsub.f32 %v14175_v17, %v18033_v5  ;;  %v18037_v59 = vand.u32 4294901760, %v14188_v4  ;;  %9967 = vmatprep.subr.bf16.mxu1 %v13892_v21  ;;  %18062 = vst [vmem:[#allocation56_spill] sm:$0xff] %v14363_v46 }
 0x212   :  { %18030 = vst [vmem:[#allocation88_spill] sm:$0xff] %v14263_v51  ;;  %18032 = vst [vmem:[#allocation89_spill] sm:$0xff] %v14268_v12  ;;  %v14282_v1 = vpack.c.bf16 %v16706_v36, %v18035_v23  ;;  %v14293_v5 = vsub.f32 %v14190_v13, %v18038_v42  ;;  %v18041_v42 = vld [vmem:[#allocation24_spill] sm:$0xff]  ;;  %v18042_v13 = vand.u32 4294901760, %v14201_v45  ;;  %v18043_v23 = vand.u32 4294901760, %v14216_v29  ;;  %v18045_v36 = vld [vmem:[#allocation33_spill] sm:$0xff] }
 0x213   :  { %v14288_v31 = vsub.f32 %v14188_v4, %v18037_v59  ;;  %v14304_v4 = vld [vmem:[#allocation5 + $0x5e8] sm:$0xff]  ;;  %v9940_v40 = vpack.c.bf16 %v18041_v42, %v17901_v25  ;;  %v9942_v59 = vpack.c.bf16 %v13531_v37, %v18045_v36  ;;  %v14324_v25 = vld [vmem:[#allocation5 + $0x560] sm:$0xff]  ;;  %v18050_v51 = vand.u32 4294901760, %v14239_v48  ;;  %9969 = vmatpush3.bf16.msra.mxu1 %v13914_v3 }
 0x214   :  { %18036 = vst [vmem:[#allocation45_spill] sm:$0xff] %v14282_v1  ;;  %18040 = vst [vmem:[#allocation92_spill] sm:$0xff] %v14304_v4  ;;  %9937 = vmatpush3.bf16.msra.mxu0 %v9936_v16  ;;  %v14313_v17 = vpack.c.bf16 %v18043_v23, %v18042_v13  ;;  %v9944_v1 = vpack.c.bf16 %v13551_v20, %v13546_v24  ;;  %v18046_v16 = vand.u32 4294901760, %v14233_v47  ;;  %v14326_v42 = vld [vmem:[#allocation5 + $0x568] sm:$0xff]  ;;  %v18051_v13 = vand.u32 4294901760, %v14244_v9  ;;  %v14339_v23 = vld [vmem:[#allocation5 + $0x5f0] sm:$0xff] }
 0x215   :  { %9939 = vmatprep.subr.bf16.mxu0 %v9938_v38  ;;  %18048 = vst [vmem:[#allocation54_spill] sm:$0xff] %v14324_v25  ;;  %18049 = vst [vmem:[#allocation96_spill] sm:$0xff] %v14326_v42  ;;  %v14354_v20 = vld [vmem:[#allocation5 + $0x5f8] sm:$0xff]  ;;  %v18060_v36 = vand.u32 4294901760, %v14276_v15  ;;  %v18064_v24 = vand.u32 4294901760, %v14268_v12  ;;  %v18065_v37 = vand.u32 4294901760, %v14273_v28 }
 0x216   :  { %18044 = vst [vmem:[#allocation52_spill] sm:$0xff] %v14313_v17  ;;  %v14322_v10 = vsub.f32 %v14233_v47, %v18046_v16  ;;  %v14332_v38 = vpack.c.bf16 %v18051_v13, %v18050_v51  ;;  %18053 = vst [vmem:[#allocation28_spill] sm:$0xff] %v14339_v23  ;;  %v18054_v16 = vld [vmem:[#allocation42_spill] sm:$0xff]  ;;  %v18055_v17 = vand.u32 4294901760, %v14255_v57  ;;  %v18057_v51 = vand.u32 4294901760, %v14257_v30  ;;  %v18074_v12 = vld [vmem:[#allocation61_spill] sm:$0xff] }
 0x217   :  { %9971 = vmatprep.subr.bf16.mxu1 %v18054_v16  ;;  %18059 = vst [vmem:[#allocation12_spill] sm:$0xff] %v14354_v20  ;;  %v18073_v9 = vld [vmem:[#allocation26_spill] sm:$0xff] }
 0x218   :  { %18047 = vst [vmem:[#allocation94_spill] sm:$0xff] %v14322_v10  ;;  %18052 = vst [vmem:[#allocation97_spill] sm:$0xff] %v14332_v38  ;;  %v14345_v47 = vsub.f32 %v14255_v57, %v18055_v17  ;;  %v14350_v13 = vsub.f32 %v14257_v30, %v18057_v51  ;;  %9941 = vmatpush3.bf16.msra.mxu0 %v9940_v40  ;;  %v14359_v38 = vsub.f32 %v14276_v15, %v18060_v36  ;;  %v14365_v51 = vld [vmem:[#allocation5 + $0x578] sm:$0xff]  ;;  %v18067_v40 = vld [vmem:[#allocation55_spill] sm:$0xff] }
 0x219   :  { %18063 = vst [vmem:[#allocation57_spill] sm:$0xff] %v14365_v51  ;;  %v14371_v30 = vpack.c.bf16 %v18065_v37, %v18064_v24  ;;  %9943 = vmatprep.subr.bf16.mxu0 %v9942_v59  ;;  %v9946_v55 = vpack.c.bf16 %v18068_v53, %v18067_v40  ;;  %v18069_v17 = vand.u32 4294901760, %v14288_v31  ;;  %v18070_v57 = vand.u32 4294901760, %v14293_v5  ;;  %9973 = vmatpush3.bf16.msra.mxu1 %v18074_v12  ;;  %v18079_v36 = vld [vmem:[#allocation82_spill] sm:$0xff] }
 0x21a   :  { %18056 = vst [vmem:[#allocation49_spill] sm:$0xff] %v14345_v47  ;;  %18058 = vst [vmem:[#allocation50_spill] sm:$0xff] %v14350_v13  ;;  %v9948_v48 = vpack.c.bf16 %v18073_v9, %v18072_v58  ;;  %v18075_v37 = vand.u32 4294901760, %v14302_v60  ;;  %v18077_v53 = vand.u32 4294901760, %v14304_v4  ;;  %9975 = vmatprep.subr.bf16.mxu1 %v18079_v36  ;;  %v18084_v58 = vld [vmem:[#allocation68_spill] sm:$0xff]  ;;  %v18085_v9 = vld [vmem:[#allocation70_spill] sm:$0xff] }
 0x21b   :  { %18061 = vst [vmem:[#allocation17_spill] sm:$0xff] %v14359_v38  ;;  %18066 = vst [vmem:[#allocation16_spill] sm:$0xff] %v14371_v30  ;;  %v14380_v15 = vpack.c.bf16 %v18070_v57, %v18069_v17  ;;  %v16731_v30 = vand.u32 4294901760, %v14350_v13  ;;  %v18091_v57 = vand.u32 4294901760, %v14354_v20 }
 0x21c   :  { %v14388_v59 = vsub.f32 %v14302_v60, %v18075_v37  ;;  %v14393_v24 = vsub.f32 %v14304_v4, %v18077_v53  ;;  %9945 = vmatpush3.bf16.msra.mxu0 %v9944_v1  ;;  %v18080_v37 = vand.u32 4294901760, %v14324_v25  ;;  %v18082_v53 = vand.u32 4294901760, %v14326_v42 }
 0x21d   :  { %18071 = vst [vmem:[#allocation23_spill] sm:$0xff] %v14380_v15  ;;  %9947 = vmatprep.subr.bf16.mxu0 %v9946_v55  ;;  %v9950_v4 = vpack.c.bf16 %v18085_v9, %v18084_v58  ;;  %v18086_v1 = vand.u32 4294901760, %v14339_v23  ;;  %9977 = vmatpush3.bf16.msra.mxu1 %v13970_v44  ;;  %v14430_v55 = vsub.f32 %v14354_v20, %v18091_v57  ;;  %v18092_v58 = vand.u32 4294901760, %v14359_v38  ;;  %v7901_v38 = vpop.f32.mrb[12].mxu1 }
 0x21e   :  { %18076 = vst [vmem:[#allocation13_spill] sm:$0xff] %v14388_v59  ;;  %18078 = vst [vmem:[#allocation35_spill] sm:$0xff] %v14393_v24  ;;  %v14404_v15 = vsub.f32 %v14324_v25, %v18080_v37  ;;  %v14409_v40 = vsub.f32 %v14326_v42, %v18082_v53  ;;  %v18088_v37 = vand.u32 4294901760, %v14322_v10  ;;  %v18089_v25 = vand.u32 4294901760, %v14345_v47  ;;  %v7866_v53 = vpop.f32.mrb[12].mxu0  ;;  %9979 = vmatprep.subr.bf16.mxu1 %v13986_v22  ;;  %v18100_v47 = vld [vmem:[#allocation79_spill] sm:$0xff] }
 0x21f   :  { %v14418_v17 = vsub.f32 %v14339_v23, %v18086_v1  ;;  %v14436_v9 = vpack.c.bf16 %v18092_v58, %v16731_v30  ;;  %v7867_v1 = vpop.f32.mrb[13].mxu0  ;;  %v16741_v57 = vand.u32 4294901760, %v14388_v59  ;;  %v16740_v20 = vand.u32 4294901760, %v14393_v24  ;;  %v18098_v58 = vld [vmem:[#allocation72_spill] sm:$0xff]  ;;  %v18099_v30 = vld [vmem:[#allocation77_spill] sm:$0xff] }
 0x220   :  { %18081 = vst [vmem:[#allocation24_spill] sm:$0xff] %v14404_v15  ;;  %18083 = vst [vmem:[#allocation33_spill] sm:$0xff] %v14409_v40  ;;  %v14424_v60 = vpack.c.bf16 %v18089_v25, %v18088_v37  ;;  %v18094_v25 = vand.u32 4294901760, %v14363_v46  ;;  %v7868_v42 = vadd.f32 %v7867_v1, %v7866_v53  ;;  %9949 = vmatpush3.bf16.msra.mxu0 %v9948_v48  ;;  %v16747_v13 = vand.u32 4294901760, %v14404_v15  ;;  %v18102_v1 = vld [vmem:[#allocation48_spill] sm:$0xff] }
 0x221   :  { %18087 = vst [vmem:[#allocation42_spill] sm:$0xff] %v14418_v17  ;;  %18093 = vst [vmem:[#allocation59_spill] sm:$0xff] %v14436_v9  ;;  %v9952_v9 = vpack.c.bf16 %v18099_v30, %v18098_v58  ;;  %9951 = vmatprep.subr.bf16.mxu0 %v9950_v4  ;;  %v14462_v48 = vpack.c.bf16 %v16740_v20, %v16741_v57  ;;  %9981 = vmatpush3.bf16.msra.mxu1 %v18102_v1  ;;  %v16745_v58 = vand.u32 4294901760, %v14430_v55  ;;  %v18104_v4 = vld [vmem:[#allocation67_spill] sm:$0xff] }
 0x222   :  { %18090 = vst [vmem:[#allocation55_spill] sm:$0xff] %v14424_v60  ;;  %v14442_v37 = vsub.f32 %v14363_v46, %v18094_v25  ;;  %v18096_v60 = vand.u32 4294901760, %v14365_v51  ;;  %v16742_v25 = vand.u32 4294901760, %v14409_v40  ;;  %v7902_v46 = vpop.f32.mrb[13].mxu1  ;;  %v2331_v30 = vadd.f32 %v7868_v42, %v14088_v41  ;;  %9983 = vmatprep.subr.bf16.mxu1 %v18104_v4  ;;  %v18105_v41 = vld [vmem:[#allocation30_spill] sm:$0xff] }
 0x223   :  { %18101 = vst [vmem:[#allocation61_spill] sm:$0xff] %v14462_v48  ;;  %v7903_v53 = vadd.f32 %v7902_v46, %v7901_v38  ;;  %v18106_v46 = vld [vmem:[#allocation32_spill] sm:$0xff] }
 0x224   :  { %18095 = vst [vmem:[#allocation14_spill] sm:$0xff] %v14442_v37  ;;  %v14447_v23 = vsub.f32 %v14365_v51, %v18096_v60  ;;  %v9954_v60 = vpack.c.bf16 %v13688_v33, %v18100_v47  ;;  %v16746_v51 = vand.u32 4294901760, %v14418_v17  ;;  %v14471_v33 = vpack.c.bf16 %v16742_v25, %v16747_v13  ;;  %9953 = vmatpush3.bf16.msra.mxu0 %v9952_v9  ;;  %v18109_v9 = vld [vmem:[#allocation93_spill] sm:$0xff] }
 0x225   :  { %v16744_v47 = vand.u32 4294901760, %v14442_v37  ;;  %v2563_v57 = vadd.f32 %v7903_v53, %v2331_v30  ;;  %v9956_v42 = vpack.c.bf16 %v18106_v46, %v18105_v41  ;;  %9985 = vmatpush3.bf16.msra.mxu1 %v14010_v50  ;;  %v18111_v30 = vld [vmem:[#allocation22_spill] sm:$0xff]  ;;  %v18112_v53 = vld [vmem:[#allocation20_spill] sm:$0xff] }
 0x226   :  { %18097 = vst [vmem:[#allocation26_spill] sm:$0xff] %v14447_v23  ;;  %18103 = vst [vmem:[#allocation82_spill] sm:$0xff] %v14471_v33  ;;  %v16743_v20 = vand.u32 4294901760, %v14447_v23  ;;  %v14482_v38 = vpack.c.bf16 %v16745_v58, %v16746_v51  ;;  %9955 = vmatprep.subr.bf16.mxu0 %v9954_v60  ;;  %9987 = vmatprep.subr.bf16.mxu1 %v14017_v61  ;;  %v18110_v60 = vld [vmem:[#allocation95_spill] sm:$0xff]  ;;  %v18113_v41 = vld [vmem:[#allocation46_spill] sm:$0xff] }
 0x227   :  { %v411_v46 = vcombine.high %v18113_v41, %v18112_v53  ;;  %v18116_v51 = vld [vmem:[#allocation41_spill] sm:$0xff]  ;;  %v18128_v41 = vand.u32 4294901760, %v14076_v49 }
 0x228   :  { %18107 = vst [vmem:[#allocation68_spill] sm:$0xff] %v14482_v38  ;;  %v14488_v25 = vpack.c.bf16 %v16743_v20, %v16744_v47  ;;  %9957 = vmatpush3.bf16.msra.mxu0 %v9956_v42  ;;  %v18114_v20 = vld [vmem:[#allocation40_spill] sm:$0xff]  ;;  %v18115_v47 = vld [vmem:[#allocation38_spill] sm:$0xff]  ;;  %v18117_v42 = vand.u32 4294901760, %v13995_v7 }
 0x229   :  { %9991 = vmatprep.subr.bf16.mxu0 %v18109_v9  ;;  %9989 = vmatpush3.bf16.msra.mxu1 %v14039_v52  ;;  %v413_v58 = vcombine.high %v18115_v47, %v18114_v20  ;;  %v18119_v9 = vld [vmem:[#allocation11_spill] sm:$0xff]  ;;  %v18125_v47 = vld [vmem:[#allocation18_spill] sm:$0xff] }
 0x22a   :  { %18108 = vst [vmem:[#allocation70_spill] sm:$0xff] %v14488_v25  ;;  %10023 = vmatprep.subr.bf16.mxu1 %v13833_v14  ;;  %v18118_v14 = vld [vmem:[#allocation47_spill] sm:$0xff] }
 0x22b   :  { %4423 = vmatmul.mubr.f32.vlgmr.msra.gmra.mrb[26].mxu0 %v13995_v7  ;;  %v14513_v53 = vrot.slane %v413_v58, %v18119_v9  ;;  %v18120_v20 = vld [vmem:[#allocation31_spill] sm:$0xff] }
 0x22c   :  { %9993 = vmatpush3.bf16.msra.mxu0 %v18110_v60  ;;  %4697 = vmatprep.mubr.f32.mxu0 %v18111_v30  ;;  %v14510_v60 = vrot.slane %v411_v46, %v18119_v9  ;;  %v18121_v7 = vld [vmem:[#allocation51_spill] sm:$0xff]  ;;  %v5036_v46 = vsub.f32 %v14076_v49, %v18128_v41  ;;  %v18174_v9 = vld [vmem:[#allocation64_spill] sm:$0xff] }
 0x22d   :  { %9995 = vmatprep.subr.bf16.mxu0 %v18116_v51  ;;  %4531 = vmatmul.mubr.f32.vlgmr.msra.gmra.mrb[26].mxu1 %v18117_v42  ;;  %v18123_v51 = vld [vmem:[#allocation58_spill] sm:$0xff] }
 0x22e   :  { %10025 = vmatpush3.bf16.msra.mxu1 %v13858_v18  ;;  %4801 = vmatprep.mubr.f32.mxu1 %v18111_v30  ;;  %v445_v18 = vcombine.high %v14510_v60, %v14513_v53  ;;  %v18127_v30 = vld [vmem:[#allocation80_spill] sm:$0xff] }
 0x22f   :  { %10027 = vmatprep.subr.bf16.mxu1 %v13865_v27  ;;  %v18122_v27 = vld [vmem:[#allocation53_spill] sm:$0xff] }
 0x230   :  { %9997 = vmatpush3.bf16.msra.mxu0 %v18118_v14  ;;  %v14525_v58 = vand.u32 4294901760, %v445_v18  ;;  %v18130_v14 = vld [vmem:[#allocation27_spill] sm:$0xff] }
 0x231   :  { %9999 = vmatprep.subr.bf16.mxu0 %v18120_v20  ;;  %v7971_v20 = vpop.f32.mrb[14].mxu1 }
 0x232   :  { %10029 = vmatpush3.bf16.msra.mxu1 %v13886_v63  ;;  %18124 = vst [vmem:[#allocation72_spill] sm:$0xff] %v14525_v58  ;;  %v18126_v63 = vld [vmem:[#allocation62_spill] sm:$0xff] }
 0x233   :  { %10031 = vmatprep.subr.bf16.mxu1 %v13892_v21  ;;  %v14532_v21 = vsub.f32 %v445_v18, %v14525_v58  ;;  %v18131_v18 = vld [vmem:[#allocation34_spill] sm:$0xff] }
 0x234   :  { %10001 = vmatpush3.bf16.msra.mxu0 %v18121_v7 }
 0x235   :  { %10003 = vmatprep.subr.bf16.mxu0 %v18122_v27  ;;  %v18132_v27 = vand.u32 4294901760, %v14093_v34 }
 0x236   :  { %10033 = vmatpush3.bf16.msra.mxu1 %v13914_v3  ;;  %v7936_v3 = vpop.f32.mrb[14].mxu0 }
 0x237   :  { %10035 = vmatprep.subr.bf16.mxu1 %v18054_v16  ;;  %v7937_v16 = vpop.f32.mrb[15].mxu0 }
 0x238   :  { %10005 = vmatpush3.bf16.msra.mxu0 %v18123_v51  ;;  %v7938_v42 = vadd.f32 %v7937_v16, %v7936_v3  ;;  %v18133_v51 = vand.u32 4294901760, %v14098_v62  ;;  %v18135_v3 = vand.u32 4294901760, %v14116_v43 }
 0x239   :  { %10007 = vmatprep.subr.bf16.mxu0 %v18125_v47 }
 0x23a   :  { %10037 = vmatpush3.bf16.msra.mxu1 %v18074_v12  ;;  %v18129_v12 = vand.u32 4294901760, %v14081_v39  ;;  %v4931_v47 = vsub.f32 %v14098_v62, %v18133_v51  ;;  %v5057_v16 = vsub.f32 %v14116_v43, %v18135_v3  ;;  %v2701_v41 = vadd.f32 %v7938_v42, %v2563_v57  ;;  %v18140_v42 = vld [vmem:[#allocation76_spill] sm:$0xff] }
 0x23b   :  { %10039 = vmatprep.subr.bf16.mxu1 %v18079_v36  ;;  %v18137_v51 = vand.u32 4294901760, %v14019_v6  ;;  %v18139_v3 = vand.u32 4294901760, %v14532_v21 }
 0x23c   :  { %10009 = vmatpush3.bf16.msra.mxu0 %v18126_v63  ;;  %v5043_v36 = vsub.f32 %v14081_v39, %v18129_v12  ;;  %v18134_v63 = vand.u32 4294901760, %v14111_v35 }
 0x23d   :  { %10011 = vmatprep.subr.bf16.mxu0 %v18127_v30  ;;  %v4907_v57 = vsub.f32 %v14532_v21, %v18139_v3 }
 0x23e   :  { %10041 = vmatpush3.bf16.msra.mxu1 %v13970_v44  ;;  %v7972_v44 = vpop.f32.mrb[15].mxu1  ;;  %v5050_v30 = vsub.f32 %v14111_v35, %v18134_v63  ;;  %v18138_v63 = vand.u32 4294901760, %v14021_v26  ;;  %v18142_v26 = vand.u32 4294901760, %v14129_v19 }
 0x23f   :  { %10043 = vmatprep.subr.bf16.mxu1 %v13986_v22  ;;  %v4924_v22 = vsub.f32 %v14093_v34, %v18132_v27  ;;  %v7973_v12 = vadd.f32 %v7972_v44, %v7971_v20  ;;  %v18136_v27 = vld [vmem:[#allocation37_spill] sm:$0xff]  ;;  %v18141_v20 = vand.u32 4294901760, %v14124_v11  ;;  %v4908_v3 = vand.u32 4294901760, %v4907_v57 }
 0x240   :  { %10013 = vmatpush3.bf16.msra.mxu0 %v18130_v14  ;;  %v5037_v14 = vand.u32 4294901760, %v5036_v46  ;;  %v14567_v7 = vpack.c.bf16 %v18138_v63, %v18137_v51  ;;  %v5051_v46 = vand.u32 4294901760, %v5050_v30  ;;  %v4945_v44 = vsub.f32 %v14129_v19, %v18142_v26 }
 0x241   :  { %10015 = vmatprep.subr.bf16.mxu0 %v18131_v18  ;;  %v5044_v18 = vand.u32 4294901760, %v5043_v36  ;;  %v14561_v13 = vadd.f32 %v7973_v12, %v2701_v41  ;;  %v5058_v36 = vand.u32 4294901760, %v5057_v16  ;;  %v4938_v6 = vsub.f32 %v14124_v11, %v18141_v20 }
 0x242   :  { %10045 = vmatpush3.bf16.msra.mxu1 %v18102_v1  ;;  %v4925_v1 = vand.u32 4294901760, %v4924_v22  ;;  %v18143_v12 = vand.u32 4294901760, %v14137_v2  ;;  %v18146_v16 = vand.u32 4294901760, %v14031_v0  ;;  %v18153_v0 = vand.u32 4294901760, %v14157_v54 }
 0x243   :  { %10047 = vmatprep.subr.bf16.mxu1 %v18104_v4  ;;  %v4932_v4 = vand.u32 4294901760, %v4931_v47  ;;  %v10086_v41 = vpack.c.bf16 %v5044_v18, %v5037_v14  ;;  %v18144_v47 = vand.u32 4294901760, %v14152_v8  ;;  %v18151_v18 = vld [vmem:[#allocation60_spill] sm:$0xff]  ;;  %v18154_v57 = vand.u32 4294901760, %v14169_v32 }
 0x244   :  { %10017 = vmatpush3.bf16.msra.mxu0 %v18136_v27  ;;  %v5064_v22 = vsub.f32 %v14137_v2, %v18143_v12  ;;  %v18147_v27 = vld [vmem:[#allocation69_spill] sm:$0xff]  ;;  %v10090_v12 = vpack.c.bf16 %v5058_v36, %v5051_v46 }
 0x245   :  { %10019 = vmatprep.subr.bf16.mxu0 %v18140_v42  ;;  %v5071_v30 = vsub.f32 %v14152_v8, %v18144_v47  ;;  %v18148_v51 = vand.u32 4294901760, %v18147_v27  ;;  %v18152_v42 = vand.u32 4294901760, %v18151_v18  ;;  %v10088_v26 = vpack.c.bf16 %v4932_v4, %v4925_v1  ;;  %v18157_v36 = vld [vmem:[#allocation25_spill] sm:$0xff] }
 0x246   :  { %10049 = vmatpush3.bf16.msra.mxu1 %v14010_v50  ;;  %v18145_v50 = vld [vmem:[#allocation78_spill] sm:$0xff]  ;;  %v4939_v47 = vand.u32 4294901760, %v4938_v6  ;;  %v4959_v27 = vsub.f32 %v14169_v32, %v18154_v57  ;;  %v18155_v1 = vand.u32 4294901760, %v14201_v45  ;;  %v18158_v6 = vand.u32 4294901760, %v18157_v36  ;;  %v18165_v57 = vld [vmem:[#allocation85_spill] sm:$0xff] }
 0x247   :  { %10051 = vmatprep.subr.bf16.mxu1 %v14017_v61  ;;  %v14592_v63 = vpack.c.bf16 %v18148_v51, %v18146_v16  ;;  %v18149_v61 = vld [vmem:[#allocation15_spill] sm:$0xff]  ;;  %v4952_v16 = vsub.f32 %v14157_v54, %v18153_v0  ;;  %v5065_v51 = vand.u32 4294901760, %v5064_v22 }
 0x248   :  { %10021 = vmatpush3.bf16.msra.mxu0 %v18145_v50  ;;  %v18150_v14 = vand.u32 4294901760, %v18149_v61  ;;  %v4946_v50 = vand.u32 4294901760, %v4945_v44  ;;  %v5072_v61 = vand.u32 4294901760, %v5071_v30  ;;  %v5078_v4 = vsub.f32 %v14201_v45, %v18155_v1  ;;  %v18159_v44 = vld [vmem:[#allocation29_spill] sm:$0xff]  ;;  %v18163_v22 = vld [vmem:[#allocation39_spill] sm:$0xff] }
 0x249   :  { %10055 = vmatprep.subr.bf16.mxu0 %v14567_v7  ;;  %v18164_v30 = vand.u32 4294901760, %v18163_v22  ;;  %v18166_v1 = vand.u32 4294901760, %v18165_v57 }
 0x24a   :  { %v14599_v20 = vpack.c.bf16 %v18152_v42, %v18150_v14  ;;  %10053 = vmatpush3.bf16.msra.mxu1 %v14039_v52  ;;  %v18156_v52 = vand.u32 4294901760, %v14216_v29  ;;  %v18160_v14 = vand.u32 4294901760, %v18159_v44  ;;  %v18161_v42 = vld [vmem:[#allocation21_spill] sm:$0xff]  ;;  %v5079_v38 = vand.u32 4294901760, %v5078_v4 }
 0x24b   :  { %4699 = vmatmul.mubr.f32.vlgmr.msra.gmra.mrb[28].mxu0 %v13951_v56  ;;  %10087 = vmatprep.subr.bf16.mxu1 %v10086_v41  ;;  %v18162_v41 = vand.u32 4294901760, %v18161_v42  ;;  %v4966_v25 = vsub.f32 %v18165_v57, %v18166_v1  ;;  %v18169_v44 = vld [vmem:[#allocation89_spill] sm:$0xff]  ;;  %v4953_v1 = vand.u32 4294901760, %v4952_v16 }
 0x24c   :  { %v5085_v46 = vsub.f32 %v14216_v29, %v18156_v52  ;;  %10057 = vmatpush3.bf16.msra.mxu0 %v14592_v63  ;;  %v14620_v18 = vpack.c.bf16 %v18160_v14, %v18158_v6  ;;  %4909 = vmatprep.mubr.f32.mxu0 %v4908_v3  ;;  %v18167_v52 = vld [vmem:[#allocation86_spill] sm:$0xff]  ;;  %v18170_v14 = vand.u32 4294901760, %v18169_v44  ;;  %v4960_v3 = vand.u32 4294901760, %v4959_v27 }
 0x24d   :  { %v14626_v0 = vpack.c.bf16 %v18164_v30, %v18162_v41  ;;  %10059 = vmatprep.subr.bf16.mxu0 %v14599_v20  ;;  %4803 = vmatmul.mubr.f32.vlgmr.msra.gmra.mrb[28].mxu1 %v13951_v56  ;;  %v18168_v36 = vand.u32 4294901760, %v18167_v52  ;;  %v18171_v41 = vand.u32 4294901760, %v14273_v28  ;;  %v10092_v30 = vpack.c.bf16 %v4946_v50, %v4939_v47 }
 0x24e   :  { %v5092_v42 = vsub.f32 %v18169_v44, %v18170_v14  ;;  %10089 = vmatpush3.bf16.msra.mxu1 %v10088_v26  ;;  %5145 = vmatprep.mubr.f32.mxu1 %v14525_v58  ;;  %v10094_v56 = vpack.c.bf16 %v5072_v61, %v5065_v51  ;;  %v5086_v33 = vand.u32 4294901760, %v5085_v46  ;;  %v18175_v14 = vand.u32 4294901760, %v18174_v9  ;;  %v18178_v26 = vld [vmem:[#allocation81_spill] sm:$0xff] }
 0x24f   :  { %v4973_v6 = vsub.f32 %v18167_v52, %v18168_v36  ;;  %v5099_v22 = vsub.f32 %v14273_v28, %v18171_v41  ;;  %10091 = vmatprep.subr.bf16.mxu1 %v10090_v12  ;;  %v18172_v36 = vld [vmem:[#allocation63_spill] sm:$0xff]  ;;  %v18179_v47 = vand.u32 4294901760, %v18178_v26  ;;  %v4967_v16 = vand.u32 4294901760, %v4966_v25 }
 0x250   :  { %10061 = vmatpush3.bf16.msra.mxu0 %v14620_v18  ;;  %v18173_v48 = vand.u32 4294901760, %v18172_v36  ;;  %v18176_v52 = vld [vmem:[#allocation71_spill] sm:$0xff]  ;;  %v5093_v27 = vand.u32 4294901760, %v5092_v42  ;;  %v444_v61 = vcombine.low %v14510_v60, %v14513_v53  ;;  %v10096_v4 = vpack.c.bf16 %v4960_v3, %v4953_v1  ;;  %v18184_v42 = vld [vmem:[#allocation49_spill] sm:$0xff] }
 0x251   :  { %v18177_v41 = vand.u32 4294901760, %v18176_v52  ;;  %10063 = vmatprep.subr.bf16.mxu0 %v14626_v0  ;;  %v4974_v12 = vand.u32 4294901760, %v4973_v6  ;;  %v5100_v51 = vand.u32 4294901760, %v5099_v22  ;;  %v18182_v46 = vand.u32 4294901760, %v14293_v5  ;;  %v18186_v53 = vld [vmem:[#allocation19_spill] sm:$0xff]  ;;  %v18188_v1 = vld [vmem:[#allocation65_spill] sm:$0xff] }
 0x252   :  { %v14648_v44 = vpack.c.bf16 %v18175_v14, %v18173_v48  ;;  %10093 = vmatpush3.bf16.msra.mxu1 %v10092_v30  ;;  %v18181_v48 = vand.u32 4294901760, %v14288_v31  ;;  %v10098_v25 = vpack.c.bf16 %v5086_v33, %v5079_v38  ;;  %v18183_v36 = vand.u32 4294901760, %v14322_v10  ;;  %v18193_v38 = vld [vmem:[#allocation73_spill] sm:$0xff] }
 0x253   :  { %v14654_v50 = vpack.c.bf16 %v18179_v47, %v18177_v41  ;;  %v4987_v52 = vsub.f32 %v14293_v5, %v18182_v46  ;;  %10095 = vmatprep.subr.bf16.mxu1 %v10094_v56  ;;  %v18185_v22 = vand.u32 4294901760, %v18184_v42  ;;  %v18187_v30 = vand.u32 4294901760, %v18186_v53  ;;  %v18191_v56 = vld [vmem:[#allocation43_spill] sm:$0xff]  ;;  %v18196_v53 = vld [vmem:[#allocation50_spill] sm:$0xff] }
 0x254   :  { %v4980_v9 = vsub.f32 %v14288_v31, %v18181_v48  ;;  %v5106_v6 = vsub.f32 %v14322_v10, %v18183_v36  ;;  %10065 = vmatpush3.bf16.msra.mxu0 %v14648_v44  ;;  %v18189_v3 = vand.u32 4294901760, %v18188_v1  ;;  %v18192_v33 = vand.u32 4294901760, %v18191_v56  ;;  %v18198_v1 = vld [vmem:[#allocation17_spill] sm:$0xff] }
 0x255   :  { %18180 = vst [vmem:[#allocation77_spill] sm:$0xff] %v14654_v50  ;;  %v5113_v60 = vsub.f32 %v18184_v42, %v18185_v22  ;;  %10067 = vmatprep.subr.bf16.mxu0 %v14654_v50  ;;  %v18194_v41 = vand.u32 4294901760, %v18193_v38  ;;  %v10100_v47 = vpack.c.bf16 %v4974_v12, %v4967_v16  ;;  %v10102_v48 = vpack.c.bf16 %v5100_v51, %v5093_v27  ;;  %v18202_v51 = vld [vmem:[#allocation75_spill] sm:$0xff] }
 0x256   :  { %v14676_v14 = vpack.c.bf16 %v18189_v3, %v18187_v30  ;;  %v14685_v46 = vand.u32 4294901760, %v444_v61  ;;  %10097 = vmatpush3.bf16.msra.mxu1 %v10096_v4  ;;  %v4981_v36 = vand.u32 4294901760, %v4980_v9  ;;  %v4988_v22 = vand.u32 4294901760, %v4987_v52 }
 0x257   :  { %v14683_v26 = vpack.c.bf16 %v18194_v41, %v18192_v33  ;;  %v18197_v58 = vand.u32 4294901760, %v18196_v53  ;;  %v18199_v3 = vand.u32 4294901760, %v18198_v1  ;;  %10099 = vmatprep.subr.bf16.mxu1 %v10098_v25  ;;  %v5107_v56 = vand.u32 4294901760, %v5106_v6 }
 0x258   :  { %18190 = vst [vmem:[#allocation79_spill] sm:$0xff] %v14676_v14  ;;  %v5114_v38 = vand.u32 4294901760, %v5113_v60  ;;  %v18200_v33 = vand.u32 4294901760, %v14388_v59  ;;  %v18201_v12 = vand.u32 4294901760, %v14393_v24  ;;  %10069 = vmatpush3.bf16.msra.mxu0 %v14676_v14  ;;  %v18203_v4 = vand.u32 4294901760, %v18202_v51  ;;  %v18215_v14 = vld [vmem:[#allocation90_spill] sm:$0xff] }
 0x259   :  { %18195 = vst [vmem:[#allocation48_spill] sm:$0xff] %v14683_v26  ;;  %v4994_v30 = vsub.f32 %v18196_v53, %v18197_v58  ;;  %v5001_v42 = vsub.f32 %v18198_v1, %v18199_v3  ;;  %v18204_v58 = vld [vmem:[#allocation83_spill] sm:$0xff]  ;;  %v18206_v25 = vand.u32 4294901760, %v14404_v15  ;;  %v18207_v60 = vand.u32 4294901760, %v14409_v40  ;;  %10071 = vmatprep.subr.bf16.mxu0 %v14683_v26  ;;  %v18221_v26 = vld [vmem:[#allocation92_spill] sm:$0xff] }
 0x25a   :  { %v5120_v16 = vsub.f32 %v14388_v59, %v18200_v33  ;;  %v5127_v27 = vsub.f32 %v14393_v24, %v18201_v12  ;;  %v18205_v9 = vand.u32 4294901760, %v18204_v58  ;;  %v18208_v3 = vand.u32 4294901760, %v14418_v17  ;;  %v18209_v12 = vld [vmem:[#allocation44_spill] sm:$0xff]  ;;  %v18211_v24 = vld [vmem:[#allocation87_spill] sm:$0xff]  ;;  %10101 = vmatpush3.bf16.msra.mxu1 %v10100_v47 }
 0x25b   :  { %v5008_v6 = vsub.f32 %v14404_v15, %v18206_v25  ;;  %v5015_v41 = vsub.f32 %v14409_v40, %v18207_v60  ;;  %v18210_v51 = vand.u32 4294901760, %v18209_v12  ;;  %v18212_v58 = vand.u32 4294901760, %v18211_v24  ;;  %10103 = vmatprep.subr.bf16.mxu1 %v10102_v48 }
 0x25c   :  { %v14704_v52 = vpack.c.bf16 %v18205_v9, %v18203_v4  ;;  %v5134_v33 = vsub.f32 %v14418_v17, %v18208_v3  ;;  %v18213_v9 = vld [vmem:[#allocation98_spill] sm:$0xff]  ;;  %v18216_v25 = vand.u32 4294901760, %v18215_v14  ;;  %v14729_v60 = vsub.f32 %v444_v61, %v14685_v46  ;;  %v18219_v17 = vld [vmem:[#allocation91_spill] sm:$0xff] }
 0x25d   :  { %v14720_v4 = vpack.c.bf16 %v18212_v58, %v18210_v51  ;;  %v18214_v59 = vand.u32 4294901760, %v18213_v9  ;;  %v18218_v40 = vand.u32 4294901760, %v14430_v55  ;;  %v18220_v12 = vand.u32 4294901760, %v18219_v17  ;;  %v18228_v17 = vld [vmem:[#allocation28_spill] sm:$0xff] }
 0x25e   :  { %v18222_v24 = vand.u32 4294901760, %v18221_v26  ;;  %v10104_v58 = vpack.c.bf16 %v4988_v22, %v4981_v36  ;;  %v4995_v9 = vand.u32 4294901760, %v4994_v30  ;;  %v5002_v1 = vand.u32 4294901760, %v5001_v42  ;;  %10073 = vmatpush3.bf16.msra.mxu0 %v14704_v52  ;;  %v18230_v26 = vld [vmem:[#allocation12_spill] sm:$0xff]  ;;  %v14753_v22 = vld [vmem:[#allocation5 + $0x680] sm:$0xff]  ;;  %v14755_v30 = vld [vmem:[#allocation5 + $0x688] sm:$0xff] }
 0x25f   :  { %v14726_v15 = vpack.c.bf16 %v18216_v25, %v18214_v59  ;;  %v5141_v3 = vsub.f32 %v14430_v55, %v18218_v40  ;;  %v18224_v59 = vld [vmem:[#allocation54_spill] sm:$0xff]  ;;  %v18226_v25 = vld [vmem:[#allocation96_spill] sm:$0xff]  ;;  %v10106_v10 = vpack.c.bf16 %v5114_v38, %v5107_v56  ;;  %v5121_v50 = vand.u32 4294901760, %v5120_v16  ;;  %10075 = vmatprep.subr.bf16.mxu0 %v14720_v4 }
 0x260   :  { %v14738_v51 = vpack.c.bf16 %v18222_v24, %v18220_v12  ;;  %v18225_v14 = vand.u32 4294901760, %v18224_v59  ;;  %v18227_v61 = vand.u32 4294901760, %v18226_v25  ;;  %v5128_v40 = vand.u32 4294901760, %v5127_v27  ;;  %10105 = vmatpush3.bf16.msra.mxu1 %v10104_v58  ;;  %v18235_v25 = vld [vmem:[#allocation56_spill] sm:$0xff] }
 0x261   :  { %18217 = vst [vmem:[#allocation67_spill] sm:$0xff] %v14726_v15  ;;  %v18229_v47 = vand.u32 4294901760, %v18228_v17  ;;  %v18231_v12 = vand.u32 4294901760, %v18230_v26  ;;  %v5009_v36 = vand.u32 4294901760, %v5008_v6  ;;  %v5016_v42 = vand.u32 4294901760, %v5015_v41  ;;  %v14765_v6 = vld [vmem:[#allocation5 + $0x600] sm:$0xff]  ;;  %10107 = vmatprep.subr.bf16.mxu1 %v10106_v10 }
 0x262   :  { %18223 = vst [vmem:[#allocation30_spill] sm:$0xff] %v14738_v51  ;;  %v14744_v53 = vpack.c.bf16 %v18227_v61, %v18225_v14  ;;  %v5135_v48 = vand.u32 4294901760, %v5134_v33  ;;  %v5142_v38 = vand.u32 4294901760, %v5141_v3  ;;  %v18232_v16 = vand.u32 4294901760, %v14442_v37  ;;  %v14767_v41 = vld [vmem:[#allocation5 + $0x608] sm:$0xff]  ;;  %v8006_v33 = vpop.f32.mrb[16].mxu0  ;;  %10077 = vmatpush3.bf16.msra.mxu0 %v14726_v15 }
 0x263   :  { %v14751_v24 = vpack.c.bf16 %v18231_v12, %v18229_v47  ;;  %v18233_v59 = vand.u32 4294901760, %v14447_v23  ;;  %18234 = vst [vmem:[#allocation32_spill] sm:$0xff] %v14767_v41  ;;  %v18236_v61 = vand.u32 4294901760, %v18235_v25  ;;  %v18237_v17 = vld [vmem:[#allocation57_spill] sm:$0xff]  ;;  %v10108_v3 = vpack.c.bf16 %v5002_v1, %v4995_v9  ;;  %v8041_v9 = vpop.f32.mrb[16].mxu1  ;;  %10079 = vmatprep.subr.bf16.mxu0 %v14738_v51  ;;  %v14803_v15 = vld [vmem:[#allocation5 + $0x6a8] sm:$0xff] }
 0x264   :  { %v5022_v27 = vsub.f32 %v14442_v37, %v18232_v16  ;;  %v18238_v47 = vand.u32 4294901760, %v18237_v17  ;;  %v10110_v56 = vpack.c.bf16 %v5128_v40, %v5121_v50  ;;  %v14783_v17 = vld [vmem:[#allocation5 + $0x690] sm:$0xff]  ;;  %v14792_v40 = vld [vmem:[#allocation5 + $0x618] sm:$0xff]  ;;  %v18243_v12 = vand.u32 4294901760, %v14729_v60  ;;  %v14798_v37 = vld [vmem:[#allocation5 + $0x6a0] sm:$0xff]  ;;  %18245 = vst [vmem:[#allocation40_spill] sm:$0xff] %v14803_v15 }
 0x265   :  { %v5029_v14 = vsub.f32 %v14447_v23, %v18233_v59  ;;  %v8007_v59 = vpop.f32.mrb[17].mxu0  ;;  %18239 = vst [vmem:[#allocation93_spill] sm:$0xff] %v14783_v17  ;;  %v14790_v50 = vld [vmem:[#allocation5 + $0x610] sm:$0xff]  ;;  %18242 = vst [vmem:[#allocation20_spill] sm:$0xff] %v14792_v40  ;;  %v8042_v23 = vpop.f32.mrb[17].mxu1  ;;  %10109 = vmatpush3.bf16.msra.mxu1 %v10108_v3  ;;  %v16775_v10 = vand.u32 4294901760, %v14783_v17 }
 0x266   :  { %v14773_v26 = vpack.c.bf16 %v18238_v47, %v18236_v61  ;;  %v14785_v61 = vld [vmem:[#allocation5 + $0x698] sm:$0xff]  ;;  %v8008_v1 = vadd.f32 %v8007_v59, %v8006_v33  ;;  %v10112_v47 = vpack.c.bf16 %v5016_v42, %v5009_v36  ;;  %18241 = vst [vmem:[#allocation22_spill] sm:$0xff] %v14790_v50  ;;  %v4913_v25 = vsub.f32 %v14729_v60, %v18243_v12  ;;  %v14805_v51 = vld [vmem:[#allocation5 + $0x620] sm:$0xff]  ;;  %v14840_v16 = vld [vmem:[#allocation5 + $0x6b0] sm:$0xff] }
 0x267   :  { %18240 = vst [vmem:[#allocation95_spill] sm:$0xff] %v14785_v61  ;;  %v10114_v33 = vpack.c.bf16 %v5142_v38, %v5135_v48  ;;  %v5023_v59 = vand.u32 4294901760, %v5022_v27  ;;  %v5030_v58 = vand.u32 4294901760, %v5029_v14  ;;  %18244 = vst [vmem:[#allocation46_spill] sm:$0xff] %v14798_v37  ;;  %v8043_v42 = vadd.f32 %v8042_v23, %v8041_v9  ;;  %10111 = vmatprep.subr.bf16.mxu1 %v10110_v56  ;;  %v14819_v14 = vld [vmem:[#allocation5 + $0x628] sm:$0xff] }
 0x268   :  { %v2977_v36 = vadd.f32 %v8008_v1, %v14561_v13  ;;  %18246 = vst [vmem:[#allocation38_spill] sm:$0xff] %v14805_v51  ;;  %v18247_v12 = vand.u32 4294901760, %v14753_v22  ;;  %v18248_v38 = vand.u32 4294901760, %v14755_v30  ;;  %18249 = vst [vmem:[#allocation41_spill] sm:$0xff] %v14819_v14  ;;  %10081 = vmatpush3.bf16.msra.mxu0 %v14744_v53  ;;  %v18250_v56 = vand.u32 4294901760, %v14765_v6 }
 0x269   :  { %v18251_v9 = vand.u32 4294901760, %v14767_v41  ;;  %10083 = vmatprep.subr.bf16.mxu0 %v14751_v24  ;;  %v4914_v27 = vand.u32 4294901760, %v4913_v25  ;;  %18252 = vst [vmem:[#allocation47_spill] sm:$0xff] %v14840_v16  ;;  %10113 = vmatpush3.bf16.msra.mxu1 %v10112_v47  ;;  %v18257_v23 = vand.u32 4294901760, %v14798_v37 }
 0x26a   :  { %v14810_v48 = vsub.f32 %v14753_v22, %v18247_v12  ;;  %v14815_v13 = vsub.f32 %v14755_v30, %v18248_v38  ;;  %v14822_v3 = vadd.f32 %v8043_v42, %v2977_v36  ;;  %v14827_v1 = vsub.f32 %v14765_v6, %v18250_v56  ;;  %10115 = vmatprep.subr.bf16.mxu1 %v10114_v33 }
 0x26b   :  { %v14832_v12 = vsub.f32 %v14767_v41, %v18251_v9  ;;  %v10116_v56 = vpack.c.bf16 %v5030_v58, %v5023_v59  ;;  %v14845_v9 = vsub.f32 %v14783_v17, %v16775_v10  ;;  %v18253_v38 = vand.u32 4294901760, %v14785_v61  ;;  %v14853_v41 = vld [vmem:[#allocation5 + $0x6b8] sm:$0xff] }
 0x26c   :  { %18254 = vst [vmem:[#allocation31_spill] sm:$0xff] %v14853_v41  ;;  %v18255_v42 = vand.u32 4294901760, %v14790_v50  ;;  %v18256_v58 = vand.u32 4294901760, %v14792_v40  ;;  %10085 = vmatpush3.bf16.msra.mxu0 %v14773_v26  ;;  %v14871_v33 = vsub.f32 %v14798_v37, %v18257_v23  ;;  %v18261_v10 = vand.u32 4294901760, %v14803_v15 }
 0x26d   :  { %v14850_v25 = vsub.f32 %v14785_v61, %v18253_v38  ;;  %v14876_v61 = vld [vmem:[#allocation5 + $0x630] sm:$0xff]  ;;  %v18260_v38 = vpack.c.bf16 %v14081_v39, %v14076_v49  ;;  %v18262_v23 = vand.u32 4294901760, %v14805_v51  ;;  %v18264_v37 = vand.u32 4294901760, %v14815_v13  ;;  %10117 = vmatpush3.bf16.msra.mxu1 %v10116_v56 }
 0x26e   :  { %v14858_v47 = vsub.f32 %v14790_v50, %v18255_v42  ;;  %v14863_v59 = vsub.f32 %v14792_v40, %v18256_v58  ;;  %18258 = vst [vmem:[#allocation51_spill] sm:$0xff] %v14876_v61  ;;  %v14878_v58 = vld [vmem:[#allocation5 + $0x638] sm:$0xff]  ;;  %v14886_v40 = vsub.f32 %v14803_v15, %v18261_v10  ;;  %v18263_v42 = vand.u32 4294901760, %v14810_v48  ;;  %10151 = vmatprep.subr.bf16.mxu1 %v14567_v7  ;;  %v14922_v10 = vld [vmem:[#allocation5 + $0x640] sm:$0xff] }
 0x26f   :  { %18259 = vst [vmem:[#allocation53_spill] sm:$0xff] %v14878_v58  ;;  %10119 = vmatprep.subr.bf16.mxu0 %v18260_v38  ;;  %v14891_v36 = vsub.f32 %v14805_v51, %v18262_v23  ;;  %v18266_v49 = vand.u32 4294901760, %v14819_v14  ;;  %v14907_v23 = vld [vmem:[#allocation5 + $0x6c0] sm:$0xff]  ;;  %v14909_v51 = vld [vmem:[#allocation5 + $0x6c8] sm:$0xff]  ;;  %v18269_v50 = vand.u32 4294901760, %v14827_v1  ;;  %v18270_v15 = vand.u32 4294901760, %v14832_v12  ;;  %4915 = vmatmul.mubr.f32.vlgmr.msra.gmra.mrb[30].mxu0 %v4914_v27 }
 0x270   :  { %v14898_v17 = vpack.c.bf16 %v18264_v37, %v18263_v42  ;;  %18267 = vst [vmem:[#allocation18_spill] sm:$0xff] %v14907_v23  ;;  %18268 = vst [vmem:[#allocation62_spill] sm:$0xff] %v14909_v51  ;;  %5282 = vmatprep.mubr.f32.mxu0 %v14532_v21  ;;  %v18276_v42 = vand.u32 4294901760, %v14845_v9  ;;  %v18277_v56 = vand.u32 4294901760, %v14850_v25  ;;  %5147 = vmatmul.mubr.f32.vlgmr.msra.gmra.mrb[30].mxu1 %v14685_v46 }
 0x271   :  { %v14903_v39 = vsub.f32 %v14819_v14, %v18266_v49  ;;  %v14915_v37 = vpack.c.bf16 %v18270_v15, %v18269_v50  ;;  %v16784_v49 = vand.u32 4294901760, %v14858_v47  ;;  %18272 = vst [vmem:[#allocation27_spill] sm:$0xff] %v14922_v10  ;;  %v18274_v14 = vpack.c.bf16 %v14098_v62, %v14093_v34  ;;  %10153 = vmatpush3.bf16.msra.mxu1 %v14592_v63 }
 0x272   :  { %18265 = vst [vmem:[#allocation58_spill] sm:$0xff] %v14898_v17  ;;  %v14924_v17 = vld [vmem:[#allocation5 + $0x648] sm:$0xff]  ;;  %v10126_v15 = vpack.c.bf16 %v14152_v8, %v14137_v2  ;;  %v18275_v50 = vand.u32 4294901760, %v14840_v16  ;;  %v14941_v38 = vpack.c.bf16 %v18277_v56, %v18276_v42  ;;  %v18279_v34 = vpack.c.bf16 %v14116_v43, %v14111_v35  ;;  %10155 = vmatprep.subr.bf16.mxu1 %v14599_v20  ;;  %v14989_v43 = vld [vmem:[#allocation5 + $0x6d8] sm:$0xff] }
 0x273   :  { %18271 = vst [vmem:[#allocation80_spill] sm:$0xff] %v14915_v37  ;;  %18273 = vst [vmem:[#allocation34_spill] sm:$0xff] %v14924_v17  ;;  %10121 = vmatpush3.bf16.msra.mxu0 %v18274_v14  ;;  %v18280_v8 = vand.u32 4294901760, %v14853_v41  ;;  %v18281_v56 = vand.u32 4294901760, %v14863_v59  ;;  %v18283_v35 = vand.u32 4294901760, %v14532_v21  ;;  %v14967_v14 = vld [vmem:[#allocation5 + $0x6d0] sm:$0xff] }
 0x274   :  { %v14935_v27 = vsub.f32 %v14840_v16, %v18275_v50  ;;  %18278 = vst [vmem:[#allocation37_spill] sm:$0xff] %v14941_v38  ;;  %10123 = vmatprep.subr.bf16.mxu0 %v18279_v34  ;;  %18284 = vst [vmem:[#allocation78_spill] sm:$0xff] %v14967_v14  ;;  %v18287_v21 = vand.u32 4294901760, %v14878_v58  ;;  %v16785_v34 = vand.u32 4294901760, %v14903_v39  ;;  %v10128_v50 = vpack.c.bf16 %v14169_v32, %v14157_v54  ;;  %v15036_v37 = vld [vmem:[#allocation5 + $0x6e0] sm:$0xff] }
 0x275   :  { %v14950_v62 = vsub.f32 %v14853_v41, %v18280_v8  ;;  %v14958_v42 = vpack.c.bf16 %v18281_v56, %v16784_v49  ;;  %5389 = vmatprep.mubr.f32.mxu1 %v18283_v35  ;;  %v18285_v56 = vand.u32 4294901760, %v14876_v61  ;;  %v18289_v8 = vpack.c.bf16 %v14129_v19, %v14124_v11  ;;  %18290 = vst [vmem:[#allocation60_spill] sm:$0xff] %v14989_v43  ;;  %v18336_v16 = vld [vmem:[#allocation50_spill] sm:$0xff] }
 0x276   :  { %v14978_v35 = vsub.f32 %v14878_v58, %v18287_v21  ;;  %v18292_v21 = vand.u32 4294901760, %v14871_v33  ;;  %v18293_v2 = vand.u32 4294901760, %v14886_v40  ;;  %v18295_v11 = vand.u32 4294901760, %v14907_v23  ;;  %10157 = vmatpush3.bf16.msra.mxu1 %v14620_v18  ;;  %18303 = vst [vmem:[#allocation63_spill] sm:$0xff] %v15036_v37  ;;  %v15097_v58 = vld [vmem:[#allocation5 + $0x670] sm:$0xff] }
 0x277   :  { %18282 = vst [vmem:[#allocation76_spill] sm:$0xff] %v14958_v42  ;;  %v14973_v49 = vsub.f32 %v14876_v61, %v18285_v56  ;;  %10125 = vmatpush3.bf16.msra.mxu0 %v18289_v8  ;;  %v10130_v56 = vpack.c.bf16 %v14216_v29, %v14201_v45  ;;  %v14991_v42 = vld [vmem:[#allocation5 + $0x650] sm:$0xff]  ;;  %v18297_v54 = vand.u32 4294901760, %v14909_v51  ;;  %v15010_v29 = vld [vmem:[#allocation5 + $0x658] sm:$0xff]  ;;  %v18299_v8 = vand.u32 4294901760, %v14891_v36  ;;  %10159 = vmatprep.subr.bf16.mxu1 %v14626_v0 }
 0x278   :  { %18288 = vst [vmem:[#allocation15_spill] sm:$0xff] %v14978_v35  ;;  %18291 = vst [vmem:[#allocation25_spill] sm:$0xff] %v14991_v42  ;;  %v14997_v38 = vpack.c.bf16 %v18293_v2, %v18292_v21  ;;  %10127 = vmatprep.subr.bf16.mxu0 %v10126_v15  ;;  %v15002_v19 = vsub.f32 %v14907_v23, %v18295_v11  ;;  %v18301_v15 = vand.u32 4294901760, %v14922_v10  ;;  %v18302_v11 = vand.u32 4294901760, %v14924_v17  ;;  %v18332_v61 = vld [vmem:[#allocation49_spill] sm:$0xff] }
 0x279   :  { %18286 = vst [vmem:[#allocation69_spill] sm:$0xff] %v14973_v49  ;;  %v15007_v32 = vsub.f32 %v14909_v51, %v18297_v54  ;;  %18298 = vst [vmem:[#allocation39_spill] sm:$0xff] %v15010_v29  ;;  %v15016_v2 = vpack.c.bf16 %v16785_v34, %v18299_v8  ;;  %v18307_v8 = vand.u32 4294901760, %v14950_v62  ;;  %v18309_v34 = vld [vmem:[#allocation89_spill] sm:$0xff] }
 0x27a   :  { %18294 = vst [vmem:[#allocation29_spill] sm:$0xff] %v14997_v38  ;;  %18296 = vst [vmem:[#allocation21_spill] sm:$0xff] %v15002_v19  ;;  %v15022_v21 = vsub.f32 %v14922_v10, %v18301_v15  ;;  %v15027_v54 = vsub.f32 %v14924_v17, %v18302_v11  ;;  %v15038_v10 = vld [vmem:[#allocation5 + $0x6e8] sm:$0xff]  ;;  %v18305_v11 = vld [vmem:[#allocation86_spill] sm:$0xff]  ;;  %v18306_v17 = vand.u32 4294901760, %v14935_v27  ;;  %v10134_v15 = vpack.c.bf16 %v14273_v28, %v18309_v34 }
 0x27b   :  { %18300 = vst [vmem:[#allocation85_spill] sm:$0xff] %v15016_v2  ;;  %18304 = vst [vmem:[#allocation64_spill] sm:$0xff] %v15038_v10  ;;  %10129 = vmatpush3.bf16.msra.mxu0 %v10128_v50  ;;  %v10132_v45 = vpack.c.bf16 %v18305_v11, %v18165_v57  ;;  %v10136_v2 = vpack.c.bf16 %v14293_v5, %v14288_v31  ;;  %v18310_v50 = vand.u32 4294901760, %v14967_v14  ;;  %v15058_v57 = vld [vmem:[#allocation5 + $0x660] sm:$0xff]  ;;  %v15060_v11 = vld [vmem:[#allocation5 + $0x668] sm:$0xff]  ;;  %v18314_v38 = vand.u32 4294901760, %v14973_v49 }
 0x27c   :  { %v15047_v51 = vpack.c.bf16 %v18307_v8, %v18306_v17  ;;  %10131 = vmatprep.subr.bf16.mxu0 %v10130_v56  ;;  %18312 = vst [vmem:[#allocation19_spill] sm:$0xff] %v15058_v57  ;;  %18313 = vst [vmem:[#allocation65_spill] sm:$0xff] %v15060_v11  ;;  %v18315_v17 = vand.u32 4294901760, %v14978_v35  ;;  %10161 = vmatpush3.bf16.msra.mxu1 %v14648_v44  ;;  %v15073_v8 = vld [vmem:[#allocation5 + $0x6f0] sm:$0xff]  ;;  %v15088_v5 = vld [vmem:[#allocation5 + $0x6f8] sm:$0xff]  ;;  %v18324_v34 = vand.u32 4294901760, %v15010_v29 }
 0x27d   :  { %v15056_v23 = vsub.f32 %v14967_v14, %v18310_v50  ;;  %18317 = vst [vmem:[#allocation73_spill] sm:$0xff] %v15073_v8  ;;  %v18318_v50 = vld [vmem:[#allocation77_spill] sm:$0xff]  ;;  %18323 = vst [vmem:[#allocation44_spill] sm:$0xff] %v15088_v5  ;;  %v18328_v31 = vand.u32 4294901760, %v15002_v19  ;;  %v18329_v28 = vand.u32 4294901760, %v15007_v32  ;;  %v18338_v19 = vld [vmem:[#allocation79_spill] sm:$0xff] }
 0x27e   :  { %18308 = vst [vmem:[#allocation71_spill] sm:$0xff] %v15047_v51  ;;  %v15066_v56 = vpack.c.bf16 %v18315_v17, %v18314_v38  ;;  %10163 = vmatprep.subr.bf16.mxu1 %v18318_v50  ;;  %v18319_v51 = vand.u32 4294901760, %v14989_v43  ;;  %v18321_v38 = vand.u32 4294901760, %v14991_v42  ;;  %18326 = vst [vmem:[#allocation98_spill] sm:$0xff] %v15097_v58  ;;  %v18337_v35 = vld [vmem:[#allocation17_spill] sm:$0xff] }
 0x27f   :  { %18311 = vst [vmem:[#allocation81_spill] sm:$0xff] %v15056_v23  ;;  %10133 = vmatpush3.bf16.msra.mxu0 %v10132_v45  ;;  %v18331_v45 = vld [vmem:[#allocation94_spill] sm:$0xff]  ;;  %v10140_v49 = vpack.c.bf16 %v18337_v35, %v18336_v16  ;;  %v18348_v16 = vld [vmem:[#allocation13_spill] sm:$0xff]  ;;  %v18349_v35 = vld [vmem:[#allocation35_spill] sm:$0xff] }
 0x280   :  { %18316 = vst [vmem:[#allocation43_spill] sm:$0xff] %v15066_v56  ;;  %v15079_v14 = vsub.f32 %v14989_v43, %v18319_v51  ;;  %v15084_v17 = vsub.f32 %v14991_v42, %v18321_v38  ;;  %v15093_v56 = vsub.f32 %v15010_v29, %v18324_v34  ;;  %v15099_v38 = vld [vmem:[#allocation5 + $0x678] sm:$0xff]  ;;  %v15105_v42 = vpack.c.bf16 %v18329_v28, %v18328_v31  ;;  %v18343_v34 = vld [vmem:[#allocation48_spill] sm:$0xff] }
 0x281   :  { %18327 = vst [vmem:[#allocation90_spill] sm:$0xff] %v15099_v38  ;;  %10135 = vmatprep.subr.bf16.mxu0 %v10134_v15  ;;  %v10138_v41 = vpack.c.bf16 %v18332_v61, %v18331_v45  ;;  %v18333_v51 = vand.u32 4294901760, %v15022_v21  ;;  %v18334_v43 = vand.u32 4294901760, %v15027_v54  ;;  %10165 = vmatpush3.bf16.msra.mxu1 %v18338_v19  ;;  %v18339_v28 = vand.u32 4294901760, %v15036_v37 }
 0x282   :  { %18320 = vst [vmem:[#allocation75_spill] sm:$0xff] %v15079_v14  ;;  %18322 = vst [vmem:[#allocation83_spill] sm:$0xff] %v15084_v17  ;;  %v18341_v61 = vand.u32 4294901760, %v15038_v10  ;;  %10167 = vmatprep.subr.bf16.mxu1 %v18343_v34 }
 0x283   :  { %18325 = vst [vmem:[#allocation87_spill] sm:$0xff] %v15093_v56  ;;  %18330 = vst [vmem:[#allocation91_spill] sm:$0xff] %v15105_v42  ;;  %v15114_v29 = vpack.c.bf16 %v18334_v43, %v18333_v51  ;;  %v15122_v15 = vsub.f32 %v15036_v37, %v18339_v28  ;;  %10137 = vmatpush3.bf16.msra.mxu0 %v10136_v2  ;;  %v18344_v28 = vand.u32 4294901760, %v15058_v57  ;;  %v16810_v42 = vand.u32 4294901760, %v15084_v17 }
 0x284   :  { %v15127_v31 = vsub.f32 %v15038_v10, %v18341_v61  ;;  %v18346_v61 = vand.u32 4294901760, %v15060_v11  ;;  %10139 = vmatprep.subr.bf16.mxu0 %v10138_v41  ;;  %v10142_v10 = vpack.c.bf16 %v18349_v35, %v18348_v16  ;;  %v18350_v2 = vand.u32 4294901760, %v15073_v8 }
 0x285   :  { %18335 = vst [vmem:[#allocation92_spill] sm:$0xff] %v15114_v29  ;;  %18340 = vst [vmem:[#allocation54_spill] sm:$0xff] %v15122_v15  ;;  %v15138_v29 = vsub.f32 %v15058_v57, %v18344_v28  ;;  %v18352_v28 = vand.u32 4294901760, %v15056_v23  ;;  %v18353_v57 = vand.u32 4294901760, %v15079_v14  ;;  %10169 = vmatpush3.bf16.msra.mxu1 %v14704_v52  ;;  %v18355_v43 = vand.u32 4294901760, %v15088_v5  ;;  %v18364_v14 = vld [vmem:[#allocation42_spill] sm:$0xff] }
 0x286   :  { %18342 = vst [vmem:[#allocation96_spill] sm:$0xff] %v15127_v31  ;;  %v15143_v45 = vsub.f32 %v15060_v11, %v18346_v61  ;;  %v15152_v51 = vsub.f32 %v15073_v8, %v18350_v2  ;;  %v8076_v61 = vpop.f32.mrb[18].mxu0  ;;  %v18356_v16 = vand.u32 4294901760, %v15093_v56  ;;  %10171 = vmatprep.subr.bf16.mxu1 %v14720_v4  ;;  %v8111_v56 = vpop.f32.mrb[18].mxu1 }
 0x287   :  { %18345 = vst [vmem:[#allocation28_spill] sm:$0xff] %v15138_v29  ;;  %v15158_v37 = vpack.c.bf16 %v18353_v57, %v18352_v28  ;;  %v15164_v41 = vsub.f32 %v15088_v5, %v18355_v43  ;;  %v8077_v2 = vpop.f32.mrb[19].mxu0  ;;  %v18358_v57 = vand.u32 4294901760, %v15097_v58  ;;  %v16820_v43 = vand.u32 4294901760, %v15122_v15  ;;  %10141 = vmatpush3.bf16.msra.mxu0 %v10140_v49 }
 0x288   :  { %18347 = vst [vmem:[#allocation12_spill] sm:$0xff] %v15143_v45  ;;  %18351 = vst [vmem:[#allocation56_spill] sm:$0xff] %v15152_v51  ;;  %v15170_v35 = vpack.c.bf16 %v18356_v16, %v16810_v42  ;;  %v16819_v5 = vand.u32 4294901760, %v15127_v31  ;;  %v8078_v11 = vadd.f32 %v8077_v2, %v8076_v61  ;;  %v18362_v16 = vld [vmem:[#allocation24_spill] sm:$0xff]  ;;  %v18363_v42 = vld [vmem:[#allocation33_spill] sm:$0xff]  ;;  %v16826_v17 = vand.u32 4294901760, %v15138_v29  ;;  %10143 = vmatprep.subr.bf16.mxu0 %v10142_v10 }
 0x289   :  { %18354 = vst [vmem:[#allocation57_spill] sm:$0xff] %v15158_v37  ;;  %v15176_v28 = vsub.f32 %v15097_v58, %v18358_v57  ;;  %v18360_v37 = vand.u32 4294901760, %v15099_v38  ;;  %v16821_v57 = vand.u32 4294901760, %v15143_v45  ;;  %v8112_v58 = vpop.f32.mrb[19].mxu1  ;;  %v18366_v2 = vld [vmem:[#allocation67_spill] sm:$0xff]  ;;  %v18368_v10 = vld [vmem:[#allocation30_spill] sm:$0xff] }
 0x28a   :  { %18357 = vst [vmem:[#allocation86_spill] sm:$0xff] %v15170_v35  ;;  %v10144_v35 = vpack.c.bf16 %v18363_v42, %v18362_v16  ;;  %v15196_v49 = vpack.c.bf16 %v16819_v5, %v16820_v43  ;;  %v3193_v42 = vadd.f32 %v8078_v11, %v14822_v3  ;;  %v8113_v61 = vadd.f32 %v8112_v58, %v8111_v56  ;;  %v18369_v3 = vld [vmem:[#allocation14_spill] sm:$0xff] }
 0x28b   :  { %18359 = vst [vmem:[#allocation89_spill] sm:$0xff] %v15176_v28  ;;  %v15181_v8 = vsub.f32 %v15099_v38, %v18360_v37  ;;  %v10146_v37 = vpack.c.bf16 %v14430_v55, %v18364_v14  ;;  %v16825_v38 = vand.u32 4294901760, %v15152_v51  ;;  %10173 = vmatpush3.bf16.msra.mxu1 %v18366_v2  ;;  %v16824_v16 = vand.u32 4294901760, %v15164_v41  ;;  %v18370_v58 = vld [vmem:[#allocation26_spill] sm:$0xff] }
 0x28c   :  { %18365 = vst [vmem:[#allocation94_spill] sm:$0xff] %v15196_v49  ;;  %v15205_v55 = vpack.c.bf16 %v16821_v57, %v16826_v17  ;;  %10175 = vmatprep.subr.bf16.mxu1 %v18368_v10  ;;  %v16823_v14 = vand.u32 4294901760, %v15176_v28  ;;  %10145 = vmatpush3.bf16.msra.mxu0 %v10144_v35  ;;  %v3425_v43 = vadd.f32 %v8113_v61, %v3193_v42  ;;  %v15226_v35 = vld [vmem:[#allocation2 + $0x18] sm:$0xff]  ;;  %v18374_v42 = vld [vmem:[#allocation66_spill] sm:$0xff] }
 0x28d   :  { %18361 = vst [vmem:[#allocation77_spill] sm:$0xff] %v15181_v8  ;;  %v16822_v5 = vand.u32 4294901760, %v15181_v8  ;;  %v10148_v11 = vpack.c.bf16 %v18370_v58, %v18369_v3  ;;  %v15216_v56 = vpack.c.bf16 %v16824_v16, %v16825_v38  ;;  %10147 = vmatprep.subr.bf16.mxu0 %v10146_v37  ;;  %18373 = vst [vmem:[#allocation79_spill] sm:$0xff] %v15226_v35  ;;  %v15229_v61 = vld [vmem:[#allocation2 + $0x38] sm:$0xff]  ;;  %v18378_v58 = vld [vmem:[#allocation74_spill] sm:$0xff]  ;;  %v18381_v16 = vand.u32 4294901760, %v14729_v60 }
 0x28e   :  { %18367 = vst [vmem:[#allocation49_spill] sm:$0xff] %v15205_v55  ;;  %18375 = vst [vmem:[#allocation48_spill] sm:$0xff] %v15229_v61  ;;  %v15231_v3 = vld [vmem:[#allocation2 + $0x58] sm:$0xff] }
 0x28f   :  { %18371 = vst [vmem:[#allocation50_spill] sm:$0xff] %v15216_v56  ;;  %v15222_v57 = vpack.c.bf16 %v16822_v5, %v16823_v14  ;;  %10177 = vmatpush3.bf16.msra.mxu1 %v14744_v53  ;;  %18376 = vst [vmem:[#allocation13_spill] sm:$0xff] %v15231_v3  ;;  %v15233_v37 = vld [vmem:[#allocation2 + $0x78] sm:$0xff]  ;;  %v18379_v5 = vld [vmem:[#allocation72_spill] sm:$0xff] }
 0x290   :  { %10179 = vmatprep.subr.bf16.mxu1 %v14751_v24  ;;  %10149 = vmatpush3.bf16.msra.mxu0 %v10148_v11  ;;  %18377 = vst [vmem:[#allocation35_spill] sm:$0xff] %v15233_v37  ;;  %v446_v11 = vcombine.low %v15226_v35, %v15229_v61  ;;  %v18380_v14 = vld [vmem:[#allocation36_spill] sm:$0xff]  ;;  %v18400_v56 = vld [vmem:[#allocation82_spill] sm:$0xff]  ;;  %v18438_v61 = vld [vmem:[#allocation41_spill] sm:$0xff] }
 0x291   :  { %18372 = vst [vmem:[#allocation17_spill] sm:$0xff] %v15222_v57  ;;  %10183 = vmatprep.subr.bf16.mxu0 %v18374_v42  ;;  %v448_v42 = vcombine.low %v15231_v3, %v15233_v37  ;;  %v18384_v57 = vld [vmem:[#allocation88_spill] sm:$0xff] }
 0x293   :  { %10181 = vmatpush3.bf16.msra.mxu1 %v14773_v26  ;;  %5285 = vmatmul.mubr.f32.vlgmr.msra.gmra.mrb[32].mxu0 %v14729_v60  ;;  %v18385_v60 = vld [vmem:[#allocation45_spill] sm:$0xff] }
 0x294   :  { %10215 = vmatprep.subr.bf16.mxu1 %v14567_v7  ;;  %10185 = vmatpush3.bf16.msra.mxu0 %v18378_v58  ;;  %v18382_v7 = vld [vmem:[#allocation84_spill] sm:$0xff]  ;;  %v18383_v58 = vld [vmem:[#allocation11_spill] sm:$0xff] }
 0x295   :  { %5559 = vmatprep.mubr.f32.mxu0 %v18379_v5  ;;  %10187 = vmatprep.subr.bf16.mxu0 %v18380_v14  ;;  %v15252_v38 = vrot.slane %v446_v11, %v18383_v58  ;;  %v15255_v17 = vrot.slane %v448_v42, %v18383_v58  ;;  %v18391_v14 = vld [vmem:[#allocation55_spill] sm:$0xff]  ;;  %v18392_v11 = vand.u32 4294901760, %v14810_v48 }
 0x296   :  { %5393 = vmatmul.mubr.f32.vlgmr.msra.gmra.mrb[32].mxu1 %v18381_v16 }
 0x297   :  { %10217 = vmatpush3.bf16.msra.mxu1 %v14592_v63  ;;  %5663 = vmatprep.mubr.f32.mxu1 %v18379_v5  ;;  %v479_v63 = vcombine.high %v15252_v38, %v15255_v17  ;;  %v18387_v5 = vld [vmem:[#allocation97_spill] sm:$0xff]  ;;  %v5898_v42 = vsub.f32 %v14810_v48, %v18392_v11  ;;  %v18398_v11 = vand.u32 4294901760, %v14845_v9 }
 0x298   :  { %10219 = vmatprep.subr.bf16.mxu1 %v14599_v20  ;;  %10189 = vmatpush3.bf16.msra.mxu0 %v18382_v7  ;;  %v18386_v20 = vld [vmem:[#allocation52_spill] sm:$0xff] }
 0x299   :  { %10191 = vmatprep.subr.bf16.mxu0 %v18384_v57  ;;  %v15267_v16 = vand.u32 4294901760, %v479_v63  ;;  %v18389_v57 = vld [vmem:[#allocation16_spill] sm:$0xff] }
 0x29b   :  { %10221 = vmatpush3.bf16.msra.mxu1 %v14620_v18  ;;  %18388 = vst [vmem:[#allocation24_spill] sm:$0xff] %v15267_v16  ;;  %v18390_v18 = vld [vmem:[#allocation23_spill] sm:$0xff] }
 0x29c   :  { %10223 = vmatprep.subr.bf16.mxu1 %v14626_v0  ;;  %10193 = vmatpush3.bf16.msra.mxu0 %v18385_v60  ;;  %v15274_v0 = vsub.f32 %v479_v63, %v15267_v16  ;;  %v18394_v60 = vld [vmem:[#allocation59_spill] sm:$0xff]  ;;  %v8181_v63 = vpop.f32.mrb[20].mxu1 }
 0x29d   :  { %10195 = vmatprep.subr.bf16.mxu0 %v18386_v20 }
 0x29f   :  { %10225 = vmatpush3.bf16.msra.mxu1 %v14648_v44  ;;  %v8146_v44 = vpop.f32.mrb[20].mxu0 }
 0x2a0   :  { %10227 = vmatprep.subr.bf16.mxu1 %v18318_v50  ;;  %10197 = vmatpush3.bf16.msra.mxu0 %v18387_v5  ;;  %v8147_v50 = vpop.f32.mrb[21].mxu0  ;;  %v18395_v5 = vld [vmem:[#allocation61_spill] sm:$0xff] }
 0x2a1   :  { %10199 = vmatprep.subr.bf16.mxu0 %v18389_v57  ;;  %v8148_v7 = vadd.f32 %v8147_v50, %v8146_v44  ;;  %v18396_v57 = vand.u32 4294901760, %v14827_v1  ;;  %v5912_v44 = vsub.f32 %v14845_v9, %v18398_v11  ;;  %v18399_v50 = vand.u32 4294901760, %v14850_v25 }
 0x2a2   :  { %v18402_v11 = vand.u32 4294901760, %v14755_v30  ;;  %v18406_v30 = vand.u32 4294901760, %v14863_v59 }
 0x2a3   :  { %10229 = vmatpush3.bf16.msra.mxu1 %v18338_v19  ;;  %v18393_v19 = vand.u32 4294901760, %v14815_v13 }
 0x2a4   :  { %10231 = vmatprep.subr.bf16.mxu1 %v18343_v34  ;;  %10201 = vmatpush3.bf16.msra.mxu0 %v18390_v18  ;;  %v18397_v18 = vand.u32 4294901760, %v14832_v12 }
 0x2a5   :  { %10203 = vmatprep.subr.bf16.mxu0 %v18391_v14  ;;  %v5905_v34 = vsub.f32 %v14815_v13, %v18393_v19  ;;  %v5919_v19 = vsub.f32 %v14850_v25, %v18399_v50  ;;  %v18403_v50 = vand.u32 4294901760, %v15274_v0 }
 0x2a6   :  { %v5793_v14 = vsub.f32 %v14832_v12, %v18397_v18  ;;  %v18401_v18 = vand.u32 4294901760, %v14753_v22 }
 0x2a7   :  { %10233 = vmatpush3.bf16.msra.mxu1 %v14704_v52  ;;  %v8182_v52 = vpop.f32.mrb[21].mxu1 }
 0x2a8   :  { %10235 = vmatprep.subr.bf16.mxu1 %v14720_v4  ;;  %10205 = vmatpush3.bf16.msra.mxu0 %v18394_v60  ;;  %v5786_v4 = vsub.f32 %v14827_v1, %v18396_v57  ;;  %v3563_v60 = vadd.f32 %v8148_v7, %v3425_v43  ;;  %v8183_v20 = vadd.f32 %v8182_v52, %v8181_v63  ;;  %v5906_v57 = vand.u32 4294901760, %v5905_v34  ;;  %v18404_v7 = vld [vmem:[#allocation68_spill] sm:$0xff] }
 0x2a9   :  { %10207 = vmatprep.subr.bf16.mxu0 %v18395_v5  ;;  %v5899_v5 = vand.u32 4294901760, %v5898_v42  ;;  %v15309_v49 = vpack.c.bf16 %v18402_v11, %v18401_v18  ;;  %v5769_v43 = vsub.f32 %v15274_v0, %v18403_v50  ;;  %v5913_v42 = vand.u32 4294901760, %v5912_v44 }
 0x2aa   :  { %v15303_v55 = vadd.f32 %v8183_v20, %v3563_v60  ;;  %v5920_v34 = vand.u32 4294901760, %v5919_v19  ;;  %v5807_v63 = vsub.f32 %v14863_v59, %v18406_v30  ;;  %v18407_v52 = vand.u32 4294901760, %v14871_v33  ;;  %v18411_v60 = vld [vmem:[#allocation32_spill] sm:$0xff] }
 0x2ab   :  { %10237 = vmatpush3.bf16.msra.mxu1 %v18366_v2  ;;  %v5787_v2 = vand.u32 4294901760, %v5786_v4  ;;  %v10278_v20 = vpack.c.bf16 %v5906_v57, %v5899_v5  ;;  %v18410_v19 = vand.u32 4294901760, %v14765_v6  ;;  %v18412_v18 = vand.u32 4294901760, %v18411_v60  ;;  %v18415_v57 = vld [vmem:[#allocation95_spill] sm:$0xff] }
 0x2ac   :  { %10239 = vmatprep.subr.bf16.mxu1 %v18368_v10  ;;  %10209 = vmatpush3.bf16.msra.mxu0 %v18400_v56  ;;  %v5794_v10 = vand.u32 4294901760, %v5793_v14  ;;  %v18405_v56 = vand.u32 4294901760, %v14858_v47  ;;  %v5926_v4 = vsub.f32 %v14871_v33, %v18407_v52  ;;  %v18408_v14 = vand.u32 4294901760, %v14886_v40 }
 0x2ad   :  { %10211 = vmatprep.subr.bf16.mxu0 %v18404_v7  ;;  %v15334_v11 = vpack.c.bf16 %v18412_v18, %v18410_v19  ;;  %v5770_v50 = vand.u32 4294901760, %v5769_v43  ;;  %v18416_v7 = vand.u32 4294901760, %v18415_v57  ;;  %v10282_v52 = vpack.c.bf16 %v5920_v34, %v5913_v42  ;;  %v18421_v34 = vld [vmem:[#allocation22_spill] sm:$0xff] }
 0x2ae   :  { %v5800_v22 = vsub.f32 %v14858_v47, %v18405_v56  ;;  %v5933_v44 = vsub.f32 %v14886_v40, %v18408_v14  ;;  %v10280_v30 = vpack.c.bf16 %v5794_v10, %v5787_v2  ;;  %v18417_v6 = vand.u32 4294901760, %v14891_v36 }
 0x2af   :  { %10241 = vmatpush3.bf16.msra.mxu1 %v14744_v53  ;;  %v18409_v53 = vld [vmem:[#allocation70_spill] sm:$0xff]  ;;  %v18418_v43 = vand.u32 4294901760, %v14903_v39  ;;  %v5927_v18 = vand.u32 4294901760, %v5926_v4  ;;  %v18419_v2 = vand.u32 4294901760, %v14935_v27  ;;  %v18427_v4 = vld [vmem:[#allocation40_spill] sm:$0xff] }
 0x2b0   :  { %10243 = vmatprep.subr.bf16.mxu1 %v14751_v24  ;;  %10213 = vmatpush3.bf16.msra.mxu0 %v18409_v53  ;;  %v18413_v24 = vld [vmem:[#allocation93_spill] sm:$0xff]  ;;  %v5801_v14 = vand.u32 4294901760, %v5800_v22  ;;  %v5808_v53 = vand.u32 4294901760, %v5807_v63  ;;  %v5814_v19 = vsub.f32 %v14891_v36, %v18417_v6  ;;  %v18422_v22 = vand.u32 4294901760, %v18421_v34  ;;  %v18423_v63 = vld [vmem:[#allocation20_spill] sm:$0xff] }
 0x2b1   :  { %10247 = vmatprep.subr.bf16.mxu0 %v15309_v49  ;;  %v18414_v5 = vand.u32 4294901760, %v18413_v24  ;;  %v5821_v60 = vsub.f32 %v14903_v39, %v18418_v43  ;;  %v5934_v24 = vand.u32 4294901760, %v5933_v44  ;;  %v5940_v10 = vsub.f32 %v14935_v27, %v18419_v2  ;;  %v18429_v43 = vld [vmem:[#allocation69_spill] sm:$0xff] }
 0x2b2   :  { %v18428_v44 = vand.u32 4294901760, %v18427_v4  ;;  %v18430_v2 = vand.u32 4294901760, %v18429_v43 }
 0x2b3   :  { %v15341_v56 = vpack.c.bf16 %v18416_v7, %v18414_v5  ;;  %10245 = vmatpush3.bf16.msra.mxu1 %v14773_v26  ;;  %5561 = vmatmul.mubr.f32.vlgmr.msra.gmra.mrb[34].mxu0 %v14685_v46  ;;  %v18420_v26 = vand.u32 4294901760, %v14950_v62  ;;  %v18424_v5 = vand.u32 4294901760, %v18423_v63  ;;  %v18425_v7 = vld [vmem:[#allocation46_spill] sm:$0xff]  ;;  %v18433_v63 = vld [vmem:[#allocation21_spill] sm:$0xff]  ;;  %v5941_v3 = vand.u32 4294901760, %v5940_v10 }
 0x2b4   :  { %10279 = vmatprep.subr.bf16.mxu1 %v10278_v20  ;;  %10249 = vmatpush3.bf16.msra.mxu0 %v15334_v11  ;;  %v18426_v20 = vand.u32 4294901760, %v18425_v7  ;;  %v5828_v58 = vsub.f32 %v18429_v43, %v18430_v2  ;;  %v5815_v2 = vand.u32 4294901760, %v5814_v19 }
 0x2b5   :  { %v5947_v42 = vsub.f32 %v14950_v62, %v18420_v26  ;;  %v15362_v57 = vpack.c.bf16 %v18424_v5, %v18422_v22  ;;  %5771 = vmatprep.mubr.f32.mxu0 %v5770_v50  ;;  %10251 = vmatprep.subr.bf16.mxu0 %v15341_v56  ;;  %v18431_v26 = vld [vmem:[#allocation15_spill] sm:$0xff]  ;;  %v18434_v5 = vand.u32 4294901760, %v18433_v63  ;;  %v5822_v50 = vand.u32 4294901760, %v5821_v60 }
 0x2b6   :  { %v15368_v6 = vpack.c.bf16 %v18428_v44, %v18426_v20  ;;  %5665 = vmatmul.mubr.f32.vlgmr.msra.gmra.mrb[34].mxu1 %v14685_v46  ;;  %v18432_v34 = vand.u32 4294901760, %v18431_v26  ;;  %v18435_v20 = vand.u32 4294901760, %v15007_v32  ;;  %v10284_v44 = vpack.c.bf16 %v5808_v53, %v5801_v14 }
 0x2b7   :  { %v5954_v7 = vsub.f32 %v18433_v63, %v18434_v5  ;;  %10281 = vmatpush3.bf16.msra.mxu1 %v10280_v30  ;;  %6007 = vmatprep.mubr.f32.mxu1 %v15267_v16  ;;  %v10286_v46 = vpack.c.bf16 %v5934_v24, %v5927_v18  ;;  %v5948_v37 = vand.u32 4294901760, %v5947_v42  ;;  %v18439_v5 = vand.u32 4294901760, %v18438_v61  ;;  %v18442_v30 = vld [vmem:[#allocation31_spill] sm:$0xff] }
 0x2b8   :  { %v5835_v22 = vsub.f32 %v18431_v26, %v18432_v34  ;;  %v5961_v4 = vsub.f32 %v15007_v32, %v18435_v20  ;;  %10283 = vmatprep.subr.bf16.mxu1 %v10282_v52  ;;  %10253 = vmatpush3.bf16.msra.mxu0 %v15362_v57  ;;  %v18436_v34 = vld [vmem:[#allocation38_spill] sm:$0xff]  ;;  %v18440_v26 = vld [vmem:[#allocation47_spill] sm:$0xff]  ;;  %v18443_v14 = vand.u32 4294901760, %v18442_v30  ;;  %v5829_v19 = vand.u32 4294901760, %v5828_v58 }
 0x2b9   :  { %v18437_v35 = vand.u32 4294901760, %v18436_v34  ;;  %v18441_v20 = vand.u32 4294901760, %v18440_v26  ;;  %10255 = vmatprep.subr.bf16.mxu0 %v15368_v6  ;;  %v5955_v60 = vand.u32 4294901760, %v5954_v7  ;;  %v478_v24 = vcombine.low %v15252_v38, %v15255_v17  ;;  %v18448_v7 = vld [vmem:[#allocation75_spill] sm:$0xff] }
 0x2ba   :  { %v5836_v52 = vand.u32 4294901760, %v5835_v22  ;;  %v5962_v18 = vand.u32 4294901760, %v5961_v4  ;;  %v10288_v10 = vpack.c.bf16 %v5822_v50, %v5815_v2  ;;  %v18446_v42 = vand.u32 4294901760, %v15027_v54  ;;  %v18450_v38 = vld [vmem:[#allocation51_spill] sm:$0xff]  ;;  %v18452_v2 = vld [vmem:[#allocation53_spill] sm:$0xff] }
 0x2bb   :  { %v15390_v63 = vpack.c.bf16 %v18439_v5, %v18437_v35  ;;  %v15396_v53 = vpack.c.bf16 %v18443_v14, %v18441_v20  ;;  %10285 = vmatpush3.bf16.msra.mxu1 %v10284_v44  ;;  %v18445_v35 = vand.u32 4294901760, %v15022_v21  ;;  %v10290_v58 = vpack.c.bf16 %v5948_v37, %v5941_v3  ;;  %v18457_v37 = vld [vmem:[#allocation62_spill] sm:$0xff] }
 0x2bc   :  { %v5849_v26 = vsub.f32 %v15027_v54, %v18446_v42  ;;  %10287 = vmatprep.subr.bf16.mxu1 %v10286_v46  ;;  %v18447_v34 = vand.u32 4294901760, %v15056_v23  ;;  %v18449_v4 = vand.u32 4294901760, %v18448_v7  ;;  %v18451_v44 = vand.u32 4294901760, %v18450_v38  ;;  %v18455_v46 = vld [vmem:[#allocation18_spill] sm:$0xff]  ;;  %v18460_v38 = vld [vmem:[#allocation83_spill] sm:$0xff] }
 0x2bd   :  { %18444 = vst [vmem:[#allocation33_spill] sm:$0xff] %v15396_v53  ;;  %v5842_v61 = vsub.f32 %v15022_v21, %v18445_v35  ;;  %10257 = vmatpush3.bf16.msra.mxu0 %v15390_v63  ;;  %v18453_v50 = vand.u32 4294901760, %v18452_v2  ;;  %v18456_v3 = vand.u32 4294901760, %v18455_v46  ;;  %v18458_v20 = vand.u32 4294901760, %v18457_v37  ;;  %v18462_v2 = vld [vmem:[#allocation87_spill] sm:$0xff] }
 0x2be   :  { %v5968_v22 = vsub.f32 %v15056_v23, %v18447_v34  ;;  %v5975_v17 = vsub.f32 %v18448_v7, %v18449_v4  ;;  %10259 = vmatprep.subr.bf16.mxu0 %v15396_v53  ;;  %v10292_v14 = vpack.c.bf16 %v5836_v52, %v5829_v19  ;;  %v10294_v35 = vpack.c.bf16 %v5962_v18, %v5955_v60  ;;  %v18466_v18 = vld [vmem:[#allocation27_spill] sm:$0xff] }
 0x2bf   :  { %v15418_v5 = vpack.c.bf16 %v18453_v50, %v18451_v44  ;;  %v15425_v30 = vpack.c.bf16 %v18458_v20, %v18456_v3  ;;  %v15427_v42 = vand.u32 4294901760, %v478_v24  ;;  %10289 = vmatpush3.bf16.msra.mxu1 %v10288_v10  ;;  %v5843_v34 = vand.u32 4294901760, %v5842_v61 }
 0x2c0   :  { %v5850_v4 = vand.u32 4294901760, %v5849_v26  ;;  %v18461_v16 = vand.u32 4294901760, %v18460_v38  ;;  %v18463_v50 = vand.u32 4294901760, %v18462_v2  ;;  %10291 = vmatprep.subr.bf16.mxu1 %v10290_v58  ;;  %v5969_v46 = vand.u32 4294901760, %v5968_v22 }
 0x2c1   :  { %18454 = vst [vmem:[#allocation42_spill] sm:$0xff] %v15418_v5  ;;  %18459 = vst [vmem:[#allocation67_spill] sm:$0xff] %v15425_v30  ;;  %v5976_v37 = vand.u32 4294901760, %v5975_v17  ;;  %v18464_v3 = vand.u32 4294901760, %v15122_v15  ;;  %v18465_v52 = vand.u32 4294901760, %v15127_v31  ;;  %10261 = vmatpush3.bf16.msra.mxu0 %v15418_v5  ;;  %v18467_v10 = vand.u32 4294901760, %v18466_v18 }
 0x2c2   :  { %v5856_v44 = vsub.f32 %v18460_v38, %v18461_v16  ;;  %v5863_v7 = vsub.f32 %v18462_v2, %v18463_v50  ;;  %v18468_v16 = vld [vmem:[#allocation34_spill] sm:$0xff]  ;;  %v18470_v58 = vand.u32 4294901760, %v15138_v29  ;;  %v18471_v17 = vand.u32 4294901760, %v15143_v45  ;;  %10263 = vmatprep.subr.bf16.mxu0 %v15425_v30  ;;  %v18479_v5 = vld [vmem:[#allocation39_spill] sm:$0xff]  ;;  %v18485_v30 = vld [vmem:[#allocation64_spill] sm:$0xff] }
 0x2c3   :  { %v5982_v19 = vsub.f32 %v15122_v15, %v18464_v3  ;;  %v5989_v60 = vsub.f32 %v15127_v31, %v18465_v52  ;;  %v18469_v61 = vand.u32 4294901760, %v18468_v16  ;;  %v18472_v50 = vand.u32 4294901760, %v15152_v51  ;;  %v18473_v52 = vld [vmem:[#allocation78_spill] sm:$0xff]  ;;  %v18475_v31 = vld [vmem:[#allocation60_spill] sm:$0xff]  ;;  %10293 = vmatpush3.bf16.msra.mxu1 %v10292_v14 }
 0x2c4   :  { %v5870_v22 = vsub.f32 %v15138_v29, %v18470_v58  ;;  %v5877_v20 = vsub.f32 %v15143_v45, %v18471_v17  ;;  %v18474_v18 = vand.u32 4294901760, %v18473_v52  ;;  %v18476_v16 = vand.u32 4294901760, %v18475_v31  ;;  %10295 = vmatprep.subr.bf16.mxu1 %v10294_v35 }
 0x2c5   :  { %v15446_v26 = vpack.c.bf16 %v18469_v61, %v18467_v10  ;;  %v5996_v3 = vsub.f32 %v15152_v51, %v18472_v50  ;;  %v18477_v61 = vld [vmem:[#allocation25_spill] sm:$0xff]  ;;  %v18480_v58 = vand.u32 4294901760, %v18479_v5  ;;  %v15471_v17 = vsub.f32 %v478_v24, %v15427_v42  ;;  %v18483_v51 = vld [vmem:[#allocation63_spill] sm:$0xff] }
 0x2c6   :  { %v15462_v10 = vpack.c.bf16 %v18476_v16, %v18474_v18  ;;  %v18478_v15 = vand.u32 4294901760, %v18477_v61  ;;  %v18482_v45 = vand.u32 4294901760, %v15164_v41  ;;  %v18484_v52 = vand.u32 4294901760, %v18483_v51  ;;  %v18492_v51 = vld [vmem:[#allocation73_spill] sm:$0xff] }
 0x2c7   :  { %v18486_v31 = vand.u32 4294901760, %v18485_v30  ;;  %v10296_v16 = vpack.c.bf16 %v5850_v4, %v5843_v34  ;;  %v5857_v61 = vand.u32 4294901760, %v5856_v44  ;;  %v5864_v2 = vand.u32 4294901760, %v5863_v7  ;;  %10265 = vmatpush3.bf16.msra.mxu0 %v15446_v26  ;;  %v18494_v30 = vld [vmem:[#allocation44_spill] sm:$0xff]  ;;  %v15495_v4 = vld [vmem:[#allocation5 + $0x780] sm:$0xff]  ;;  %v15497_v44 = vld [vmem:[#allocation5 + $0x788] sm:$0xff] }
 0x2c8   :  { %v15468_v29 = vpack.c.bf16 %v18480_v58, %v18478_v15  ;;  %v6003_v50 = vsub.f32 %v15164_v41, %v18482_v45  ;;  %v18488_v15 = vld [vmem:[#allocation19_spill] sm:$0xff]  ;;  %v18490_v58 = vld [vmem:[#allocation65_spill] sm:$0xff]  ;;  %v10298_v23 = vpack.c.bf16 %v5976_v37, %v5969_v46  ;;  %v5983_v53 = vand.u32 4294901760, %v5982_v19  ;;  %10267 = vmatprep.subr.bf16.mxu0 %v15462_v10 }
 0x2c9   :  { %v15480_v18 = vpack.c.bf16 %v18486_v31, %v18484_v52  ;;  %v18489_v5 = vand.u32 4294901760, %v18488_v15  ;;  %v18491_v24 = vand.u32 4294901760, %v18490_v58  ;;  %v5990_v45 = vand.u32 4294901760, %v5989_v60  ;;  %10297 = vmatpush3.bf16.msra.mxu1 %v10296_v16  ;;  %v18499_v58 = vld [vmem:[#allocation98_spill] sm:$0xff] }
 0x2ca   :  { %18481 = vst [vmem:[#allocation30_spill] sm:$0xff] %v15468_v29  ;;  %v18493_v14 = vand.u32 4294901760, %v18492_v51  ;;  %v18495_v52 = vand.u32 4294901760, %v18494_v30  ;;  %v5871_v34 = vand.u32 4294901760, %v5870_v22  ;;  %v5878_v7 = vand.u32 4294901760, %v5877_v20  ;;  %v15507_v22 = vld [vmem:[#allocation5 + $0x700] sm:$0xff]  ;;  %10299 = vmatprep.subr.bf16.mxu1 %v10298_v23 }
 0x2cb   :  { %18487 = vst [vmem:[#allocation14_spill] sm:$0xff] %v15480_v18  ;;  %v15486_v38 = vpack.c.bf16 %v18491_v24, %v18489_v5  ;;  %v5997_v35 = vand.u32 4294901760, %v5996_v3  ;;  %v6004_v37 = vand.u32 4294901760, %v6003_v50  ;;  %v18496_v19 = vand.u32 4294901760, %v15176_v28  ;;  %v15509_v20 = vld [vmem:[#allocation5 + $0x708] sm:$0xff]  ;;  %v8216_v3 = vpop.f32.mrb[22].mxu0  ;;  %10269 = vmatpush3.bf16.msra.mxu0 %v15468_v29 }
 0x2cc   :  { %v15493_v31 = vpack.c.bf16 %v18495_v52, %v18493_v14  ;;  %v18497_v15 = vand.u32 4294901760, %v15181_v8  ;;  %18498 = vst [vmem:[#allocation26_spill] sm:$0xff] %v15509_v20  ;;  %v18500_v24 = vand.u32 4294901760, %v18499_v58  ;;  %v18501_v51 = vld [vmem:[#allocation90_spill] sm:$0xff]  ;;  %v10300_v50 = vpack.c.bf16 %v5864_v2, %v5857_v61  ;;  %v8251_v61 = vpop.f32.mrb[22].mxu1  ;;  %10271 = vmatprep.subr.bf16.mxu0 %v15480_v18  ;;  %v15545_v29 = vld [vmem:[#allocation5 + $0x7a8] sm:$0xff] }
 0x2cd   :  { %v5884_v60 = vsub.f32 %v15176_v28, %v18496_v19  ;;  %v18502_v14 = vand.u32 4294901760, %v18501_v51  ;;  %v10302_v46 = vpack.c.bf16 %v5990_v45, %v5983_v53  ;;  %v15525_v51 = vld [vmem:[#allocation5 + $0x790] sm:$0xff]  ;;  %v15534_v45 = vld [vmem:[#allocation5 + $0x718] sm:$0xff]  ;;  %v18507_v52 = vand.u32 4294901760, %v15471_v17  ;;  %v15540_v28 = vld [vmem:[#allocation5 + $0x7a0] sm:$0xff]  ;;  %18509 = vst [vmem:[#allocation88_spill] sm:$0xff] %v15545_v29 }
 0x2ce   :  { %v5891_v5 = vsub.f32 %v15181_v8, %v18497_v15  ;;  %v8217_v15 = vpop.f32.mrb[23].mxu0  ;;  %18503 = vst [vmem:[#allocation66_spill] sm:$0xff] %v15525_v51  ;;  %v15532_v53 = vld [vmem:[#allocation5 + $0x710] sm:$0xff]  ;;  %18506 = vst [vmem:[#allocation36_spill] sm:$0xff] %v15534_v45  ;;  %v8252_v8 = vpop.f32.mrb[23].mxu1  ;;  %10301 = vmatpush3.bf16.msra.mxu1 %v10300_v50  ;;  %v16858_v23 = vand.u32 4294901760, %v15525_v51 }
 0x2cf   :  { %v15515_v30 = vpack.c.bf16 %v18502_v14, %v18500_v24  ;;  %v15527_v24 = vld [vmem:[#allocation5 + $0x798] sm:$0xff]  ;;  %v8218_v2 = vadd.f32 %v8217_v15, %v8216_v3  ;;  %v10304_v14 = vpack.c.bf16 %v5878_v7, %v5871_v34  ;;  %18505 = vst [vmem:[#allocation72_spill] sm:$0xff] %v15532_v53  ;;  %v5775_v58 = vsub.f32 %v15471_v17, %v18507_v52  ;;  %v15547_v18 = vld [vmem:[#allocation5 + $0x720] sm:$0xff]  ;;  %v15582_v19 = vld [vmem:[#allocation5 + $0x7b0] sm:$0xff] }
 0x2d0   :  { %18504 = vst [vmem:[#allocation74_spill] sm:$0xff] %v15527_v24  ;;  %v10306_v3 = vpack.c.bf16 %v6004_v37, %v5997_v35  ;;  %v5885_v15 = vand.u32 4294901760, %v5884_v60  ;;  %v5892_v16 = vand.u32 4294901760, %v5891_v5  ;;  %18508 = vst [vmem:[#allocation84_spill] sm:$0xff] %v15540_v28  ;;  %v8253_v7 = vadd.f32 %v8252_v8, %v8251_v61  ;;  %10303 = vmatprep.subr.bf16.mxu1 %v10302_v46  ;;  %v15561_v5 = vld [vmem:[#allocation5 + $0x728] sm:$0xff] }
 0x2d1   :  { %v3839_v34 = vadd.f32 %v8218_v2, %v15303_v55  ;;  %18510 = vst [vmem:[#allocation45_spill] sm:$0xff] %v15547_v18  ;;  %v18511_v52 = vand.u32 4294901760, %v15495_v4  ;;  %v18512_v37 = vand.u32 4294901760, %v15497_v44  ;;  %18513 = vst [vmem:[#allocation52_spill] sm:$0xff] %v15561_v5  ;;  %10273 = vmatpush3.bf16.msra.mxu0 %v15486_v38  ;;  %v18514_v46 = vand.u32 4294901760, %v15507_v22 }
 0x2d2   :  { %v18515_v61 = vand.u32 4294901760, %v15509_v20  ;;  %10275 = vmatprep.subr.bf16.mxu0 %v15493_v31  ;;  %v5776_v60 = vand.u32 4294901760, %v5775_v58  ;;  %18516 = vst [vmem:[#allocation97_spill] sm:$0xff] %v15582_v19  ;;  %10305 = vmatpush3.bf16.msra.mxu1 %v10304_v14  ;;  %v18521_v8 = vand.u32 4294901760, %v15540_v28 }
 0x2d3   :  { %v15552_v35 = vsub.f32 %v15495_v4, %v18511_v52  ;;  %v15557_v55 = vsub.f32 %v15497_v44, %v18512_v37  ;;  %v15564_v50 = vadd.f32 %v8253_v7, %v3839_v34  ;;  %v15569_v2 = vsub.f32 %v15507_v22, %v18514_v46  ;;  %10307 = vmatprep.subr.bf16.mxu1 %v10306_v3 }
 0x2d4   :  { %v15574_v52 = vsub.f32 %v15509_v20, %v18515_v61  ;;  %v10308_v46 = vpack.c.bf16 %v5892_v16, %v5885_v15  ;;  %v15587_v61 = vsub.f32 %v15525_v51, %v16858_v23  ;;  %v18517_v37 = vand.u32 4294901760, %v15527_v24  ;;  %v15595_v20 = vld [vmem:[#allocation5 + $0x7b8] sm:$0xff] }
 0x2d5   :  { %18518 = vst [vmem:[#allocation16_spill] sm:$0xff] %v15595_v20  ;;  %v18519_v7 = vand.u32 4294901760, %v15532_v53  ;;  %v18520_v16 = vand.u32 4294901760, %v15534_v45  ;;  %10277 = vmatpush3.bf16.msra.mxu0 %v15515_v30  ;;  %v15613_v3 = vsub.f32 %v15540_v28, %v18521_v8  ;;  %v18525_v23 = vand.u32 4294901760, %v15545_v29 }
 0x2d6   :  { %v15592_v58 = vsub.f32 %v15527_v24, %v18517_v37  ;;  %v15618_v24 = vld [vmem:[#allocation5 + $0x730] sm:$0xff]  ;;  %v18524_v37 = vpack.c.bf16 %v14815_v13, %v14810_v48  ;;  %v18526_v8 = vand.u32 4294901760, %v15547_v18  ;;  %v18528_v28 = vand.u32 4294901760, %v15557_v55  ;;  %10309 = vmatpush3.bf16.msra.mxu1 %v10308_v46 }
 0x2d7   :  { %v15600_v14 = vsub.f32 %v15532_v53, %v18519_v7  ;;  %v15605_v15 = vsub.f32 %v15534_v45, %v18520_v16  ;;  %18522 = vst [vmem:[#allocation23_spill] sm:$0xff] %v15618_v24  ;;  %v15620_v16 = vld [vmem:[#allocation5 + $0x738] sm:$0xff]  ;;  %v15628_v45 = vsub.f32 %v15545_v29, %v18525_v23  ;;  %v18527_v7 = vand.u32 4294901760, %v15552_v35  ;;  %10343 = vmatprep.subr.bf16.mxu1 %v15309_v49  ;;  %v15664_v23 = vld [vmem:[#allocation5 + $0x740] sm:$0xff] }
 0x2d8   :  { %18523 = vst [vmem:[#allocation55_spill] sm:$0xff] %v15620_v16  ;;  %10311 = vmatprep.subr.bf16.mxu0 %v18524_v37  ;;  %v15633_v34 = vsub.f32 %v15547_v18, %v18526_v8  ;;  %v18530_v48 = vand.u32 4294901760, %v15561_v5  ;;  %v15649_v8 = vld [vmem:[#allocation5 + $0x7c0] sm:$0xff]  ;;  %v15651_v18 = vld [vmem:[#allocation5 + $0x7c8] sm:$0xff]  ;;  %v18533_v53 = vand.u32 4294901760, %v15569_v2  ;;  %v18534_v29 = vand.u32 4294901760, %v15574_v52  ;;  %5777 = vmatmul.mubr.f32.vlgmr.msra.gmra.mrb[36].mxu0 %v5776_v60 }
 0x2d9   :  { %v15640_v51 = vpack.c.bf16 %v18528_v28, %v18527_v7  ;;  %18531 = vst [vmem:[#allocation61_spill] sm:$0xff] %v15649_v8  ;;  %18532 = vst [vmem:[#allocation82_spill] sm:$0xff] %v15651_v18  ;;  %6144 = vmatprep.mubr.f32.mxu0 %v15274_v0  ;;  %v18540_v7 = vand.u32 4294901760, %v15587_v61  ;;  %v18541_v46 = vand.u32 4294901760, %v15592_v58  ;;  %6009 = vmatmul.mubr.f32.vlgmr.msra.gmra.mrb[36].mxu1 %v15427_v42 }
 0x2da   :  { %v15645_v13 = vsub.f32 %v15561_v5, %v18530_v48  ;;  %v15657_v28 = vpack.c.bf16 %v18534_v29, %v18533_v53  ;;  %v16867_v48 = vand.u32 4294901760, %v15600_v14  ;;  %18536 = vst [vmem:[#allocation70_spill] sm:$0xff] %v15664_v23  ;;  %v18538_v5 = vpack.c.bf16 %v14832_v12, %v14827_v1  ;;  %10345 = vmatpush3.bf16.msra.mxu1 %v15334_v11 }
 0x2db   :  { %18529 = vst [vmem:[#allocation59_spill] sm:$0xff] %v15640_v51  ;;  %v15666_v51 = vld [vmem:[#allocation5 + $0x748] sm:$0xff]  ;;  %v10318_v29 = vpack.c.bf16 %v14886_v40, %v14871_v33  ;;  %v18539_v53 = vand.u32 4294901760, %v15582_v19  ;;  %v15683_v37 = vpack.c.bf16 %v18541_v46, %v18540_v7  ;;  %v18543_v1 = vpack.c.bf16 %v14850_v25, %v14845_v9  ;;  %10347 = vmatprep.subr.bf16.mxu1 %v15341_v56  ;;  %v15731_v25 = vld [vmem:[#allocation5 + $0x7d8] sm:$0xff] }
 0x2dc   :  { %18535 = vst [vmem:[#allocation68_spill] sm:$0xff] %v15657_v28  ;;  %18537 = vst [vmem:[#allocation32_spill] sm:$0xff] %v15666_v51  ;;  %10313 = vmatpush3.bf16.msra.mxu0 %v18538_v5  ;;  %v18544_v40 = vand.u32 4294901760, %v15595_v20  ;;  %v18545_v46 = vand.u32 4294901760, %v15605_v15  ;;  %v18547_v9 = vand.u32 4294901760, %v15274_v0  ;;  %v15709_v5 = vld [vmem:[#allocation5 + $0x7d0] sm:$0xff] }
 0x2dd   :  { %v15677_v60 = vsub.f32 %v15582_v19, %v18539_v53  ;;  %18542 = vst [vmem:[#allocation93_spill] sm:$0xff] %v15683_v37  ;;  %10315 = vmatprep.subr.bf16.mxu0 %v18543_v1  ;;  %18548 = vst [vmem:[#allocation22_spill] sm:$0xff] %v15709_v5  ;;  %v18551_v0 = vand.u32 4294901760, %v15620_v16  ;;  %v16868_v1 = vand.u32 4294901760, %v15645_v13  ;;  %v10320_v53 = vpack.c.bf16 %v14903_v39, %v14891_v36  ;;  %v15778_v28 = vld [vmem:[#allocation5 + $0x7e0] sm:$0xff]  ;;  %v18602_v19 = vld [vmem:[#allocation83_spill] sm:$0xff] }
 0x2de   :  { %v15692_v12 = vsub.f32 %v15595_v20, %v18544_v40  ;;  %v15700_v7 = vpack.c.bf16 %v18545_v46, %v16867_v48  ;;  %6251 = vmatprep.mubr.f32.mxu1 %v18547_v9  ;;  %v18549_v46 = vand.u32 4294901760, %v15618_v24  ;;  %v18553_v40 = vpack.c.bf16 %v14863_v59, %v14858_v47  ;;  %18554 = vst [vmem:[#allocation40_spill] sm:$0xff] %v15731_v25 }
 0x2df   :  { %v15720_v9 = vsub.f32 %v15620_v16, %v18551_v0  ;;  %v18556_v0 = vand.u32 4294901760, %v15613_v3  ;;  %v18557_v33 = vand.u32 4294901760, %v15628_v45  ;;  %v18559_v47 = vand.u32 4294901760, %v15649_v8  ;;  %10349 = vmatpush3.bf16.msra.mxu1 %v15362_v57  ;;  %18569 = vst [vmem:[#allocation18_spill] sm:$0xff] %v15778_v28  ;;  %v15839_v16 = vld [vmem:[#allocation5 + $0x770] sm:$0xff] }
 0x2e0   :  { %18546 = vst [vmem:[#allocation95_spill] sm:$0xff] %v15700_v7  ;;  %v15715_v48 = vsub.f32 %v15618_v24, %v18549_v46  ;;  %10317 = vmatpush3.bf16.msra.mxu0 %v18553_v40  ;;  %v10322_v46 = vpack.c.bf16 %v14950_v62, %v14935_v27  ;;  %v15733_v7 = vld [vmem:[#allocation5 + $0x750] sm:$0xff]  ;;  %v18561_v36 = vand.u32 4294901760, %v15651_v18  ;;  %v15752_v62 = vld [vmem:[#allocation5 + $0x758] sm:$0xff]  ;;  %v18563_v40 = vand.u32 4294901760, %v15633_v34  ;;  %10351 = vmatprep.subr.bf16.mxu1 %v15368_v6  ;;  %v18598_v24 = vld [vmem:[#allocation75_spill] sm:$0xff] }
 0x2e1   :  { %18552 = vst [vmem:[#allocation46_spill] sm:$0xff] %v15720_v9  ;;  %18555 = vst [vmem:[#allocation69_spill] sm:$0xff] %v15733_v7  ;;  %v15739_v37 = vpack.c.bf16 %v18557_v33, %v18556_v0  ;;  %10319 = vmatprep.subr.bf16.mxu0 %v10318_v29  ;;  %v15744_v59 = vsub.f32 %v15649_v8, %v18559_v47  ;;  %v18565_v29 = vand.u32 4294901760, %v15664_v23  ;;  %v18567_v47 = vand.u32 4294901760, %v15666_v51 }
 0x2e2   :  { %18550 = vst [vmem:[#allocation20_spill] sm:$0xff] %v15715_v48  ;;  %v15749_v39 = vsub.f32 %v15651_v18, %v18561_v36  ;;  %18562 = vst [vmem:[#allocation47_spill] sm:$0xff] %v15752_v62  ;;  %v15758_v33 = vpack.c.bf16 %v16868_v1, %v18563_v40  ;;  %v18573_v40 = vand.u32 4294901760, %v15692_v12  ;;  %v18575_v1 = vld [vmem:[#allocation21_spill] sm:$0xff] }
 0x2e3   :  { %18558 = vst [vmem:[#allocation38_spill] sm:$0xff] %v15739_v37  ;;  %18560 = vst [vmem:[#allocation41_spill] sm:$0xff] %v15744_v59  ;;  %v15764_v0 = vsub.f32 %v15664_v23, %v18565_v29  ;;  %v15769_v36 = vsub.f32 %v15666_v51, %v18567_v47  ;;  %v15780_v23 = vld [vmem:[#allocation5 + $0x7e8] sm:$0xff]  ;;  %v18572_v51 = vand.u32 4294901760, %v15677_v60  ;;  %v10326_v29 = vpack.c.bf16 %v15007_v32, %v18575_v1 }
 0x2e4   :  { %18564 = vst [vmem:[#allocation31_spill] sm:$0xff] %v15758_v33  ;;  %18570 = vst [vmem:[#allocation62_spill] sm:$0xff] %v15780_v23  ;;  %10321 = vmatpush3.bf16.msra.mxu0 %v10320_v53  ;;  %v18571_v47 = vld [vmem:[#allocation15_spill] sm:$0xff]  ;;  %v10328_v33 = vpack.c.bf16 %v15027_v54, %v15022_v21  ;;  %v18576_v53 = vand.u32 4294901760, %v15709_v5  ;;  %v18580_v37 = vand.u32 4294901760, %v15715_v48  ;;  %10353 = vmatpush3.bf16.msra.mxu1 %v15390_v63  ;;  %v15830_v54 = vld [vmem:[#allocation5 + $0x7f8] sm:$0xff] }
 0x2e5   :  { %18566 = vst [vmem:[#allocation51_spill] sm:$0xff] %v15764_v0  ;;  %18568 = vst [vmem:[#allocation53_spill] sm:$0xff] %v15769_v36  ;;  %v10324_v27 = vpack.c.bf16 %v18571_v47, %v18429_v43  ;;  %v15789_v18 = vpack.c.bf16 %v18573_v40, %v18572_v51  ;;  %10323 = vmatprep.subr.bf16.mxu0 %v10322_v46  ;;  %v15800_v43 = vld [vmem:[#allocation5 + $0x760] sm:$0xff]  ;;  %v15802_v47 = vld [vmem:[#allocation5 + $0x768] sm:$0xff]  ;;  %v18581_v51 = vand.u32 4294901760, %v15720_v9  ;;  %v18590_v1 = vand.u32 4294901760, %v15752_v62 }
 0x2e6   :  { %v15798_v8 = vsub.f32 %v15709_v5, %v18576_v53  ;;  %18578 = vst [vmem:[#allocation78_spill] sm:$0xff] %v15800_v43  ;;  %18579 = vst [vmem:[#allocation60_spill] sm:$0xff] %v15802_v47  ;;  %v15815_v40 = vld [vmem:[#allocation5 + $0x7f0] sm:$0xff]  ;;  %v18584_v53 = vld [vmem:[#allocation33_spill] sm:$0xff]  ;;  %v18594_v21 = vand.u32 4294901760, %v15744_v59  ;;  %v18595_v32 = vand.u32 4294901760, %v15749_v39 }
 0x2e7   :  { %18574 = vst [vmem:[#allocation27_spill] sm:$0xff] %v15789_v18  ;;  %v15808_v46 = vpack.c.bf16 %v18581_v51, %v18580_v37  ;;  %18583 = vst [vmem:[#allocation39_spill] sm:$0xff] %v15815_v40  ;;  %10355 = vmatprep.subr.bf16.mxu1 %v18584_v53  ;;  %v18585_v18 = vand.u32 4294901760, %v15731_v25  ;;  %v18587_v37 = vand.u32 4294901760, %v15733_v7  ;;  %v18603_v9 = vld [vmem:[#allocation87_spill] sm:$0xff]  ;;  %v18604_v59 = vld [vmem:[#allocation42_spill] sm:$0xff] }
 0x2e8   :  { %18577 = vst [vmem:[#allocation34_spill] sm:$0xff] %v15798_v8  ;;  %18589 = vst [vmem:[#allocation19_spill] sm:$0xff] %v15830_v54  ;;  %10325 = vmatpush3.bf16.msra.mxu0 %v10324_v27  ;;  %v18597_v27 = vld [vmem:[#allocation81_spill] sm:$0xff]  ;;  %v10332_v48 = vpack.c.bf16 %v18603_v9, %v18602_v19  ;;  %10357 = vmatpush3.bf16.msra.mxu1 %v18604_v59  ;;  %v18613_v19 = vld [vmem:[#allocation54_spill] sm:$0xff] }
 0x2e9   :  { %18582 = vst [vmem:[#allocation25_spill] sm:$0xff] %v15808_v46  ;;  %v15821_v5 = vsub.f32 %v15731_v25, %v18585_v18  ;;  %v15826_v51 = vsub.f32 %v15733_v7, %v18587_v37  ;;  %v15835_v46 = vsub.f32 %v15752_v62, %v18590_v1  ;;  %18592 = vst [vmem:[#allocation73_spill] sm:$0xff] %v15839_v16  ;;  %v15841_v37 = vld [vmem:[#allocation5 + $0x778] sm:$0xff]  ;;  %10327 = vmatprep.subr.bf16.mxu0 %v10326_v29  ;;  %v18609_v1 = vld [vmem:[#allocation67_spill] sm:$0xff] }
 0x2ea   :  { %18593 = vst [vmem:[#allocation44_spill] sm:$0xff] %v15841_v37  ;;  %v15847_v7 = vpack.c.bf16 %v18595_v32, %v18594_v21  ;;  %v10330_v20 = vpack.c.bf16 %v18598_v24, %v18597_v27  ;;  %v18599_v18 = vand.u32 4294901760, %v15764_v0  ;;  %v18600_v25 = vand.u32 4294901760, %v15769_v36  ;;  %10359 = vmatprep.subr.bf16.mxu1 %v18609_v1  ;;  %v18614_v9 = vld [vmem:[#allocation96_spill] sm:$0xff] }
 0x2eb   :  { %18586 = vst [vmem:[#allocation63_spill] sm:$0xff] %v15821_v5  ;;  %18588 = vst [vmem:[#allocation64_spill] sm:$0xff] %v15826_v51  ;;  %v18605_v32 = vand.u32 4294901760, %v15778_v28  ;;  %v18607_v24 = vand.u32 4294901760, %v15780_v23 }
 0x2ec   :  { %18591 = vst [vmem:[#allocation65_spill] sm:$0xff] %v15835_v46  ;;  %18596 = vst [vmem:[#allocation98_spill] sm:$0xff] %v15847_v7  ;;  %v15856_v62 = vpack.c.bf16 %v18600_v25, %v18599_v18  ;;  %10329 = vmatpush3.bf16.msra.mxu0 %v10328_v33  ;;  %v16893_v7 = vand.u32 4294901760, %v15826_v51  ;;  %v18615_v33 = vand.u32 4294901760, %v15815_v40  ;;  %10361 = vmatpush3.bf16.msra.mxu1 %v15446_v26  ;;  %v18620_v25 = vand.u32 4294901760, %v15830_v54 }
 0x2ed   :  { %v15864_v29 = vsub.f32 %v15778_v28, %v18605_v32  ;;  %v15869_v21 = vsub.f32 %v15780_v23, %v18607_v24  ;;  %v18610_v32 = vand.u32 4294901760, %v15800_v43  ;;  %v18611_v24 = vand.u32 4294901760, %v15802_v47  ;;  %10331 = vmatprep.subr.bf16.mxu0 %v10330_v20  ;;  %10363 = vmatprep.subr.bf16.mxu1 %v15462_v10 }
 0x2ee   :  { %18601 = vst [vmem:[#allocation90_spill] sm:$0xff] %v15856_v62  ;;  %v10334_v23 = vpack.c.bf16 %v18614_v9, %v18613_v19  ;;  %v15894_v18 = vsub.f32 %v15815_v40, %v18615_v33  ;;  %v15906_v20 = vsub.f32 %v15830_v54, %v18620_v25  ;;  %v18622_v19 = vand.u32 4294901760, %v15835_v46  ;;  %v8321_v46 = vpop.f32.mrb[24].mxu1 }
 0x2ef   :  { %18606 = vst [vmem:[#allocation15_spill] sm:$0xff] %v15864_v29  ;;  %18608 = vst [vmem:[#allocation21_spill] sm:$0xff] %v15869_v21  ;;  %v15880_v62 = vsub.f32 %v15800_v43, %v18610_v32  ;;  %v15885_v27 = vsub.f32 %v15802_v47, %v18611_v24  ;;  %v18617_v32 = vand.u32 4294901760, %v15798_v8  ;;  %v18618_v43 = vand.u32 4294901760, %v15821_v5  ;;  %v8286_v24 = vpop.f32.mrb[24].mxu0  ;;  %v18630_v5 = vld [vmem:[#allocation56_spill] sm:$0xff] }
 0x2f0   :  { %18616 = vst [vmem:[#allocation81_spill] sm:$0xff] %v15894_v18  ;;  %18621 = vst [vmem:[#allocation83_spill] sm:$0xff] %v15906_v20  ;;  %v15912_v9 = vpack.c.bf16 %v18622_v19, %v16893_v7  ;;  %v8287_v33 = vpop.f32.mrb[25].mxu0  ;;  %v16903_v25 = vand.u32 4294901760, %v15864_v29  ;;  %v16902_v54 = vand.u32 4294901760, %v15869_v21  ;;  %10333 = vmatpush3.bf16.msra.mxu0 %v10332_v48  ;;  %v18628_v19 = vld [vmem:[#allocation28_spill] sm:$0xff] }
 0x2f1   :  { %18612 = vst [vmem:[#allocation33_spill] sm:$0xff] %v15885_v27  ;;  %v15900_v28 = vpack.c.bf16 %v18618_v43, %v18617_v32  ;;  %v18624_v43 = vand.u32 4294901760, %v15839_v16  ;;  %v8288_v47 = vadd.f32 %v8287_v33, %v8286_v24  ;;  %v18629_v7 = vld [vmem:[#allocation12_spill] sm:$0xff]  ;;  %v16910_v51 = vand.u32 4294901760, %v15880_v62  ;;  %10335 = vmatprep.subr.bf16.mxu0 %v10334_v23  ;;  %v18632_v33 = vld [vmem:[#allocation30_spill] sm:$0xff] }
 0x2f2   :  { %18623 = vst [vmem:[#allocation87_spill] sm:$0xff] %v15912_v9  ;;  %v10336_v9 = vpack.c.bf16 %v18629_v7, %v18628_v19  ;;  %v15938_v48 = vpack.c.bf16 %v16902_v54, %v16903_v25  ;;  %10365 = vmatpush3.bf16.msra.mxu1 %v18632_v33  ;;  %v16907_v19 = vand.u32 4294901760, %v15906_v20  ;;  %v18634_v23 = vld [vmem:[#allocation14_spill] sm:$0xff] }
 0x2f3   :  { %18619 = vst [vmem:[#allocation75_spill] sm:$0xff] %v15900_v28  ;;  %v15918_v32 = vsub.f32 %v15839_v16, %v18624_v43  ;;  %v18626_v28 = vand.u32 4294901760, %v15841_v37  ;;  %v16904_v43 = vand.u32 4294901760, %v15885_v27  ;;  %v8322_v16 = vpop.f32.mrb[25].mxu1  ;;  %v4055_v7 = vadd.f32 %v8288_v47, %v15564_v50  ;;  %10367 = vmatprep.subr.bf16.mxu1 %v18634_v23  ;;  %v18635_v50 = vld [vmem:[#allocation89_spill] sm:$0xff] }
 0x2f4   :  { %18631 = vst [vmem:[#allocation54_spill] sm:$0xff] %v15938_v48  ;;  %v8323_v24 = vadd.f32 %v8322_v16, %v8321_v46  ;;  %10337 = vmatpush3.bf16.msra.mxu0 %v10336_v9  ;;  %v18636_v16 = vld [vmem:[#allocation77_spill] sm:$0xff]  ;;  %v18639_v9 = vld [vmem:[#allocation58_spill] sm:$0xff] }
 0x2f5   :  { %18625 = vst [vmem:[#allocation42_spill] sm:$0xff] %v15918_v32  ;;  %v15923_v40 = vsub.f32 %v15841_v37, %v18626_v28  ;;  %v10338_v28 = vpack.c.bf16 %v15164_v41, %v18630_v5  ;;  %v16908_v37 = vand.u32 4294901760, %v15894_v18  ;;  %v15947_v41 = vpack.c.bf16 %v16904_v43, %v16910_v51  ;;  %v18680_v51 = vld [vmem:[#allocation74_spill] sm:$0xff] }
 0x2f6   :  { %v16906_v5 = vand.u32 4294901760, %v15918_v32  ;;  %v4287_v25 = vadd.f32 %v8323_v24, %v4055_v7  ;;  %v10340_v47 = vpack.c.bf16 %v18636_v16, %v18635_v50  ;;  %10369 = vmatpush3.bf16.msra.mxu1 %v15486_v38  ;;  %v18641_v7 = vld [vmem:[#allocation24_spill] sm:$0xff]  ;;  %v18643_v50 = vld [vmem:[#allocation79_spill] sm:$0xff] }
 0x2f7   :  { %18627 = vst [vmem:[#allocation67_spill] sm:$0xff] %v15923_v40  ;;  %18633 = vst [vmem:[#allocation96_spill] sm:$0xff] %v15947_v41  ;;  %v16905_v54 = vand.u32 4294901760, %v15923_v40  ;;  %v15958_v46 = vpack.c.bf16 %v16907_v19, %v16908_v37  ;;  %10339 = vmatprep.subr.bf16.mxu0 %v10338_v28  ;;  %10371 = vmatprep.subr.bf16.mxu1 %v15493_v31  ;;  %v18640_v28 = vld [vmem:[#allocation80_spill] sm:$0xff]  ;;  %v18646_v37 = vld [vmem:[#allocation37_spill] sm:$0xff] }
 0x2f8   :  { %10341 = vmatpush3.bf16.msra.mxu0 %v10340_v47  ;;  %v18642_v24 = vld [vmem:[#allocation48_spill] sm:$0xff]  ;;  %v18647_v47 = vand.u32 4294901760, %v15471_v17 }
 0x2f9   :  { %18637 = vst [vmem:[#allocation28_spill] sm:$0xff] %v15958_v46  ;;  %v15964_v43 = vpack.c.bf16 %v16905_v54, %v16906_v5  ;;  %10375 = vmatprep.subr.bf16.mxu0 %v18639_v9  ;;  %v447_v16 = vcombine.high %v18643_v50, %v18642_v24  ;;  %v18644_v54 = vld [vmem:[#allocation35_spill] sm:$0xff]  ;;  %v18645_v5 = vld [vmem:[#allocation13_spill] sm:$0xff]  ;;  %v18658_v50 = vand.u32 4294901760, %v15552_v35 }
 0x2fa   :  { %10373 = vmatpush3.bf16.msra.mxu1 %v15515_v30  ;;  %v449_v19 = vcombine.high %v18645_v5, %v18644_v54  ;;  %v18649_v9 = vld [vmem:[#allocation11_spill] sm:$0xff]  ;;  %v18650_v54 = vld [vmem:[#allocation29_spill] sm:$0xff] }
 0x2fb   :  { %18638 = vst [vmem:[#allocation12_spill] sm:$0xff] %v15964_v43  ;;  %6147 = vmatmul.mubr.f32.vlgmr.msra.gmra.mrb[38].mxu0 %v15471_v17  ;;  %10407 = vmatprep.subr.bf16.mxu1 %v15309_v49  ;;  %v18648_v49 = vld [vmem:[#allocation76_spill] sm:$0xff]  ;;  %v18651_v17 = vld [vmem:[#allocation85_spill] sm:$0xff]  ;;  %v18655_v5 = vld [vmem:[#allocation91_spill] sm:$0xff] }
 0x2fc   :  { %10377 = vmatpush3.bf16.msra.mxu0 %v18640_v28  ;;  %6421 = vmatprep.mubr.f32.mxu0 %v18641_v7  ;;  %v15986_v28 = vrot.slane %v447_v16, %v18649_v9  ;;  %v15989_v24 = vrot.slane %v449_v19, %v18649_v9  ;;  %v6760_v16 = vsub.f32 %v15552_v35, %v18658_v50  ;;  %v18698_v46 = vld [vmem:[#allocation41_spill] sm:$0xff] }
 0x2fd   :  { %10379 = vmatprep.subr.bf16.mxu0 %v18646_v37  ;;  %6255 = vmatmul.mubr.f32.vlgmr.msra.gmra.mrb[38].mxu1 %v18647_v47  ;;  %v18653_v37 = vld [vmem:[#allocation43_spill] sm:$0xff] }
 0x2fe   :  { %10409 = vmatpush3.bf16.msra.mxu1 %v15334_v11  ;;  %6525 = vmatprep.mubr.f32.mxu1 %v18641_v7  ;;  %v481_v11 = vcombine.high %v15986_v28, %v15989_v24  ;;  %v18657_v7 = vld [vmem:[#allocation57_spill] sm:$0xff] }
 0x2ff   :  { %10411 = vmatprep.subr.bf16.mxu1 %v15341_v56  ;;  %v18652_v56 = vld [vmem:[#allocation71_spill] sm:$0xff] }
 0x300   :  { %10381 = vmatpush3.bf16.msra.mxu0 %v18648_v49  ;;  %v16001_v19 = vand.u32 4294901760, %v481_v11  ;;  %v18660_v49 = vld [vmem:[#allocation86_spill] sm:$0xff]  ;;  %v8391_v9 = vpop.f32.mrb[26].mxu1 }
 0x301   :  { %10383 = vmatprep.subr.bf16.mxu0 %v18650_v54 }
 0x302   :  { %10413 = vmatpush3.bf16.msra.mxu1 %v15362_v57  ;;  %18654 = vst [vmem:[#allocation56_spill] sm:$0xff] %v16001_v19  ;;  %v18656_v57 = vld [vmem:[#allocation92_spill] sm:$0xff] }
 0x303   :  { %10415 = vmatprep.subr.bf16.mxu1 %v15368_v6  ;;  %v16008_v6 = vsub.f32 %v481_v11, %v16001_v19  ;;  %v18662_v11 = vand.u32 4294901760, %v15569_v2 }
 0x304   :  { %10385 = vmatpush3.bf16.msra.mxu0 %v18651_v17  ;;  %v18661_v17 = vld [vmem:[#allocation94_spill] sm:$0xff] }
 0x305   :  { %10387 = vmatprep.subr.bf16.mxu0 %v18652_v56  ;;  %v16909_v54 = vand.u32 4294901760, %v16008_v6  ;;  %v18663_v56 = vand.u32 4294901760, %v15574_v52 }
 0x306   :  { %10417 = vmatpush3.bf16.msra.mxu1 %v15390_v63  ;;  %v8356_v63 = vpop.f32.mrb[26].mxu0 }
 0x307   :  { %10419 = vmatprep.subr.bf16.mxu1 %v18584_v53  ;;  %v8357_v53 = vpop.f32.mrb[27].mxu0 }
 0x308   :  { %10389 = vmatpush3.bf16.msra.mxu0 %v18653_v37  ;;  %v8358_v47 = vadd.f32 %v8357_v53, %v8356_v63  ;;  %v6655_v37 = vsub.f32 %v15574_v52, %v18663_v56  ;;  %v18664_v53 = vand.u32 4294901760, %v15587_v61 }
 0x309   :  { %10391 = vmatprep.subr.bf16.mxu0 %v18655_v5 }
 0x30a   :  { %10421 = vmatpush3.bf16.msra.mxu1 %v18604_v59  ;;  %v18659_v59 = vand.u32 4294901760, %v15557_v55  ;;  %v4425_v5 = vadd.f32 %v8358_v47, %v4287_v25  ;;  %v6774_v50 = vsub.f32 %v15587_v61, %v18664_v53  ;;  %v18667_v25 = vand.u32 4294901760, %v15495_v4 }
 0x30b   :  { %10423 = vmatprep.subr.bf16.mxu1 %v18609_v1  ;;  %v18673_v53 = vand.u32 4294901760, %v15628_v45 }
 0x30c   :  { %10393 = vmatpush3.bf16.msra.mxu0 %v18656_v57  ;;  %v6767_v1 = vsub.f32 %v15557_v55, %v18659_v59  ;;  %v18665_v59 = vand.u32 4294901760, %v15592_v58 }
 0x30d   :  { %10395 = vmatprep.subr.bf16.mxu0 %v18657_v7  ;;  %v6761_v7 = vand.u32 4294901760, %v6760_v16  ;;  %v18669_v16 = vld [vmem:[#allocation50_spill] sm:$0xff] }
 0x30e   :  { %10425 = vmatpush3.bf16.msra.mxu1 %v15446_v26  ;;  %v8392_v26 = vpop.f32.mrb[27].mxu1  ;;  %v6768_v63 = vand.u32 4294901760, %v6767_v1 }
 0x30f   :  { %10427 = vmatprep.subr.bf16.mxu1 %v15462_v10  ;;  %v6648_v10 = vsub.f32 %v15569_v2, %v18662_v11  ;;  %v8393_v57 = vadd.f32 %v8392_v26, %v8391_v9  ;;  %v6656_v9 = vand.u32 4294901760, %v6655_v37  ;;  %v18670_v26 = vand.u32 4294901760, %v15600_v14 }
 0x310   :  { %10397 = vmatpush3.bf16.msra.mxu0 %v18660_v49  ;;  %v6781_v49 = vsub.f32 %v15592_v58, %v18665_v59  ;;  %v6795_v59 = vsub.f32 %v15628_v45, %v18673_v53  ;;  %v6775_v37 = vand.u32 4294901760, %v6774_v50  ;;  %v18681_v53 = vand.u32 4294901760, %v18680_v51 }
 0x311   :  { %10399 = vmatprep.subr.bf16.mxu0 %v18661_v17  ;;  %v18666_v17 = vld [vmem:[#allocation49_spill] sm:$0xff]  ;;  %v16037_v11 = vadd.f32 %v8393_v57, %v4425_v5  ;;  %v6649_v1 = vand.u32 4294901760, %v6648_v10  ;;  %v6662_v56 = vsub.f32 %v15600_v14, %v18670_v26  ;;  %v18671_v5 = vand.u32 4294901760, %v15605_v15 }
 0x312   :  { %10429 = vmatpush3.bf16.msra.mxu1 %v18632_v33  ;;  %v18668_v33 = vand.u32 4294901760, %v15497_v44  ;;  %v18672_v44 = vand.u32 4294901760, %v15613_v3  ;;  %v10470_v10 = vpack.c.bf16 %v6768_v63, %v6761_v7 }
 0x313   :  { %10431 = vmatprep.subr.bf16.mxu1 %v18634_v23  ;;  %v6631_v23 = vsub.f32 %v16008_v6, %v16909_v54  ;;  %v6669_v4 = vsub.f32 %v15605_v15, %v18671_v5  ;;  %v6663_v7 = vand.u32 4294901760, %v6662_v56  ;;  %v18686_v56 = vld [vmem:[#allocation72_spill] sm:$0xff] }
 0x314   :  { %10401 = vmatpush3.bf16.msra.mxu0 %v18666_v17  ;;  %v16043_v47 = vpack.c.bf16 %v18668_v33, %v18667_v25  ;;  %v6788_v57 = vsub.f32 %v15613_v3, %v18672_v44  ;;  %v6782_v17 = vand.u32 4294901760, %v6781_v49  ;;  %v18674_v25 = vld [vmem:[#allocation17_spill] sm:$0xff]  ;;  %v18675_v33 = vand.u32 4294901760, %v15507_v22  ;;  %v18678_v44 = vld [vmem:[#allocation66_spill] sm:$0xff] }
 0x315   :  { %10403 = vmatprep.subr.bf16.mxu0 %v18669_v16  ;;  %v18676_v16 = vld [vmem:[#allocation26_spill] sm:$0xff]  ;;  %v6632_v5 = vand.u32 4294901760, %v6631_v23  ;;  %v18679_v54 = vand.u32 4294901760, %v18678_v44  ;;  %v6670_v63 = vand.u32 4294901760, %v6669_v4  ;;  %v6796_v22 = vand.u32 4294901760, %v6795_v59 }
 0x316   :  { %10433 = vmatpush3.bf16.msra.mxu1 %v15486_v38  ;;  %v18677_v26 = vand.u32 4294901760, %v18676_v16  ;;  %v6789_v50 = vand.u32 4294901760, %v6788_v57  ;;  %v18682_v49 = vand.u32 4294901760, %v15633_v34  ;;  %v18683_v23 = vand.u32 4294901760, %v15645_v13  ;;  %v18688_v57 = vld [vmem:[#allocation36_spill] sm:$0xff] }
 0x317   :  { %10435 = vmatprep.subr.bf16.mxu1 %v15493_v31  ;;  %v16075_v43 = vpack.c.bf16 %v18681_v53, %v18679_v54  ;;  %v10472_v31 = vpack.c.bf16 %v6656_v9, %v6649_v1  ;;  %v10474_v51 = vpack.c.bf16 %v6782_v17, %v6775_v37  ;;  %v18684_v54 = vand.u32 4294901760, %v15677_v60  ;;  %v18692_v37 = vld [vmem:[#allocation84_spill] sm:$0xff] }
 0x318   :  { %10405 = vmatpush3.bf16.msra.mxu0 %v18674_v25  ;;  %v16068_v38 = vpack.c.bf16 %v18677_v26, %v18675_v33  ;;  %v6676_v25 = vsub.f32 %v15633_v34, %v18682_v49  ;;  %v6683_v33 = vsub.f32 %v15645_v13, %v18683_v23  ;;  %v18687_v4 = vand.u32 4294901760, %v18686_v56  ;;  %v18690_v26 = vld [vmem:[#allocation20_spill] sm:$0xff] }
 0x319   :  { %10439 = vmatprep.subr.bf16.mxu0 %v16043_v47  ;;  %v6802_v1 = vsub.f32 %v15677_v60, %v18684_v54  ;;  %v18689_v59 = vand.u32 4294901760, %v18688_v57  ;;  %v18691_v44 = vand.u32 4294901760, %v18690_v26  ;;  %v18693_v17 = vand.u32 4294901760, %v18692_v37  ;;  %v18694_v53 = vld [vmem:[#allocation88_spill] sm:$0xff]  ;;  %v18696_v54 = vld [vmem:[#allocation46_spill] sm:$0xff] }
 0x31a   :  { %10437 = vmatpush3.bf16.msra.mxu1 %v15515_v30  ;;  %v18685_v30 = vand.u32 4294901760, %v15692_v12  ;;  %v18695_v49 = vand.u32 4294901760, %v18694_v53  ;;  %v10478_v57 = vpack.c.bf16 %v6796_v22, %v6789_v50  ;;  %v18699_v37 = vand.u32 4294901760, %v18698_v46 }
 0x31b   :  { %6423 = vmatmul.mubr.f32.vlgmr.msra.gmra.mrb[40].mxu0 %v15427_v42  ;;  %10471 = vmatprep.subr.bf16.mxu1 %v10470_v10  ;;  %v16096_v16 = vpack.c.bf16 %v18689_v59, %v18687_v4  ;;  %v6690_v10 = vsub.f32 %v18690_v26, %v18691_v44  ;;  %v10476_v4 = vpack.c.bf16 %v6670_v63, %v6663_v7  ;;  %v6677_v59 = vand.u32 4294901760, %v6676_v25  ;;  %v18703_v63 = vld [vmem:[#allocation52_spill] sm:$0xff]  ;;  %v18705_v25 = vld [vmem:[#allocation97_spill] sm:$0xff] }
 0x31c   :  { %v6809_v9 = vsub.f32 %v15692_v12, %v18685_v30  ;;  %10441 = vmatpush3.bf16.msra.mxu0 %v16068_v38  ;;  %6633 = vmatprep.mubr.f32.mxu0 %v6632_v5  ;;  %v16107_v23 = vpack.c.bf16 %v18695_v49, %v18693_v17  ;;  %v18697_v30 = vand.u32 4294901760, %v18696_v54  ;;  %v6684_v44 = vand.u32 4294901760, %v6683_v33 }
 0x31d   :  { %10443 = vmatprep.subr.bf16.mxu0 %v16075_v43  ;;  %6527 = vmatmul.mubr.f32.vlgmr.msra.gmra.mrb[40].mxu1 %v15427_v42  ;;  %v6803_v5 = vand.u32 4294901760, %v6802_v1  ;;  %v6816_v53 = vsub.f32 %v18698_v46, %v18699_v37  ;;  %v18700_v17 = vand.u32 4294901760, %v15749_v39  ;;  %v18704_v50 = vand.u32 4294901760, %v18703_v63 }
 0x31e   :  { %v6697_v56 = vsub.f32 %v18696_v54, %v18697_v30  ;;  %10473 = vmatpush3.bf16.msra.mxu1 %v10472_v31  ;;  %6869 = vmatprep.mubr.f32.mxu1 %v16001_v19  ;;  %v6810_v42 = vand.u32 4294901760, %v6809_v9  ;;  %v18701_v31 = vld [vmem:[#allocation45_spill] sm:$0xff]  ;;  %v18706_v33 = vand.u32 4294901760, %v18705_v25  ;;  %v6691_v30 = vand.u32 4294901760, %v6690_v10 }
 0x31f   :  { %10475 = vmatprep.subr.bf16.mxu1 %v10474_v51  ;;  %v6823_v49 = vsub.f32 %v15749_v39, %v18700_v17  ;;  %v18702_v7 = vand.u32 4294901760, %v18701_v31  ;;  %v18707_v51 = vld [vmem:[#allocation16_spill] sm:$0xff]  ;;  %v18709_v17 = vand.u32 4294901760, %v15764_v0  ;;  %v18710_v31 = vand.u32 4294901760, %v15769_v36 }
 0x320   :  { %10445 = vmatpush3.bf16.msra.mxu0 %v16096_v16  ;;  %v18708_v1 = vand.u32 4294901760, %v18707_v51  ;;  %v6698_v37 = vand.u32 4294901760, %v6697_v56  ;;  %v10480_v25 = vpack.c.bf16 %v6684_v44, %v6677_v59  ;;  %v10482_v56 = vpack.c.bf16 %v6810_v42, %v6803_v5  ;;  %v18720_v44 = vld [vmem:[#allocation82_spill] sm:$0xff] }
 0x321   :  { %v16124_v22 = vpack.c.bf16 %v18704_v50, %v18702_v7  ;;  %10447 = vmatprep.subr.bf16.mxu0 %v16107_v23  ;;  %v6704_v41 = vsub.f32 %v15764_v0, %v18709_v17  ;;  %v6711_v63 = vsub.f32 %v15769_v36, %v18710_v31  ;;  %v18711_v7 = vand.u32 4294901760, %v15798_v8  ;;  %v18714_v31 = vld [vmem:[#allocation23_spill] sm:$0xff] }
 0x322   :  { %v16130_v9 = vpack.c.bf16 %v18708_v1, %v18706_v33  ;;  %10477 = vmatpush3.bf16.msra.mxu1 %v10476_v4  ;;  %v18712_v33 = vld [vmem:[#allocation63_spill] sm:$0xff]  ;;  %v6817_v1 = vand.u32 4294901760, %v6816_v53  ;;  %v6824_v48 = vand.u32 4294901760, %v6823_v49  ;;  %v480_v17 = vcombine.low %v15986_v28, %v15989_v24  ;;  %v18718_v4 = vld [vmem:[#allocation61_spill] sm:$0xff]  ;;  %v18722_v53 = vld [vmem:[#allocation64_spill] sm:$0xff] }
 0x323   :  { %v6830_v50 = vsub.f32 %v15798_v8, %v18711_v7  ;;  %v18713_v51 = vand.u32 4294901760, %v18712_v33  ;;  %10479 = vmatprep.subr.bf16.mxu1 %v10478_v57  ;;  %v18715_v19 = vand.u32 4294901760, %v18714_v31  ;;  %v18716_v36 = vld [vmem:[#allocation55_spill] sm:$0xff]  ;;  %v18719_v59 = vand.u32 4294901760, %v18718_v4 }
 0x324   :  { %10449 = vmatpush3.bf16.msra.mxu0 %v16124_v22  ;;  %v18717_v0 = vand.u32 4294901760, %v18716_v36  ;;  %v18721_v8 = vand.u32 4294901760, %v18720_v44  ;;  %v10484_v57 = vpack.c.bf16 %v6698_v37, %v6691_v30  ;;  %v6705_v5 = vand.u32 4294901760, %v6704_v41 }
 0x325   :  { %v6837_v10 = vsub.f32 %v18712_v33, %v18713_v51  ;;  %10451 = vmatprep.subr.bf16.mxu0 %v16130_v9  ;;  %v6712_v42 = vand.u32 4294901760, %v6711_v63  ;;  %v6831_v28 = vand.u32 4294901760, %v6830_v50  ;;  %v18723_v49 = vand.u32 4294901760, %v18722_v53  ;;  %v18728_v63 = vld [vmem:[#allocation70_spill] sm:$0xff] }
 0x326   :  { %v16152_v7 = vpack.c.bf16 %v18717_v0, %v18715_v19  ;;  %v16158_v51 = vpack.c.bf16 %v18721_v8, %v18719_v59  ;;  %10481 = vmatpush3.bf16.msra.mxu1 %v10480_v25  ;;  %v18724_v0 = vld [vmem:[#allocation65_spill] sm:$0xff]  ;;  %v18726_v4 = vand.u32 4294901760, %v15864_v29  ;;  %v10486_v59 = vpack.c.bf16 %v6824_v48, %v6817_v1  ;;  %v18730_v25 = vld [vmem:[#allocation32_spill] sm:$0xff] }
 0x327   :  { %v6838_v24 = vand.u32 4294901760, %v6837_v10  ;;  %v6718_v36 = vsub.f32 %v18722_v53, %v18723_v49  ;;  %v18725_v19 = vand.u32 4294901760, %v18724_v0  ;;  %10483 = vmatprep.subr.bf16.mxu1 %v10482_v56  ;;  %v16170_v30 = vand.u32 4294901760, %v480_v17  ;;  %v18732_v49 = vld [vmem:[#allocation22_spill] sm:$0xff]  ;;  %v18734_v56 = vld [vmem:[#allocation40_spill] sm:$0xff] }
 0x328   :  { %v6844_v8 = vsub.f32 %v15864_v29, %v18726_v4  ;;  %v18727_v41 = vand.u32 4294901760, %v15869_v21  ;;  %10453 = vmatpush3.bf16.msra.mxu0 %v16152_v7  ;;  %v18729_v50 = vand.u32 4294901760, %v18728_v63  ;;  %v18731_v10 = vand.u32 4294901760, %v18730_v25 }
 0x329   :  { %v6725_v31 = vsub.f32 %v18724_v0, %v18725_v19  ;;  %10455 = vmatprep.subr.bf16.mxu0 %v16158_v51  ;;  %v18733_v19 = vand.u32 4294901760, %v18732_v49  ;;  %v18735_v48 = vand.u32 4294901760, %v18734_v56  ;;  %v10488_v4 = vpack.c.bf16 %v6712_v42, %v6705_v5 }
 0x32a   :  { %v6851_v37 = vsub.f32 %v15869_v21, %v18727_v41  ;;  %v16180_v44 = vpack.c.bf16 %v18731_v10, %v18729_v50  ;;  %v18736_v29 = vand.u32 4294901760, %v15880_v62  ;;  %v18737_v21 = vand.u32 4294901760, %v15885_v27  ;;  %10485 = vmatpush3.bf16.msra.mxu1 %v10484_v57 }
 0x32b   :  { %v16187_v1 = vpack.c.bf16 %v18735_v48, %v18733_v19  ;;  %v10490_v50 = vpack.c.bf16 %v6838_v24, %v6831_v28  ;;  %v6719_v25 = vand.u32 4294901760, %v6718_v36  ;;  %v6726_v10 = vand.u32 4294901760, %v6725_v31  ;;  %10487 = vmatprep.subr.bf16.mxu1 %v10486_v59  ;;  %v18742_v28 = vld [vmem:[#allocation47_spill] sm:$0xff] }
 0x32c   :  { %v6732_v41 = vsub.f32 %v15880_v62, %v18736_v29  ;;  %v6739_v63 = vsub.f32 %v15885_v27, %v18737_v21  ;;  %v6845_v0 = vand.u32 4294901760, %v6844_v8  ;;  %v16196_v49 = vsub.f32 %v480_v17, %v16170_v30  ;;  %10457 = vmatpush3.bf16.msra.mxu0 %v16180_v44  ;;  %v18740_v21 = vld [vmem:[#allocation69_spill] sm:$0xff]  ;;  %v18744_v17 = vld [vmem:[#allocation18_spill] sm:$0xff] }
 0x32d   :  { %v6852_v19 = vand.u32 4294901760, %v6851_v37  ;;  %v18738_v5 = vand.u32 4294901760, %v15894_v18  ;;  %v18739_v29 = vand.u32 4294901760, %v15906_v20  ;;  %v18741_v57 = vand.u32 4294901760, %v18740_v21  ;;  %10459 = vmatprep.subr.bf16.mxu0 %v16187_v1  ;;  %v18746_v8 = vld [vmem:[#allocation62_spill] sm:$0xff] }
 0x32e   :  { %v18743_v24 = vand.u32 4294901760, %v18742_v28  ;;  %v18745_v31 = vand.u32 4294901760, %v18744_v17  ;;  %v18747_v59 = vand.u32 4294901760, %v18746_v8  ;;  %v6733_v48 = vand.u32 4294901760, %v6732_v41  ;;  %10489 = vmatpush3.bf16.msra.mxu1 %v10488_v4  ;;  %v18750_v4 = vld [vmem:[#allocation78_spill] sm:$0xff] }
 0x32f   :  { %v6858_v42 = vsub.f32 %v15894_v18, %v18738_v5  ;;  %v6865_v56 = vsub.f32 %v15906_v20, %v18739_v29  ;;  %v6740_v5 = vand.u32 4294901760, %v6739_v63  ;;  %v8426_v18 = vpop.f32.mrb[28].mxu0  ;;  %v10492_v29 = vpack.c.bf16 %v6726_v10, %v6719_v25  ;;  %10491 = vmatprep.subr.bf16.mxu1 %v10490_v50  ;;  %v18752_v25 = vld [vmem:[#allocation60_spill] sm:$0xff] }
 0x330   :  { %v16209_v36 = vpack.c.bf16 %v18743_v24, %v18741_v57  ;;  %v16216_v37 = vpack.c.bf16 %v18747_v59, %v18745_v31  ;;  %v18748_v20 = vand.u32 4294901760, %v15918_v32  ;;  %v18749_v57 = vand.u32 4294901760, %v15923_v40  ;;  %v8427_v24 = vpop.f32.mrb[29].mxu0 }
 0x331   :  { %v10494_v8 = vpack.c.bf16 %v6852_v19, %v6845_v0  ;;  %v6859_v31 = vand.u32 4294901760, %v6858_v42  ;;  %v6866_v59 = vand.u32 4294901760, %v6865_v56  ;;  %v8428_v41 = vadd.f32 %v8427_v24, %v8426_v18 }
 0x332   :  { %v6746_v21 = vsub.f32 %v15918_v32, %v18748_v20  ;;  %v6753_v28 = vsub.f32 %v15923_v40, %v18749_v57  ;;  %10461 = vmatpush3.bf16.msra.mxu0 %v16209_v36  ;;  %v18751_v63 = vand.u32 4294901760, %v18750_v4  ;;  %v18753_v10 = vand.u32 4294901760, %v18752_v25  ;;  %v8461_v20 = vpop.f32.mrb[28].mxu1  ;;  %v18754_v40 = vld [vmem:[#allocation39_spill] sm:$0xff]  ;;  %10493 = vmatpush3.bf16.msra.mxu1 %v10492_v29 }
 0x333   :  { %10463 = vmatprep.subr.bf16.mxu0 %v16216_v37  ;;  %v8462_v57 = vpop.f32.mrb[29].mxu1  ;;  %v18755_v50 = vand.u32 4294901760, %v18754_v40  ;;  %v18756_v32 = vld [vmem:[#allocation19_spill] sm:$0xff]  ;;  %v10496_v19 = vpack.c.bf16 %v6740_v5, %v6733_v48  ;;  %v4701_v18 = vadd.f32 %v8428_v41, %v16037_v11  ;;  %v18758_v4 = vand.u32 4294901760, %v16196_v49  ;;  %10495 = vmatprep.subr.bf16.mxu1 %v10494_v8 }
 0x334   :  { %v16230_v27 = vpack.c.bf16 %v18753_v10, %v18751_v63  ;;  %v18757_v17 = vand.u32 4294901760, %v18756_v32  ;;  %v8463_v42 = vadd.f32 %v8462_v57, %v8461_v20  ;;  %v6747_v56 = vand.u32 4294901760, %v6746_v21  ;;  %v18759_v10 = vld [vmem:[#allocation73_spill] sm:$0xff] }
 0x335   :  { %v6754_v24 = vand.u32 4294901760, %v6753_v28  ;;  %v6637_v63 = vsub.f32 %v16196_v49, %v18758_v4  ;;  %v10498_v25 = vpack.c.bf16 %v6866_v59, %v6859_v31  ;;  %v18760_v32 = vand.u32 4294901760, %v18759_v10  ;;  %v18771_v20 = vld [vmem:[#allocation81_spill] sm:$0xff] }
 0x336   :  { %v16237_v0 = vpack.c.bf16 %v18757_v17, %v18755_v50  ;;  %10465 = vmatpush3.bf16.msra.mxu0 %v16230_v27  ;;  %v4805_v40 = vadd.f32 %v8463_v42, %v4701_v18  ;;  %v18761_v17 = vld [vmem:[#allocation44_spill] sm:$0xff]  ;;  %v10502_v11 = vpack.c.bf16 %v15557_v55, %v15552_v35  ;;  %10497 = vmatpush3.bf16.msra.mxu1 %v10496_v19  ;;  %v18779_v10 = vand.u32 4294901760, %v16196_v49 }
 0x337   :  { %v18762_v50 = vand.u32 4294901760, %v18761_v17  ;;  %v10500_v5 = vpack.c.bf16 %v6754_v24, %v6747_v56  ;;  %v6638_v29 = vand.u32 4294901760, %v6637_v63  ;;  %10499 = vmatprep.subr.bf16.mxu1 %v10498_v25  ;;  %v10504_v21 = vpack.c.bf16 %v15574_v52, %v15569_v2  ;;  %v18773_v56 = vld [vmem:[#allocation42_spill] sm:$0xff]  ;;  %v18774_v24 = vld [vmem:[#allocation67_spill] sm:$0xff]  ;;  %v18776_v63 = vld [vmem:[#allocation68_spill] sm:$0xff] }
 0x338   :  { %10467 = vmatprep.subr.bf16.mxu0 %v16237_v0  ;;  %v10506_v28 = vpack.c.bf16 %v15592_v58, %v15587_v61  ;;  %v10508_v35 = vpack.c.bf16 %v15605_v15, %v15600_v14  ;;  %v10510_v55 = vpack.c.bf16 %v15628_v45, %v15613_v3  ;;  %v18763_v2 = vand.u32 4294901760, %v16008_v6  ;;  %v18765_v14 = vld [vmem:[#allocation53_spill] sm:$0xff]  ;;  %v18766_v3 = vld [vmem:[#allocation34_spill] sm:$0xff]  ;;  %v18777_v25 = vld [vmem:[#allocation56_spill] sm:$0xff] }
 0x339   :  { %v16248_v48 = vpack.c.bf16 %v18762_v50, %v18760_v32  ;;  %v10512_v52 = vpack.c.bf16 %v15645_v13, %v15633_v34  ;;  %v10514_v61 = vpack.c.bf16 %v15692_v12, %v15677_v60  ;;  %v10516_v45 = vpack.c.bf16 %v18696_v54, %v18690_v26  ;;  %v18764_v34 = vld [vmem:[#allocation51_spill] sm:$0xff]  ;;  %v18767_v60 = vld [vmem:[#allocation65_spill] sm:$0xff]  ;;  %v18781_v17 = vld [vmem:[#allocation38_spill] sm:$0xff] }
 0x33a   :  { %10501 = vmatpush3.bf16.msra.mxu1 %v10500_v5  ;;  %v10518_v58 = vpack.c.bf16 %v15749_v39, %v18698_v46  ;;  %v10520_v15 = vpack.c.bf16 %v18765_v14, %v18764_v34  ;;  %v10522_v13 = vpack.c.bf16 %v18712_v33, %v18766_v3  ;;  %v10524_v12 = vpack.c.bf16 %v18767_v60, %v18722_v53  ;;  %v18768_v39 = vld [vmem:[#allocation15_spill] sm:$0xff]  ;;  %v18769_v46 = vld [vmem:[#allocation21_spill] sm:$0xff] }
 0x33b   :  { %10469 = vmatpush3.bf16.msra.mxu0 %v16248_v48  ;;  %10535 = vmatprep.subr.bf16.mxu1 %v16043_v47  ;;  %v18770_v33 = vld [vmem:[#allocation33_spill] sm:$0xff]  ;;  %v18772_v53 = vld [vmem:[#allocation83_spill] sm:$0xff]  ;;  %v10532_v4 = vpack.c.bf16 %v18774_v24, %v18773_v56 }
 0x33c   :  { %10503 = vmatprep.subr.bf16.mxu0 %v10502_v11  ;;  %v10528_v31 = vpack.c.bf16 %v18770_v33, %v15880_v62  ;;  %v10530_v57 = vpack.c.bf16 %v18772_v53, %v18771_v20  ;;  %v18775_v62 = vld [vmem:[#allocation59_spill] sm:$0xff] }
 0x33d   :  { %6871 = vmatmul.mubr.f32.vlgmr.msra.gmra.mrb[42].mxu1 %v16170_v30  ;;  %v18780_v32 = vld [vmem:[#allocation95_spill] sm:$0xff] }
 0x33e   :  { %6639 = vmatmul.mubr.f32.vlgmr.msra.gmra.mrb[42].mxu0 %v6638_v29  ;;  %10537 = vmatpush3.bf16.msra.mxu1 %v16068_v38  ;;  %v18783_v50 = vld [vmem:[#allocation27_spill] sm:$0xff]  ;;  %v18789_v29 = vld [vmem:[#allocation54_spill] sm:$0xff] }
 0x33f   :  { %10505 = vmatpush3.bf16.msra.mxu0 %v10504_v21  ;;  %7006 = vmatprep.mubr.f32.mxu0 %v16008_v6  ;;  %v10526_v6 = vpack.c.bf16 %v18769_v46, %v18768_v39 }
 0x340   :  { %10507 = vmatprep.subr.bf16.mxu0 %v10506_v28  ;;  %7113 = vmatprep.mubr.f32.mxu1 %v18763_v2 }
 0x341   :  { %10539 = vmatprep.subr.bf16.mxu1 %v16075_v43 }
 0x342   :  { %10541 = vmatpush3.bf16.msra.mxu1 %v16096_v16  ;;  %v8496_v26 = vpop.f32.mrb[30].mxu0 }
 0x343   :  { %10509 = vmatpush3.bf16.msra.mxu0 %v10508_v35  ;;  %10543 = vmatprep.subr.bf16.mxu1 %v16107_v23  ;;  %v8497_v54 = vpop.f32.mrb[31].mxu0  ;;  %v8531_v59 = vpop.f32.mrb[30].mxu1 }
 0x344   :  { %10511 = vmatprep.subr.bf16.mxu0 %v10510_v55  ;;  %v8498_v8 = vadd.f32 %v8497_v54, %v8496_v26  ;;  %v8532_v41 = vpop.f32.mrb[31].mxu1 }
 0x345   :  { %v8533_v18 = vadd.f32 %v8532_v41, %v8531_v59 }
 0x346   :  { %10545 = vmatpush3.bf16.msra.mxu1 %v16124_v22  ;;  %v4917_v19 = vadd.f32 %v8498_v8, %v4805_v40  ;;  %v18778_v40 = vld [vmem:[#allocation93_spill] sm:$0xff] }
 0x347   :  { %10513 = vmatpush3.bf16.msra.mxu0 %v10512_v52  ;;  %10547 = vmatprep.subr.bf16.mxu1 %v16130_v9 }
 0x348   :  { %10515 = vmatprep.subr.bf16.mxu0 %v10514_v61  ;;  %v5149_v42 = vadd.f32 %v8533_v18, %v4917_v19 }
 0x34a   :  { %10549 = vmatpush3.bf16.msra.mxu1 %v16152_v7 }
 0x34b   :  { %10517 = vmatpush3.bf16.msra.mxu0 %v10516_v45  ;;  %10551 = vmatprep.subr.bf16.mxu1 %v16158_v51 }
 0x34c   :  { %10519 = vmatprep.subr.bf16.mxu0 %v10518_v58 }
 0x34e   :  { %10553 = vmatpush3.bf16.msra.mxu1 %v16180_v44 }
 0x34f   :  { %10521 = vmatpush3.bf16.msra.mxu0 %v10520_v15  ;;  %10555 = vmatprep.subr.bf16.mxu1 %v16187_v1 }
 0x350   :  { %10523 = vmatprep.subr.bf16.mxu0 %v10522_v13 }
 0x352   :  { %10557 = vmatpush3.bf16.msra.mxu1 %v16209_v36 }
 0x353   :  { %10525 = vmatpush3.bf16.msra.mxu0 %v10524_v12  ;;  %10559 = vmatprep.subr.bf16.mxu1 %v16216_v37 }
 0x354   :  { %10527 = vmatprep.subr.bf16.mxu0 %v10526_v6 }
 0x356   :  { %10561 = vmatpush3.bf16.msra.mxu1 %v16230_v27 }
 0x357   :  { %10529 = vmatpush3.bf16.msra.mxu0 %v10528_v31  ;;  %10563 = vmatprep.subr.bf16.mxu1 %v16237_v0 }
 0x358   :  { %10531 = vmatprep.subr.bf16.mxu0 %v10530_v57 }
 0x35a   :  { %10565 = vmatpush3.bf16.msra.mxu1 %v16248_v48 }
 0x35b   :  { %10533 = vmatpush3.bf16.msra.mxu0 %v10532_v4  ;;  %10599 = vmatprep.subr.bf16.mxu1 %v16043_v47  ;;  %v18782_v47 = vld [vmem:[#allocation31_spill] sm:$0xff] }
 0x35c   :  { %10567 = vmatprep.subr.bf16.mxu0 %v18775_v62 }
 0x35d   :  { %7117 = vmatmul.mubr.f32.vlgmr.msra.gmra.mrb[44].mxu1 %v18779_v10 }
 0x35e   :  { %7009 = vmatmul.mubr.f32.vlgmr.msra.gmra.mrb[44].mxu0 %v16196_v49  ;;  %10601 = vmatpush3.bf16.msra.mxu1 %v16068_v38  ;;  %v18784_v38 = vld [vmem:[#allocation25_spill] sm:$0xff]  ;;  %v18785_v49 = vld [vmem:[#allocation98_spill] sm:$0xff] }
 0x35f   :  { %10569 = vmatpush3.bf16.msra.mxu0 %v18776_v63  ;;  %7283 = vmatprep.mubr.f32.mxu0 %v18777_v25 }
 0x360   :  { %10571 = vmatprep.subr.bf16.mxu0 %v18778_v40  ;;  %7387 = vmatprep.mubr.f32.mxu1 %v18777_v25 }
 0x361   :  { %10603 = vmatprep.subr.bf16.mxu1 %v16075_v43  ;;  %v18786_v43 = vld [vmem:[#allocation90_spill] sm:$0xff] }
 0x362   :  { %10605 = vmatpush3.bf16.msra.mxu1 %v16096_v16  ;;  %v18787_v16 = vld [vmem:[#allocation75_spill] sm:$0xff] }
 0x363   :  { %10573 = vmatpush3.bf16.msra.mxu0 %v18780_v32  ;;  %10607 = vmatprep.subr.bf16.mxu1 %v16107_v23 }
 0x364   :  { %10575 = vmatprep.subr.bf16.mxu0 %v18781_v17 }
 0x366   :  { %10609 = vmatpush3.bf16.msra.mxu1 %v16124_v22  ;;  %v8566_v23 = vpop.f32.mrb[32].mxu0 }
 0x367   :  { %10577 = vmatpush3.bf16.msra.mxu0 %v18782_v47  ;;  %10611 = vmatprep.subr.bf16.mxu1 %v16130_v9  ;;  %v8567_v11 = vpop.f32.mrb[33].mxu0  ;;  %v18788_v9 = vld [vmem:[#allocation87_spill] sm:$0xff] }
 0x368   :  { %10579 = vmatprep.subr.bf16.mxu0 %v18783_v50  ;;  %v8568_v22 = vadd.f32 %v8567_v11, %v8566_v23 }
 0x369   :  { %v8601_v5 = vpop.f32.mrb[32].mxu1 }
 0x36a   :  { %10613 = vmatpush3.bf16.msra.mxu1 %v16152_v7  ;;  %v8602_v21 = vpop.f32.mrb[33].mxu1  ;;  %v5287_v7 = vadd.f32 %v8568_v22, %v5149_v42 }
 0x36b   :  { %10581 = vmatpush3.bf16.msra.mxu0 %v18784_v38  ;;  %10615 = vmatprep.subr.bf16.mxu1 %v16158_v51  ;;  %v8603_v28 = vadd.f32 %v8602_v21, %v8601_v5  ;;  %v18790_v51 = vld [vmem:[#allocation96_spill] sm:$0xff] }
 0x36c   :  { %10583 = vmatprep.subr.bf16.mxu0 %v18785_v49 }
 0x36d   :  { %v5395_v35 = vadd.f32 %v8603_v28, %v5287_v7 }
 0x36e   :  { %10617 = vmatpush3.bf16.msra.mxu1 %v16180_v44  ;;  %v18791_v44 = vld [vmem:[#allocation28_spill] sm:$0xff] }
 0x36f   :  { %10585 = vmatpush3.bf16.msra.mxu0 %v18786_v43  ;;  %10619 = vmatprep.subr.bf16.mxu1 %v16187_v1  ;;  %v18792_v1 = vld [vmem:[#allocation12_spill] sm:$0xff] }
 0x370   :  { %10587 = vmatprep.subr.bf16.mxu0 %v18787_v16 }
 0x372   :  { %10621 = vmatpush3.bf16.msra.mxu1 %v16209_v36 }
 0x373   :  { %10589 = vmatpush3.bf16.msra.mxu0 %v18788_v9  ;;  %10623 = vmatprep.subr.bf16.mxu1 %v16216_v37 }
 0x374   :  { %10591 = vmatprep.subr.bf16.mxu0 %v18789_v29 }
 0x376   :  { %10625 = vmatpush3.bf16.msra.mxu1 %v16230_v27 }
 0x377   :  { %10593 = vmatpush3.bf16.msra.mxu0 %v18790_v51  ;;  %10627 = vmatprep.subr.bf16.mxu1 %v16237_v0 }
 0x378   :  { %10595 = vmatprep.subr.bf16.mxu0 %v18791_v44 }
 0x37a   :  { %10629 = vmatpush3.bf16.msra.mxu1 %v16248_v48 }
 0x37b   :  { %10597 = vmatpush3.bf16.msra.mxu0 %v18792_v1 }
 0x37d   :  { %7389 = vmatmul.mubr.f32.vlgmr.msra.gmra.mrb[46].mxu1 %v16170_v30 }
 0x37e   :  { %7285 = vmatmul.mubr.f32.vlgmr.msra.gmra.mrb[46].mxu0 %v16170_v30 }
 0x386   :  { %v8636_v36 = vpop.f32.mrb[34].mxu0 }
 0x387   :  { %v8637_v55 = vpop.f32.mrb[35].mxu0 }
 0x388   :  { %v8638_v37 = vadd.f32 %v8637_v55, %v8636_v36 }
 0x389   :  { %v8671_v2 = vpop.f32.mrb[34].mxu1 }
 0x38a   :  { %v8672_v52 = vpop.f32.mrb[35].mxu1  ;;  %v5563_v61 = vadd.f32 %v8638_v37, %v5395_v35 }
 0x38b   :  { %v8673_v45 = vadd.f32 %v8672_v52, %v8671_v2 }
 0x38d   :  { %v5667_v58 = vadd.f32 %v8673_v45, %v5563_v61 }
 0x3ab   :  { %v8706_v34 = vpop.f32.mrb[36].mxu0 }
 0x3ac   :  { %v8707_v27 = vpop.f32.mrb[37].mxu0  ;;  %v8741_v0 = vpop.f32.mrb[36].mxu1 }
 0x3ad   :  { %v8708_v14 = vadd.f32 %v8707_v27, %v8706_v34  ;;  %v8742_v15 = vpop.f32.mrb[37].mxu1 }
 0x3ae   :  { %v8743_v13 = vadd.f32 %v8742_v15, %v8741_v0 }
 0x3af   :  { %v5779_v3 = vadd.f32 %v8708_v14, %v5667_v58 }
 0x3b1   :  { %v6011_v48 = vadd.f32 %v8743_v13, %v5779_v3 }
 0x3ce   :  { %v8776_v60 = vpop.f32.mrb[38].mxu0 }
 0x3cf   :  { %v8777_v12 = vpop.f32.mrb[39].mxu0 }
 0x3d0   :  { %v8778_v39 = vadd.f32 %v8777_v12, %v8776_v60  ;;  %v8811_v30 = vpop.f32.mrb[38].mxu1 }
 0x3d1   :  { %v8812_v46 = vpop.f32.mrb[39].mxu1 }
 0x3d2   :  { %v6149_v6 = vadd.f32 %v8778_v39, %v6011_v48  ;;  %v8813_v26 = vadd.f32 %v8812_v46, %v8811_v30 }
 0x3d4   :  { %v6257_v54 = vadd.f32 %v8813_v26, %v6149_v6 }
 0x3ee   :  { %v8846_v8 = vpop.f32.mrb[40].mxu0 }
 0x3ef   :  { %v8847_v33 = vpop.f32.mrb[41].mxu0 }
 0x3f0   :  { %v8848_v31 = vadd.f32 %v8847_v33, %v8846_v8  ;;  %v8881_v59 = vpop.f32.mrb[40].mxu1 }
 0x3f1   :  { %v8882_v41 = vpop.f32.mrb[41].mxu1 }
 0x3f2   :  { %v6425_v20 = vadd.f32 %v8848_v31, %v6257_v54  ;;  %v8883_v53 = vadd.f32 %v8882_v41, %v8881_v59 }
 0x3f4   :  { %v6529_v57 = vadd.f32 %v8883_v53, %v6425_v20 }
 0x410   :  { %v8951_v56 = vpop.f32.mrb[42].mxu1 }
 0x411   :  { %v8916_v19 = vpop.f32.mrb[42].mxu0  ;;  %v8952_v24 = vpop.f32.mrb[43].mxu1 }
 0x412   :  { %v8917_v18 = vpop.f32.mrb[43].mxu0  ;;  %v8953_v62 = vadd.f32 %v8952_v24, %v8951_v56 }
 0x413   :  { %v8918_v42 = vadd.f32 %v8917_v18, %v8916_v19 }
 0x415   :  { %v6641_v4 = vadd.f32 %v8918_v42, %v6529_v57 }
 0x417   :  { %v6873_v63 = vadd.f32 %v8953_v62, %v6641_v4 }
 0x430   :  { %v9021_v32 = vpop.f32.mrb[44].mxu1 }
 0x431   :  { %v8986_v25 = vpop.f32.mrb[44].mxu0  ;;  %v9022_v17 = vpop.f32.mrb[45].mxu1 }
 0x432   :  { %v8987_v40 = vpop.f32.mrb[45].mxu0  ;;  %v9023_v50 = vadd.f32 %v9022_v17, %v9021_v32 }
 0x433   :  { %v8988_v10 = vadd.f32 %v8987_v40, %v8986_v25 }
 0x435   :  { %v7011_v47 = vadd.f32 %v8988_v10, %v6873_v63 }
 0x437   :  { %v7119_v38 = vadd.f32 %v9023_v50, %v7011_v47 }
 0x450   :  { %v9091_v23 = vpop.f32.mrb[46].mxu1 }
 0x451   :  { %v9056_v49 = vpop.f32.mrb[46].mxu0  ;;  %v9092_v11 = vpop.f32.mrb[47].mxu1 }
 0x452   :  { %v9057_v43 = vpop.f32.mrb[47].mxu0  ;;  %v9093_v9 = vadd.f32 %v9092_v11, %v9091_v23 }
 0x453   :  { %v9058_v16 = vadd.f32 %v9057_v43, %v9056_v49 }
 0x455   :  { %v7287_v22 = vadd.f32 %v9058_v16, %v7119_v38 }
 0x457   :  { %v7391_v5 = vadd.f32 %v9093_v9, %v7287_v22 }
 0x459   :  { %7394 = vst [vmem:[#allocation7] sm:$0xff] %v7391_v5 }
 0x45a   :  { %7399 = vsyncadd [#allocation4], 96  ;;  %s10718_s2 = smov [#allocation7]  }
 0x45b   :  { %s7400_s14 = sshll.u32 %s10718_s2, 4  ;;  %s7401_s14 = int_to_ptr.vmem [resolvable:$true] %s7400_s14 }
 0x45c   :  { %s10683_s15 = scalar_lea.vmem %s7401_s14, 32  ;;  %s10687_s16 = scalar_lea.vmem %s7401_s14, 128 }
 0x45d   :  { %p10684_p2 = scmp.ne.s32.totalorder %s7401_s14, %s10683_s15  ;;  %p10688_p3 = scmp.lt.s32.totalorder %s7401_s14, %s7401_s14 }
 0x45e   :  { %p10689_p4 = scmp.lt.s32.totalorder %s10687_s16, %s10683_s15 }
 0x460   :  { %p10690_p5 = por %p10689_p4, %p10688_p3 }
 0x462   :  { %p10691_p6 = pnand %p10690_p5, %p10684_p2 }
 0x464   :  { %10694 = shalt.err (!%p10691_p6)
}
 0x465   :  { %s10695_s19 = scalar_lea.hbm %s16360_s3, 32 }
 0x466   :  { %p10696_p7 = scmp.ne.s32.totalorder %s16360_s3, %s10695_s19  ;;  %p10699_p8 = scmp.lt.u32.totalorder %s10695_s19, %s16360_s3 }
 0x468   :  { %p10701_p9 = pnand %p10699_p8, %p10696_p7 }
 0x46a   :  { %10704 = shalt.err (!%p10701_p9)
}
 0x46b   :  { %s10719_s25 = smov 2  }
 0x46c   :  { %7406 = dma.vmem_to_hbm [thread:$0]  %s7401_s14, 32, %s16360_s3, [#allocation4], %s10713_s24, %s10713_s24, %s10719_s25  }
 0x46d   :  { %10709 = dma.done.wait [#allocation4], 128  }
 0x46e   :  { %10710 = vsyncadd [#allocation4], 4294967168 }
 0x46f   :  { %7410 = vsyncpa [#allocation3], 1 }
 0x470   :  { %7411 = vsyncpa [#allocation6], 1 }
 0x471   :  { %7412 = vsyncpa [#allocation4], 1 }

</bundles_post_ra>
